<compile_context>
chip_gen: v5e
topology: v5e:2x2
jax: 0.10.0
libtpu: 0.0.40
codegen_flags: <defaults>
</compile_context>

<pallas_src>
import functools

import jax
import jax.numpy as jnp
from jax.experimental import pallas as pl
from jax.experimental.pallas import tpu as pltpu

# Force full-precision f32 matmuls in the XLA reference (and everywhere) so the
# kernel-vs-reference comparison is not polluted by bf16 default matmuls.
jax.config.update("jax_default_matmul_precision", "highest")


# ---------------------------------------------------------------------------
# Wrapper-side constant packing: one f32 slab with all layer weights + static
# helper matrices, plus static (row, rows, cols) offsets per entry.
# ---------------------------------------------------------------------------
def _prep_constants(layers, n):
  n_layer = len(layers)
  placed = []      # (row_offset, array)
  meta = []        # per layer: dict name -> (row, r, c)  + nh / fo / last
  row = 0
  width = 0

  def _add(arr):
    nonlocal row, width
    arr = arr.astype(jnp.float32)
    r, c = arr.shape
    off = row
    row += -(-r // 8) * 8            # keep every entry 8-sublane aligned
    width = max(width, c)
    placed.append((off, arr))
    return (off, r, c)

  for li, lp in enumerate(layers):
    nh, f_in, fo = lp["w"].shape
    last = (li + 1 == n_layer)
    eye_h = jnp.eye(nh, dtype=jnp.float32)
    eye_n = jnp.eye(n, dtype=jnp.float32)
    ones_n = jnp.ones((n,), jnp.float32)

    # Projection for all heads as one lane-dense matmul: (f_in, nh*fo).
    w_packed = jnp.transpose(lp["w"], (1, 0, 2)).reshape(f_in, nh * fo)
    # Expanded attention vectors: column (hd, j) carries head hd's vector on
    # rows [hd*fo, (hd+1)*fo) for every j  ->  t @ a_src_exp gives (n, nh*n)
    # with entry [i, hd*n+j] = src_hd(i)   (resp. dst_hd(i) for a_dst_exp).
    a_src_exp = jnp.einsum("ho,hk,j->hokj", lp["a_src"][:, :, 0], eye_h,
                           ones_n).reshape(nh * fo, nh * n)
    a_dst_exp = jnp.einsum("ho,hk,j->hokj", lp["a_dst"][:, :, 0], eye_h,
                           ones_n).reshape(nh * fo, nh * n)
    sel = jnp.tile(eye_n, (1, nh))                               # (n, nh*n)
    selT = jnp.tile(eye_n, (nh, 1))                              # (nh*n, n)
    head_mask = jnp.kron(eye_h, jnp.ones((n, fo), jnp.float32))  # (nh*n, nh*fo)
    block_ones = jnp.kron(eye_h, jnp.ones((n, n), jnp.float32))  # (nh*n, nh*n)
    if last:
      bias = lp["bias"].reshape(1, fo)           # added after the head mean
      head_mean = jnp.tile(jnp.eye(fo, dtype=jnp.float32), (nh, 1)) / nh
    else:
      bias = jnp.tile(lp["bias"], nh).reshape(1, nh * fo)
      head_mean = None

    m = {"nh": nh, "fo": fo, "last": last}
    m["w"] = _add(w_packed)
    m["a_src"] = _add(a_src_exp)
    m["a_dst"] = _add(a_dst_exp)
    m["bias"] = _add(bias)
    m["sel"] = _add(sel)
    m["selT"] = _add(selT)
    m["head_mask"] = _add(head_mask)
    m["block_ones"] = _add(block_ones)
    if last:
      m["head_mean"] = _add(head_mean)
    meta.append(m)

  width = max(128, -(-width // 128) * 128)       # lane-pad the slab
  slab = jnp.zeros((row, width), jnp.float32)
  for off, arr in placed:
    slab = slab.at[off:off + arr.shape[0], :arr.shape[1]].set(arr)
  return slab, meta


# ---------------------------------------------------------------------------
# Pallas kernel: whole GAT stack for `nb` batch elements per grid step.
# ---------------------------------------------------------------------------
def _build_gat_kernel(meta, nb, n):
  def _ld(slab_ref, lm, key):
    off, r, c = lm[key]
    return slab_ref[off:off + r, 0:c]

  def kernel(x_ref, adj_ref, slab_ref, out_ref):
    hs = [x_ref[b] for b in range(nb)]            # activations stay in vregs
    adjs = [adj_ref[b] for b in range(nb)]

    for lm in meta:
      nh, fo, last = lm["nh"], lm["fo"], lm["last"]
      W = _ld(slab_ref, lm, "w")                  # (f_in, nh*fo)
      A_src = _ld(slab_ref, lm, "a_src")          # (nh*fo, nh*n)
      A_dst = _ld(slab_ref, lm, "a_dst")          # (nh*fo, nh*n)
      Bias = _ld(slab_ref, lm, "bias")            # (1, nh*fo) or (1, fo)
      Sel = _ld(slab_ref, lm, "sel")              # (n, nh*n)   [i,(hd,j)]=d(i==j)
      SelT = _ld(slab_ref, lm, "selT")            # (nh*n, n)
      HeadMask = _ld(slab_ref, lm, "head_mask")   # (nh*n, nh*fo) block diag 1s
      BlockOnes = _ld(slab_ref, lm, "block_ones")  # (nh*n, nh*n) block diag 1s
      HeadMean = _ld(slab_ref, lm, "head_mean") if last else None

      for b in range(nb):
        h, adj = hs[b], adjs[b]
        # Projection of every head: one lane-dense MXU matmul.
        hp = jnp.dot(h, W, preferred_element_type=jnp.float32)     # (n, nh*fo)
        t = jnp.tanh(hp)

        # Head-packed attention logits, lane = (head, neighbor).
        src = jnp.dot(t, A_src, preferred_element_type=jnp.float32)   # (n, nh*n)
        pdst = jnp.dot(t, A_dst, preferred_element_type=jnp.float32)  # [i,(hd,j)]=dst_hd(i)
        dst_flat = jnp.sum(pdst * Sel, axis=0, keepdims=True)         # [(hd,j)]=dst_hd(j)
        logits = src + dst_flat                                        # (n, nh*n)
        logits = jnp.maximum(logits, 0.2 * logits)                     # LeakyReLU(0.2)

        # Softmax over neighbours, all heads at once.  Max is taken over the
        # MASKED logits of the whole packed row (valid per head since it is a
        # per-row constant; tanh-bounded logits keep the cross-head spread
        # tiny), and the exp argument is clamped to <=0 so masked-out entries
        # can never produce inf*0 = NaN.
        adj_t = jnp.dot(adj, Sel, preferred_element_type=jnp.float32)  # head-tiled adj
        masked = jnp.where(adj_t > 0.0, logits, -1e30)
        mrow = jnp.max(masked, axis=-1, keepdims=True)
        e = jnp.exp(jnp.minimum(logits - mrow, 0.0)) * adj_t
        s = jnp.dot(e, BlockOnes, preferred_element_type=jnp.float32)  # per-head sums
        p = e / s                                                      # exact divide

        # Aggregation for all heads: out[i,(hd,o)] = sum_j p[i,(hd,j)] hp[j,(hd,o)]
        hp_blk = jnp.dot(SelT, hp,
                         preferred_element_type=jnp.float32) * HeadMask
        out = jnp.dot(p, hp_blk, preferred_element_type=jnp.float32)   # (n, nh*fo)

        if last:
          # Head mean + bias + log_softmax, fused epilogue.
          o = jnp.dot(out, HeadMean, preferred_element_type=jnp.float32) + Bias
          mx = jnp.max(o, axis=-1, keepdims=True)
          sh = o - mx
          lse = jnp.log(jnp.sum(jnp.exp(sh), axis=-1, keepdims=True))
          out_ref[b] = sh - lse
        else:
          o = out + Bias
          hs[b] = jnp.where(o > 0.0, o, jnp.exp(jnp.minimum(o, 0.0)) - 1.0)  # ELU

  return kernel


def _batch_per_block(bs):
  """v7x (2 TensorCores): 1 batch element per grid step so the 'parallel' axis
  splits across cores.  Single-TC v5e/v6e: fold the whole batch into one step."""
  try:
    kind = jax.devices()[0].device_kind.lower()
  except Exception:
    kind = ""
  multi_tc = ("v7" in kind) or ("7x" in kind)
  return 1 if (multi_tc and bs > 1) else bs


# ---------------------------------------------------------------------------
# Wrapper
# ---------------------------------------------------------------------------
def gat_pallas(x, adj, layers):
  """Fused multi-layer GAT: (bs, n, f_in0), (bs, n, n) -> (bs, n, n_class)."""
  bs, n, f_in0 = x.shape
  slab, meta = _prep_constants(layers, n)
  n_class = meta[-1]["fo"]

  nb = _batch_per_block(bs)
  grid = (bs // nb,)

  return pl.pallas_call(
      _build_gat_kernel(meta, nb, n),
      out_shape=jax.ShapeDtypeStruct((bs, n, n_class), jnp.float32),
      grid=grid,
      in_specs=[
          pl.BlockSpec((nb, n, f_in0), lambda i: (i, 0, 0)),   # x
          pl.BlockSpec((nb, n, n), lambda i: (i, 0, 0)),       # adj
          pl.BlockSpec(slab.shape, lambda i: (0, 0)),          # weight slab (fetched once)
      ],
      out_specs=pl.BlockSpec((nb, n, n_class), lambda i: (i, 0, 0)),
      compiler_params=pltpu.CompilerParams(
          dimension_semantics=("parallel",)),
  )(x, adj, slab)


def gat_forward(params, x, vertices, adj, use_vertex_feature=True):
  """GAT.forward (eval mode: dropout / attn_dropout are identity)."""
  if use_vertex_feature:
    # TODO(synk): the embedding gather stays in XLA glue; an in-kernel DMA
    # gather is not worth it at these sizes.
    vfeat = params["vertex_feature"][vertices]
    x = jnp.concatenate([x, vfeat], axis=2)
  return gat_pallas(x, adj, params["layers"])


# ---------------------------------------------------------------------------
# Pure-JAX reference (for correctness check)
# ---------------------------------------------------------------------------
def _gat_layer_ref(h, adj, w, a_src, a_dst, bias):
  h_prime = jnp.einsum("bnf,hfo->bhno", h, w)
  t = jnp.tanh(h_prime)
  attn_src = jnp.einsum("bhno,hoi->bhni", t, a_src)
  attn_dst = jnp.einsum("bhno,hoi->bhni", t, a_dst)
  attn = attn_src + jnp.swapaxes(attn_dst, -1, -2)
  attn = jnp.where(attn >= 0, attn, 0.2 * attn)
  attn = jnp.where(adj[:, None] > 0, attn, -jnp.inf)
  attn = jax.nn.softmax(attn, axis=-1)
  return jnp.einsum("bhnm,bhmo->bhno", attn, h_prime) + bias


def gat_forward_ref(params, x, vertices, adj, use_vertex_feature=True):
  if use_vertex_feature:
    x = jnp.concatenate([x, params["vertex_feature"][vertices]], axis=2)
  bs, n = adj.shape[:2]
  n_layer = len(params["layers"])
  for i, lp in enumerate(params["layers"]):
    x = _gat_layer_ref(x, adj, lp["w"], lp["a_src"], lp["a_dst"], lp["bias"])
    if i + 1 == n_layer:
      x = x.mean(axis=1)
    else:
      x = jax.nn.elu(jnp.transpose(x, (0, 2, 1, 3)).reshape(bs, n, -1))
  return jax.nn.log_softmax(x, axis=-1)


# ---------------------------------------------------------------------------
# Deterministic parameter construction
# ---------------------------------------------------------------------------
def _xavier(key, shape):
  fan_in, fan_out = shape[-2], shape[-1]
  lim = (6.0 / (fan_in + fan_out)) ** 0.5
  return jax.random.uniform(key, shape, jnp.float32, -lim, lim)


def make_params(key, n_units, n_heads, vf_rows, vf_dim, use_vertex_feature):
  params = {}
  keys = jax.random.split(key, 16)
  ki = 0
  n_units = list(n_units)
  if use_vertex_feature:
    params["vertex_feature"] = jax.random.normal(
        keys[ki], (vf_rows, vf_dim), jnp.float32); ki += 1
    n_units[0] += vf_dim
  layers = []
  n_layer = len(n_units) - 1
  for i in range(n_layer):
    f_in = n_units[i] * n_heads[i - 1] if i else n_units[i]
    f_out = n_units[i + 1]
    nh = n_heads[i]
    layers.append({
        "w": _xavier(keys[ki], (nh, f_in, f_out)),
        "a_src": _xavier(keys[ki + 1], (nh, f_out, 1)),
        "a_dst": _xavier(keys[ki + 2], (nh, f_out, 1)),
        "bias": jnp.zeros((f_out,), jnp.float32),
    })
    ki += 3
  params["layers"] = layers
  return params


# ---------------------------------------------------------------------------
if __name__ == "__main__":
  key = jax.random.PRNGKey(0)
  k_x, k_v, k_adj, k_p = jax.random.split(key, 4)

  bs, n = 2, 16
  n_units = [16, 8, 7]
  n_heads = [8, 1]
  vf_rows, vf_dim = 32, 8
  use_vertex_feature = True

  x = jax.random.normal(k_x, (bs, n, n_units[0]), jnp.float32)
  vertices = jax.random.randint(k_v, (bs, n), 0, vf_rows)
  adj = (jax.random.uniform(k_adj, (bs, n, n)) < 0.4).astype(jnp.float32)
  eye = jnp.eye(n, dtype=jnp.float32)[None]
  adj = jnp.maximum(adj, eye)   # self loops so every softmax row is non-empty

  params = make_params(k_p, n_units, n_heads, vf_rows, vf_dim,
                       use_vertex_feature)

  fwd = jax.jit(functools.partial(gat_forward,
                                  use_vertex_feature=use_vertex_feature))
  out = jax.block_until_ready(fwd(params, x, vertices, adj))

  ref = gat_forward_ref(params, x, vertices, adj,
                        use_vertex_feature=use_vertex_feature)
  assert out.shape == (bs, n, n_units[-1])
  err = float(jnp.max(jnp.abs(out - ref)))
  # Exact divide in the softmax (approx reciprocal dropped) restores tight
  # accuracy vs the previous 2e-3 tolerance.
  assert jnp.allclose(out, ref, atol=2e-4, rtol=2e-4), (
      f"mismatch vs reference (max abs err {err})")

  print("KERNEL_OK")
</pallas_src>

<mosaic_0001>
module attributes {stable_mosaic.version = 11 : i64} {
  func.func @kernel(%arg0: i32, %arg1: memref<2x16x24xf32, #tpu.memory_space<vmem>>, %arg2: memref<2x16x16xf32, #tpu.memory_space<vmem>>, %arg3: memref<720x128xf32, #tpu.memory_space<vmem>>, %arg4: memref<2x16x7xf32, #tpu.memory_space<vmem>>) attributes {dimension_semantics = [#tpu.dimension_semantics<parallel>], iteration_bounds = array<i64: 1>, scalar_prefetch = 0 : i64, scratch_operands = 0 : i64, tpu.core_type = #tpu.core_type<tc>, window_params = [{transform_indices = @transform_0, window_bounds = array<i64: 2, 16, 24>}, {transform_indices = @transform_1, window_bounds = array<i64: 2, 16, 16>}, {pipeline_mode = #tpu.pipeline_mode<synchronous>, transform_indices = @transform_2, window_bounds = array<i64: 720, 128>}, {transform_indices = @transform_3, window_bounds = array<i64: 2, 16, 7>}]} {
    %c0 = arith.constant 0 : index
    %c0_0 = arith.constant 0 : index
    %c0_1 = arith.constant 0 : index
    %0 = vector.load %arg1[%c0, %c0_0, %c0_1] : memref<2x16x24xf32, #tpu.memory_space<vmem>>, vector<1x16x24xf32>
    %1 = vector.shape_cast %0 : vector<1x16x24xf32> to vector<16x24xf32>
    %c1 = arith.constant 1 : index
    %c0_2 = arith.constant 0 : index
    %c0_3 = arith.constant 0 : index
    %2 = vector.load %arg1[%c1, %c0_2, %c0_3] : memref<2x16x24xf32, #tpu.memory_space<vmem>>, vector<1x16x24xf32>
    %3 = vector.shape_cast %2 : vector<1x16x24xf32> to vector<16x24xf32>
    %c0_4 = arith.constant 0 : index
    %c0_5 = arith.constant 0 : index
    %c0_6 = arith.constant 0 : index
    %4 = vector.load %arg2[%c0_4, %c0_5, %c0_6] : memref<2x16x16xf32, #tpu.memory_space<vmem>>, vector<1x16x16xf32>
    %5 = vector.shape_cast %4 : vector<1x16x16xf32> to vector<16x16xf32>
    %c1_7 = arith.constant 1 : index
    %c0_8 = arith.constant 0 : index
    %c0_9 = arith.constant 0 : index
    %6 = vector.load %arg2[%c1_7, %c0_8, %c0_9] : memref<2x16x16xf32, #tpu.memory_space<vmem>>, vector<1x16x16xf32>
    %7 = vector.shape_cast %6 : vector<1x16x16xf32> to vector<16x16xf32>
    %c0_10 = arith.constant 0 : index
    %c0_11 = arith.constant 0 : index
    %8 = vector.load %arg3[%c0_10, %c0_11] : memref<720x128xf32, #tpu.memory_space<vmem>>, vector<24x64xf32>
    %c24 = arith.constant 24 : index
    %c0_12 = arith.constant 0 : index
    %9 = vector.load %arg3[%c24, %c0_12] : memref<720x128xf32, #tpu.memory_space<vmem>>, vector<64x128xf32>
    %c88 = arith.constant 88 : index
    %c0_13 = arith.constant 0 : index
    %10 = vector.load %arg3[%c88, %c0_13] : memref<720x128xf32, #tpu.memory_space<vmem>>, vector<64x128xf32>
    %c152 = arith.constant 152 : index
    %c0_14 = arith.constant 0 : index
    %11 = vector.load %arg3[%c152, %c0_14] : memref<720x128xf32, #tpu.memory_space<vmem>>, vector<1x64xf32>
    %c160 = arith.constant 160 : index
    %c0_15 = arith.constant 0 : index
    %12 = vector.load %arg3[%c160, %c0_15] : memref<720x128xf32, #tpu.memory_space<vmem>>, vector<16x128xf32>
    %c176 = arith.constant 176 : index
    %c0_16 = arith.constant 0 : index
    %13 = vector.load %arg3[%c176, %c0_16] : memref<720x128xf32, #tpu.memory_space<vmem>>, vector<128x16xf32>
    %c304 = arith.constant 304 : index
    %c0_17 = arith.constant 0 : index
    %14 = vector.load %arg3[%c304, %c0_17] : memref<720x128xf32, #tpu.memory_space<vmem>>, vector<128x64xf32>
    %c432 = arith.constant 432 : index
    %c0_18 = arith.constant 0 : index
    %15 = vector.load %arg3[%c432, %c0_18] : memref<720x128xf32, #tpu.memory_space<vmem>>, vector<128x128xf32>
    %cst = arith.constant dense<0.000000e+00> : vector<16x64xf32>
    %16 = tpu.matmul %1, %8, %cst {dimension_numbers = #tpu.dot_dimension_numbers<[1], [0], [0], [1], [0, 0, 1, 1], [], []>, precision = #tpu.contract_precision<fp32>} : vector<16x24xf32>, vector<24x64xf32>, vector<16x64xf32> -> vector<16x64xf32>
    %17 = math.tanh %16 : vector<16x64xf32>
    %cst_19 = arith.constant dense<0.000000e+00> : vector<16x128xf32>
    %18 = tpu.matmul %17, %9, %cst_19 {dimension_numbers = #tpu.dot_dimension_numbers<[1], [0], [0], [1], [0, 0, 1, 1], [], []>, precision = #tpu.contract_precision<fp32>} : vector<16x64xf32>, vector<64x128xf32>, vector<16x128xf32> -> vector<16x128xf32>
    %cst_20 = arith.constant dense<0.000000e+00> : vector<16x128xf32>
    %19 = tpu.matmul %17, %10, %cst_20 {dimension_numbers = #tpu.dot_dimension_numbers<[1], [0], [0], [1], [0, 0, 1, 1], [], []>, precision = #tpu.contract_precision<fp32>} : vector<16x64xf32>, vector<64x128xf32>, vector<16x128xf32> -> vector<16x128xf32>
    %20 = arith.mulf %19, %12 : vector<16x128xf32>
    %cst_21 = arith.constant dense<0.000000e+00> : vector<128xf32>
    %21 = vector.multi_reduction <add>, %20, %cst_21 [0] : vector<16x128xf32> to vector<128xf32>
    %22 = vector.shape_cast %21 : vector<128xf32> to vector<1x128xf32>
    %23 = vector.broadcast %22 : vector<1x128xf32> to vector<16x128xf32>
    %24 = arith.addf %18, %23 : vector<16x128xf32>
    %cst_22 = arith.constant 2.000000e-01 : f32
    %25 = vector.broadcast %cst_22 : f32 to vector<16x128xf32>
    %26 = arith.mulf %25, %24 : vector<16x128xf32>
    %27 = arith.maximumf %24, %26 : vector<16x128xf32>
    %cst_23 = arith.constant dense<0.000000e+00> : vector<16x128xf32>
    %28 = tpu.matmul %5, %12, %cst_23 {dimension_numbers = #tpu.dot_dimension_numbers<[1], [0], [0], [1], [0, 0, 1, 1], [], []>, precision = #tpu.contract_precision<fp32>} : vector<16x16xf32>, vector<16x128xf32>, vector<16x128xf32> -> vector<16x128xf32>
    %cst_24 = arith.constant 0.000000e+00 : f32
    %29 = vector.broadcast %cst_24 : f32 to vector<16x128xf32>
    %30 = arith.cmpf ogt, %28, %29 : vector<16x128xf32>
    %cst_25 = arith.constant -1.000000e+30 : f32
    %31 = vector.broadcast %cst_25 : f32 to vector<16x128xf32>
    %32 = arith.select %30, %27, %31 : vector<16x128xi1>, vector<16x128xf32>
    %cst_26 = arith.constant dense<0xFF800000> : vector<16xf32>
    %33 = vector.multi_reduction <maximumf>, %32, %cst_26 [1] : vector<16x128xf32> to vector<16xf32>
    %34 = vector.shape_cast %33 : vector<16xf32> to vector<16x1xf32>
    %35 = vector.broadcast %34 : vector<16x1xf32> to vector<16x128xf32>
    %36 = arith.subf %27, %35 : vector<16x128xf32>
    %cst_27 = arith.constant 0.000000e+00 : f32
    %37 = vector.broadcast %cst_27 : f32 to vector<16x128xf32>
    %38 = arith.minimumf %36, %37 : vector<16x128xf32>
    %39 = math.exp %38 : vector<16x128xf32>
    %40 = arith.mulf %39, %28 : vector<16x128xf32>
    %cst_28 = arith.constant dense<0.000000e+00> : vector<16x128xf32>
    %41 = tpu.matmul %40, %15, %cst_28 {dimension_numbers = #tpu.dot_dimension_numbers<[1], [0], [0], [1], [0, 0, 1, 1], [], []>, precision = #tpu.contract_precision<fp32>} : vector<16x128xf32>, vector<128x128xf32>, vector<16x128xf32> -> vector<16x128xf32>
    %42 = arith.divf %40, %41 : vector<16x128xf32>
    %cst_29 = arith.constant dense<0.000000e+00> : vector<128x64xf32>
    %43 = tpu.matmul %13, %16, %cst_29 {dimension_numbers = #tpu.dot_dimension_numbers<[1], [0], [0], [1], [0, 0, 1, 1], [], []>, precision = #tpu.contract_precision<fp32>} : vector<128x16xf32>, vector<16x64xf32>, vector<128x64xf32> -> vector<128x64xf32>
    %44 = arith.mulf %43, %14 : vector<128x64xf32>
    %cst_30 = arith.constant dense<0.000000e+00> : vector<16x64xf32>
    %45 = tpu.matmul %42, %44, %cst_30 {dimension_numbers = #tpu.dot_dimension_numbers<[1], [0], [0], [1], [0, 0, 1, 1], [], []>, precision = #tpu.contract_precision<fp32>} : vector<16x128xf32>, vector<128x64xf32>, vector<16x64xf32> -> vector<16x64xf32>
    %46 = vector.broadcast %11 : vector<1x64xf32> to vector<16x64xf32>
    %47 = arith.addf %45, %46 : vector<16x64xf32>
    %cst_31 = arith.constant 0.000000e+00 : f32
    %48 = vector.broadcast %cst_31 : f32 to vector<16x64xf32>
    %49 = arith.cmpf ogt, %47, %48 : vector<16x64xf32>
    %cst_32 = arith.constant 0.000000e+00 : f32
    %50 = vector.broadcast %cst_32 : f32 to vector<16x64xf32>
    %51 = arith.minimumf %47, %50 : vector<16x64xf32>
    %52 = math.exp %51 : vector<16x64xf32>
    %cst_33 = arith.constant 1.000000e+00 : f32
    %53 = vector.broadcast %cst_33 : f32 to vector<16x64xf32>
    %54 = arith.subf %52, %53 : vector<16x64xf32>
    %55 = arith.select %49, %47, %54 : vector<16x64xi1>, vector<16x64xf32>
    %cst_34 = arith.constant dense<0.000000e+00> : vector<16x64xf32>
    %56 = tpu.matmul %3, %8, %cst_34 {dimension_numbers = #tpu.dot_dimension_numbers<[1], [0], [0], [1], [0, 0, 1, 1], [], []>, precision = #tpu.contract_precision<fp32>} : vector<16x24xf32>, vector<24x64xf32>, vector<16x64xf32> -> vector<16x64xf32>
    %57 = math.tanh %56 : vector<16x64xf32>
    %cst_35 = arith.constant dense<0.000000e+00> : vector<16x128xf32>
    %58 = tpu.matmul %57, %9, %cst_35 {dimension_numbers = #tpu.dot_dimension_numbers<[1], [0], [0], [1], [0, 0, 1, 1], [], []>, precision = #tpu.contract_precision<fp32>} : vector<16x64xf32>, vector<64x128xf32>, vector<16x128xf32> -> vector<16x128xf32>
    %cst_36 = arith.constant dense<0.000000e+00> : vector<16x128xf32>
    %59 = tpu.matmul %57, %10, %cst_36 {dimension_numbers = #tpu.dot_dimension_numbers<[1], [0], [0], [1], [0, 0, 1, 1], [], []>, precision = #tpu.contract_precision<fp32>} : vector<16x64xf32>, vector<64x128xf32>, vector<16x128xf32> -> vector<16x128xf32>
    %60 = arith.mulf %59, %12 : vector<16x128xf32>
    %cst_37 = arith.constant dense<0.000000e+00> : vector<128xf32>
    %61 = vector.multi_reduction <add>, %60, %cst_37 [0] : vector<16x128xf32> to vector<128xf32>
    %62 = vector.shape_cast %61 : vector<128xf32> to vector<1x128xf32>
    %63 = vector.broadcast %62 : vector<1x128xf32> to vector<16x128xf32>
    %64 = arith.addf %58, %63 : vector<16x128xf32>
    %cst_38 = arith.constant 2.000000e-01 : f32
    %65 = vector.broadcast %cst_38 : f32 to vector<16x128xf32>
    %66 = arith.mulf %65, %64 : vector<16x128xf32>
    %67 = arith.maximumf %64, %66 : vector<16x128xf32>
    %cst_39 = arith.constant dense<0.000000e+00> : vector<16x128xf32>
    %68 = tpu.matmul %7, %12, %cst_39 {dimension_numbers = #tpu.dot_dimension_numbers<[1], [0], [0], [1], [0, 0, 1, 1], [], []>, precision = #tpu.contract_precision<fp32>} : vector<16x16xf32>, vector<16x128xf32>, vector<16x128xf32> -> vector<16x128xf32>
    %cst_40 = arith.constant 0.000000e+00 : f32
    %69 = vector.broadcast %cst_40 : f32 to vector<16x128xf32>
    %70 = arith.cmpf ogt, %68, %69 : vector<16x128xf32>
    %cst_41 = arith.constant -1.000000e+30 : f32
    %71 = vector.broadcast %cst_41 : f32 to vector<16x128xf32>
    %72 = arith.select %70, %67, %71 : vector<16x128xi1>, vector<16x128xf32>
    %cst_42 = arith.constant dense<0xFF800000> : vector<16xf32>
    %73 = vector.multi_reduction <maximumf>, %72, %cst_42 [1] : vector<16x128xf32> to vector<16xf32>
    %74 = vector.shape_cast %73 : vector<16xf32> to vector<16x1xf32>
    %75 = vector.broadcast %74 : vector<16x1xf32> to vector<16x128xf32>
    %76 = arith.subf %67, %75 : vector<16x128xf32>
    %cst_43 = arith.constant 0.000000e+00 : f32
    %77 = vector.broadcast %cst_43 : f32 to vector<16x128xf32>
    %78 = arith.minimumf %76, %77 : vector<16x128xf32>
    %79 = math.exp %78 : vector<16x128xf32>
    %80 = arith.mulf %79, %68 : vector<16x128xf32>
    %cst_44 = arith.constant dense<0.000000e+00> : vector<16x128xf32>
    %81 = tpu.matmul %80, %15, %cst_44 {dimension_numbers = #tpu.dot_dimension_numbers<[1], [0], [0], [1], [0, 0, 1, 1], [], []>, precision = #tpu.contract_precision<fp32>} : vector<16x128xf32>, vector<128x128xf32>, vector<16x128xf32> -> vector<16x128xf32>
    %82 = arith.divf %80, %81 : vector<16x128xf32>
    %cst_45 = arith.constant dense<0.000000e+00> : vector<128x64xf32>
    %83 = tpu.matmul %13, %56, %cst_45 {dimension_numbers = #tpu.dot_dimension_numbers<[1], [0], [0], [1], [0, 0, 1, 1], [], []>, precision = #tpu.contract_precision<fp32>} : vector<128x16xf32>, vector<16x64xf32>, vector<128x64xf32> -> vector<128x64xf32>
    %84 = arith.mulf %83, %14 : vector<128x64xf32>
    %cst_46 = arith.constant dense<0.000000e+00> : vector<16x64xf32>
    %85 = tpu.matmul %82, %84, %cst_46 {dimension_numbers = #tpu.dot_dimension_numbers<[1], [0], [0], [1], [0, 0, 1, 1], [], []>, precision = #tpu.contract_precision<fp32>} : vector<16x128xf32>, vector<128x64xf32>, vector<16x64xf32> -> vector<16x64xf32>
    %86 = vector.broadcast %11 : vector<1x64xf32> to vector<16x64xf32>
    %87 = arith.addf %85, %86 : vector<16x64xf32>
    %cst_47 = arith.constant 0.000000e+00 : f32
    %88 = vector.broadcast %cst_47 : f32 to vector<16x64xf32>
    %89 = arith.cmpf ogt, %87, %88 : vector<16x64xf32>
    %cst_48 = arith.constant 0.000000e+00 : f32
    %90 = vector.broadcast %cst_48 : f32 to vector<16x64xf32>
    %91 = arith.minimumf %87, %90 : vector<16x64xf32>
    %92 = math.exp %91 : vector<16x64xf32>
    %cst_49 = arith.constant 1.000000e+00 : f32
    %93 = vector.broadcast %cst_49 : f32 to vector<16x64xf32>
    %94 = arith.subf %92, %93 : vector<16x64xf32>
    %95 = arith.select %89, %87, %94 : vector<16x64xi1>, vector<16x64xf32>
    %c560 = arith.constant 560 : index
    %c0_50 = arith.constant 0 : index
    %96 = vector.load %arg3[%c560, %c0_50] : memref<720x128xf32, #tpu.memory_space<vmem>>, vector<64x7xf32>
    %c624 = arith.constant 624 : index
    %c0_51 = arith.constant 0 : index
    %97 = vector.load %arg3[%c624, %c0_51] : memref<720x128xf32, #tpu.memory_space<vmem>>, vector<7x16xf32>
    %c632 = arith.constant 632 : index
    %c0_52 = arith.constant 0 : index
    %98 = vector.load %arg3[%c632, %c0_52] : memref<720x128xf32, #tpu.memory_space<vmem>>, vector<7x16xf32>
    %c640 = arith.constant 640 : index
    %c0_53 = arith.constant 0 : index
    %99 = vector.load %arg3[%c640, %c0_53] : memref<720x128xf32, #tpu.memory_space<vmem>>, vector<1x7xf32>
    %c648 = arith.constant 648 : index
    %c0_54 = arith.constant 0 : index
    %100 = vector.load %arg3[%c648, %c0_54] : memref<720x128xf32, #tpu.memory_space<vmem>>, vector<16x16xf32>
    %c664 = arith.constant 664 : index
    %c0_55 = arith.constant 0 : index
    %101 = vector.load %arg3[%c664, %c0_55] : memref<720x128xf32, #tpu.memory_space<vmem>>, vector<16x16xf32>
    %c680 = arith.constant 680 : index
    %c0_56 = arith.constant 0 : index
    %102 = vector.load %arg3[%c680, %c0_56] : memref<720x128xf32, #tpu.memory_space<vmem>>, vector<16x7xf32>
    %c696 = arith.constant 696 : index
    %c0_57 = arith.constant 0 : index
    %103 = vector.load %arg3[%c696, %c0_57] : memref<720x128xf32, #tpu.memory_space<vmem>>, vector<16x16xf32>
    %c712 = arith.constant 712 : index
    %c0_58 = arith.constant 0 : index
    %104 = vector.load %arg3[%c712, %c0_58] : memref<720x128xf32, #tpu.memory_space<vmem>>, vector<7x7xf32>
    %cst_59 = arith.constant dense<0.000000e+00> : vector<16x7xf32>
    %105 = tpu.matmul %55, %96, %cst_59 {dimension_numbers = #tpu.dot_dimension_numbers<[1], [0], [0], [1], [0, 0, 1, 1], [], []>, precision = #tpu.contract_precision<fp32>} : vector<16x64xf32>, vector<64x7xf32>, vector<16x7xf32> -> vector<16x7xf32>
    %106 = math.tanh %105 : vector<16x7xf32>
    %cst_60 = arith.constant dense<0.000000e+00> : vector<16x16xf32>
    %107 = tpu.matmul %106, %97, %cst_60 {dimension_numbers = #tpu.dot_dimension_numbers<[1], [0], [0], [1], [0, 0, 1, 1], [], []>, precision = #tpu.contract_precision<fp32>} : vector<16x7xf32>, vector<7x16xf32>, vector<16x16xf32> -> vector<16x16xf32>
    %cst_61 = arith.constant dense<0.000000e+00> : vector<16x16xf32>
    %108 = tpu.matmul %106, %98, %cst_61 {dimension_numbers = #tpu.dot_dimension_numbers<[1], [0], [0], [1], [0, 0, 1, 1], [], []>, precision = #tpu.contract_precision<fp32>} : vector<16x7xf32>, vector<7x16xf32>, vector<16x16xf32> -> vector<16x16xf32>
    %109 = arith.mulf %108, %100 : vector<16x16xf32>
    %cst_62 = arith.constant dense<0.000000e+00> : vector<16xf32>
    %110 = vector.multi_reduction <add>, %109, %cst_62 [0] : vector<16x16xf32> to vector<16xf32>
    %111 = vector.shape_cast %110 : vector<16xf32> to vector<1x16xf32>
    %112 = vector.broadcast %111 : vector<1x16xf32> to vector<16x16xf32>
    %113 = arith.addf %107, %112 : vector<16x16xf32>
    %cst_63 = arith.constant 2.000000e-01 : f32
    %114 = vector.broadcast %cst_63 : f32 to vector<16x16xf32>
    %115 = arith.mulf %114, %113 : vector<16x16xf32>
    %116 = arith.maximumf %113, %115 : vector<16x16xf32>
    %cst_64 = arith.constant dense<0.000000e+00> : vector<16x16xf32>
    %117 = tpu.matmul %5, %100, %cst_64 {dimension_numbers = #tpu.dot_dimension_numbers<[1], [0], [0], [1], [0, 0, 1, 1], [], []>, precision = #tpu.contract_precision<fp32>} : vector<16x16xf32>, vector<16x16xf32>, vector<16x16xf32> -> vector<16x16xf32>
    %cst_65 = arith.constant 0.000000e+00 : f32
    %118 = vector.broadcast %cst_65 : f32 to vector<16x16xf32>
    %119 = arith.cmpf ogt, %117, %118 : vector<16x16xf32>
    %cst_66 = arith.constant -1.000000e+30 : f32
    %120 = vector.broadcast %cst_66 : f32 to vector<16x16xf32>
    %121 = arith.select %119, %116, %120 : vector<16x16xi1>, vector<16x16xf32>
    %cst_67 = arith.constant dense<0xFF800000> : vector<16xf32>
    %122 = vector.multi_reduction <maximumf>, %121, %cst_67 [1] : vector<16x16xf32> to vector<16xf32>
    %123 = vector.shape_cast %122 : vector<16xf32> to vector<16x1xf32>
    %124 = vector.broadcast %123 : vector<16x1xf32> to vector<16x16xf32>
    %125 = arith.subf %116, %124 : vector<16x16xf32>
    %cst_68 = arith.constant 0.000000e+00 : f32
    %126 = vector.broadcast %cst_68 : f32 to vector<16x16xf32>
    %127 = arith.minimumf %125, %126 : vector<16x16xf32>
    %128 = math.exp %127 : vector<16x16xf32>
    %129 = arith.mulf %128, %117 : vector<16x16xf32>
    %cst_69 = arith.constant dense<0.000000e+00> : vector<16x16xf32>
    %130 = tpu.matmul %129, %103, %cst_69 {dimension_numbers = #tpu.dot_dimension_numbers<[1], [0], [0], [1], [0, 0, 1, 1], [], []>, precision = #tpu.contract_precision<fp32>} : vector<16x16xf32>, vector<16x16xf32>, vector<16x16xf32> -> vector<16x16xf32>
    %131 = arith.divf %129, %130 : vector<16x16xf32>
    %cst_70 = arith.constant dense<0.000000e+00> : vector<16x7xf32>
    %132 = tpu.matmul %101, %105, %cst_70 {dimension_numbers = #tpu.dot_dimension_numbers<[1], [0], [0], [1], [0, 0, 1, 1], [], []>, precision = #tpu.contract_precision<fp32>} : vector<16x16xf32>, vector<16x7xf32>, vector<16x7xf32> -> vector<16x7xf32>
    %133 = arith.mulf %132, %102 : vector<16x7xf32>
    %cst_71 = arith.constant dense<0.000000e+00> : vector<16x7xf32>
    %134 = tpu.matmul %131, %133, %cst_71 {dimension_numbers = #tpu.dot_dimension_numbers<[1], [0], [0], [1], [0, 0, 1, 1], [], []>, precision = #tpu.contract_precision<fp32>} : vector<16x16xf32>, vector<16x7xf32>, vector<16x7xf32> -> vector<16x7xf32>
    %cst_72 = arith.constant dense<0.000000e+00> : vector<16x7xf32>
    %135 = tpu.matmul %134, %104, %cst_72 {dimension_numbers = #tpu.dot_dimension_numbers<[1], [0], [0], [1], [0, 0, 1, 1], [], []>, precision = #tpu.contract_precision<fp32>} : vector<16x7xf32>, vector<7x7xf32>, vector<16x7xf32> -> vector<16x7xf32>
    %136 = vector.broadcast %99 : vector<1x7xf32> to vector<16x7xf32>
    %137 = arith.addf %135, %136 : vector<16x7xf32>
    %cst_73 = arith.constant dense<0xFF800000> : vector<16xf32>
    %138 = vector.multi_reduction <maximumf>, %137, %cst_73 [1] : vector<16x7xf32> to vector<16xf32>
    %139 = vector.shape_cast %138 : vector<16xf32> to vector<16x1xf32>
    %140 = vector.broadcast %139 : vector<16x1xf32> to vector<16x7xf32>
    %141 = arith.subf %137, %140 : vector<16x7xf32>
    %142 = math.exp %141 : vector<16x7xf32>
    %cst_74 = arith.constant dense<0.000000e+00> : vector<16xf32>
    %143 = vector.multi_reduction <add>, %142, %cst_74 [1] : vector<16x7xf32> to vector<16xf32>
    %144 = vector.shape_cast %143 : vector<16xf32> to vector<16x1xf32>
    %145 = math.log %144 : vector<16x1xf32>
    %146 = vector.broadcast %145 : vector<16x1xf32> to vector<16x7xf32>
    %147 = arith.subf %141, %146 : vector<16x7xf32>
    %c0_75 = arith.constant 0 : index
    %c0_76 = arith.constant 0 : index
    %c0_77 = arith.constant 0 : index
    %148 = vector.load %arg4[%c0_75, %c0_76, %c0_77] : memref<2x16x7xf32, #tpu.memory_space<vmem>>, vector<1x16x7xf32>
    %149 = vector.shape_cast %148 : vector<1x16x7xf32> to vector<16x7xf32>
    %150 = vector.shape_cast %147 : vector<16x7xf32> to vector<1x16x7xf32>
    tpu.vector_store %arg4[%c0_75, %c0_76, %c0_77], %150 {strides = array<i32>} : memref<2x16x7xf32, #tpu.memory_space<vmem>>, vector<1x16x7xf32>,
    %cst_78 = arith.constant dense<0.000000e+00> : vector<16x7xf32>
    %151 = tpu.matmul %95, %96, %cst_78 {dimension_numbers = #tpu.dot_dimension_numbers<[1], [0], [0], [1], [0, 0, 1, 1], [], []>, precision = #tpu.contract_precision<fp32>} : vector<16x64xf32>, vector<64x7xf32>, vector<16x7xf32> -> vector<16x7xf32>
    %152 = math.tanh %151 : vector<16x7xf32>
    %cst_79 = arith.constant dense<0.000000e+00> : vector<16x16xf32>
    %153 = tpu.matmul %152, %97, %cst_79 {dimension_numbers = #tpu.dot_dimension_numbers<[1], [0], [0], [1], [0, 0, 1, 1], [], []>, precision = #tpu.contract_precision<fp32>} : vector<16x7xf32>, vector<7x16xf32>, vector<16x16xf32> -> vector<16x16xf32>
    %cst_80 = arith.constant dense<0.000000e+00> : vector<16x16xf32>
    %154 = tpu.matmul %152, %98, %cst_80 {dimension_numbers = #tpu.dot_dimension_numbers<[1], [0], [0], [1], [0, 0, 1, 1], [], []>, precision = #tpu.contract_precision<fp32>} : vector<16x7xf32>, vector<7x16xf32>, vector<16x16xf32> -> vector<16x16xf32>
    %155 = arith.mulf %154, %100 : vector<16x16xf32>
    %cst_81 = arith.constant dense<0.000000e+00> : vector<16xf32>
    %156 = vector.multi_reduction <add>, %155, %cst_81 [0] : vector<16x16xf32> to vector<16xf32>
    %157 = vector.shape_cast %156 : vector<16xf32> to vector<1x16xf32>
    %158 = vector.broadcast %157 : vector<1x16xf32> to vector<16x16xf32>
    %159 = arith.addf %153, %158 : vector<16x16xf32>
    %cst_82 = arith.constant 2.000000e-01 : f32
    %160 = vector.broadcast %cst_82 : f32 to vector<16x16xf32>
    %161 = arith.mulf %160, %159 : vector<16x16xf32>
    %162 = arith.maximumf %159, %161 : vector<16x16xf32>
    %cst_83 = arith.constant dense<0.000000e+00> : vector<16x16xf32>
    %163 = tpu.matmul %7, %100, %cst_83 {dimension_numbers = #tpu.dot_dimension_numbers<[1], [0], [0], [1], [0, 0, 1, 1], [], []>, precision = #tpu.contract_precision<fp32>} : vector<16x16xf32>, vector<16x16xf32>, vector<16x16xf32> -> vector<16x16xf32>
    %cst_84 = arith.constant 0.000000e+00 : f32
    %164 = vector.broadcast %cst_84 : f32 to vector<16x16xf32>
    %165 = arith.cmpf ogt, %163, %164 : vector<16x16xf32>
    %cst_85 = arith.constant -1.000000e+30 : f32
    %166 = vector.broadcast %cst_85 : f32 to vector<16x16xf32>
    %167 = arith.select %165, %162, %166 : vector<16x16xi1>, vector<16x16xf32>
    %cst_86 = arith.constant dense<0xFF800000> : vector<16xf32>
    %168 = vector.multi_reduction <maximumf>, %167, %cst_86 [1] : vector<16x16xf32> to vector<16xf32>
    %169 = vector.shape_cast %168 : vector<16xf32> to vector<16x1xf32>
    %170 = vector.broadcast %169 : vector<16x1xf32> to vector<16x16xf32>
    %171 = arith.subf %162, %170 : vector<16x16xf32>
    %cst_87 = arith.constant 0.000000e+00 : f32
    %172 = vector.broadcast %cst_87 : f32 to vector<16x16xf32>
    %173 = arith.minimumf %171, %172 : vector<16x16xf32>
    %174 = math.exp %173 : vector<16x16xf32>
    %175 = arith.mulf %174, %163 : vector<16x16xf32>
    %cst_88 = arith.constant dense<0.000000e+00> : vector<16x16xf32>
    %176 = tpu.matmul %175, %103, %cst_88 {dimension_numbers = #tpu.dot_dimension_numbers<[1], [0], [0], [1], [0, 0, 1, 1], [], []>, precision = #tpu.contract_precision<fp32>} : vector<16x16xf32>, vector<16x16xf32>, vector<16x16xf32> -> vector<16x16xf32>
    %177 = arith.divf %175, %176 : vector<16x16xf32>
    %cst_89 = arith.constant dense<0.000000e+00> : vector<16x7xf32>
    %178 = tpu.matmul %101, %151, %cst_89 {dimension_numbers = #tpu.dot_dimension_numbers<[1], [0], [0], [1], [0, 0, 1, 1], [], []>, precision = #tpu.contract_precision<fp32>} : vector<16x16xf32>, vector<16x7xf32>, vector<16x7xf32> -> vector<16x7xf32>
    %179 = arith.mulf %178, %102 : vector<16x7xf32>
    %cst_90 = arith.constant dense<0.000000e+00> : vector<16x7xf32>
    %180 = tpu.matmul %177, %179, %cst_90 {dimension_numbers = #tpu.dot_dimension_numbers<[1], [0], [0], [1], [0, 0, 1, 1], [], []>, precision = #tpu.contract_precision<fp32>} : vector<16x16xf32>, vector<16x7xf32>, vector<16x7xf32> -> vector<16x7xf32>
    %cst_91 = arith.constant dense<0.000000e+00> : vector<16x7xf32>
    %181 = tpu.matmul %180, %104, %cst_91 {dimension_numbers = #tpu.dot_dimension_numbers<[1], [0], [0], [1], [0, 0, 1, 1], [], []>, precision = #tpu.contract_precision<fp32>} : vector<16x7xf32>, vector<7x7xf32>, vector<16x7xf32> -> vector<16x7xf32>
    %182 = vector.broadcast %99 : vector<1x7xf32> to vector<16x7xf32>
    %183 = arith.addf %181, %182 : vector<16x7xf32>
    %cst_92 = arith.constant dense<0xFF800000> : vector<16xf32>
    %184 = vector.multi_reduction <maximumf>, %183, %cst_92 [1] : vector<16x7xf32> to vector<16xf32>
    %185 = vector.shape_cast %184 : vector<16xf32> to vector<16x1xf32>
    %186 = vector.broadcast %185 : vector<16x1xf32> to vector<16x7xf32>
    %187 = arith.subf %183, %186 : vector<16x7xf32>
    %188 = math.exp %187 : vector<16x7xf32>
    %cst_93 = arith.constant dense<0.000000e+00> : vector<16xf32>
    %189 = vector.multi_reduction <add>, %188, %cst_93 [1] : vector<16x7xf32> to vector<16xf32>
    %190 = vector.shape_cast %189 : vector<16xf32> to vector<16x1xf32>
    %191 = math.log %190 : vector<16x1xf32>
    %192 = vector.broadcast %191 : vector<16x1xf32> to vector<16x7xf32>
    %193 = arith.subf %187, %192 : vector<16x7xf32>
    %c1_94 = arith.constant 1 : index
    %c0_95 = arith.constant 0 : index
    %c0_96 = arith.constant 0 : index
    %194 = vector.load %arg4[%c1_94, %c0_95, %c0_96] : memref<2x16x7xf32, #tpu.memory_space<vmem>>, vector<1x16x7xf32>
    %195 = vector.shape_cast %194 : vector<1x16x7xf32> to vector<16x7xf32>
    %196 = vector.shape_cast %193 : vector<16x7xf32> to vector<1x16x7xf32>
    tpu.vector_store %arg4[%c1_94, %c0_95, %c0_96], %196 {strides = array<i32>} : memref<2x16x7xf32, #tpu.memory_space<vmem>>, vector<1x16x7xf32>,
    return
  }
  func.func @transform_0(%arg0: i32) -> (i32, i32, i32) {
    %c0_i32 = arith.constant 0 : i32
    %c0_i32_0 = arith.constant 0 : i32
    %c0_i32_1 = arith.constant 0 : i32
    return %arg0, %c0_i32, %c0_i32_0 : i32, i32, i32
  }
  func.func @transform_1(%arg0: i32) -> (i32, i32, i32) {
    %c0_i32 = arith.constant 0 : i32
    %c0_i32_0 = arith.constant 0 : i32
    %c0_i32_1 = arith.constant 0 : i32
    return %arg0, %c0_i32, %c0_i32_0 : i32, i32, i32
  }
  func.func @transform_2(%arg0: i32) -> (i32, i32) {
    %c0_i32 = arith.constant 0 : i32
    %c0_i32_0 = arith.constant 0 : i32
    %c0_i32_1 = arith.constant 0 : i32
    return %c0_i32, %c0_i32_0 : i32, i32
  }
  func.func @transform_3(%arg0: i32) -> (i32, i32, i32) {
    %c0_i32 = arith.constant 0 : i32
    %c0_i32_0 = arith.constant 0 : i32
    %c0_i32_1 = arith.constant 0 : i32
    return %arg0, %c0_i32, %c0_i32_0 : i32, i32, i32
  }
}

</mosaic_0001>

<bundles_post_ra>
// kernel: tile.28
= control target key start
LH: loop header
LB: loop body
LE: loop exit
PB: predicated region body
PF: predicated region fallthrough
CT: control target
= control target key end

     0   :  { %s22_s0 = inlined_call_operand.vmem [shape: f32[8], index: 0, kind: input, shape index: {}]   ;;  %s23_s1 = inlined_call_operand.vmem [shape: f32[8,8], index: 1, kind: output, shape index: {}]  }
   0x1   :  { %v4_v0 = vld [vmem:[%s22_s0] ss:$0 sm:$0xff] }
   0x2   :  { %5 = vst [vmem:[%s23_s1] sm:$0xff] %v4_v0 }

// kernel: gat_forward.1
= control target key start
LH: loop header
LB: loop body
LE: loop exit
PB: predicated region body
PF: predicated region fallthrough
CT: control target
= control target key end

     0   :  { %vm94_vm0 = vcmask 195584   ;;  %vm306_vm1 = vcmask 523264   ;;  %vm862_vm2 = vcmask 130048   ;;  %s12364_s2 = inlined_call_operand.vmem [shape: f32[720,128], index: 2, kind: input, shape index: {}]   ;;  %s12365_s0 = inlined_call_operand.vmem [shape: f32[2,16,24], index: 0, kind: input, shape index: {}]   ;;  %s12366_s1 = inlined_call_operand.vmem [shape: f32[2,16,16], index: 1, kind: input, shape index: {}]   ;;  %s12367_s3 = inlined_call_operand.vmem [shape: f32[2,16,7], index: 3, kind: output, shape index: {}]  }
   0x1   :  { %v26_v0 = vld [vmem:[%s12364_s2 + $0x10] sm:$0xff]  ;;  %v25_v1 = vld [vmem:[%s12364_s2 + $0x8] sm:$0xff]  ;;  %v24_v2 = vld [vmem:[%s12364_s2] sm:$0xff] }
   0x2   :  { %v8505_v3 = vand.u32 4294901760, %v26_v0  ;;  %v8507_v4 = vand.u32 4294901760, %v25_v1  ;;  %v8509_v5 = vand.u32 4294901760, %v24_v2  ;;  %v14_v6 = vld [vmem:[%s12365_s0] sm:$0xff]  ;;  %v15_v7 = vld [vmem:[%s12365_s0 + $0x8] sm:$0xff]  ;;  %v42_v32 = vld [vmem:[%s12364_s2 + $0x90] sm:$0xff] }
   0x3   :  { %v96_v8 = vsel %vm94_vm0, %v14_v6, 0  ;;  %v99_v9 = vsel %vm94_vm0, %v15_v7, 0  ;;  %v8570_v33 = vand.u32 4294901760, %v42_v32  ;;  %v41_v34 = vld [vmem:[%s12364_s2 + $0x88] sm:$0xff]  ;;  %v40_v37 = vld [vmem:[%s12364_s2 + $0x80] sm:$0xff]  ;;  %v39_v41 = vld [vmem:[%s12364_s2 + $0x78] sm:$0xff] }
   0x4   :  { %12752 = vst [vmem:[#allocation2_spill] sm:$0xff] %v8505_v3  ;;  %115 = vmatpush.msra.mxu0 %v8505_v3  ;;  %v8521_v10 = vsub.f32 %v26_v0, %v8505_v3  ;;  %v8524_v11 = vsub.f32 %v25_v1, %v8507_v4  ;;  %224 = vmatpush.msra.mxu3 %v8505_v3  ;;  %v120_v13 = vand.u32 4294901760, %v96_v8  ;;  %v128_v14 = vand.u32 4294901760, %v99_v9  ;;  %v38_v46 = vld [vmem:[%s12364_s2 + $0x70] sm:$0xff]  ;;  %v37_v52 = vld [vmem:[%s12364_s2 + $0x68] sm:$0xff]  ;;  %v36_v58 = vld [vmem:[%s12364_s2 + $0x60] sm:$0xff] }
   0x5   :  { %12753 = vst [vmem:[#allocation3_spill] sm:$0xff] %v8507_v4  ;;  %v8528_v12 = vsub.f32 %v24_v2, %v8509_v5  ;;  %v8576_v35 = vsub.f32 %v42_v32, %v8570_v33  ;;  %v8578_v36 = vand.u32 4294901760, %v41_v34  ;;  %v8592_v40 = vand.u32 4294901760, %v40_v37  ;;  %v35_v0 = vld [vmem:[%s12364_s2 + $0x58] sm:$0xff] }
   0x6   :  { %12754 = vst [vmem:[#allocation4_spill] sm:$0xff] %v8509_v5  ;;  %192 = vmatpush.msra.mxu2 %v8521_v10  ;;  %117 = vmatpush.msra.mxu0 %v8507_v4  ;;  %v8533_v15 = vand.u32 4294901760, %v8521_v10  ;;  %v121_v16 = vsub.f32 %v96_v8, %v120_v13  ;;  %v8536_v17 = vand.u32 4294901760, %v8524_v11  ;;  %v129_v19 = vsub.f32 %v99_v9, %v128_v14 }
   0x7   :  { %12755 = vst [vmem:[#allocation5_spill] sm:$0xff] %v8521_v10  ;;  %v8539_v18 = vand.u32 4294901760, %v8528_v12  ;;  %226 = vmatpush.msra.mxu3 %v8507_v4  ;;  %v8586_v38 = vand.u32 4294901760, %v8576_v35  ;;  %v8589_v39 = vsub.f32 %v41_v34, %v8578_v36  ;;  %v8605_v44 = vsub.f32 %v40_v37, %v8592_v40  ;;  %v32_v34 = vld [vmem:[%s12364_s2 + $0x40] sm:$0xff] }
   0x8   :  { %12756 = vst [vmem:[#allocation6_spill] sm:$0xff] %v8524_v11  ;;  %195 = vmatpush.msra.mxu2 %v8524_v11  ;;  %119 = vmatpush.msra.mxu0 %v8509_v5  ;;  %v153_v20 = vsub.f32 %v8521_v10, %v8533_v15  ;;  %v122_v21 = vand.u32 4294901760, %v121_v16  ;;  %v159_v22 = vsub.f32 %v8524_v11, %v8536_v17  ;;  %v130_v27 = vand.u32 4294901760, %v129_v19 }
   0x9   :  { %12757 = vst [vmem:[#allocation7_spill] sm:$0xff] %v8528_v12  ;;  %v165_v23 = vsub.f32 %v8528_v12, %v8539_v18  ;;  %228 = vmatpush.msra.mxu3 %v8509_v5  ;;  %v365_v42 = vsub.f32 %v8576_v35, %v8586_v38  ;;  %v8602_v43 = vand.u32 4294901760, %v8589_v39  ;;  %v8608_v45 = vand.u32 4294901760, %v39_v41 }
   0xa   :  { %12758 = vst [vmem:[#allocation8_spill] sm:$0xff] %v8533_v15  ;;  %258 = vmatpush.msrb.mxu0 %v8533_v15  ;;  %v8552_v24 = vand.u32 4294901760, %v153_v20  ;;  %198 = vmatpush.msra.mxu2 %v8528_v12  ;;  %v123_v25 = vsub.f32 %v121_v16, %v122_v21  ;;  %v8555_v26 = vand.u32 4294901760, %v159_v22  ;;  %v131_v30 = vsub.f32 %v129_v19, %v130_v27  ;;  %v34_v22 = vld [vmem:[%s12364_s2 + $0x50] sm:$0xff] }
   0xb   :  { %12759 = vst [vmem:[#allocation9_spill] sm:$0xff] %v8536_v17  ;;  %232 = vmatmul.f32.vlgmr.msra.gmra.mxu3 %v122_v21  ;;  %201 = vmatmul.f32.vlgmr.msra.gmra.mxu2 %v121_v16  ;;  %v8559_v29 = vand.u32 4294901760, %v165_v23  ;;  %v8615_v47 = vand.u32 4294901760, %v365_v42  ;;  %v371_v48 = vsub.f32 %v8589_v39, %v8602_v43  ;;  %v8620_v49 = vand.u32 4294901760, %v8605_v44 }
   0xc   :  { %12760 = vst [vmem:[#allocation10_spill] sm:$0xff] %v8539_v18  ;;  %262 = vmatpush.msrb.mxu0 %v8536_v17  ;;  %155 = vmatpush.msra.mxu1 %v8552_v24  ;;  %v124_v28 = vand.u32 4294901760, %v123_v25  ;;  %v132_v31 = vand.u32 4294901760, %v131_v30  ;;  %v8623_v50 = vsub.f32 %v39_v41, %v8608_v45  ;;  %v8627_v51 = vand.u32 4294901760, %v38_v46 }
   0xd   :  { %12761 = vst [vmem:[#allocation11_spill] sm:$0xff] %v8552_v24  ;;  %322 = vmatpush.msrb.mxu2 %v8570_v33  ;;  %367 = vmatpush.msrb.mxu3 %v8615_v47  ;;  %v8634_v53 = vand.u32 4294901760, %v371_v48  ;;  %v377_v54 = vsub.f32 %v8605_v44, %v8620_v49  ;;  %v8642_v56 = vand.u32 4294901760, %v37_v52  ;;  %v8660_v62 = vand.u32 4294901760, %v36_v58  ;;  %v31_v48 = vld [vmem:[%s12364_s2 + $0x38] sm:$0xff] }
   0xe   :  { %12762 = vst [vmem:[#allocation12_spill] sm:$0xff] %v8555_v26  ;;  %266 = vmatpush.msrb.mxu0 %v8539_v18  ;;  %161 = vmatpush.msra.mxu1 %v8555_v26  ;;  %v8639_v55 = vand.u32 4294901760, %v8623_v50  ;;  %v8645_v57 = vsub.f32 %v38_v46, %v8627_v51  ;;  %v8683_v8 = vand.u32 4294901760, %v35_v0  ;;  %v8715_v25 = vand.u32 4294901760, %v34_v22 }
   0xf   :  { %12763 = vst [vmem:[#allocation13_spill] sm:$0xff] %v8559_v29  ;;  %125 = vmatmul.f32.vlgmr.msra.gmra.mxu0 %v124_v28  ;;  %324 = vmatpush.msrb.mxu2 %v8578_v36  ;;  %v8653_v59 = vand.u32 4294901760, %v377_v54  ;;  %v8658_v61 = vsub.f32 %v37_v52, %v8642_v56  ;;  %v8677_v6 = vsub.f32 %v36_v58, %v8660_v62  ;;  %v33_v28 = vld [vmem:[%s12364_s2 + $0x48] sm:$0xff]  ;;  %v8741_v42 = vand.u32 4294901760, %v32_v34 }
  0x10   :  { %167 = vmatpush.msra.mxu1 %v8559_v29  ;;  %12764 = vst [vmem:[#allocation14_spill] sm:$0xff] %v8570_v33  ;;  %429 = vmatpush.msra.mxu0 %v8576_v35  ;;  %v383_v60 = vsub.f32 %v8623_v50, %v8639_v55  ;;  %v8663_v63 = vand.u32 4294901760, %v8645_v57  ;;  %v8696_v16 = vsub.f32 %v35_v0, %v8683_v8  ;;  %v8725_v30 = vand.u32 4294901760, %v33_v28 }
  0x11   :  { %169 = vmatmul.f32.vlgmr.msra.gmra.mxu1 %v120_v13  ;;  %12765 = vst [vmem:[#allocation15_spill] sm:$0xff] %v8576_v35  ;;  %326 = vmatpush.msrb.mxu2 %v8592_v40  ;;  %v8674_v2 = vand.u32 4294901760, %v8658_v61  ;;  %v8758_v58 = vand.u32 4294901760, %v31_v48 }
  0x12   :  { %290 = vmatpush.msrb.mxu1 %v8505_v3  ;;  %12766 = vst [vmem:[#allocation16_spill] sm:$0xff] %v8578_v36  ;;  %432 = vmatpush.msra.mxu0 %v8589_v39  ;;  %v8671_v1 = vand.u32 4294901760, %v383_v60  ;;  %v389_v7 = vsub.f32 %v8645_v57, %v8663_v63  ;;  %v8707_v21 = vand.u32 4294901760, %v8696_v16  ;;  %v8744_v46 = vsub.f32 %v33_v28, %v8725_v30 }
  0x13   :  { %238 = vmatmul.f32.gmra.mxu3 %v130_v27  ;;  %206 = vmatmul.f32.gmra.mxu2 %v129_v19  ;;  %12767 = vst [vmem:[#allocation17_spill] sm:$0xff] %v8586_v38  ;;  %v395_v9 = vsub.f32 %v8658_v61, %v8674_v2  ;;  %v8761_v60 = vsub.f32 %v32_v34, %v8741_v42  ;;  %v29_v34 = vld [vmem:[%s12364_s2 + $0x28] sm:$0xff] }
  0x14   :  { %292 = vmatpush.msrb.mxu1 %v8507_v4  ;;  %12768 = vst [vmem:[#allocation18_spill] sm:$0xff] %v8589_v39  ;;  %435 = vmatpush.msra.mxu0 %v8605_v44  ;;  %v407_v27 = vsub.f32 %v8696_v16, %v8707_v21  ;;  %v8756_v54 = vand.u32 4294901760, %v8744_v46  ;;  %v8779_v28 = vsub.f32 %v31_v48, %v8758_v58 }
  0x15   :  { %12769 = vst [vmem:[#allocation19_spill] sm:$0xff] %v8592_v40  ;;  %328 = vmatpush.msrb.mxu2 %v8608_v45  ;;  %373 = vmatpush.msrb.mxu3 %v8634_v53  ;;  %v8700_v19 = vand.u32 4294901760, %v395_v9 }
  0x16   :  { %294 = vmatpush.msrb.mxu1 %v8509_v5  ;;  %12770 = vst [vmem:[#allocation20_spill] sm:$0xff] %v8602_v43  ;;  %438 = vmatpush.msra.mxu0 %v8623_v50  ;;  %v8732_v32 = vand.u32 4294901760, %v407_v27  ;;  %v8795_v48 = vand.u32 4294901760, %v8779_v28 }
  0x17   :  { %133 = vmatmul.f32.gmra.mxu0 %v132_v31  ;;  %12771 = vst [vmem:[#allocation21_spill] sm:$0xff] %v8605_v44  ;;  %330 = vmatpush.msrb.mxu2 %v8627_v51  ;;  %v8728_v31 = vsub.f32 %v34_v22, %v8715_v25  ;;  %v8774_v22 = vand.u32 4294901760, %v8761_v60 }
  0x18   :  { %471 = vmatpush.msra.mxu1 %v8570_v33  ;;  %12772 = vst [vmem:[#allocation22_spill] sm:$0xff] %v8608_v45  ;;  %441 = vmatpush.msra.mxu0 %v8645_v57 }
  0x19   :  { %173 = vmatmul.f32.gmra.mxu1 %v128_v14  ;;  %12773 = vst [vmem:[#allocation23_spill] sm:$0xff] %v8615_v47  ;;  %379 = vmatpush.msrb.mxu3 %v8653_v59  ;;  %v8739_v41 = vand.u32 4294901760, %v8728_v31 }
  0x1a   :  { %473 = vmatpush.msra.mxu1 %v8578_v36  ;;  %12774 = vst [vmem:[#allocation24_spill] sm:$0xff] %v8620_v49  ;;  %332 = vmatpush.msrb.mxu2 %v8642_v56 }
  0x1b   :  { %12775 = vst [vmem:[#allocation25_spill] sm:$0xff] %v8623_v50  ;;  %444 = vmatpush.msra.mxu0 %v8658_v61  ;;  %385 = vmatpush.msrb.mxu3 %v8671_v1  ;;  %v642_v52 = vsub.f32 %v8728_v31, %v8739_v41 }
  0x1c   :  { %475 = vmatpush.msra.mxu1 %v8592_v40  ;;  %12776 = vst [vmem:[#allocation26_spill] sm:$0xff] %v8627_v51  ;;  %334 = vmatpush.msrb.mxu2 %v8660_v62 }
  0x1d   :  { %12777 = vst [vmem:[#allocation27_spill] sm:$0xff] %v8634_v53  ;;  %447 = vmatpush.msra.mxu0 %v8677_v6  ;;  %v8768_v9 = vand.u32 4294901760, %v642_v52 }
  0x1e   :  { %477 = vmatpush.msra.mxu1 %v8608_v45  ;;  %12778 = vst [vmem:[#allocation28_spill] sm:$0xff] %v8639_v55  ;;  %336 = vmatpush.msrb.mxu2 %v8683_v8 }
  0x1f   :  { %268 = vmatmul.f32.vlgmr.msrb.gmra.mxu0 %v120_v13  ;;  %12779 = vst [vmem:[#allocation29_spill] sm:$0xff] %v8642_v56 }
  0x20   :  { %12780 = vst [vmem:[#allocation30_spill] sm:$0xff] %v8645_v57  ;;  %479 = vmatpush.msra.mxu1 %v8627_v51  ;;  %450 = vmatpush.msra.mxu0 %v8696_v16 }
  0x21   :  { %296 = vmatmul.f32.vlgmr.msrb.gmra.mxu1 %v120_v13  ;;  %12781 = vst [vmem:[#allocation31_spill] sm:$0xff] %v8653_v59  ;;  %v8690_v13 = vand.u32 4294901760, %v8677_v6  ;;  %510 = vmatpush.msra.mxu2 %v8586_v38 }
  0x22   :  { %12782 = vst [vmem:[#allocation32_spill] sm:$0xff] %v8658_v61  ;;  %481 = vmatpush.msra.mxu1 %v8642_v56  ;;  %599 = vmatpush.msrb.mxu0 %v8715_v25 }
  0x23   :  { %12783 = vst [vmem:[#allocation33_spill] sm:$0xff] %v8660_v62  ;;  %v401_v20 = vsub.f32 %v8677_v6, %v8690_v13  ;;  %514 = vmatpush.msra.mxu2 %v8602_v43 }
  0x24   :  { %12784 = vst [vmem:[#allocation34_spill] sm:$0xff] %v8663_v63  ;;  %483 = vmatpush.msra.mxu1 %v8660_v62  ;;  %601 = vmatpush.msrb.mxu0 %v8725_v30 }
  0x25   :  { %12785 = vst [vmem:[#allocation35_spill] sm:$0xff] %v8671_v1  ;;  %v8713_v23 = vand.u32 4294901760, %v401_v20  ;;  %518 = vmatpush.msra.mxu2 %v8620_v49  ;;  %v648_v20 = vsub.f32 %v8744_v46, %v8756_v54 }
  0x26   :  { %12786 = vst [vmem:[#allocation36_spill] sm:$0xff] %v8674_v2  ;;  %485 = vmatpush.msra.mxu1 %v8683_v8  ;;  %603 = vmatpush.msrb.mxu0 %v8741_v42 }
  0x27   :  { %272 = vmatmul.f32.gmra.mxu0 %v128_v14  ;;  %12787 = vst [vmem:[#allocation37_spill] sm:$0xff] %v8677_v6  ;;  %522 = vmatpush.msra.mxu2 %v8639_v55  ;;  %v8787_v52 = vand.u32 4294901760, %v648_v20  ;;  %v654_v55 = vsub.f32 %v8761_v60, %v8774_v22 }
  0x28   :  { %12788 = vst [vmem:[#allocation38_spill] sm:$0xff] %v8683_v8  ;;  %605 = vmatpush.msrb.mxu0 %v8758_v58  ;;  %644 = vmatpush.msrb.mxu1 %v8768_v9 }
  0x29   :  { %300 = vmatmul.f32.gmra.mxu1 %v128_v14  ;;  %12789 = vst [vmem:[#allocation39_spill] sm:$0xff] %v8690_v13  ;;  %v8693_v14 = vand.u32 4294901760, %v389_v7  ;;  %v30_v7 = vld [vmem:[%s12364_s2 + $0x30] sm:$0xff]  ;;  %526 = vmatpush.msra.mxu2 %v8663_v63  ;;  %v28_v63 = vld [vmem:[%s12364_s2 + $0x20] sm:$0xff] }
  0x2a   :  { %12791 = vst [vmem:[#allocation41_spill] sm:$0xff] %v8696_v16  ;;  %v8776_v27 = vand.u32 4294901760, %v30_v7  ;;  %650 = vmatpush.msrb.mxu1 %v8787_v52  ;;  %v8808_v38 = vand.u32 4294901760, %v28_v63 }
  0x2b   :  { %12790 = vst [vmem:[#allocation40_spill] sm:$0xff] %v8693_v14  ;;  %391 = vmatpush.msrb.mxu3 %v8693_v14  ;;  %530 = vmatpush.msra.mxu2 %v8674_v2 }
  0x2c   :  { %12792 = vst [vmem:[#allocation42_spill] sm:$0xff] %v8700_v19  ;;  %607 = vmatpush.msrb.mxu0 %v8776_v27 }
  0x2d   :  { %12793 = vst [vmem:[#allocation43_spill] sm:$0xff] %v8707_v21  ;;  %397 = vmatpush.msrb.mxu3 %v8700_v19  ;;  %v8806_v19 = vand.u32 4294901760, %v654_v55  ;;  %534 = vmatpush.msra.mxu2 %v8690_v13 }
  0x2e   :  { %12794 = vst [vmem:[#allocation44_spill] sm:$0xff] %v8713_v23 }
  0x2f   :  { %12795 = vst [vmem:[#allocation45_spill] sm:$0xff] %v8715_v25  ;;  %403 = vmatpush.msrb.mxu3 %v8713_v23  ;;  %v8798_v23 = vsub.f32 %v30_v7, %v8776_v27  ;;  %v660_v7 = vsub.f32 %v8779_v28, %v8795_v48  ;;  %656 = vmatpush.msrb.mxu1 %v8806_v19 }
  0x30   :  { %12796 = vst [vmem:[#allocation46_spill] sm:$0xff] %v8725_v30  ;;  %538 = vmatpush.msra.mxu2 %v8707_v21 }
  0x31   :  { %12797 = vst [vmem:[#allocation47_spill] sm:$0xff] %v8728_v31  ;;  %409 = vmatpush.msrb.mxu3 %v8732_v32  ;;  %v8817_v2 = vand.u32 4294901760, %v8798_v23  ;;  %v8833_v53 = vand.u32 4294901760, %v660_v7 }
  0x32   :  { %12798 = vst [vmem:[#allocation48_spill] sm:$0xff] %v8732_v32  ;;  %v8791_v32 = vand.u32 4294901760, %v29_v34 }
  0x33   :  { %12799 = vst [vmem:[#allocation49_spill] sm:$0xff] %v8739_v41  ;;  %557 = vmatpush.msra.mxu3 %v8570_v33  ;;  %v666_v47 = vsub.f32 %v8798_v23, %v8817_v2  ;;  %662 = vmatpush.msrb.mxu1 %v8833_v53 }
  0x34   :  { %12800 = vst [vmem:[#allocation50_spill] sm:$0xff] %v8741_v42  ;;  %v8811_v14 = vsub.f32 %v29_v34, %v8791_v32  ;;  %609 = vmatpush.msrb.mxu0 %v8791_v32  ;;  %v8831_v34 = vsub.f32 %v28_v63, %v8808_v38 }
  0x35   :  { %12801 = vst [vmem:[#allocation51_spill] sm:$0xff] %v8744_v46  ;;  %559 = vmatpush.msra.mxu3 %v8578_v36  ;;  %v8849_v7 = vand.u32 4294901760, %v666_v47 }
  0x36   :  { %12802 = vst [vmem:[#allocation52_spill] sm:$0xff] %v8756_v54  ;;  %v8826_v55 = vand.u32 4294901760, %v8811_v14  ;;  %611 = vmatpush.msrb.mxu0 %v8808_v38  ;;  %v8843_v63 = vand.u32 4294901760, %v8831_v34 }
  0x37   :  { %12803 = vst [vmem:[#allocation53_spill] sm:$0xff] %v8758_v58  ;;  %561 = vmatpush.msra.mxu3 %v8592_v40  ;;  %668 = vmatpush.msrb.mxu1 %v8849_v7 }
  0x38   :  { %12804 = vst [vmem:[#allocation54_spill] sm:$0xff] %v8761_v60  ;;  %v672_v29 = vsub.f32 %v8811_v14, %v8826_v55 }
  0x39   :  { %12805 = vst [vmem:[#allocation55_spill] sm:$0xff] %v8768_v9  ;;  %563 = vmatpush.msra.mxu3 %v8608_v45  ;;  %v78_v9 = vld [vmem:[%s12364_s2 + $0x1b0] sm:$0xff] }
  0x3a   :  { %12806 = vst [vmem:[#allocation56_spill] sm:$0xff] %v8774_v22 }
  0x3b   :  { %12807 = vst [vmem:[#allocation57_spill] sm:$0xff] %v8776_v27  ;;  %565 = vmatpush.msra.mxu3 %v8627_v51 }
  0x3c   :  { %12808 = vst [vmem:[#allocation58_spill] sm:$0xff] %v8779_v28 }
  0x3d   :  { %12809 = vst [vmem:[#allocation59_spill] sm:$0xff] %v8787_v52  ;;  %567 = vmatpush.msra.mxu3 %v8642_v56 }
  0x3e   :  { %12810 = vst [vmem:[#allocation60_spill] sm:$0xff] %v8791_v32 }
  0x3f   :  { %12811 = vst [vmem:[#allocation61_spill] sm:$0xff] %v8795_v48  ;;  %569 = vmatpush.msra.mxu3 %v8660_v62 }
  0x40   :  { %12812 = vst [vmem:[#allocation62_spill] sm:$0xff] %v8798_v23 }
  0x41   :  { %12813 = vst [vmem:[#allocation63_spill] sm:$0xff] %v8806_v19  ;;  %571 = vmatpush.msra.mxu3 %v8683_v8  ;;  %v9221_v8 = vand.u32 4294901760, %v78_v9 }
  0x42   :  { %12814 = vst [vmem:[#allocation64_spill] sm:$0xff] %v8808_v38 }
  0x43   :  { %12815 = vst [vmem:[#allocation65_spill] sm:$0xff] %v8811_v14 }
  0x44   :  { %12816 = vst [vmem:[#allocation66_spill] sm:$0xff] %v8817_v2 }
  0x45   :  { %12817 = vst [vmem:[#allocation67_spill] sm:$0xff] %v8826_v55 }
  0x46   :  { %12819 = vst [vmem:[#allocation69_spill] sm:$0xff] %v8831_v34 }
  0x47   :  { %12820 = vst [vmem:[#allocation70_spill] sm:$0xff] %v8833_v53 }
  0x48   :  { %12821 = vst [vmem:[#allocation71_spill] sm:$0xff] %v8843_v63 }
  0x49   :  { %12823 = vst [vmem:[#allocation73_spill] sm:$0xff] %v8849_v7 }
  0x4a   :  { %12868 = vst [vmem:[#allocation118_spill] sm:$0xff] %v9221_v8 }
  0x8c   :  { %v126_v37 = vpop.f32.mrf.mxu0 }
  0x8e   :  { %v170_v0 = vpop.f32.mrf.mxu1  ;;  %v202_v49 = vpop.f32.mrf.mxu2 }
  0x8f   :  { %v171_v20 = vadd.f32 %v170_v0, %v126_v37  ;;  %v27_v37 = vld [vmem:[%s12364_s2 + $0x18] sm:$0xff]  ;;  %v233_v1 = vpop.f32.mrf.mxu3 }
  0x90   :  { %v8828_v0 = vand.u32 4294901760, %v27_v37 }
  0x91   :  { %v203_v13 = vadd.f32 %v202_v49, %v171_v20  ;;  %v8853_v49 = vand.u32 4294901760, %v672_v29  ;;  %v678_v20 = vsub.f32 %v8831_v34, %v8843_v63 }
  0x92   :  { %12818 = vst [vmem:[#allocation68_spill] sm:$0xff] %v8828_v0  ;;  %v8846_v12 = vsub.f32 %v27_v37, %v8828_v0  ;;  %613 = vmatpush.msrb.mxu0 %v8828_v0 }
  0x93   :  { %12824 = vst [vmem:[#allocation74_spill] sm:$0xff] %v8853_v49  ;;  %v234_v37 = vadd.f32 %v233_v1, %v203_v13  ;;  %v8862_v47 = vand.u32 4294901760, %v678_v20  ;;  %674 = vmatpush.msrb.mxu1 %v8853_v49 }
  0x94   :  { %v134_v43 = vpop.f32.mrf.mxu0  ;;  %12822 = vst [vmem:[#allocation72_spill] sm:$0xff] %v8846_v12  ;;  %v8858_v21 = vand.u32 4294901760, %v8846_v12 }
  0x95   :  { %12826 = vst [vmem:[#allocation76_spill] sm:$0xff] %v8862_v47  ;;  %680 = vmatpush.msrb.mxu1 %v8862_v47 }
  0x96   :  { %v174_v59 = vpop.f32.mrf.mxu1  ;;  %12825 = vst [vmem:[#allocation75_spill] sm:$0xff] %v8858_v21  ;;  %v684_v24 = vsub.f32 %v8846_v12, %v8858_v21  ;;  %v207_v29 = vpop.f32.mrf.mxu2 }
  0x97   :  { %v175_v26 = vadd.f32 %v174_v59, %v134_v43  ;;  %v239_v43 = vpop.f32.mrf.mxu3 }
  0x98   :  { %v8867_v53 = vand.u32 4294901760, %v684_v24 }
  0x99   :  { %v208_v7 = vadd.f32 %v207_v29, %v175_v26  ;;  %v8887_v26 = vld [vmem:[%s12364_s2 + $0xa8] sm:$0xff] }
  0x9a   :  { %12827 = vst [vmem:[#allocation77_spill] sm:$0xff] %v8867_v53  ;;  %686 = vmatpush.msrb.mxu1 %v8867_v53 }
  0x9b   :  { %v240_v59 = vadd.f32 %v239_v43, %v208_v7  ;;  %v8900_v7 = vld [vmem:[%s12364_s2 + $0xa0] sm:$0xff] }
  0x9c   :  { %v269_v11 = vpop.f32.mrf.mxu0 }
  0x9d   :  { %v270_v10 = vadd.f32 %v269_v11, %v234_v37 }
  0x9e   :  { %v297_v19 = vpop.f32.mrf.mxu1 }
  0x9f   :  { %v8870_v1 = vadd.f32 %v297_v19, %v270_v10 }
  0xa1   :  { %8381 = vtanh.f32 %v8870_v1 }
  0xa4   :  { %v273_v13 = vpop.f32.mrf.mxu0 }
  0xa5   :  { %v274_v20 = vadd.f32 %v273_v13, %v240_v59  ;;  %v8911_v59 = vand.u32 4294901760, %v8900_v7 }
  0xa6   :  { %v301_v52 = vpop.f32.mrf.mxu1 }
  0xa7   :  { %v8382_v49 = vpop.eup %8381  ;;  %v8874_v11 = vadd.f32 %v301_v52, %v274_v20  ;;  %v8895_v52 = vand.u32 4294901760, %v8887_v26  ;;  %12829 = vst [vmem:[#allocation79_spill] sm:$0xff] %v8911_v59 }
  0xa8   :  { %v308_v24 = vsel %vm306_vm1, %v8382_v49, 0 }
  0xa9   :  { %v8877_v37 = vand.u32 4294901760, %v308_v24  ;;  %8383 = vtanh.f32 %v8874_v11  ;;  %12828 = vst [vmem:[#allocation78_spill] sm:$0xff] %v8895_v52 }
  0xab   :  { %411 = vmatmul.f32.vlgmr.msrb.gmra.mxu3 %v8877_v37  ;;  %v8882_v10 = vsub.f32 %v308_v24, %v8877_v37  ;;  %v8918_v24 = vsub.f32 %v8887_v26, %v8895_v52 }
  0xac   :  { %748 = vmatpush.msrb.mxu3 %v8715_v25 }
  0xad   :  { %453 = vmatmul.f32.vlgmr.msra.gmra.mxu0 %v8882_v10  ;;  %v8892_v19 = vand.u32 4294901760, %v8882_v10  ;;  %12830 = vst [vmem:[#allocation80_spill] sm:$0xff] %v8918_v24 }
  0xae   :  { %750 = vmatpush.msrb.mxu3 %v8725_v30  ;;  %787 = vmatpush.msra.mxu0 %v8739_v41 }
  0xaf   :  { %v8384_v49 = vpop.eup %8383  ;;  %489 = vmatmul.f32.vlgmr.msra.gmra.mxu1 %v8892_v19  ;;  %v340_v29 = vsub.f32 %v8882_v10, %v8892_v19 }
  0xb0   :  { %v311_v43 = vsel %vm306_vm1, %v8384_v49, 0  ;;  %752 = vmatpush.msrb.mxu3 %v8741_v42  ;;  %791 = vmatpush.msra.mxu0 %v8756_v54 }
  0xb1   :  { %v8913_v13 = vand.u32 4294901760, %v311_v43  ;;  %v341_v20 = vand.u32 4294901760, %v340_v29  ;;  %834 = vmatpush.msra.mxu1 %v8715_v25  ;;  %v8930_v29 = vsub.f32 %v8900_v7, %v8911_v59 }
  0xb2   :  { %754 = vmatpush.msrb.mxu3 %v8758_v58  ;;  %795 = vmatpush.msra.mxu0 %v8774_v22  ;;  %v8938_v22 = vand.u32 4294901760, %v8918_v24 }
  0xb3   :  { %342 = vmatmul.f32.vlgmr.msrb.gmra.mxu2 %v341_v20  ;;  %415 = vmatmul.f32.gmra.mxu3 %v8913_v13  ;;  %v8924_v49 = vsub.f32 %v311_v43, %v8913_v13  ;;  %12831 = vst [vmem:[#allocation81_spill] sm:$0xff] %v8930_v29 }
  0xb4   :  { %836 = vmatpush.msra.mxu1 %v8725_v30  ;;  %706 = vmatpush.msrb.mxu2 %v8728_v31  ;;  %12832 = vst [vmem:[#allocation82_spill] sm:$0xff] %v8938_v22  ;;  %v8949_v31 = vand.u32 4294901760, %v8930_v29 }
  0xb5   :  { %458 = vmatmul.f32.gmra.mxu0 %v8924_v49  ;;  %v8934_v54 = vand.u32 4294901760, %v8924_v49  ;;  %756 = vmatpush.msrb.mxu3 %v8776_v27 }
  0xb6   :  { %799 = vmatpush.msra.mxu0 %v8795_v48  ;;  %838 = vmatpush.msra.mxu1 %v8741_v42  ;;  %12833 = vst [vmem:[#allocation83_spill] sm:$0xff] %v8949_v31  ;;  %v921_v48 = vsub.f32 %v8918_v24, %v8938_v22 }
  0xb7   :  { %495 = vmatmul.f32.gmra.mxu1 %v8934_v54  ;;  %v348_v43 = vsub.f32 %v8924_v49, %v8934_v54  ;;  %709 = vmatpush.msrb.mxu2 %v8744_v46 }
  0xb8   :  { %758 = vmatpush.msrb.mxu3 %v8791_v32  ;;  %803 = vmatpush.msra.mxu0 %v8817_v2  ;;  %v9098_v2 = vld [vmem:[%s12364_s2 + $0x1e0] sm:$0xff] }
  0xb9   :  { %v349_v41 = vand.u32 4294901760, %v348_v43  ;;  %840 = vmatpush.msra.mxu1 %v8758_v58  ;;  %712 = vmatpush.msrb.mxu2 %v8761_v60  ;;  %v927_v43 = vsub.f32 %v8930_v29, %v8949_v31  ;;  %v8963_v60 = vand.u32 4294901760, %v921_v48  ;;  %v19_v48 = vld [vmem:[%s12366_s1] sm:$0xff]  ;;  %v9189_v58 = vand.u32 4294901760, %v8870_v1 }
  0xba   :  { %760 = vmatpush.msrb.mxu3 %v8808_v38  ;;  %807 = vmatpush.msra.mxu0 %v8826_v55 }
  0xbb   :  { %350 = vmatmul.f32.gmra.mxu2 %v349_v41  ;;  %573 = vmatmul.f32.vlgmr.msra.gmra.mxu3 %v8877_v37  ;;  %12834 = vst [vmem:[#allocation84_spill] sm:$0xff] %v8963_v60  ;;  %v9219_v25 = vsub.f32 %v8870_v1, %v9189_v58 }
  0xbc   :  { %842 = vmatpush.msra.mxu1 %v8776_v27  ;;  %715 = vmatpush.msrb.mxu2 %v8779_v28  ;;  %v8971_v28 = vand.u32 4294901760, %v927_v43  ;;  %v864_v43 = vsel %vm862_vm2, %v19_v48, 0  ;;  %v9019_v48 = vld [vmem:[%s12364_s2 + $0x210] sm:$0xff] }
  0xbd   :  { %619 = vmatmul.f32.vlgmr.msrb.gmra.mxu0 %v341_v20  ;;  %762 = vmatpush.msrb.mxu3 %v8828_v0  ;;  %v92_v20 = vld [vmem:[%s12364_s2 + $0x220] sm:$0xff]  ;;  %12867 = vst [vmem:[#allocation117_spill] sm:$0xff] %v9219_v25 }
  0xbe   :  { %811 = vmatpush.msra.mxu0 %v8843_v63  ;;  %844 = vmatpush.msra.mxu1 %v8791_v32  ;;  %12835 = vst [vmem:[#allocation85_spill] sm:$0xff] %v8971_v28 }
  0xbf   :  { %688 = vmatmul.f32.vlgmr.msrb.gmra.mxu1 %v8877_v37  ;;  %718 = vmatpush.msrb.mxu2 %v8798_v23 }
  0xc0   :  { %815 = vmatpush.msra.mxu0 %v8858_v21  ;;  %846 = vmatpush.msra.mxu1 %v8808_v38  ;;  %v82_v38 = vld [vmem:[%s12364_s2 + $0x1d0] sm:$0xff] }
  0xc1   :  { %721 = vmatpush.msrb.mxu2 %v8811_v14  ;;  %923 = vmatpush.msra.mxu3 %v8963_v60  ;;  %v9045_v60 = vld [vmem:[%s12364_s2 + $0x200] sm:$0xff]  ;;  %v9151_v32 = vand.u32 4294901760, %v82_v38 }
  0xc2   :  { %848 = vmatpush.msra.mxu1 %v8828_v0  ;;  %955 = vmatpush.msrb.mxu0 %v8918_v24 }
  0xc3   :  { %540 = vmatmul.f32.vlgmr.msra.gmra.mxu2 %v8877_v37  ;;  %577 = vmatmul.f32.gmra.mxu3 %v8913_v13  ;;  %12857 = vst [vmem:[#allocation107_spill] sm:$0xff] %v9151_v32 }
  0xc4   :  { %724 = vmatpush.msrb.mxu2 %v8831_v34  ;;  %929 = vmatpush.msra.mxu3 %v8971_v28  ;;  %v9034_v34 = vand.u32 4294901760, %v9019_v48 }
  0xc5   :  { %627 = vmatmul.f32.gmra.mxu0 %v349_v41  ;;  %985 = vmatpush.msrb.mxu1 %v8895_v52  ;;  %v93_v41 = vld [vmem:[%s12364_s2 + $0x228] sm:$0xff] }
  0xc6   :  { %727 = vmatpush.msrb.mxu2 %v8846_v12  ;;  %958 = vmatpush.msrb.mxu0 %v8930_v29  ;;  %v9001_v29 = vand.u32 4294901760, %v93_v41  ;;  %v9007_v12 = vld [vmem:[%s12364_s2 + $0x218] sm:$0xff]  ;;  %12840 = vst [vmem:[#allocation90_spill] sm:$0xff] %v9034_v34 }
  0xc7   :  { %692 = vmatmul.f32.gmra.mxu1 %v8913_v13  ;;  %v9022_v28 = vand.u32 4294901760, %v9007_v12 }
  0xc8   :  { %884 = vmatpush.msra.mxu2 %v8895_v52  ;;  %987 = vmatpush.msrb.mxu1 %v8911_v59  ;;  %12836 = vst [vmem:[#allocation86_spill] sm:$0xff] %v9001_v29 }
  0xc9   :  { %12839 = vst [vmem:[#allocation89_spill] sm:$0xff] %v9022_v28 }
  0xca   :  { %886 = vmatpush.msra.mxu2 %v8911_v59 }
  0xcb   :  { %544 = vmatmul.f32.gmra.mxu2 %v8913_v13  ;;  %766 = vmatmul.f32.vlgmr.msrb.gmra.mxu3 %v8892_v19  ;;  %v9010_v19 = vand.u32 4294901760, %v92_v20 }
  0xcc   :  { %1047 = vmatpush.msrb.mxu3 %v8895_v52  ;;  %v9014_v52 = vand.u32 4294901760, %v864_v43 }
  0xcd   :  { %817 = vmatmul.f32.vlgmr.msra.gmra.mxu0 %v8877_v37  ;;  %12837 = vst [vmem:[#allocation87_spill] sm:$0xff] %v9010_v19 }
  0xce   :  { %1049 = vmatpush.msrb.mxu3 %v8911_v59  ;;  %1078 = vmatpush.msra.mxu0 %v9001_v29  ;;  %12838 = vst [vmem:[#allocation88_spill] sm:$0xff] %v9014_v52  ;;  %v9028_v59 = vld [vmem:[%s12364_s2 + $0x208] sm:$0xff]  ;;  %v9040_v24 = vsub.f32 %v864_v43, %v9014_v52 }
  0xcf   :  { %850 = vmatmul.f32.vlgmr.msra.gmra.mxu1 %v8877_v37  ;;  %v20_v37 = vld [vmem:[%s12366_s1 + $0x8] sm:$0xff]  ;;  %v9049_v14 = vand.u32 4294901760, %v9028_v59 }
  0xd0   :  { %1080 = vmatpush.msra.mxu0 %v9010_v19  ;;  %12841 = vst [vmem:[#allocation91_spill] sm:$0xff] %v9040_v24  ;;  %v867_v21 = vsel %vm862_vm2, %v20_v37, 0  ;;  %v9066_v43 = vand.u32 4294901760, %v9040_v24  ;;  %v9071_v37 = vld [vmem:[%s12364_s2 + $0x1f0] sm:$0xff] }
  0xd1   :  { %12842 = vst [vmem:[#allocation92_spill] sm:$0xff] %v9049_v14 }
  0xd2   :  { %1082 = vmatpush.msra.mxu0 %v9022_v28  ;;  %12844 = vst [vmem:[#allocation94_spill] sm:$0xff] %v9066_v43  ;;  %v890_v63 = vsub.f32 %v9040_v24, %v9066_v43 }
  0xd3   :  { %730 = vmatmul.f32.vlgmr.msrb.gmra.mxu2 %v8882_v10  ;;  %772 = vmatmul.f32.gmra.mxu3 %v8934_v54  ;;  %v9057_v54 = vld [vmem:[%s12364_s2 + $0x1f8] sm:$0xff]  ;;  %v9061_v10 = vand.u32 4294901760, %v9045_v60 }
  0xd4   :  { %1018 = vmatpush.msrb.mxu2 %v8938_v22  ;;  %1084 = vmatpush.msra.mxu0 %v9034_v34  ;;  %v9073_v22 = vand.u32 4294901760, %v867_v21  ;;  %v9076_v23 = vand.u32 4294901760, %v9057_v54  ;;  %v9116_v53 = vand.u32 4294901760, %v890_v63  ;;  %v9132_v63 = vsub.f32 %v92_v20, %v9010_v19 }
  0xd5   :  { %821 = vmatmul.f32.gmra.mxu0 %v8913_v13  ;;  %12843 = vst [vmem:[#allocation93_spill] sm:$0xff] %v9061_v10  ;;  %v9146_v20 = vsub.f32 %v9007_v12, %v9022_v28 }
  0xd6   :  { %1022 = vmatpush.msrb.mxu2 %v8949_v31  ;;  %1086 = vmatpush.msra.mxu0 %v9049_v14  ;;  %12845 = vst [vmem:[#allocation95_spill] sm:$0xff] %v9073_v22  ;;  %v9082_v31 = vld [vmem:[%s12364_s2 + $0x1e8] sm:$0xff]  ;;  %v9093_v55 = vsub.f32 %v867_v21, %v9073_v22  ;;  %v9113_v21 = vand.u32 4294901760, %v9098_v2 }
  0xd7   :  { %854 = vmatmul.f32.gmra.mxu1 %v8913_v13  ;;  %12846 = vst [vmem:[#allocation96_spill] sm:$0xff] %v9076_v23  ;;  %v9085_v13 = vand.u32 4294901760, %v9071_v37  ;;  %v9102_v46 = vand.u32 4294901760, %v9082_v31 }
  0xd8   :  { %1088 = vmatpush.msra.mxu0 %v9061_v10  ;;  %12848 = vst [vmem:[#allocation98_spill] sm:$0xff] %v9093_v55  ;;  %v9119_v47 = vand.u32 4294901760, %v9093_v55  ;;  %v9236_v1 = vsub.f32 %v9098_v2, %v9113_v21  ;;  %v9253_v2 = vsub.f32 %v82_v38, %v9151_v32 }
  0xd9   :  { %12847 = vst [vmem:[#allocation97_spill] sm:$0xff] %v9085_v13 }
  0xda   :  { %1090 = vmatpush.msra.mxu0 %v9076_v23  ;;  %12849 = vst [vmem:[#allocation99_spill] sm:$0xff] %v9102_v46 }
  0xdb   :  { %735 = vmatmul.f32.gmra.mxu2 %v8924_v49  ;;  %931 = vmatmul.f32.vlgmr.msra.gmra.mxu3 %v9014_v52  ;;  %v9109_v49 = vld [vmem:[%s12364_s2 + $0x1d8] sm:$0xff]  ;;  %12850 = vst [vmem:[#allocation100_spill] sm:$0xff] %v9113_v21 }
  0xdc   :  { %1291 = vmatpush.msra.mxu3 %v9001_v29  ;;  %1092 = vmatpush.msra.mxu0 %v9085_v13  ;;  %12851 = vst [vmem:[#allocation101_spill] sm:$0xff] %v9116_v53  ;;  %v9127_v0 = vand.u32 4294901760, %v9109_v49 }
  0xdd   :  { %961 = vmatmul.f32.vlgmr.msrb.gmra.mxu0 %v9040_v24  ;;  %12852 = vst [vmem:[#allocation102_spill] sm:$0xff] %v9119_v47  ;;  %v9124_v24 = vsub.f32 %v93_v41, %v9001_v29  ;;  %v898_v41 = vsub.f32 %v9093_v55, %v9119_v47 }
  0xde   :  { %1293 = vmatpush.msra.mxu3 %v9010_v19  ;;  %1094 = vmatpush.msra.mxu0 %v9102_v46  ;;  %12854 = vst [vmem:[#allocation104_spill] sm:$0xff] %v9127_v0 }
  0xdf   :  { %991 = vmatmul.f32.vlgmr.msrb.gmra.mxu1 %v9066_v43  ;;  %12853 = vst [vmem:[#allocation103_spill] sm:$0xff] %v9124_v24  ;;  %v81_v43 = vld [vmem:[%s12364_s2 + $0x1c8] sm:$0xff]  ;;  %v9160_v27 = vand.u32 4294901760, %v898_v41  ;;  %v9176_v41 = vand.u32 4294901760, %v8874_v11 }
  0xe0   :  { %1295 = vmatpush.msra.mxu3 %v9022_v28  ;;  %1096 = vmatpush.msra.mxu0 %v9113_v21  ;;  %12855 = vst [vmem:[#allocation105_spill] sm:$0xff] %v9132_v63  ;;  %v9162_v12 = vand.u32 4294901760, %v81_v43 }
  0xe1   :  { %12856 = vst [vmem:[#allocation106_spill] sm:$0xff] %v9146_v20  ;;  %v9206_v30 = vsub.f32 %v8874_v11, %v9176_v41  ;;  %v9228_v11 = vsub.f32 %v9082_v31, %v9102_v46  ;;  %v9245_v31 = vsub.f32 %v9109_v49, %v9127_v0 }
  0xe2   :  { %1297 = vmatpush.msra.mxu3 %v9034_v34  ;;  %1098 = vmatpush.msra.mxu0 %v9127_v0  ;;  %12859 = vst [vmem:[#allocation109_spill] sm:$0xff] %v9160_v27  ;;  %v9261_v49 = vsub.f32 %v81_v43, %v9162_v12 }
  0xe3   :  { %892 = vmatmul.f32.vlgmr.msra.gmra.mxu2 %v9116_v53  ;;  %935 = vmatmul.f32.gmra.mxu3 %v9073_v22  ;;  %v9158_v53 = vsub.f32 %v9019_v48, %v9034_v34  ;;  %12860 = vst [vmem:[#allocation110_spill] sm:$0xff] %v9162_v12  ;;  %v80_v48 = vld [vmem:[%s12364_s2 + $0x1c0] sm:$0xff]  ;;  %v12455_v62 = vand.u32 4294901760, %v9206_v30 }
  0xe4   :  { %1233 = vmatpush.msra.mxu2 %v9124_v24  ;;  %1299 = vmatpush.msra.mxu3 %v9049_v14  ;;  %v9193_v42 = vand.u32 4294901760, %v80_v48  ;;  %12869 = vst [vmem:[#allocation119_spill] sm:$0xff] %v9228_v11 }
  0xe5   :  { %966 = vmatmul.f32.gmra.mxu0 %v9093_v55  ;;  %12858 = vst [vmem:[#allocation108_spill] sm:$0xff] %v9158_v53  ;;  %v9170_v55 = vsub.f32 %v9028_v59, %v9049_v14  ;;  %v79_v59 = vld [vmem:[%s12364_s2 + $0x1b8] sm:$0xff]  ;;  %v1691_v16 = vsub.f32 %v9206_v30, %v12455_v62 }
  0xe6   :  { %1236 = vmatpush.msra.mxu2 %v9132_v63  ;;  %1301 = vmatpush.msra.mxu3 %v9061_v10  ;;  %12863 = vst [vmem:[#allocation113_spill] sm:$0xff] %v9193_v42  ;;  %v9266_v62 = vsub.f32 %v80_v48, %v9193_v42 }
  0xe7   :  { %997 = vmatmul.f32.gmra.mxu1 %v9119_v47  ;;  %1100 = vmatpush.msra.mxu0 %v9151_v32  ;;  %12861 = vst [vmem:[#allocation111_spill] sm:$0xff] %v9170_v55  ;;  %v9183_v47 = vsub.f32 %v9045_v60, %v9061_v10  ;;  %v9199_v60 = vsub.f32 %v9057_v54, %v9076_v23  ;;  %v1692_v56 = vand.u32 4294901760, %v1691_v16 }
  0xe8   :  { %1239 = vmatpush.msra.mxu2 %v9146_v20  ;;  %1303 = vmatpush.msra.mxu3 %v9076_v23  ;;  %v9215_v54 = vsub.f32 %v9071_v37, %v9085_v13  ;;  %12870 = vst [vmem:[#allocation120_spill] sm:$0xff] %v9236_v1  ;;  %v12456_v37 = vand.u32 4294901760, %v9219_v25  ;;  %v9275_v16 = vsub.f32 %v78_v9, %v9221_v8 }
  0xe9   :  { %1102 = vmatpush.msra.mxu0 %v9162_v12  ;;  %12862 = vst [vmem:[#allocation112_spill] sm:$0xff] %v9183_v47 }
  0xea   :  { %1242 = vmatpush.msra.mxu2 %v9158_v53  ;;  %1305 = vmatpush.msra.mxu3 %v9085_v13  ;;  %12864 = vst [vmem:[#allocation114_spill] sm:$0xff] %v9199_v60 }
  0xeb   :  { %900 = vmatmul.f32.gmra.mxu2 %v9160_v27  ;;  %1051 = vmatmul.f32.vlgmr.msrb.gmra.mxu3 %v9014_v52  ;;  %v9208_v27 = vand.u32 4294901760, %v79_v59  ;;  %12866 = vst [vmem:[#allocation116_spill] sm:$0xff] %v9215_v54 }
  0xec   :  { %1245 = vmatpush.msra.mxu2 %v9170_v55  ;;  %1307 = vmatpush.msra.mxu3 %v9102_v46  ;;  %12871 = vst [vmem:[#allocation121_spill] sm:$0xff] %v9245_v31 }
  0xed   :  { %12865 = vst [vmem:[#allocation115_spill] sm:$0xff] %v9208_v27  ;;  %1104 = vmatpush.msra.mxu0 %v9193_v42 }
  0xee   :  { %1248 = vmatpush.msra.mxu2 %v9183_v47  ;;  %1309 = vmatpush.msra.mxu3 %v9113_v21  ;;  %12872 = vst [vmem:[#allocation122_spill] sm:$0xff] %v9253_v2 }
  0xef   :  { %1106 = vmatpush.msra.mxu0 %v9208_v27  ;;  %12873 = vst [vmem:[#allocation123_spill] sm:$0xff] %v9261_v49 }
  0xf0   :  { %1251 = vmatpush.msra.mxu2 %v9199_v60  ;;  %1311 = vmatpush.msra.mxu3 %v9127_v0  ;;  %12874 = vst [vmem:[#allocation124_spill] sm:$0xff] %v9266_v62 }
  0xf1   :  { %1108 = vmatpush.msra.mxu0 %v9221_v8  ;;  %12876 = vst [vmem:[#allocation126_spill] sm:$0xff] %v9275_v16 }
  0xf2   :  { %1254 = vmatpush.msra.mxu2 %v9215_v54  ;;  %1313 = vmatpush.msra.mxu3 %v9151_v32 }
  0xf3   :  { %1024 = vmatmul.f32.vlgmr.msrb.gmra.mxu2 %v9014_v52  ;;  %1055 = vmatmul.f32.gmra.mxu3 %v9073_v22  ;;  %v1697_v52 = vsub.f32 %v9219_v25, %v12456_v37  ;;  %v9271_v37 = vsub.f32 %v79_v59, %v9208_v27 }
  0xf4   :  { %1257 = vmatpush.msra.mxu2 %v9228_v11  ;;  %1315 = vmatpush.msra.mxu3 %v9162_v12 }
  0xf5   :  { %v1698_v38 = vand.u32 4294901760, %v1697_v52  ;;  %12875 = vst [vmem:[#allocation125_spill] sm:$0xff] %v9271_v37 }
  0xf6   :  { %1260 = vmatpush.msra.mxu2 %v9236_v1  ;;  %1317 = vmatpush.msra.mxu3 %v9193_v42 }
  0xf8   :  { %1263 = vmatpush.msra.mxu2 %v9245_v31  ;;  %1319 = vmatpush.msra.mxu3 %v9208_v27 }
  0xfa   :  { %1266 = vmatpush.msra.mxu2 %v9253_v2  ;;  %1321 = vmatpush.msra.mxu3 %v9221_v8 }
  0xfb   :  { %1028 = vmatmul.f32.gmra.mxu2 %v9073_v22 }
  0xfc   :  { %1693 = vmatpush.msrb.mxu3 %v1692_v56  ;;  %1269 = vmatpush.msra.mxu2 %v9261_v49 }
  0xfe   :  { %1699 = vmatpush.msrb.mxu3 %v1698_v38  ;;  %1272 = vmatpush.msra.mxu2 %v9266_v62 }
 0x100   :  { %1275 = vmatpush.msra.mxu2 %v9271_v37 }
 0x102   :  { %1278 = vmatpush.msra.mxu2 %v9275_v16 }
 0x104   :  { %1542 = vmatpush.msrb.mxu2 %v9176_v41 }
 0x106   :  { %1544 = vmatpush.msrb.mxu2 %v9189_v58 }
 0x12a   :  { %v454_v52 = vpop.f32.mrf.mxu0 }
 0x12c   :  { %v490_v43 = vpop.f32.mrf.mxu1 }
 0x12e   :  { %v412_v56 = vpop.f32.mrf.mxu3 }
 0x132   :  { %v459_v22 = vpop.f32.mrf.mxu0 }
 0x134   :  { %v496_v51 = vpop.f32.mrf.mxu1 }
 0x136   :  { %v343_v48 = vpop.f32.mrf.mxu2  ;;  %v416_v59 = vpop.f32.mrf.mxu3 }
 0x137   :  { %v413_v61 = vadd.f32 %v412_v56, %v343_v48 }
 0x139   :  { %v455_v9 = vadd.f32 %v454_v52, %v413_v61 }
 0x13a   :  { %v620_v45 = vpop.f32.mrf.mxu0 }
 0x13b   :  { %v491_v44 = vadd.f32 %v490_v43, %v455_v9 }
 0x13c   :  { %v689_v33 = vpop.f32.mrf.mxu1 }
 0x13e   :  { %v351_v38 = vpop.f32.mrf.mxu2  ;;  %v574_v6 = vpop.f32.mrf.mxu3 }
 0x13f   :  { %v417_v57 = vadd.f32 %v416_v59, %v351_v38 }
 0x141   :  { %v460_v36 = vadd.f32 %v459_v22, %v417_v57 }
 0x142   :  { %v628_v17 = vpop.f32.mrf.mxu0 }
 0x143   :  { %v497_v35 = vadd.f32 %v496_v51, %v460_v36 }
 0x144   :  { %v693_v61 = vpop.f32.mrf.mxu1 }
 0x146   :  { %v541_v40 = vpop.f32.mrf.mxu2  ;;  %v578_v50 = vpop.f32.mrf.mxu3 }
 0x147   :  { %v542_v39 = vadd.f32 %v541_v40, %v491_v44 }
 0x149   :  { %v575_v4 = vadd.f32 %v574_v6, %v542_v39 }
 0x14a   :  { %v818_v57 = vpop.f32.mrf.mxu0 }
 0x14b   :  { %v581_v25 = vmul.f32 %v575_v4, %v8900_v7  ;;  %v9295_v7 = vand.u32 4294901760, %v9158_v53 }
 0x14c   :  { %v851_v36 = vpop.f32.mrf.mxu1 }
 0x14d   :  { %12880 = vst [vmem:[#allocation130_spill] sm:$0xff] %v9295_v7 }
 0x14e   :  { %v545_v5 = vpop.f32.mrf.mxu2  ;;  %v767_v3 = vpop.f32.mrf.mxu3 }
 0x14f   :  { %v546_v18 = vadd.f32 %v545_v5, %v497_v35 }
 0x151   :  { %v579_v15 = vadd.f32 %v578_v50, %v546_v18  ;;  %v9289_v50 = vand.u32 4294901760, %v9132_v63 }
 0x152   :  { %v9283_v18 = vpop.f32.mrf.mxu0 }
 0x153   :  { %v582_v56 = vmul.f32 %v579_v15, %v8887_v26  ;;  %v9286_v15 = vand.u32 4294901760, %v9124_v24  ;;  %12878 = vst [vmem:[#allocation128_spill] sm:$0xff] %v9289_v50  ;;  %v9292_v26 = vand.u32 4294901760, %v9146_v20 }
 0x155   :  { %v583_v52 = vadd.f32 %v582_v56, %v581_v25  ;;  %12877 = vst [vmem:[#allocation127_spill] sm:$0xff] %v9286_v15  ;;  %1338 = vmatpush.msrb.mxu0 %v9286_v15  ;;  %v9303_v56 = vpop.f32.mrf.mxu1 }
 0x156   :  { %v731_v48 = vpop.f32.mrf.mxu2  ;;  %v773_v22 = vpop.f32.mrf.mxu3  ;;  %12879 = vst [vmem:[#allocation129_spill] sm:$0xff] %v9292_v26 }
 0x157   :  { %v584_v59 = vrot.slane %v583_v52, 4  ;;  %1342 = vmatpush.msrb.mxu0 %v9289_v50 }
 0x159   :  { %v585_v38 = vadd.f32 %v584_v59, %v583_v52  ;;  %v1141_v52 = vsub.f32 %v9146_v20, %v9292_v26  ;;  %1346 = vmatpush.msrb.mxu0 %v9292_v26  ;;  %v9346_v26 = vand.u32 4294901760, %v9236_v1 }
 0x15b   :  { %v586_v43 = vrot.slane %v585_v38, 2  ;;  %1350 = vmatpush.msrb.mxu0 %v9295_v7  ;;  %12891 = vst [vmem:[#allocation141_spill] sm:$0xff] %v9346_v26 }
 0x15d   :  { %v587_v40 = vadd.f32 %v586_v43, %v585_v38  ;;  %v9314_v38 = vand.u32 4294901760, %v9183_v47 }
 0x15e   :  { %v736_v44 = vpop.f32.mrf.mxu2  ;;  %v932_v35 = vpop.f32.mrf.mxu3 }
 0x15f   :  { %v588_v39 = vrot.slane %v587_v40, 1  ;;  %12883 = vst [vmem:[#allocation133_spill] sm:$0xff] %v9314_v38 }
 0x161   :  { %v589_v5 = vadd.f32 %v588_v39, %v587_v40 }
 0x163   :  { %v621_v51 = vadd.f32 %v620_v45, %v589_v5  ;;  %v629_v6 = vadd.f32 %v628_v17, %v589_v5  ;;  %v1129_v45 = vsub.f32 %v9124_v24, %v9286_v15  ;;  %v1135_v17 = vsub.f32 %v9132_v63, %v9289_v50 }
 0x164   :  { %v9320_v5 = vand.u32 4294901760, %v1141_v52  ;;  %v9325_v15 = vand.u32 4294901760, %v9199_v60 }
 0x165   :  { %v690_v4 = vadd.f32 %v689_v33, %v621_v51  ;;  %v9300_v33 = vand.u32 4294901760, %v9170_v55  ;;  %v9309_v59 = vand.u32 4294901760, %v1129_v45  ;;  %v694_v40 = vadd.f32 %v693_v61, %v629_v6 }
 0x166   :  { %v893_v25 = vpop.f32.mrf.mxu2  ;;  %v9317_v39 = vand.u32 4294901760, %v1135_v17  ;;  %12885 = vst [vmem:[#allocation135_spill] sm:$0xff] %v9320_v5  ;;  %v936_v45 = vpop.f32.mrf.mxu3  ;;  %v1159_v61 = vsub.f32 %v9183_v47, %v9314_v38  ;;  %v9334_v6 = vand.u32 4294901760, %v9215_v54 }
 0x167   :  { %v732_v9 = vadd.f32 %v731_v48, %v690_v4  ;;  %12881 = vst [vmem:[#allocation131_spill] sm:$0xff] %v9300_v33  ;;  %v1147_v48 = vsub.f32 %v9158_v53, %v9295_v7  ;;  %1131 = vmatpush.msra.mxu1 %v9309_v59  ;;  %v1153_v51 = vsub.f32 %v9170_v55, %v9300_v33  ;;  %v962_v4 = vpop.f32.mrf.mxu0 }
 0x168   :  { %12882 = vst [vmem:[#allocation132_spill] sm:$0xff] %v9309_v59  ;;  %v933_v53 = vadd.f32 %v932_v35, %v893_v25  ;;  %v1165_v35 = vsub.f32 %v9199_v60, %v9325_v15  ;;  %v9343_v25 = vand.u32 4294901760, %v9228_v11  ;;  %1354 = vmatpush.msrb.mxu0 %v9300_v33  ;;  %v13019_v59 = vld [vmem:[#allocation57_spill] sm:$0xff] }
 0x169   :  { %v768_v43 = vadd.f32 %v767_v3, %v732_v9  ;;  %12884 = vst [vmem:[#allocation134_spill] sm:$0xff] %v9317_v39  ;;  %1137 = vmatpush.msra.mxu1 %v9317_v39  ;;  %v9329_v3 = vand.u32 4294901760, %v1147_v48  ;;  %v737_v9 = vadd.f32 %v736_v44, %v694_v40  ;;  %v9338_v50 = vand.u32 4294901760, %v1153_v51  ;;  %v992_v48 = vpop.f32.mrf.mxu1  ;;  %v13017_v39 = vld [vmem:[#allocation53_spill] sm:$0xff] }
 0x16a   :  { %12886 = vst [vmem:[#allocation136_spill] sm:$0xff] %v9325_v15  ;;  %v963_v44 = vadd.f32 %v962_v4, %v933_v53  ;;  %1358 = vmatpush.msrb.mxu0 %v9314_v38  ;;  %v9356_v7 = vand.u32 4294901760, %v1165_v35  ;;  %v1177_v60 = vsub.f32 %v9228_v11, %v9343_v25  ;;  %v9361_v53 = vand.u32 4294901760, %v9245_v31 }
 0x16b   :  { %12887 = vst [vmem:[#allocation137_spill] sm:$0xff] %v9329_v3  ;;  %v819_v52 = vadd.f32 %v818_v57, %v768_v43  ;;  %1143 = vmatpush.msra.mxu1 %v9320_v5  ;;  %v9350_v57 = vand.u32 4294901760, %v1159_v61  ;;  %v1171_v43 = vsub.f32 %v9215_v54, %v9334_v6  ;;  %v774_v40 = vadd.f32 %v773_v22, %v737_v9  ;;  %v13015_v5 = vld [vmem:[#allocation59_spill] sm:$0xff] }
 0x16c   :  { %12888 = vst [vmem:[#allocation138_spill] sm:$0xff] %v9334_v6  ;;  %v1183_v61 = vsub.f32 %v9236_v1, %v9346_v26  ;;  %1362 = vmatpush.msrb.mxu0 %v9325_v15  ;;  %v993_v22 = vadd.f32 %v992_v48, %v963_v44  ;;  %v9375_v15 = vand.u32 4294901760, %v1177_v60  ;;  %v9391_v60 = vand.u32 4294901760, %v9266_v62 }
 0x16d   :  { %12889 = vst [vmem:[#allocation139_spill] sm:$0xff] %v9338_v50  ;;  %1149 = vmatpush.msra.mxu1 %v9329_v3  ;;  %v852_v51 = vadd.f32 %v851_v36, %v819_v52  ;;  %v9367_v9 = vand.u32 4294901760, %v1171_v43  ;;  %v9370_v52 = vand.u32 4294901760, %v9253_v2  ;;  %v823_v35 = vadd.f32 %v9283_v18, %v774_v40  ;;  %v13014_v3 = vld [vmem:[#allocation50_spill] sm:$0xff] }
 0x16e   :  { %v901_v17 = vpop.f32.mrf.mxu2  ;;  %12890 = vst [vmem:[#allocation140_spill] sm:$0xff] %v9343_v25  ;;  %v1052_v4 = vpop.f32.mrf.mxu3  ;;  %1366 = vmatpush.msrb.mxu0 %v9334_v6  ;;  %v9382_v48 = vand.u32 4294901760, %v1183_v61 }
 0x16f   :  { %12892 = vst [vmem:[#allocation142_spill] sm:$0xff] %v9350_v57  ;;  %1155 = vmatpush.msra.mxu1 %v9338_v50  ;;  %v937_v36 = vadd.f32 %v936_v45, %v901_v17  ;;  %v967_v38 = vpop.f32.mrf.mxu0  ;;  %v858_v11 = vmul.f32 0.2, %v852_v51  ;;  %v1189_v45 = vsub.f32 %v9245_v31, %v9361_v53  ;;  %v9380_v17 = vand.u32 4294901760, %v9261_v49 }
 0x170   :  { %12893 = vst [vmem:[#allocation143_spill] sm:$0xff] %v9356_v7  ;;  %1370 = vmatpush.msrb.mxu0 %v9343_v25 }
 0x171   :  { %12894 = vst [vmem:[#allocation144_spill] sm:$0xff] %v9361_v53  ;;  %1161 = vmatpush.msra.mxu1 %v9350_v57  ;;  %v968_v18 = vadd.f32 %v967_v38, %v937_v36  ;;  %v998_v43 = vpop.f32.mrf.mxu1  ;;  %v860_v40 = vmax.f32 %v852_v51, %v858_v11  ;;  %v1201_v38 = vsub.f32 %v9261_v49, %v9380_v17  ;;  %v9411_v36 = vand.u32 4294901760, %v9275_v16 }
 0x172   :  { %12895 = vst [vmem:[#allocation145_spill] sm:$0xff] %v9367_v9  ;;  %1374 = vmatpush.msrb.mxu0 %v9346_v26  ;;  %v1207_v51 = vsub.f32 %v9266_v62, %v9391_v60  ;;  %v12928_v62 = vld [vmem:[#allocation10_spill] sm:$0xff] }
 0x173   :  { %12896 = vst [vmem:[#allocation146_spill] sm:$0xff] %v9370_v52  ;;  %1167 = vmatpush.msra.mxu1 %v9356_v7  ;;  %v999_v11 = vadd.f32 %v998_v43, %v968_v18  ;;  %v9415_v18 = vand.u32 4294901760, %v1201_v38 }
 0x174   :  { %12897 = vst [vmem:[#allocation147_spill] sm:$0xff] %v9375_v15  ;;  %1378 = vmatpush.msrb.mxu0 %v9361_v53  ;;  %v1219_v53 = vsub.f32 %v9275_v16, %v9411_v36 }
 0x175   :  { %12898 = vst [vmem:[#allocation148_spill] sm:$0xff] %v9380_v17  ;;  %1173 = vmatpush.msra.mxu1 %v9367_v9 }
 0x176   :  { %v1025_v33 = vpop.f32.mrf.mxu2  ;;  %12899 = vst [vmem:[#allocation149_spill] sm:$0xff] %v9382_v48  ;;  %1382 = vmatpush.msrb.mxu0 %v9370_v52 }
 0x177   :  { %v1026_v54 = vadd.f32 %v1025_v33, %v993_v22  ;;  %v1195_v33 = vsub.f32 %v9253_v2, %v9370_v52  ;;  %12900 = vst [vmem:[#allocation150_spill] sm:$0xff] %v9391_v60  ;;  %v856_v22 = vadd.f32 %v9303_v56, %v823_v35  ;;  %1179 = vmatpush.msra.mxu1 %v9375_v15 }
 0x178   :  { %12904 = vst [vmem:[#allocation154_spill] sm:$0xff] %v9411_v36  ;;  %1386 = vmatpush.msrb.mxu0 %v9380_v17 }
 0x179   :  { %v9385_v44 = vadd.f32 %v1052_v4, %v1026_v54  ;;  %v9397_v54 = vand.u32 4294901760, %v1189_v45  ;;  %v9402_v4 = vand.u32 4294901760, %v9271_v37  ;;  %1185 = vmatpush.msra.mxu1 %v9382_v48  ;;  %v9406_v56 = vand.u32 4294901760, %v1195_v33  ;;  %v1056_v45 = vpop.f32.mrf.mxu3  ;;  %12905 = vst [vmem:[#allocation155_spill] sm:$0xff] %v9415_v18 }
 0x17a   :  { %v859_v26 = vmul.f32 0.2, %v856_v22  ;;  %1390 = vmatpush.msrb.mxu0 %v9391_v60 }
 0x17b   :  { %vm1059_vm3 = vcmp.gt.f32.partialorder %v9385_v44, 0.0  ;;  %12901 = vst [vmem:[#allocation151_spill] sm:$0xff] %v9397_v54  ;;  %1191 = vmatpush.msra.mxu1 %v9397_v54  ;;  %v1213_v33 = vsub.f32 %v9271_v37, %v9402_v4 }
 0x17c   :  { %12902 = vst [vmem:[#allocation152_spill] sm:$0xff] %v9402_v4  ;;  %v1061_v61 = vsel %vm1059_vm3, %v860_v40, -1e+30  ;;  %v861_v6 = vmax.f32 %v856_v22, %v859_v26  ;;  %1394 = vmatpush.msrb.mxu0 %v9402_v4 }
 0x17d   :  { %1063 = vmax.xlane.f32.xlu0 %v1061_v61  ;;  %12903 = vst [vmem:[#allocation153_spill] sm:$0xff] %v9406_v56  ;;  %1197 = vmatpush.msra.mxu1 %v9406_v56  ;;  %v9421_v61 = vand.u32 4294901760, %v1207_v51  ;;  %v9427_v38 = vand.u32 4294901760, %v1213_v33  ;;  %v46_v33 = vld [vmem:[%s12364_s2 + $0xb0] sm:$0xff] }
 0x17e   :  { %v1029_v35 = vpop.f32.mrf.mxu2  ;;  %1398 = vmatpush.msrb.mxu0 %v9411_v36  ;;  %v1480_v60 = vsel %vm862_vm2, %v46_v33, 0  ;;  %v12913_v33 = vld [vmem:[#allocation117_spill] sm:$0xff] }
 0x17f   :  { %v1030_v25 = vadd.f32 %v1029_v35, %v999_v11  ;;  %12906 = vst [vmem:[#allocation156_spill] sm:$0xff] %v9421_v61  ;;  %1203 = vmatpush.msra.mxu1 %v9415_v18 }
 0x180   :  { %12907 = vst [vmem:[#allocation157_spill] sm:$0xff] %v9427_v38 }
 0x181   :  { %v1057_v43 = vadd.f32 %v1056_v45, %v1030_v25  ;;  %1209 = vmatpush.msra.mxu1 %v9421_v61  ;;  %v9431_v25 = vand.u32 4294901760, %v1219_v53 }
 0x183   :  { %vm1060_vm4 = vcmp.gt.f32.partialorder %v1057_v43, 0.0  ;;  %12908 = vst [vmem:[#allocation158_spill] sm:$0xff] %v9431_v25  ;;  %1215 = vmatpush.msra.mxu1 %v9427_v38 }
 0x184   :  { %v1062_v11 = vsel %vm1060_vm4, %v861_v6, -1e+30 }
 0x185   :  { %1065 = vmax.xlane.f32.xlu0 %v1062_v11  ;;  %1221 = vmatpush.msra.mxu1 %v9431_v25 }
 0x187   :  { %1409 = vmatpush.msrb.mxu1 %v9001_v29  ;;  %v13020_v29 = vld [vmem:[#allocation70_spill] sm:$0xff] }
 0x189   :  { %1411 = vmatpush.msrb.mxu1 %v9010_v19  ;;  %v13018_v19 = vld [vmem:[#allocation63_spill] sm:$0xff] }
 0x18b   :  { %1413 = vmatpush.msrb.mxu1 %v9022_v28 }
 0x18d   :  { %1415 = vmatpush.msrb.mxu1 %v9034_v34 }
 0x18f   :  { %1417 = vmatpush.msrb.mxu1 %v9049_v14  ;;  %v13009_v14 = vld [vmem:[#allocation45_spill] sm:$0xff] }
 0x191   :  { %1419 = vmatpush.msrb.mxu1 %v9061_v10 }
 0x193   :  { %1421 = vmatpush.msrb.mxu1 %v9076_v23 }
 0x195   :  { %1423 = vmatpush.msrb.mxu1 %v9085_v13 }
 0x197   :  { %1425 = vmatpush.msrb.mxu1 %v9102_v46 }
 0x199   :  { %1427 = vmatpush.msrb.mxu1 %v9113_v21 }
 0x19b   :  { %1429 = vmatpush.msrb.mxu1 %v9127_v0 }
 0x19d   :  { %1431 = vmatpush.msrb.mxu1 %v9151_v32 }
 0x19f   :  { %1433 = vmatpush.msrb.mxu1 %v9162_v12 }
 0x1a1   :  { %1435 = vmatpush.msrb.mxu1 %v9193_v42 }
 0x1a3   :  { %1437 = vmatpush.msrb.mxu1 %v9208_v27 }
 0x1a5   :  { %1439 = vmatpush.msrb.mxu1 %v9221_v8 }
 0x1f0   :  { %v1064_v26 = vpop.xlane.xlu0 %1063 }
 0x1f1   :  { %v1067_v53 = vsub.f32 %v860_v40, %v1064_v26  ;;  %v9460_v26 = vand.u32 4294901760, %v1480_v60 }
 0x1f3   :  { %v1069_v22 = vmin.f32 %v1067_v53, 0.0  ;;  %12909 = vst [vmem:[#allocation159_spill] sm:$0xff] %v9460_v26  ;;  %v47_v53 = vld [vmem:[%s12364_s2 + $0xb8] sm:$0xff] }
 0x1f5   :  { %v1071_v51 = vmul.f32 1.442695, %v1069_v22 }
 0x1f7   :  { %8385 = vpow2.f32 %v1071_v51  ;;  %v9468_v51 = vsub.f32 %v1480_v60, %v9460_v26 }
 0x1f8   :  { %v1066_v35 = vpop.xlane.xlu0 %1065 }
 0x1f9   :  { %v1068_v45 = vsub.f32 %v861_v6, %v1066_v35  ;;  %12910 = vst [vmem:[#allocation160_spill] sm:$0xff] %v9468_v51  ;;  %v9481_v16 = vand.u32 4294901760, %v9468_v51 }
 0x1fb   :  { %v1070_v11 = vmin.f32 %v1068_v45, 0.0  ;;  %12915 = vst [vmem:[#allocation117_spill] sm:$0xff] %v9481_v16 }
 0x1fd   :  { %v8386_v36 = vpop.eup %8385  ;;  %v1073_v4 = vmul.f32 1.442695, %v1070_v11  ;;  %v12914_v11 = vand.u32 4294901760, %v12913_v33 }
 0x1fe   :  { %v9457_v17 = vmul.f32 %v8386_v36, %v9385_v44  ;;  %v1483_v36 = vsel %vm862_vm2, %v47_v53, 0  ;;  %v1548_v53 = vsub.f32 %v9468_v51, %v9481_v16 }
 0x1ff   :  { %8387 = vpow2.f32 %v1073_v4  ;;  %v12911_v4 = vand.u32 4294901760, %v9206_v30  ;;  %v9483_v37 = vand.u32 4294901760, %v1483_v36 }
 0x200   :  { %v1109_v40 = vand.u32 4294901760, %v9457_v17 }
 0x201   :  { %12916 = vst [vmem:[#allocation162_spill] sm:$0xff] %v9483_v37 }
 0x202   :  { %1223 = vmatmul.f32.vlgmr.msra.gmra.mxu1 %v1109_v40  ;;  %v1110_v6 = vsub.f32 %v9457_v17, %v1109_v40 }
 0x203   :  { %1881 = vmatpush.msra.mxu1 %v9176_v41 }
 0x204   :  { %1281 = vmatmul.f32.vlgmr.msra.gmra.mxu2 %v1110_v6  ;;  %v1111_v22 = vand.u32 4294901760, %v1110_v6 }
 0x205   :  { %v8388_v44 = vpop.eup %8387  ;;  %1883 = vmatpush.msra.mxu1 %v9189_v58  ;;  %1998 = vmatpush.msra.mxu2 %v12911_v4  ;;  %v9498_v4 = vand.u32 4294901760, %v1548_v53  ;;  %v12924_v53 = vld [vmem:[#allocation9_spill] sm:$0xff] }
 0x206   :  { %v9474_v35 = vmul.f32 %v8388_v44, %v1057_v43  ;;  %1325 = vmatmul.f32.vlgmr.msra.gmra.mxu3 %v1111_v22  ;;  %v1112_v45 = vsub.f32 %v1110_v6, %v1111_v22  ;;  %v48_v6 = vld [vmem:[%s12364_s2 + $0xc0] sm:$0xff]  ;;  %v9494_v22 = vsub.f32 %v1483_v36, %v9483_v37  ;;  %v49_v36 = vld [vmem:[%s12364_s2 + $0xc8] sm:$0xff] }
 0x207   :  { %2002 = vmatpush.msra.mxu2 %v12914_v11  ;;  %2083 = vmatpush.msra.mxu3 %v9176_v41  ;;  %12918 = vst [vmem:[#allocation164_spill] sm:$0xff] %v9498_v4 }
 0x208   :  { %12912 = vst [vmem:[#allocation161_spill] sm:$0xff] %v9474_v35  ;;  %v1113_v52 = vand.u32 4294901760, %v1112_v45  ;;  %v1117_v60 = vand.u32 4294901760, %v9474_v35  ;;  %v9501_v45 = vand.u32 4294901760, %v9494_v22 }
 0x209   :  { %2085 = vmatpush.msra.mxu3 %v9189_v58  ;;  %12917 = vst [vmem:[#allocation163_spill] sm:$0xff] %v9494_v22  ;;  %v1486_v58 = vsel %vm862_vm2, %v48_v6, 0  ;;  %v12922_v6 = vld [vmem:[#allocation8_spill] sm:$0xff] }
 0x20a   :  { %1114 = vmatmul.f32.vlgmr.msra.gmra.mxu0 %v1113_v52  ;;  %1227 = vmatmul.f32.gmra.mxu1 %v1117_v60  ;;  %v1118_v43 = vsub.f32 %v9474_v35, %v1117_v60  ;;  %12919 = vst [vmem:[#allocation165_spill] sm:$0xff] %v9501_v45 }
 0x20b   :  { %1781 = vmatpush.msra.mxu0 %v9206_v30  ;;  %v9503_v30 = vand.u32 4294901760, %v1486_v58 }
 0x20c   :  { %1286 = vmatmul.f32.gmra.mxu2 %v1118_v43  ;;  %v1119_v41 = vand.u32 4294901760, %v1118_v43 }
 0x20d   :  { %1784 = vmatpush.msra.mxu0 %v12913_v33  ;;  %12920 = vst [vmem:[#allocation166_spill] sm:$0xff] %v9503_v30  ;;  %v1556_v33 = vsub.f32 %v9494_v22, %v9501_v45  ;;  %v9512_v11 = vsub.f32 %v1486_v58, %v9503_v30  ;;  %v12929_v58 = vld [vmem:[#allocation3_spill] sm:$0xff] }
 0x20e   :  { %1331 = vmatmul.f32.gmra.mxu3 %v1119_v41  ;;  %v1120_v52 = vsub.f32 %v1118_v43, %v1119_v41  ;;  %v1489_v43 = vsel %vm862_vm2, %v49_v36, 0  ;;  %v12923_v41 = vld [vmem:[#allocation2_spill] sm:$0xff]  ;;  %v50_v36 = vld [vmem:[%s12364_s2 + $0xd0] sm:$0xff] }
 0x20f   :  { %12921 = vst [vmem:[#allocation167_spill] sm:$0xff] %v9512_v11 }
 0x210   :  { %v1121_v44 = vand.u32 4294901760, %v1120_v52  ;;  %v9519_v52 = vand.u32 4294901760, %v1556_v33 }
 0x212   :  { %1122 = vmatmul.f32.gmra.mxu0 %v1121_v44  ;;  %1441 = vmatmul.f32.vlgmr.msrb.gmra.mxu1 %v1109_v40  ;;  %12925 = vst [vmem:[#allocation8_spill] sm:$0xff] %v9519_v52  ;;  %v9522_v44 = vand.u32 4294901760, %v9512_v11 }
 0x214   :  { %1550 = vmatmul.f32.vlgmr.msrb.gmra.mxu2 %v9498_v4  ;;  %12926 = vst [vmem:[#allocation9_spill] sm:$0xff] %v9522_v44  ;;  %v9524_v4 = vand.u32 4294901760, %v1489_v43  ;;  %v1564_v33 = vsub.f32 %v9512_v11, %v9522_v44 }
 0x215   :  { %2715 = vmatpush.msrb.mxu2 %v12922_v6  ;;  %v12930_v6 = vld [vmem:[#allocation4_spill] sm:$0xff] }
 0x216   :  { %1701 = vmatmul.f32.vlgmr.msrb.gmra.mxu3 %v9460_v26  ;;  %12927 = vst [vmem:[#allocation168_spill] sm:$0xff] %v9524_v4 }
 0x217   :  { %2747 = vmatpush.msrb.mxu3 %v12923_v41  ;;  %2719 = vmatpush.msrb.mxu2 %v12924_v53  ;;  %v9536_v53 = vsub.f32 %v1489_v43, %v9524_v4 }
 0x219   :  { %2723 = vmatpush.msrb.mxu2 %v12928_v62  ;;  %2749 = vmatpush.msrb.mxu3 %v12929_v58  ;;  %12931 = vst [vmem:[#allocation10_spill] sm:$0xff] %v9536_v53  ;;  %v1492_v62 = vsel %vm862_vm2, %v50_v36, 0  ;;  %v9543_v49 = vand.u32 4294901760, %v9536_v53 }
 0x21a   :  { %1400 = vmatmul.f32.vlgmr.msrb.gmra.mxu0 %v1109_v40  ;;  %1445 = vmatmul.f32.gmra.mxu1 %v1117_v60  ;;  %v9540_v40 = vand.u32 4294901760, %v1564_v33  ;;  %v9545_v8 = vand.u32 4294901760, %v1492_v62 }
 0x21b   :  { %2751 = vmatpush.msrb.mxu3 %v12930_v6  ;;  %12933 = vst [vmem:[#allocation170_spill] sm:$0xff] %v9543_v49  ;;  %v1572_v43 = vsub.f32 %v9536_v53, %v9543_v49 }
 0x21c   :  { %1558 = vmatmul.f32.gmra.mxu2 %v9519_v52  ;;  %12932 = vst [vmem:[#allocation169_spill] sm:$0xff] %v9540_v40  ;;  %v51_v52 = vld [vmem:[%s12364_s2 + $0xd8] sm:$0xff]  ;;  %v9555_v36 = vsub.f32 %v1492_v62, %v9545_v8  ;;  %v52_v62 = vld [vmem:[%s12364_s2 + $0xe0] sm:$0xff] }
 0x21d   :  { %12934 = vst [vmem:[#allocation171_spill] sm:$0xff] %v9545_v8  ;;  %v1495_v33 = vsel %vm862_vm2, %v51_v52, 0  ;;  %v9559_v2 = vand.u32 4294901760, %v1572_v43 }
 0x21e   :  { %1705 = vmatmul.f32.gmra.mxu3 %v9483_v37  ;;  %12935 = vst [vmem:[#allocation172_spill] sm:$0xff] %v9555_v36 }
 0x21f   :  { %12936 = vst [vmem:[#allocation173_spill] sm:$0xff] %v9559_v2 }
 0x222   :  { %1404 = vmatmul.f32.gmra.mxu0 %v1117_v60  ;;  %1887 = vmatmul.f32.vlgmr.msra.gmra.mxu1 %v9481_v16  ;;  %v9562_v60 = vand.u32 4294901760, %v9555_v36  ;;  %v9564_v16 = vand.u32 4294901760, %v1495_v33 }
 0x224   :  { %1566 = vmatmul.f32.gmra.mxu2 %v9540_v40  ;;  %12937 = vst [vmem:[#allocation174_spill] sm:$0xff] %v9562_v60  ;;  %v1580_v52 = vsub.f32 %v9555_v36, %v9562_v60  ;;  %v9575_v43 = vsub.f32 %v1495_v33, %v9564_v16  ;;  %v1498_v40 = vsel %vm862_vm2, %v52_v62, 0  ;;  %v53_v33 = vld [vmem:[%s12364_s2 + $0xe8] sm:$0xff] }
 0x225   :  { %12938 = vst [vmem:[#allocation175_spill] sm:$0xff] %v9564_v16 }
 0x226   :  { %1709 = vmatmul.f32.gmra.mxu3 %v9503_v30  ;;  %12939 = vst [vmem:[#allocation176_spill] sm:$0xff] %v9575_v43  ;;  %v9579_v27 = vand.u32 4294901760, %v1580_v52 }
 0x228   :  { %12940 = vst [vmem:[#allocation177_spill] sm:$0xff] %v9579_v27 }
 0x22a   :  { %1787 = vmatmul.f32.vlgmr.msra.gmra.mxu0 %v9468_v51  ;;  %1893 = vmatmul.f32.gmra.mxu1 %v9501_v45  ;;  %v9582_v45 = vand.u32 4294901760, %v9575_v43  ;;  %v9584_v51 = vand.u32 4294901760, %v1498_v40 }
 0x22c   :  { %1574 = vmatmul.f32.gmra.mxu2 %v9559_v2  ;;  %12941 = vst [vmem:[#allocation178_spill] sm:$0xff] %v9582_v45  ;;  %v1588_v62 = vsub.f32 %v9575_v43, %v9582_v45  ;;  %v9595_v52 = vsub.f32 %v1498_v40, %v9584_v51  ;;  %v1501_v2 = vsel %vm862_vm2, %v53_v33, 0  ;;  %v54_v40 = vld [vmem:[%s12364_s2 + $0xf0] sm:$0xff] }
 0x22d   :  { %12942 = vst [vmem:[#allocation179_spill] sm:$0xff] %v9584_v51 }
 0x22e   :  { %1713 = vmatmul.f32.gmra.mxu3 %v9524_v4  ;;  %12943 = vst [vmem:[#allocation180_spill] sm:$0xff] %v9595_v52  ;;  %v9599_v31 = vand.u32 4294901760, %v1588_v62 }
 0x230   :  { %12944 = vst [vmem:[#allocation181_spill] sm:$0xff] %v9599_v31 }
 0x232   :  { %1792 = vmatmul.f32.gmra.mxu0 %v9494_v22  ;;  %1899 = vmatmul.f32.gmra.mxu1 %v9522_v44  ;;  %v9602_v44 = vand.u32 4294901760, %v9595_v52  ;;  %v9604_v22 = vand.u32 4294901760, %v1501_v2 }
 0x234   :  { %1582 = vmatmul.f32.gmra.mxu2 %v9579_v27  ;;  %12945 = vst [vmem:[#allocation182_spill] sm:$0xff] %v9602_v44  ;;  %v1596_v33 = vsub.f32 %v9595_v52, %v9602_v44  ;;  %v9615_v62 = vsub.f32 %v1501_v2, %v9604_v22  ;;  %v1504_v27 = vsel %vm862_vm2, %v54_v40, 0  ;;  %v55_v2 = vld [vmem:[%s12364_s2 + $0xf8] sm:$0xff] }
 0x235   :  { %12946 = vst [vmem:[#allocation183_spill] sm:$0xff] %v9604_v22 }
 0x236   :  { %1717 = vmatmul.f32.gmra.mxu3 %v9545_v8  ;;  %12947 = vst [vmem:[#allocation184_spill] sm:$0xff] %v9615_v62  ;;  %v9619_v42 = vand.u32 4294901760, %v1596_v33 }
 0x238   :  { %12948 = vst [vmem:[#allocation185_spill] sm:$0xff] %v9619_v42 }
 0x23a   :  { %1797 = vmatmul.f32.gmra.mxu0 %v9512_v11  ;;  %1905 = vmatmul.f32.gmra.mxu1 %v9543_v49  ;;  %v9622_v49 = vand.u32 4294901760, %v9615_v62  ;;  %v9624_v11 = vand.u32 4294901760, %v1504_v27 }
 0x23c   :  { %1590 = vmatmul.f32.gmra.mxu2 %v9599_v31  ;;  %12949 = vst [vmem:[#allocation186_spill] sm:$0xff] %v9622_v49  ;;  %v1604_v40 = vsub.f32 %v9615_v62, %v9622_v49  ;;  %v9635_v33 = vsub.f32 %v1504_v27, %v9624_v11  ;;  %v1507_v31 = vsel %vm862_vm2, %v55_v2, 0  ;;  %v56_v27 = vld [vmem:[%s12364_s2 + $0x100] sm:$0xff] }
 0x23d   :  { %12950 = vst [vmem:[#allocation187_spill] sm:$0xff] %v9624_v11 }
 0x23e   :  { %1721 = vmatmul.f32.gmra.mxu3 %v9564_v16  ;;  %12951 = vst [vmem:[#allocation188_spill] sm:$0xff] %v9635_v33  ;;  %v9639_v1 = vand.u32 4294901760, %v1604_v40 }
 0x240   :  { %12952 = vst [vmem:[#allocation189_spill] sm:$0xff] %v9639_v1 }
 0x242   :  { %1802 = vmatmul.f32.gmra.mxu0 %v9536_v53  ;;  %1911 = vmatmul.f32.gmra.mxu1 %v9562_v60  ;;  %v9642_v60 = vand.u32 4294901760, %v9635_v33  ;;  %v9644_v53 = vand.u32 4294901760, %v1507_v31 }
 0x244   :  { %1598 = vmatmul.f32.gmra.mxu2 %v9619_v42  ;;  %12953 = vst [vmem:[#allocation190_spill] sm:$0xff] %v9642_v60  ;;  %v1612_v2 = vsub.f32 %v9635_v33, %v9642_v60  ;;  %v9655_v40 = vsub.f32 %v1507_v31, %v9644_v53  ;;  %v1510_v42 = vsel %vm862_vm2, %v56_v27, 0  ;;  %v57_v31 = vld [vmem:[%s12364_s2 + $0x108] sm:$0xff] }
 0x245   :  { %12954 = vst [vmem:[#allocation191_spill] sm:$0xff] %v9644_v53 }
 0x246   :  { %1725 = vmatmul.f32.gmra.mxu3 %v9584_v51  ;;  %12955 = vst [vmem:[#allocation192_spill] sm:$0xff] %v9655_v40  ;;  %v9659_v25 = vand.u32 4294901760, %v1612_v2 }
 0x248   :  { %12956 = vst [vmem:[#allocation193_spill] sm:$0xff] %v9659_v25 }
 0x24a   :  { %1807 = vmatmul.f32.gmra.mxu0 %v9555_v36  ;;  %1917 = vmatmul.f32.gmra.mxu1 %v9582_v45  ;;  %v9662_v45 = vand.u32 4294901760, %v9655_v40  ;;  %v9664_v36 = vand.u32 4294901760, %v1510_v42 }
 0x24c   :  { %1606 = vmatmul.f32.gmra.mxu2 %v9639_v1  ;;  %12957 = vst [vmem:[#allocation194_spill] sm:$0xff] %v9662_v45  ;;  %v1620_v27 = vsub.f32 %v9655_v40, %v9662_v45  ;;  %v9675_v2 = vsub.f32 %v1510_v42, %v9664_v36  ;;  %v1513_v1 = vsel %vm862_vm2, %v57_v31, 0  ;;  %v58_v42 = vld [vmem:[%s12364_s2 + $0x110] sm:$0xff] }
 0x24d   :  { %12958 = vst [vmem:[#allocation195_spill] sm:$0xff] %v9664_v36 }
 0x24e   :  { %1729 = vmatmul.f32.gmra.mxu3 %v9604_v22  ;;  %12959 = vst [vmem:[#allocation196_spill] sm:$0xff] %v9675_v2  ;;  %v9679_v12 = vand.u32 4294901760, %v1620_v27 }
 0x250   :  { %12960 = vst [vmem:[#allocation197_spill] sm:$0xff] %v9679_v12 }
 0x252   :  { %1812 = vmatmul.f32.gmra.mxu0 %v9575_v43  ;;  %1923 = vmatmul.f32.gmra.mxu1 %v9602_v44  ;;  %v9682_v44 = vand.u32 4294901760, %v9675_v2  ;;  %v9684_v43 = vand.u32 4294901760, %v1513_v1 }
 0x254   :  { %1614 = vmatmul.f32.gmra.mxu2 %v9659_v25  ;;  %12961 = vst [vmem:[#allocation198_spill] sm:$0xff] %v9682_v44  ;;  %v1628_v31 = vsub.f32 %v9675_v2, %v9682_v44  ;;  %v9695_v27 = vsub.f32 %v1513_v1, %v9684_v43  ;;  %v1516_v25 = vsel %vm862_vm2, %v58_v42, 0  ;;  %v59_v1 = vld [vmem:[%s12364_s2 + $0x118] sm:$0xff] }
 0x255   :  { %12962 = vst [vmem:[#allocation199_spill] sm:$0xff] %v9684_v43 }
 0x256   :  { %1733 = vmatmul.f32.gmra.mxu3 %v9624_v11  ;;  %12963 = vst [vmem:[#allocation200_spill] sm:$0xff] %v9695_v27  ;;  %v9699_v32 = vand.u32 4294901760, %v1628_v31 }
 0x258   :  { %12964 = vst [vmem:[#allocation201_spill] sm:$0xff] %v9699_v32 }
 0x25a   :  { %1817 = vmatmul.f32.gmra.mxu0 %v9595_v52  ;;  %1929 = vmatmul.f32.gmra.mxu1 %v9622_v49  ;;  %v9702_v49 = vand.u32 4294901760, %v9695_v27  ;;  %v9704_v52 = vand.u32 4294901760, %v1516_v25 }
 0x25c   :  { %1622 = vmatmul.f32.gmra.mxu2 %v9679_v12  ;;  %12965 = vst [vmem:[#allocation202_spill] sm:$0xff] %v9702_v49  ;;  %v1636_v42 = vsub.f32 %v9695_v27, %v9702_v49  ;;  %v9715_v31 = vsub.f32 %v1516_v25, %v9704_v52  ;;  %v1519_v12 = vsel %vm862_vm2, %v59_v1, 0  ;;  %v60_v25 = vld [vmem:[%s12364_s2 + $0x120] sm:$0xff] }
 0x25d   :  { %12966 = vst [vmem:[#allocation203_spill] sm:$0xff] %v9704_v52 }
 0x25e   :  { %1737 = vmatmul.f32.gmra.mxu3 %v9644_v53  ;;  %12967 = vst [vmem:[#allocation204_spill] sm:$0xff] %v9715_v31  ;;  %v9719_v38 = vand.u32 4294901760, %v1636_v42 }
 0x260   :  { %12968 = vst [vmem:[#allocation205_spill] sm:$0xff] %v9719_v38 }
 0x262   :  { %1822 = vmatmul.f32.gmra.mxu0 %v9615_v62  ;;  %1935 = vmatmul.f32.gmra.mxu1 %v9642_v60  ;;  %v9722_v60 = vand.u32 4294901760, %v9715_v31  ;;  %v9724_v62 = vand.u32 4294901760, %v1519_v12 }
 0x264   :  { %1630 = vmatmul.f32.gmra.mxu2 %v9699_v32  ;;  %12969 = vst [vmem:[#allocation206_spill] sm:$0xff] %v9722_v60  ;;  %v1644_v1 = vsub.f32 %v9715_v31, %v9722_v60  ;;  %v9735_v42 = vsub.f32 %v1519_v12, %v9724_v62  ;;  %v1522_v32 = vsel %vm862_vm2, %v60_v25, 0  ;;  %v61_v12 = vld [vmem:[%s12364_s2 + $0x128] sm:$0xff] }
 0x265   :  { %12970 = vst [vmem:[#allocation207_spill] sm:$0xff] %v9724_v62 }
 0x266   :  { %1741 = vmatmul.f32.gmra.mxu3 %v9664_v36  ;;  %12971 = vst [vmem:[#allocation208_spill] sm:$0xff] %v9735_v42  ;;  %v9739_v0 = vand.u32 4294901760, %v1644_v1 }
 0x268   :  { %12972 = vst [vmem:[#allocation209_spill] sm:$0xff] %v9739_v0 }
 0x26a   :  { %1827 = vmatmul.f32.gmra.mxu0 %v9635_v33  ;;  %1941 = vmatmul.f32.gmra.mxu1 %v9662_v45  ;;  %v9742_v45 = vand.u32 4294901760, %v9735_v42  ;;  %v9744_v33 = vand.u32 4294901760, %v1522_v32 }
 0x26c   :  { %1638 = vmatmul.f32.gmra.mxu2 %v9719_v38  ;;  %12973 = vst [vmem:[#allocation210_spill] sm:$0xff] %v9742_v45  ;;  %v1652_v25 = vsub.f32 %v9735_v42, %v9742_v45  ;;  %v9755_v1 = vsub.f32 %v1522_v32, %v9744_v33  ;;  %v1525_v38 = vsel %vm862_vm2, %v61_v12, 0 }
 0x26d   :  { %12974 = vst [vmem:[#allocation211_spill] sm:$0xff] %v9744_v33 }
 0x26e   :  { %1745 = vmatmul.f32.gmra.mxu3 %v9684_v43  ;;  %12975 = vst [vmem:[#allocation212_spill] sm:$0xff] %v9755_v1  ;;  %v9759_v61 = vand.u32 4294901760, %v1652_v25 }
 0x270   :  { %12976 = vst [vmem:[#allocation213_spill] sm:$0xff] %v9759_v61 }
 0x272   :  { %1832 = vmatmul.f32.gmra.mxu0 %v9655_v40  ;;  %1947 = vmatmul.f32.gmra.mxu1 %v9682_v44  ;;  %v9762_v44 = vand.u32 4294901760, %v9755_v1  ;;  %v9764_v40 = vand.u32 4294901760, %v1525_v38 }
 0x274   :  { %1646 = vmatmul.f32.gmra.mxu2 %v9739_v0  ;;  %12977 = vst [vmem:[#allocation214_spill] sm:$0xff] %v9762_v44  ;;  %v1660_v32 = vsub.f32 %v9755_v1, %v9762_v44  ;;  %v9772_v12 = vsub.f32 %v1525_v38, %v9764_v40 }
 0x275   :  { %12978 = vst [vmem:[#allocation215_spill] sm:$0xff] %v9764_v40 }
 0x276   :  { %1749 = vmatmul.f32.gmra.mxu3 %v9704_v52  ;;  %12979 = vst [vmem:[#allocation216_spill] sm:$0xff] %v9772_v12  ;;  %v9775_v25 = vand.u32 4294901760, %v1660_v32  ;;  %v9778_v0 = vand.u32 4294901760, %v9772_v12 }
 0x278   :  { %12980 = vst [vmem:[#allocation217_spill] sm:$0xff] %v9775_v25 }
 0x279   :  { %12981 = vst [vmem:[#allocation218_spill] sm:$0xff] %v9778_v0 }
 0x27a   :  { %1837 = vmatmul.f32.gmra.mxu0 %v9675_v2  ;;  %1953 = vmatmul.f32.gmra.mxu1 %v9702_v49 }
 0x27c   :  { %1654 = vmatmul.f32.gmra.mxu2 %v9759_v61  ;;  %v1668_v61 = vsub.f32 %v9772_v12, %v9778_v0 }
 0x27e   :  { %1753 = vmatmul.f32.gmra.mxu3 %v9724_v62  ;;  %v9786_v32 = vand.u32 4294901760, %v1668_v61  ;;  %v12985_v61 = vld [vmem:[#allocation14_spill] sm:$0xff] }
 0x27f   :  { %v1224_v49 = vpop.f32.mrf.mxu1 }
 0x280   :  { %12982 = vst [vmem:[#allocation219_spill] sm:$0xff] %v9786_v32 }
 0x282   :  { %1842 = vmatmul.f32.gmra.mxu0 %v9695_v27  ;;  %1959 = vmatmul.f32.gmra.mxu1 %v9722_v60 }
 0x284   :  { %1662 = vmatmul.f32.gmra.mxu2 %v9775_v25 }
 0x286   :  { %1757 = vmatmul.f32.gmra.mxu3 %v9744_v33 }
 0x287   :  { %v1115_v38 = vpop.f32.mrf.mxu0  ;;  %v1282_v47 = vpop.f32.mrf.mxu2 }
 0x288   :  { %v1225_v2 = vadd.f32 %v1224_v49, %v1115_v38  ;;  %v1228_v25 = vpop.f32.mrf.mxu1 }
 0x289   :  { %v1326_v21 = vpop.f32.mrf.mxu3 }
 0x28a   :  { %v1283_v18 = vadd.f32 %v1282_v47, %v1225_v2  ;;  %1847 = vmatmul.f32.gmra.mxu0 %v9715_v31  ;;  %1965 = vmatmul.f32.gmra.mxu1 %v9742_v45 }
 0x28c   :  { %v9790_v60 = vadd.f32 %v1326_v21, %v1283_v18  ;;  %1670 = vmatmul.f32.gmra.mxu2 %v9786_v32  ;;  %v12983_v21 = vld [vmem:[#allocation15_spill] sm:$0xff]  ;;  %v12984_v18 = vld [vmem:[#allocation18_spill] sm:$0xff] }
 0x28d   :  { %v12998_v32 = vld [vmem:[#allocation38_spill] sm:$0xff] }
 0x28e   :  { %1761 = vmatmul.f32.gmra.mxu3 %v9764_v40 }
 0x28f   :  { %v1123_v27 = vpop.f32.mrf.mxu0  ;;  %v1287_v46 = vpop.f32.mrf.mxu2 }
 0x290   :  { %v1229_v55 = vadd.f32 %v1228_v25, %v1123_v27  ;;  %v12986_v25 = vld [vmem:[#allocation21_spill] sm:$0xff] }
 0x291   :  { %v1332_v49 = vpop.f32.mrf.mxu3 }
 0x292   :  { %v1288_v38 = vadd.f32 %v1287_v46, %v1229_v55  ;;  %1852 = vmatmul.f32.gmra.mxu0 %v9735_v42  ;;  %1971 = vmatmul.f32.gmra.mxu1 %v9762_v44  ;;  %v12987_v46 = vld [vmem:[#allocation16_spill] sm:$0xff]  ;;  %v12994_v44 = vld [vmem:[#allocation37_spill] sm:$0xff] }
 0x293   :  { %v12996_v42 = vld [vmem:[#allocation41_spill] sm:$0xff] }
 0x294   :  { %v9796_v47 = vadd.f32 %v1332_v49, %v1288_v38  ;;  %2004 = vmatmul.f32.vlgmr.msra.gmra.mxu2 %v9460_v26  ;;  %v12988_v49 = vld [vmem:[#allocation25_spill] sm:$0xff]  ;;  %v12989_v38 = vld [vmem:[#allocation19_spill] sm:$0xff] }
 0x295   :  { %2885 = vmatpush.msra.mxu2 %v12983_v21  ;;  %v12990_v21 = vld [vmem:[#allocation30_spill] sm:$0xff] }
 0x296   :  { %2087 = vmatmul.f32.vlgmr.msra.gmra.mxu3 %v9460_v26 }
 0x297   :  { %2888 = vmatpush.msra.mxu2 %v12984_v18  ;;  %2927 = vmatpush.msra.mxu3 %v12985_v61  ;;  %v1551_v2 = vpop.f32.mrf.mxu2  ;;  %v12991_v18 = vld [vmem:[#allocation22_spill] sm:$0xff] }
 0x299   :  { %v1702_v27 = vpop.f32.mrf.mxu3  ;;  %2891 = vmatpush.msra.mxu2 %v12986_v25  ;;  %2929 = vmatpush.msra.mxu3 %v12987_v46  ;;  %v12992_v25 = vld [vmem:[#allocation32_spill] sm:$0xff] }
 0x29a   :  { %v9805_v55 = vadd.f32 %v1702_v27, %v1551_v2  ;;  %1857 = vmatmul.f32.gmra.mxu0 %v9755_v1  ;;  %1977 = vmatmul.f32.gmra.mxu1 %v9778_v0  ;;  %v12993_v2 = vld [vmem:[#allocation26_spill] sm:$0xff]  ;;  %v12995_v0 = vld [vmem:[#allocation29_spill] sm:$0xff] }
 0x29b   :  { %2894 = vmatpush.msra.mxu2 %v12988_v49  ;;  %2931 = vmatpush.msra.mxu3 %v12989_v38 }
 0x29c   :  { %2008 = vmatmul.f32.gmra.mxu2 %v9483_v37 }
 0x29d   :  { %2897 = vmatpush.msra.mxu2 %v12990_v21  ;;  %2933 = vmatpush.msra.mxu3 %v12991_v18  ;;  %v12997_v21 = vld [vmem:[#allocation33_spill] sm:$0xff] }
 0x29e   :  { %2091 = vmatmul.f32.gmra.mxu3 %v9483_v37 }
 0x29f   :  { %2900 = vmatpush.msra.mxu2 %v12992_v25  ;;  %2935 = vmatpush.msra.mxu3 %v12993_v2  ;;  %v1559_v27 = vpop.f32.mrf.mxu2 }
 0x2a1   :  { %v1706_v1 = vpop.f32.mrf.mxu3  ;;  %2903 = vmatpush.msra.mxu2 %v12994_v44  ;;  %2937 = vmatpush.msra.mxu3 %v12995_v0 }
 0x2a2   :  { %v9819_v49 = vadd.f32 %v1706_v1, %v1559_v27  ;;  %1862 = vmatmul.f32.gmra.mxu0 %v9772_v12 }
 0x2a3   :  { %2906 = vmatpush.msra.mxu2 %v12996_v42  ;;  %2939 = vmatpush.msra.mxu3 %v12997_v21  ;;  %v13027_v21 = vld [vmem:[#allocation74_spill] sm:$0xff] }
 0x2a4   :  { %2012 = vmatmul.f32.gmra.mxu2 %v9503_v30 }
 0x2a5   :  { %2941 = vmatpush.msra.mxu3 %v12998_v32 }
 0x2a6   :  { %2095 = vmatmul.f32.gmra.mxu3 %v9503_v30 }
 0x2a7   :  { %v1567_v25 = vpop.f32.mrf.mxu2 }
 0x2a9   :  { %v1710_v45 = vpop.f32.mrf.mxu3 }
 0x2aa   :  { %v9827_v31 = vadd.f32 %v1710_v45, %v1567_v25 }
 0x2ac   :  { %12999 = vst [vmem:[#allocation15_spill] sm:$0xff] %v9827_v31  ;;  %2016 = vmatmul.f32.gmra.mxu2 %v9524_v4 }
 0x2ae   :  { %2099 = vmatmul.f32.gmra.mxu3 %v9524_v4 }
 0x2af   :  { %v1575_v44 = vpop.f32.mrf.mxu2 }
 0x2b1   :  { %v1714_v1 = vpop.f32.mrf.mxu3 }
 0x2b2   :  { %v9831_v27 = vadd.f32 %v1714_v1, %v1575_v44 }
 0x2b4   :  { %13000 = vst [vmem:[#allocation18_spill] sm:$0xff] %v9831_v27  ;;  %2020 = vmatmul.f32.gmra.mxu2 %v9545_v8 }
 0x2b6   :  { %2103 = vmatmul.f32.gmra.mxu3 %v9545_v8 }
 0x2b7   :  { %v1583_v42 = vpop.f32.mrf.mxu2 }
 0x2b9   :  { %v1718_v12 = vpop.f32.mrf.mxu3 }
 0x2ba   :  { %v9835_v37 = vadd.f32 %v1718_v12, %v1583_v42 }
 0x2bc   :  { %13001 = vst [vmem:[#allocation21_spill] sm:$0xff] %v9835_v37  ;;  %2024 = vmatmul.f32.gmra.mxu2 %v9564_v16 }
 0x2be   :  { %2107 = vmatmul.f32.gmra.mxu3 %v9564_v16 }
 0x2bf   :  { %v1591_v45 = vpop.f32.mrf.mxu2 }
 0x2c1   :  { %v1722_v25 = vpop.f32.mrf.mxu3 }
 0x2c2   :  { %v9839_v30 = vadd.f32 %v1722_v25, %v1591_v45 }
 0x2c4   :  { %2028 = vmatmul.f32.gmra.mxu2 %v9584_v51 }
 0x2c6   :  { %2111 = vmatmul.f32.gmra.mxu3 %v9584_v51 }
 0x2c7   :  { %v1599_v44 = vpop.f32.mrf.mxu2 }
 0x2c9   :  { %v1726_v1 = vpop.f32.mrf.mxu3 }
 0x2ca   :  { %v9843_v4 = vadd.f32 %v1726_v1, %v1599_v44  ;;  %v9854_v44 = vpop.f32.mrf.mxu0 }
 0x2cc   :  { %2032 = vmatmul.f32.gmra.mxu2 %v9604_v22 }
 0x2ce   :  { %2115 = vmatmul.f32.gmra.mxu3 %v9604_v22 }
 0x2cf   :  { %v1607_v12 = vpop.f32.mrf.mxu2 }
 0x2d1   :  { %v1730_v42 = vpop.f32.mrf.mxu3 }
 0x2d2   :  { %v9847_v8 = vadd.f32 %v1730_v42, %v1607_v12  ;;  %v9861_v12 = vpop.f32.mrf.mxu1  ;;  %v9865_v42 = vpop.f32.mrf.mxu0 }
 0x2d3   :  { %v1406_v31 = vadd.f32 %v9865_v42, %v9796_v47 }
 0x2d4   :  { %2036 = vmatmul.f32.gmra.mxu2 %v9624_v11 }
 0x2d6   :  { %2119 = vmatmul.f32.gmra.mxu3 %v9624_v11 }
 0x2d7   :  { %v1615_v45 = vpop.f32.mrf.mxu2 }
 0x2d9   :  { %v1734_v25 = vpop.f32.mrf.mxu3 }
 0x2da   :  { %v9851_v16 = vadd.f32 %v1734_v25, %v1615_v45  ;;  %v9872_v11 = vpop.f32.mrf.mxu1  ;;  %v9879_v26 = vpop.f32.mrf.mxu0 }
 0x2dc   :  { %2040 = vmatmul.f32.gmra.mxu2 %v9644_v53 }
 0x2de   :  { %2123 = vmatmul.f32.gmra.mxu3 %v9644_v53 }
 0x2df   :  { %v9857_v1 = vpop.f32.mrf.mxu2 }
 0x2e1   :  { %v9859_v22 = vpop.f32.mrf.mxu3 }
 0x2e2   :  { %v9889_v13 = vpop.f32.mrf.mxu0 }
 0x2e4   :  { %2044 = vmatmul.f32.gmra.mxu2 %v9664_v36 }
 0x2e6   :  { %2127 = vmatmul.f32.gmra.mxu3 %v9664_v36  ;;  %v9882_v36 = vpop.f32.mrf.mxu1 }
 0x2e7   :  { %v9867_v45 = vpop.f32.mrf.mxu2 }
 0x2e9   :  { %v9869_v25 = vpop.f32.mrf.mxu3 }
 0x2ea   :  { %v9900_v24 = vpop.f32.mrf.mxu0 }
 0x2eb   :  { %13003 = vst [vmem:[#allocation30_spill] sm:$0xff] %v9900_v24 }
 0x2ec   :  { %2048 = vmatmul.f32.gmra.mxu2 %v9684_v43 }
 0x2ee   :  { %2131 = vmatmul.f32.gmra.mxu3 %v9684_v43  ;;  %v9893_v43 = vpop.f32.mrf.mxu1 }
 0x2ef   :  { %v9875_v53 = vpop.f32.mrf.mxu2  ;;  %13002 = vst [vmem:[#allocation25_spill] sm:$0xff] %v9893_v43 }
 0x2f1   :  { %v9877_v51 = vpop.f32.mrf.mxu3 }
 0x2f2   :  { %v9917_v10 = vpop.f32.mrf.mxu0 }
 0x2f3   :  { %13006 = vst [vmem:[#allocation41_spill] sm:$0xff] %v9917_v10 }
 0x2f4   :  { %2052 = vmatmul.f32.gmra.mxu2 %v9704_v52 }
 0x2f6   :  { %2135 = vmatmul.f32.gmra.mxu3 %v9704_v52  ;;  %v9907_v23 = vpop.f32.mrf.mxu1 }
 0x2f7   :  { %v9885_v56 = vpop.f32.mrf.mxu2  ;;  %13004 = vst [vmem:[#allocation32_spill] sm:$0xff] %v9907_v23  ;;  %v1402_v23 = vadd.f32 %v9854_v44, %v9790_v60  ;;  %v10024_v60 = vadd.f32 %v9872_v11, %v1406_v31 }
 0x2f9   :  { %v9887_v20 = vpop.f32.mrf.mxu3  ;;  %vm1469_vm10 = vweird.f32 %v10024_v60 }
 0x2fa   :  { %v9939_v28 = vpop.f32.mrf.mxu0  ;;  %v1751_v47 = vadd.f32 %v9887_v20, %v9885_v56  ;;  %v1743_v20 = vadd.f32 %v9869_v25, %v9867_v45 }
 0x2fb   :  { %13016 = vst [vmem:[#allocation59_spill] sm:$0xff] %v9939_v28 }
 0x2fc   :  { %2056 = vmatmul.f32.gmra.mxu2 %v9724_v62 }
 0x2fe   :  { %2139 = vmatmul.f32.gmra.mxu3 %v9724_v62  ;;  %v8369_v62 = vld [vmem:[%s12365_s0 + $0x10] sm:$0xff]  ;;  %v9926_v57 = vpop.f32.mrf.mxu1 }
 0x2ff   :  { %v9895_v63 = vpop.f32.mrf.mxu2  ;;  %v9915_v15 = vsel %vm94_vm0, %v8369_v62, 0  ;;  %13008 = vst [vmem:[#allocation221_spill] sm:$0xff] %v9926_v57  ;;  %v13011_v62 = vld [vmem:[#allocation55_spill] sm:$0xff]  ;;  %v1443_v57 = vadd.f32 %v9861_v12, %v1402_v23 }
 0x300   :  { %13005 = vst [vmem:[#allocation37_spill] sm:$0xff] %v9915_v15  ;;  %v9924_v7 = vand.u32 4294901760, %v9915_v15 }
 0x301   :  { %v9897_v54 = vpop.f32.mrf.mxu3  ;;  %8389 = vrcp.f32 %v1443_v57  ;;  %vm1454_vm6 = vweird.f32 %v1443_v57 }
 0x302   :  { %13007 = vst [vmem:[#allocation220_spill] sm:$0xff] %v9924_v7  ;;  %8391 = vrcp.f32 %v10024_v60 }
 0x304   :  { %2060 = vmatmul.f32.gmra.mxu2 %v9744_v33 }
 0x306   :  { %2143 = vmatmul.f32.gmra.mxu3 %v9744_v33 }
 0x307   :  { %v9903_v52 = vpop.f32.mrf.mxu2 }
 0x309   :  { %v9905_v48 = vpop.f32.mrf.mxu3 }
 0x30a   :  { %v1759_v11 = vadd.f32 %v9905_v48, %v9903_v52 }
 0x30c   :  { %2064 = vmatmul.f32.gmra.mxu2 %v9764_v40 }
 0x30e   :  { %2147 = vmatmul.f32.gmra.mxu3 %v9764_v40  ;;  %v13010_v40 = vld [vmem:[#allocation46_spill] sm:$0xff] }
 0x30f   :  { %v9919_v33 = vpop.f32.mrf.mxu2 }
 0x311   :  { %v9921_v9 = vpop.f32.mrf.mxu3 }
 0x314   :  { %2725 = vmatmul.f32.vlgmr.msrb.gmra.mxu2 %v9924_v7 }
 0x315   :  { %3055 = vmatpush.msrb.mxu2 %v13009_v14  ;;  %v13023_v14 = vld [vmem:[#allocation73_spill] sm:$0xff] }
 0x316   :  { %2753 = vmatmul.f32.vlgmr.msrb.gmra.mxu3 %v9924_v7 }
 0x317   :  { %3057 = vmatpush.msrb.mxu2 %v13010_v40  ;;  %3100 = vmatpush.msrb.mxu3 %v13011_v62  ;;  %v9933_v50 = vpop.f32.mrf.mxu2  ;;  %v9945_v40 = vpop.f32.mrf.mxu1  ;;  %v13022_v62 = vld [vmem:[#allocation60_spill] sm:$0xff] }
 0x318   :  { %13012 = vst [vmem:[#allocation55_spill] sm:$0xff] %v9933_v50 }
 0x319   :  { %v9935_v34 = vpop.f32.mrf.mxu3  ;;  %3059 = vmatpush.msrb.mxu2 %v13014_v3  ;;  %3106 = vmatpush.msrb.mxu3 %v13015_v5  ;;  %13021 = vst [vmem:[#allocation63_spill] sm:$0xff] %v9945_v40  ;;  %v13026_v5 = vld [vmem:[#allocation64_spill] sm:$0xff] }
 0x31a   :  { %13013 = vst [vmem:[#allocation222_spill] sm:$0xff] %v9935_v34 }
 0x31b   :  { %3061 = vmatpush.msrb.mxu2 %v13017_v39  ;;  %3112 = vmatpush.msrb.mxu3 %v13018_v19  ;;  %v13028_v39 = vld [vmem:[#allocation68_spill] sm:$0xff] }
 0x31c   :  { %v13029_v19 = vld [vmem:[#allocation76_spill] sm:$0xff] }
 0x31d   :  { %3063 = vmatpush.msrb.mxu2 %v13019_v59  ;;  %3118 = vmatpush.msrb.mxu3 %v13020_v29  ;;  %v9957_v59 = vpop.f32.mrf.mxu0  ;;  %v13030_v29 = vld [vmem:[#allocation77_spill] sm:$0xff] }
 0x31f   :  { %3065 = vmatpush.msrb.mxu2 %v13022_v62  ;;  %3124 = vmatpush.msrb.mxu3 %v13023_v14  ;;  %v9949_v32 = vpop.f32.mrf.mxu2  ;;  %v9960_v0 = vpop.f32.mrf.mxu1 }
 0x320   :  { %13024 = vst [vmem:[#allocation70_spill] sm:$0xff] %v9949_v32 }
 0x321   :  { %v9951_v3 = vpop.f32.mrf.mxu3  ;;  %3067 = vmatpush.msrb.mxu2 %v13026_v5  ;;  %3130 = vmatpush.msrb.mxu3 %v13027_v21  ;;  %13031 = vst [vmem:[#allocation74_spill] sm:$0xff] %v9960_v0 }
 0x322   :  { %13025 = vst [vmem:[#allocation73_spill] sm:$0xff] %v9951_v3 }
 0x323   :  { %3069 = vmatpush.msrb.mxu2 %v13028_v39  ;;  %3136 = vmatpush.msrb.mxu3 %v13029_v19 }
 0x325   :  { %3142 = vmatpush.msrb.mxu3 %v13030_v29  ;;  %v9966_v2 = vpop.f32.mrf.mxu0 }
 0x327   :  { %v9962_v62 = vpop.f32.mrf.mxu2  ;;  %v9972_v21 = vpop.f32.mrf.mxu1 }
 0x328   :  { %13032 = vst [vmem:[#allocation76_spill] sm:$0xff] %v9962_v62 }
 0x329   :  { %v9964_v14 = vpop.f32.mrf.mxu3  ;;  %13036 = vst [vmem:[#allocation225_spill] sm:$0xff] %v9972_v21 }
 0x32a   :  { %13033 = vst [vmem:[#allocation77_spill] sm:$0xff] %v9964_v14 }
 0x32d   :  { %v9974_v39 = vpop.f32.mrf.mxu0 }
 0x32f   :  { %v9968_v18 = vpop.f32.mrf.mxu2  ;;  %v9980_v29 = vpop.f32.mrf.mxu1 }
 0x330   :  { %13034 = vst [vmem:[#allocation223_spill] sm:$0xff] %v9968_v18 }
 0x331   :  { %v9970_v5 = vpop.f32.mrf.mxu3 }
 0x332   :  { %13035 = vst [vmem:[#allocation224_spill] sm:$0xff] %v9970_v5 }
 0x335   :  { %v9986_v6 = vpop.f32.mrf.mxu0 }
 0x337   :  { %v9976_v19 = vpop.f32.mrf.mxu2  ;;  %v9988_v58 = vpop.f32.mrf.mxu1 }
 0x338   :  { %13037 = vst [vmem:[#allocation226_spill] sm:$0xff] %v9976_v19 }
 0x339   :  { %v9978_v38 = vpop.f32.mrf.mxu3 }
 0x33a   :  { %13038 = vst [vmem:[#allocation227_spill] sm:$0xff] %v9978_v38 }
 0x33d   :  { %v9994_v7 = vpop.f32.mrf.mxu0 }
 0x33f   :  { %v9982_v46 = vpop.f32.mrf.mxu2  ;;  %v9996_v35 = vpop.f32.mrf.mxu1 }
 0x340   :  { %13039 = vst [vmem:[#allocation228_spill] sm:$0xff] %v9982_v46 }
 0x341   :  { %v9984_v61 = vpop.f32.mrf.mxu3 }
 0x342   :  { %13040 = vst [vmem:[#allocation229_spill] sm:$0xff] %v9984_v61 }
 0x345   :  { %v1838_v14 = vpop.f32.mrf.mxu0 }
 0x347   :  { %v9990_v41 = vpop.f32.mrf.mxu2  ;;  %v10006_v32 = vpop.f32.mrf.mxu1 }
 0x348   :  { %13041 = vst [vmem:[#allocation230_spill] sm:$0xff] %v9990_v41 }
 0x349   :  { %v9992_v15 = vpop.f32.mrf.mxu3 }
 0x34a   :  { %13042 = vst [vmem:[#allocation231_spill] sm:$0xff] %v9992_v15 }
 0x34d   :  { %v1843_v38 = vpop.f32.mrf.mxu0 }
 0x34f   :  { %v9998_v34 = vpop.f32.mrf.mxu2  ;;  %v1954_v18 = vpop.f32.mrf.mxu1 }
 0x350   :  { %13043 = vst [vmem:[#allocation232_spill] sm:$0xff] %v9998_v34  ;;  %v1755_v34 = vadd.f32 %v9897_v54, %v9895_v63  ;;  %v1460_v54 = vand.u32 2147483648, %v1443_v57 }
 0x351   :  { %v10000_v3 = vpop.f32.mrf.mxu3 }
 0x352   :  { %13044 = vst [vmem:[#allocation233_spill] sm:$0xff] %v10000_v3 }
 0x355   :  { %v1848_v3 = vpop.f32.mrf.mxu0 }
 0x357   :  { %v10002_v50 = vpop.f32.mrf.mxu2  ;;  %v1960_v46 = vpop.f32.mrf.mxu1 }
 0x358   :  { %13045 = vst [vmem:[#allocation234_spill] sm:$0xff] %v10002_v50 }
 0x359   :  { %v10004_v5 = vpop.f32.mrf.mxu3 }
 0x35a   :  { %13046 = vst [vmem:[#allocation235_spill] sm:$0xff] %v10004_v5  ;;  %v8390_v5 = vpop.eup %8389 }
 0x35b   :  { %v1450_v0 = vmul.f32 %v8390_v5, %v1443_v57  ;;  %v10029_v28 = vpop.eup %8391  ;;  %vm1455_vm5 = vweird.f32 %v8390_v5 }
 0x35c   :  { %v1465_v50 = vmul.f32 %v10029_v28, %v10024_v60  ;;  %vm10041_vm7 = vmor %vm1454_vm6, %vm1455_vm5  ;;  %vm1470_vm9 = vweird.f32 %v10029_v28 }
 0x35d   :  { %v1853_v41 = vpop.f32.mrf.mxu0  ;;  %vm10241_vm12 = vmor %vm1469_vm10, %vm1470_vm9 }
 0x35e   :  { %v1854_v31 = vadd.f32 %v1853_v41, %v1755_v34  ;;  %v1466_v25 = vsub.f32 1.0, %v1465_v50  ;;  %v1829_v50 = vadd.f32 %v9986_v6, %v9851_v16  ;;  %v75_v16 = vld [vmem:[%s12364_s2 + $0x198] sm:$0xff]  ;;  %v1473_v6 = vand.u32 2147483647, %v10024_v60  ;;  %v13057_v41 = vld [vmem:[#allocation59_spill] sm:$0xff] }
 0x35f   :  { %v10008_v62 = vpop.f32.mrf.mxu2  ;;  %v1966_v44 = vpop.f32.mrf.mxu1 }
 0x360   :  { %v1967_v34 = vadd.f32 %v1966_v44, %v1854_v31  ;;  %v1789_v44 = vadd.f32 %v9879_v26, %v9805_v55  ;;  %vm10202_vm11 = vcmp.eq.f32.partialorder %v1473_v6, 8.507059e+37 }
 0x361   :  { %v10010_v61 = vpop.f32.mrf.mxu3 }
 0x362   :  { %13047 = vst [vmem:[#allocation236_spill] sm:$0xff] %v10010_v61  ;;  %v1451_v61 = vsub.f32 1.0, %v1450_v0  ;;  %v1458_v0 = vand.u32 2147483647, %v1443_v57 }
 0x364   :  { %v1452_v12 = vmul.f32 %v8390_v5, %v1451_v61  ;;  %v1747_v61 = vadd.f32 %v9877_v51, %v9875_v53  ;;  %vm10045_vm8 = vcmp.eq.f32.partialorder %v1458_v0, 8.507059e+37  ;;  %v1839_v51 = vadd.f32 %v1838_v14, %v1743_v20 }
 0x365   :  { %v1858_v23 = vpop.f32.mrf.mxu0  ;;  %v1819_v0 = vadd.f32 %v9966_v2, %v9843_v4  ;;  %v13053_v2 = vld [vmem:[#allocation234_spill] sm:$0xff] }
 0x366   :  { %v1453_v43 = vadd.f32 %v8390_v5, %v1452_v12  ;;  %v1859_v63 = vadd.f32 %v1858_v23, %v1759_v11  ;;  %v1844_v48 = vadd.f32 %v1843_v38, %v1747_v61  ;;  %v1461_v38 = vor.u32 1.1754944e-38, %v1460_v54 }
 0x367   :  { %v10014_v15 = vpop.f32.mrf.mxu2  ;;  %v1972_v37 = vpop.f32.mrf.mxu1  ;;  %v1949_v26 = vadd.f32 %v10006_v32, %v1839_v51  ;;  %v13058_v51 = vld [vmem:[#allocation225_spill] sm:$0xff] }
 0x368   :  { %v1457_v53 = vsel %vm10041_vm7, %v8390_v5, %v1453_v43  ;;  %v1973_v45 = vadd.f32 %v1972_v37, %v1859_v63  ;;  %v1955_v11 = vadd.f32 %v1954_v18, %v1844_v48  ;;  %v1475_v43 = vand.u32 2147483648, %v10024_v60 }
 0x369   :  { %v10016_v19 = vpop.f32.mrf.mxu3  ;;  %v1462_v37 = vsel %vm10045_vm8, %v1461_v38, %v1457_v53  ;;  %v10069_v18 = vadd.f32 %v9882_v36, %v1789_v44  ;;  %v1824_v5 = vadd.f32 %v9974_v39, %v9847_v8  ;;  %v1794_v36 = vadd.f32 %v9889_v13, %v9819_v49  ;;  %v74_v39 = vld [vmem:[%s12364_s2 + $0x190] sm:$0xff]  ;;  %v73_v49 = vld [vmem:[%s12364_s2 + $0x188] sm:$0xff] }
 0x36a   :  { %13048 = vst [vmem:[#allocation237_spill] sm:$0xff] %v10016_v19  ;;  %v1849_v19 = vadd.f32 %v1848_v3, %v1751_v47  ;;  %v1739_v3 = vadd.f32 %v9859_v22, %v9857_v1  ;;  %v1763_v22 = vadd.f32 %v9921_v9, %v9919_v33  ;;  %v1467_v33 = vmul.f32 %v10029_v28, %v1466_v25  ;;  %v77_v38 = vld [vmem:[%s12364_s2 + $0x1a8] sm:$0xff]  ;;  %v13060_v25 = vld [vmem:[#allocation236_spill] sm:$0xff] }
 0x36b   :  { %v1937_v8 = vadd.f32 %v9988_v58, %v1829_v50  ;;  %v10088_v61 = vmul.f32 %v1462_v37, %v9457_v17  ;;  %v1814_v13 = vadd.f32 %v9957_v59, %v9839_v30  ;;  %v1931_v4 = vadd.f32 %v9980_v29, %v1824_v5  ;;  %v13055_v59 = vld [vmem:[#allocation25_spill] sm:$0xff]  ;;  %v13064_v37 = vld [vmem:[#allocation230_spill] sm:$0xff] }
 0x36c   :  { %v1961_v52 = vadd.f32 %v1960_v46, %v1849_v19  ;;  %v1834_v23 = vadd.f32 %v9994_v7, %v1739_v3  ;;  %v76_v7 = vld [vmem:[%s12364_s2 + $0x1a0] sm:$0xff]  ;;  %v10100_v17 = vadd.f32 %v10029_v28, %v1467_v33  ;;  %v1895_v30 = vadd.f32 %v13055_v59, %v1794_v36  ;;  %v13056_v29 = vld [vmem:[#allocation21_spill] sm:$0xff]  ;;  %v13069_v36 = vld [vmem:[#allocation228_spill] sm:$0xff] }
 0x36d   :  { %v1863_v12 = vpop.f32.mrf.mxu0  ;;  %v2038_v58 = vadd.f32 %v13053_v2, %v1937_v8  ;;  %v1809_v3 = vadd.f32 %v13057_v41, %v13056_v29  ;;  %v1925_v53 = vadd.f32 %v13058_v51, %v1819_v0  ;;  %v13070_v8 = vld [vmem:[#allocation233_spill] sm:$0xff]  ;;  %v13074_v41 = vld [vmem:[#allocation32_spill] sm:$0xff]  ;;  %v13075_v51 = vld [vmem:[#allocation223_spill] sm:$0xff] }
 0x36e   :  { %v1864_v46 = vadd.f32 %v1863_v12, %v1763_v22  ;;  %v1943_v32 = vadd.f32 %v9996_v35, %v1834_v23  ;;  %v13062_v22 = vld [vmem:[#allocation41_spill] sm:$0xff] }
 0x36f   :  { %v2049_v40 = vpop.f32.mrf.mxu2  ;;  %v2030_v50 = vadd.f32 %v13064_v37, %v1925_v53 }
 0x370   :  { %v2050_v55 = vadd.f32 %v2049_v40, %v1955_v11  ;;  %v2046_v40 = vadd.f32 %v10014_v15, %v1949_v26  ;;  %v2042_v15 = vadd.f32 %v10008_v62, %v1943_v32  ;;  %v13061_v11 = vld [vmem:[#allocation18_spill] sm:$0xff]  ;;  %v13065_v26 = vld [vmem:[#allocation235_spill] sm:$0xff] }
 0x371   :  { %v10019_v24 = vpop.f32.mrf.mxu3  ;;  %v13054_v20 = vld [vmem:[#allocation237_spill] sm:$0xff] }
 0x372   :  { %v2129_v62 = vadd.f32 %v13054_v20, %v2046_v40  ;;  %v2125_v44 = vadd.f32 %v13060_v25, %v2042_v15  ;;  %v13068_v40 = vld [vmem:[#allocation63_spill] sm:$0xff] }
 0x377   :  { %v2053_v10 = vpop.f32.mrf.mxu2 }
 0x378   :  { %v2054_v1 = vadd.f32 %v2053_v10, %v1961_v52  ;;  %v13059_v52 = vld [vmem:[#allocation232_spill] sm:$0xff] }
 0x379   :  { %v2136_v27 = vpop.f32.mrf.mxu3 }
 0x37a   :  { %v2137_v19 = vadd.f32 %v2136_v27, %v2054_v1  ;;  %v2133_v27 = vadd.f32 %v10019_v24, %v2050_v55  ;;  %v1804_v1 = vadd.f32 %v13062_v22, %v13061_v11  ;;  %v70_v55 = vld [vmem:[%s12364_s2 + $0x170] sm:$0xff] }
 0x37b   :  { %v13077_v11 = vld [vmem:[#allocation76_spill] sm:$0xff] }
 0x37c   :  { %v2163_v48 = vmul.f32 %v2137_v19, %v74_v39  ;;  %v2162_v23 = vmul.f32 %v2133_v27, %v73_v49  ;;  %v1913_v19 = vadd.f32 %v13068_v40, %v1809_v3 }
 0x37e   :  { %v10144_v27 = vand.u32 4294901760, %v2162_v23 }
 0x37f   :  { %v2057_v21 = vpop.f32.mrf.mxu2 }
 0x380   :  { %v2058_v57 = vadd.f32 %v2057_v21, %v1967_v34  ;;  %v1978_v21 = vpop.f32.mrf.mxu1  ;;  %v10177_v25 = vsub.f32 %v2162_v23, %v10144_v27 }
 0x381   :  { %v2140_v42 = vpop.f32.mrf.mxu3  ;;  %v1979_v35 = vadd.f32 %v1978_v21, %v1864_v46  ;;  %v71_v46 = vld [vmem:[%s12364_s2 + $0x178] sm:$0xff]  ;;  %v13066_v21 = vld [vmem:[#allocation15_spill] sm:$0xff] }
 0x382   :  { %v2141_v9 = vadd.f32 %v2140_v42, %v2058_v57  ;;  %v72_v57 = vld [vmem:[%s12364_s2 + $0x180] sm:$0xff]  ;;  %v2160_v15 = vmul.f32 %v2125_v44, %v71_v46 }
 0x384   :  { %v2164_v63 = vmul.f32 %v2141_v9, %v75_v16  ;;  %v2161_v9 = vmul.f32 %v2129_v62, %v72_v57  ;;  %v13067_v16 = vld [vmem:[#allocation30_spill] sm:$0xff] }
 0x385   :  { %v1799_v32 = vadd.f32 %v13067_v16, %v13066_v21  ;;  %v13082_v21 = vld [vmem:[#allocation224_spill] sm:$0xff] }
 0x386   :  { %v10117_v12 = vand.u32 4294901760, %v2164_v63 }
 0x387   :  { %v2061_v47 = vpop.f32.mrf.mxu2  ;;  %v1901_v3 = vadd.f32 %v13074_v41, %v1799_v32 }
 0x388   :  { %v2062_v14 = vadd.f32 %v2061_v47, %v1973_v45  ;;  %v2034_v45 = vadd.f32 %v13059_v52, %v1931_v4  ;;  %v13071_v4 = vld [vmem:[#allocation221_spill] sm:$0xff] }
 0x389   :  { %v2144_v31 = vpop.f32.mrf.mxu3  ;;  %v1907_v2 = vadd.f32 %v13071_v4, %v1804_v1  ;;  %v13076_v52 = vld [vmem:[#allocation229_spill] sm:$0xff]  ;;  %v2014_v22 = vadd.f32 %v13077_v11, %v1901_v3  ;;  %v13078_v1 = vld [vmem:[#allocation227_spill] sm:$0xff] }
 0x38a   :  { %v2145_v10 = vadd.f32 %v2144_v31, %v2062_v14  ;;  %v13063_v14 = vld [vmem:[#allocation74_spill] sm:$0xff]  ;;  %v2117_v39 = vadd.f32 %v13070_v8, %v2034_v45  ;;  %v13083_v8 = vld [vmem:[#allocation55_spill] sm:$0xff] }
 0x38b   :  { %v1919_v31 = vadd.f32 %v13063_v14, %v1814_v13  ;;  %v2018_v53 = vadd.f32 %v13075_v51, %v1907_v2 }
 0x38c   :  { %v2165_v42 = vmul.f32 %v2145_v10, %v76_v7  ;;  %v2121_v7 = vadd.f32 %v13065_v26, %v2038_v58  ;;  %v10130_v10 = vand.u32 4294901760, %v2163_v48  ;;  %v13072_v58 = vld [vmem:[#allocation226_spill] sm:$0xff] }
 0x38d   :  { %v2026_v0 = vadd.f32 %v13069_v36, %v1919_v31  ;;  %v2022_v49 = vadd.f32 %v13072_v58, %v1913_v19  ;;  %v2101_v16 = vadd.f32 %v13082_v21, %v2018_v53  ;;  %v65_v19 = vld [vmem:[%s12364_s2 + $0x148] sm:$0xff]  ;;  %v1472_v53 = vsel %vm10241_vm12, %v10029_v28, %v10100_v17 }
 0x38e   :  { %v10103_v24 = vand.u32 4294901760, %v2165_v42  ;;  %v2159_v62 = vmul.f32 %v2121_v7, %v70_v55  ;;  %vm5254_vm12 = vcmask 56320  }
 0x38f   :  { %v2065_v54 = vpop.f32.mrf.mxu2  ;;  %v2109_v45 = vadd.f32 %v13076_v52, %v2026_v0  ;;  %v2105_v14 = vadd.f32 %v13078_v1, %v2022_v49  ;;  %v2154_v3 = vmul.f32 %v2101_v16, %v65_v19  ;;  %v63_v52 = vld [vmem:[%s12364_s2 + $0x138] sm:$0xff]  ;;  %v13088_v1 = vld [vmem:[#allocation222_spill] sm:$0xff] }
 0x390   :  { %v2066_v34 = vadd.f32 %v2065_v54, %v1979_v35  ;;  %v10133_v33 = vsub.f32 %v2165_v42, %v10103_v24  ;;  %v69_v35 = vld [vmem:[%s12364_s2 + $0x168] sm:$0xff]  ;;  %v10147_v42 = vsub.f32 %v2164_v63, %v10117_v12  ;;  %v10161_v63 = vsub.f32 %v2163_v48, %v10130_v10 }
 0x391   :  { %v2148_v56 = vpop.f32.mrf.mxu3  ;;  %v13073_v54 = vld [vmem:[#allocation231_spill] sm:$0xff]  ;;  %v2158_v57 = vmul.f32 %v2117_v39, %v69_v35  ;;  %v10174_v48 = vand.u32 4294901760, %v2160_v15  ;;  %v10184_v37 = vand.u32 4294901760, %v2159_v62  ;;  %v2006_v39 = vadd.f32 %v13083_v8, %v10069_v18  ;;  %v13084_v35 = vld [vmem:[#allocation77_spill] sm:$0xff] }
 0x392   :  { %v2149_v47 = vadd.f32 %v2148_v56, %v2066_v34  ;;  %v2113_v20 = vadd.f32 %v13073_v54, %v2030_v50  ;;  %v68_v34 = vld [vmem:[%s12364_s2 + $0x160] sm:$0xff]  ;;  %v10158_v56 = vand.u32 4294901760, %v2161_v9  ;;  %v2225_v29 = vand.u32 4294901760, %v10133_v33  ;;  %v66_v50 = vld [vmem:[%s12364_s2 + $0x150] sm:$0xff] }
 0x393   :  { %v2237_v46 = vand.u32 4294901760, %v10161_v63  ;;  %v10208_v40 = vand.u32 4294901760, %v2158_v57  ;;  %v10214_v36 = vsub.f32 %v2160_v15, %v10174_v48  ;;  %v2097_v4 = vadd.f32 %v13084_v35, %v2014_v22  ;;  %v64_v15 = vld [vmem:[%s12364_s2 + $0x140] sm:$0xff] }
 0x394   :  { %v2166_v5 = vmul.f32 %v2149_v47, %v77_v38  ;;  %v67_v38 = vld [vmem:[%s12364_s2 + $0x158] sm:$0xff]  ;;  %v2231_v47 = vand.u32 4294901760, %v10147_v42  ;;  %v2157_v31 = vmul.f32 %v2113_v20, %v68_v34  ;;  %v10190_v23 = vsub.f32 %v2161_v9, %v10158_v56  ;;  %v13081_v9 = vld [vmem:[#allocation70_spill] sm:$0xff] }
 0x395   :  { %v2226_v7 = vsub.f32 %v10133_v33, %v2225_v29  ;;  %v2156_v32 = vmul.f32 %v2109_v45, %v67_v38  ;;  %v2155_v2 = vmul.f32 %v2105_v14, %v66_v50  ;;  %v10230_v49 = vsub.f32 %v2159_v62, %v10184_v37  ;;  %v13087_v62 = vld [vmem:[#allocation73_spill] sm:$0xff] }
 0x396   :  { %v10149_v13 = vand.u32 4294901760, %v2166_v5  ;;  %v2232_v0 = vsub.f32 %v10147_v42, %v2231_v47  ;;  %v10224_v58 = vand.u32 4294901760, %v2157_v31  ;;  %v2238_v18 = vsub.f32 %v10161_v63, %v2237_v46 }
 0x397   :  { %v2227_v54 = vand.u32 4294901760, %v2226_v7  ;;  %v2249_v20 = vand.u32 4294901760, %v10190_v23  ;;  %v10246_v51 = vand.u32 4294901760, %v2156_v32  ;;  %v10256_v45 = vsub.f32 %v2158_v57, %v10208_v40  ;;  %v62_v57 = vld [vmem:[%s12364_s2 + $0x130] sm:$0xff] }
 0x398   :  { %v10164_v59 = vsub.f32 %v2166_v5, %v10149_v13  ;;  %2169 = vmatpush.msrb.mxu0 %v10149_v13  ;;  %v2010_v5 = vadd.f32 %v13081_v9, %v1895_v30  ;;  %v2243_v30 = vand.u32 4294901760, %v10177_v25  ;;  %v2233_v38 = vand.u32 4294901760, %v2232_v0 }
 0x399   :  { %v2255_v22 = vand.u32 4294901760, %v10214_v36  ;;  %v2089_v14 = vadd.f32 %v13088_v1, %v2006_v39  ;;  %v2153_v28 = vmul.f32 %v2097_v4, %v64_v15  ;;  %v10264_v17 = vand.u32 4294901760, %v2155_v2 }
 0x39a   :  { %2171 = vmatpush.msrb.mxu0 %v10103_v24  ;;  %v2219_v44 = vand.u32 4294901760, %v10164_v59  ;;  %v2093_v41 = vadd.f32 %v13087_v62, %v2010_v5  ;;  %v2244_v11 = vsub.f32 %v10177_v25, %v2243_v30  ;;  %v1476_v50 = vor.u32 1.1754944e-38, %v1475_v43 }
 0x39b   :  { %v2239_v7 = vand.u32 4294901760, %v2238_v18  ;;  %v2250_v9 = vsub.f32 %v10190_v23, %v2249_v20  ;;  %v2261_v5 = vand.u32 4294901760, %v10230_v49  ;;  %v10279_v60 = vand.u32 4294901760, %v2154_v3  ;;  %v13089_v18 = vld [vmem:[#allocation161_spill] sm:$0xff] }
 0x39c   :  { %2173 = vmatpush.msrb.mxu0 %v10117_v12  ;;  %v2220_v26 = vsub.f32 %v10164_v59, %v2219_v44  ;;  %v2152_v21 = vmul.f32 %v2093_v41, %v63_v52  ;;  %v10282_v43 = vand.u32 4294901760, %v10088_v61  ;;  %v10287_v16 = vsub.f32 %v2156_v32, %v10246_v51 }
 0x39d   :  { %v2245_v19 = vand.u32 4294901760, %v2244_v11  ;;  %v2267_v0 = vand.u32 4294901760, %v10256_v45  ;;  %v2151_v8 = vmul.f32 %v2089_v14, %v62_v57  ;;  %v10294_v39 = vand.u32 4294901760, %v2153_v28 }
 0x39e   :  { %2175 = vmatpush.msrb.mxu0 %v10130_v10  ;;  %v2221_v6 = vand.u32 4294901760, %v2220_v26  ;;  %v10272_v26 = vsub.f32 %v2157_v31, %v10224_v58  ;;  %v1477_v31 = vsel %vm10202_vm11, %v1476_v50, %v1472_v53  ;;  %v10297_v35 = vsub.f32 %v2155_v2, %v10264_v17 }
 0x39f   :  { %v2251_v55 = vand.u32 4294901760, %v2250_v9  ;;  %v2262_v32 = vsub.f32 %v10230_v49, %v2261_v5  ;;  %v10304_v15 = vand.u32 4294901760, %v2152_v21  ;;  %v1478_v34 = vmul.f32 %v1477_v31, %v13089_v18 }
 0x3a0   :  { %2177 = vmatpush.msrb.mxu0 %v10144_v27  ;;  %2222 = vmatpush.msrb.mxu1 %v2221_v6  ;;  %v2256_v6 = vsub.f32 %v10214_v36, %v2255_v22  ;;  %v2273_v4 = vand.u32 4294901760, %v10272_v26  ;;  %v10312_v2 = vsub.f32 %v2154_v3, %v10279_v60  ;;  %v2268_v41 = vsub.f32 %v10256_v45, %v2267_v0 }
 0x3a1   :  { %v2279_v53 = vand.u32 4294901760, %v10287_v16  ;;  %v10319_v52 = vand.u32 4294901760, %v2151_v8  ;;  %v2263_v3 = vand.u32 4294901760, %v2262_v32  ;;  %v2285_v11 = vand.u32 4294901760, %v10297_v35 }
 0x3a2   :  { %2179 = vmatpush.msrb.mxu0 %v10158_v56  ;;  %2228 = vmatpush.msrb.mxu1 %v2227_v54  ;;  %v10308_v54 = vsub.f32 %v10088_v61, %v10282_v43  ;;  %v2257_v62 = vand.u32 4294901760, %v2256_v6  ;;  %v10322_v61 = vsub.f32 %v2153_v28, %v10294_v39  ;;  %v10330_v14 = vand.u32 4294901760, %v1478_v34 }
 0x3a3   :  { %v10333_v50 = vsub.f32 %v2152_v21, %v10304_v15  ;;  %v2269_v28 = vand.u32 4294901760, %v2268_v41  ;;  %v2280_v57 = vsub.f32 %v10287_v16, %v2279_v53  ;;  %v10341_v9 = vsub.f32 %v2151_v8, %v10319_v52 }
 0x3a4   :  { %2181 = vmatpush.msrb.mxu0 %v10174_v48  ;;  %2234 = vmatpush.msrb.mxu1 %v2233_v38  ;;  %v2274_v38 = vsub.f32 %v10272_v26, %v2273_v4  ;;  %v2202_v1 = vand.u32 4294901760, %v10308_v54  ;;  %v2286_v21 = vsub.f32 %v10297_v35, %v2285_v11  ;;  %vm5261_vm11 = vcmask 1046528  }
 0x3a5   :  { %v2281_v8 = vand.u32 4294901760, %v2280_v57  ;;  %v2303_v18 = vand.u32 4294901760, %v10333_v50 }
 0x3a6   :  { %2183 = vmatpush.msrb.mxu0 %v10184_v37  ;;  %2240 = vmatpush.msrb.mxu1 %v2239_v7  ;;  %v2291_v7 = vand.u32 4294901760, %v10312_v2  ;;  %v2275_v31 = vand.u32 4294901760, %v2274_v38  ;;  %v2203_v6 = vsub.f32 %v10308_v54, %v2202_v1 }
 0x3a7   :  { %v2304_v57 = vsub.f32 %v10333_v50, %v2303_v18 }
 0x3a8   :  { %2185 = vmatpush.msrb.mxu0 %v10208_v40  ;;  %2246 = vmatpush.msrb.mxu1 %v2245_v19  ;;  %v2297_v19 = vand.u32 4294901760, %v10322_v61  ;;  %v2292_v32 = vsub.f32 %v10312_v2, %v2291_v7 }
 0x3aa   :  { %2187 = vmatpush.msrb.mxu0 %v10224_v58  ;;  %2252 = vmatpush.msrb.mxu1 %v2251_v55  ;;  %v10352_v55 = vsub.f32 %v1478_v34, %v10330_v14  ;;  %v2298_v41 = vsub.f32 %v10322_v61, %v2297_v19  ;;  %v2309_v34 = vand.u32 4294901760, %v10341_v9 }
 0x3ac   :  { %2189 = vmatpush.msrb.mxu0 %v10246_v51  ;;  %2258 = vmatpush.msrb.mxu1 %v2257_v62  ;;  %v2287_v62 = vand.u32 4294901760, %v2286_v21  ;;  %v2210_v38 = vand.u32 4294901760, %v10352_v55  ;;  %v2310_v21 = vsub.f32 %v10341_v9, %v2309_v34 }
 0x3ae   :  { %2191 = vmatpush.msrb.mxu0 %v10264_v17  ;;  %2264 = vmatpush.msrb.mxu1 %v2263_v3  ;;  %v2204_v3 = vand.u32 4294901760, %v2203_v6  ;;  %v2211_v6 = vsub.f32 %v10352_v55, %v2210_v38 }
 0x3b0   :  { %2193 = vmatpush.msrb.mxu0 %v10279_v60  ;;  %2270 = vmatpush.msrb.mxu1 %v2269_v28  ;;  %v2293_v28 = vand.u32 4294901760, %v2292_v32  ;;  %v2311_v32 = vand.u32 4294901760, %v2310_v21 }
 0x3b2   :  { %2195 = vmatpush.msrb.mxu0 %v10294_v39  ;;  %2276 = vmatpush.msrb.mxu1 %v2275_v31  ;;  %v2299_v31 = vand.u32 4294901760, %v2298_v41 }
 0x3b4   :  { %2197 = vmatpush.msrb.mxu0 %v10304_v15  ;;  %2282 = vmatpush.msrb.mxu1 %v2281_v8  ;;  %v2305_v8 = vand.u32 4294901760, %v2304_v57 }
 0x3b6   :  { %2199 = vmatpush.msrb.mxu0 %v10319_v52  ;;  %2288 = vmatpush.msrb.mxu1 %v2287_v62  ;;  %v2212_v62 = vand.u32 4294901760, %v2211_v6 }
 0x3b7   :  { %2205 = vmatmul.f32.vlgmr.msrb.gmra.mxu0 %v2204_v3 }
 0x3b8   :  { %2324 = vmatpush.msra.mxu0 %v10164_v59  ;;  %2294 = vmatpush.msrb.mxu1 %v2293_v28  ;;  %v13094_v59 = vld [vmem:[#allocation4_spill] sm:$0xff] }
 0x3ba   :  { %2327 = vmatpush.msra.mxu0 %v10133_v33  ;;  %2300 = vmatpush.msrb.mxu1 %v2299_v31  ;;  %v8370_v33 = vld [vmem:[%s12365_s0 + $0x18] sm:$0xff] }
 0x3bc   :  { %2330 = vmatpush.msra.mxu0 %v10147_v42  ;;  %2306 = vmatpush.msrb.mxu1 %v2305_v8  ;;  %v2556_v42 = vsel %vm94_vm0, %v8370_v33, 0  ;;  %v2726_v33 = vpop.f32.mrf.mxu2 }
 0x3be   :  { %2333 = vmatpush.msra.mxu0 %v10161_v63  ;;  %2312 = vmatpush.msrb.mxu1 %v2311_v32  ;;  %v10434_v63 = vand.u32 4294901760, %v2556_v42 }
 0x3bf   :  { %2213 = vmatmul.f32.gmra.mxu0 %v2212_v62  ;;  %2314 = vmatmul.f32.vlgmr.msrb.gmra.mxu1 %v10282_v43 }
 0x3c0   :  { %2336 = vmatpush.msra.mxu0 %v10177_v25  ;;  %2382 = vmatpush.msra.mxu1 %v10149_v13  ;;  %v2586_v25 = vsub.f32 %v2556_v42, %v10434_v63 }
 0x3c1   :  { %2729 = vmatmul.f32.gmra.mxu2 %v10434_v63  ;;  %2757 = vmatmul.f32.gmra.mxu3 %v10434_v63 }
 0x3c2   :  { %2339 = vmatpush.msra.mxu0 %v10190_v23  ;;  %2384 = vmatpush.msra.mxu1 %v10103_v24  ;;  %v13099_v23 = vld [vmem:[#allocation7_spill] sm:$0xff] }
 0x3c4   :  { %2342 = vmatpush.msra.mxu0 %v10214_v36  ;;  %2386 = vmatpush.msra.mxu1 %v10117_v12  ;;  %v13100_v36 = vld [vmem:[#allocation13_spill] sm:$0xff] }
 0x3c6   :  { %2345 = vmatpush.msra.mxu0 %v10230_v49  ;;  %2388 = vmatpush.msra.mxu1 %v10130_v10  ;;  %v13102_v49 = vld [vmem:[#allocation16_spill] sm:$0xff] }
 0x3c7   :  { %2318 = vmatmul.f32.gmra.mxu1 %v10330_v14 }
 0x3c8   :  { %2348 = vmatpush.msra.mxu0 %v10256_v45  ;;  %2390 = vmatpush.msra.mxu1 %v10144_v27  ;;  %v13104_v45 = vld [vmem:[#allocation22_spill] sm:$0xff] }
 0x3ca   :  { %2351 = vmatpush.msra.mxu0 %v10272_v26  ;;  %2392 = vmatpush.msra.mxu1 %v10158_v56  ;;  %v13107_v26 = vld [vmem:[#allocation27_spill] sm:$0xff] }
 0x3cc   :  { %2354 = vmatpush.msra.mxu0 %v10287_v16  ;;  %2394 = vmatpush.msra.mxu1 %v10174_v48  ;;  %v13111_v16 = vld [vmem:[#allocation35_spill] sm:$0xff] }
 0x3ce   :  { %2357 = vmatpush.msra.mxu0 %v10297_v35  ;;  %2396 = vmatpush.msra.mxu1 %v10184_v37  ;;  %v13114_v35 = vld [vmem:[#allocation17_spill] sm:$0xff] }
 0x3d0   :  { %2360 = vmatpush.msra.mxu0 %v10312_v2  ;;  %2398 = vmatpush.msra.mxu1 %v10208_v40  ;;  %v13118_v2 = vld [vmem:[#allocation24_spill] sm:$0xff] }
 0x3d2   :  { %2363 = vmatpush.msra.mxu0 %v10322_v61  ;;  %2400 = vmatpush.msra.mxu1 %v10224_v58  ;;  %v13121_v61 = vld [vmem:[#allocation34_spill] sm:$0xff] }
 0x3d4   :  { %2366 = vmatpush.msra.mxu0 %v10333_v50  ;;  %2402 = vmatpush.msra.mxu1 %v10246_v51 }
 0x3d6   :  { %2369 = vmatpush.msra.mxu0 %v10341_v9  ;;  %2404 = vmatpush.msra.mxu1 %v10264_v17 }
 0x3d7   :  { %2372 = vmatmul.f32.vlgmr.msra.gmra.mxu0 %v10308_v54  ;;  %v13117_v54 = vld [vmem:[#allocation44_spill] sm:$0xff] }
 0x3d8   :  { %2429 = vmatpush.msrb.mxu0 %v2219_v44  ;;  %2406 = vmatpush.msra.mxu1 %v10279_v60  ;;  %v13096_v44 = vld [vmem:[#allocation11_spill] sm:$0xff] }
 0x3da   :  { %2433 = vmatpush.msrb.mxu0 %v2225_v29  ;;  %2408 = vmatpush.msra.mxu1 %v10294_v39  ;;  %v13095_v29 = vld [vmem:[#allocation5_spill] sm:$0xff] }
 0x3dc   :  { %2437 = vmatpush.msrb.mxu0 %v2231_v47  ;;  %2410 = vmatpush.msra.mxu1 %v10304_v15  ;;  %v13097_v47 = vld [vmem:[#allocation6_spill] sm:$0xff] }
 0x3de   :  { %2441 = vmatpush.msrb.mxu0 %v2237_v46  ;;  %2412 = vmatpush.msra.mxu1 %v10319_v52 }
 0x3df   :  { %2377 = vmatmul.f32.gmra.mxu0 %v10352_v55  ;;  %2416 = vmatmul.f32.vlgmr.msra.gmra.mxu1 %v2202_v1  ;;  %v13123_v1 = vld [vmem:[#allocation39_spill] sm:$0xff] }
 0x3e0   :  { %2445 = vmatpush.msrb.mxu0 %v2243_v30  ;;  %2500 = vmatpush.msrb.mxu1 %v10149_v13  ;;  %v13093_v13 = vld [vmem:[#allocation3_spill] sm:$0xff] }
 0x3e2   :  { %2449 = vmatpush.msrb.mxu0 %v2249_v20  ;;  %2502 = vmatpush.msrb.mxu1 %v10103_v24  ;;  %v13090_v24 = vld [vmem:[#allocation220_spill] sm:$0xff] }
 0x3e4   :  { %2453 = vmatpush.msrb.mxu0 %v2255_v22  ;;  %2504 = vmatpush.msrb.mxu1 %v10117_v12  ;;  %v13091_v12 = vld [vmem:[#allocation37_spill] sm:$0xff]  ;;  %v13105_v22 = vld [vmem:[#allocation23_spill] sm:$0xff] }
 0x3e6   :  { %2457 = vmatpush.msrb.mxu0 %v2261_v5  ;;  %2506 = vmatpush.msrb.mxu1 %v10130_v10  ;;  %v2578_v10 = vsub.f32 %v13091_v12, %v13090_v24  ;;  %v13108_v5 = vld [vmem:[#allocation29_spill] sm:$0xff] }
 0x3e7   :  { %2422 = vmatmul.f32.gmra.mxu1 %v2210_v38 }
 0x3e8   :  { %2461 = vmatpush.msrb.mxu0 %v2267_v0  ;;  %2508 = vmatpush.msrb.mxu1 %v10144_v27  ;;  %v13092_v27 = vld [vmem:[#allocation2_spill] sm:$0xff] }
 0x3e9   :  { %v13112_v0 = vld [vmem:[#allocation38_spill] sm:$0xff] }
 0x3ea   :  { %2465 = vmatpush.msrb.mxu0 %v2273_v4  ;;  %2510 = vmatpush.msrb.mxu1 %v10158_v56  ;;  %v2579_v56 = vand.u32 4294901760, %v2578_v10  ;;  %v13115_v4 = vld [vmem:[#allocation42_spill] sm:$0xff] }
 0x3ec   :  { %2469 = vmatpush.msrb.mxu0 %v2279_v53  ;;  %2512 = vmatpush.msrb.mxu1 %v10174_v48  ;;  %v2580_v48 = vsub.f32 %v2578_v10, %v2579_v56  ;;  %v13119_v53 = vld [vmem:[#allocation48_spill] sm:$0xff] }
 0x3ee   :  { %2473 = vmatpush.msrb.mxu0 %v2285_v11  ;;  %2514 = vmatpush.msrb.mxu1 %v10184_v37  ;;  %v13098_v37 = vld [vmem:[#allocation12_spill] sm:$0xff]  ;;  %v2581_v46 = vand.u32 4294901760, %v2580_v48 }
 0x3ef   :  { %v13122_v11 = vld [vmem:[#allocation36_spill] sm:$0xff] }
 0x3f0   :  { %2477 = vmatpush.msrb.mxu0 %v2291_v7  ;;  %2516 = vmatpush.msrb.mxu1 %v10208_v40  ;;  %v2587_v40 = vand.u32 4294901760, %v2586_v25 }
 0x3f2   :  { %2481 = vmatpush.msrb.mxu0 %v2297_v19  ;;  %2518 = vmatpush.msrb.mxu1 %v10224_v58  ;;  %v2588_v30 = vsub.f32 %v2586_v25, %v2587_v40  ;;  %v13101_v58 = vld [vmem:[#allocation14_spill] sm:$0xff] }
 0x3f4   :  { %2485 = vmatpush.msrb.mxu0 %v2303_v18  ;;  %2520 = vmatpush.msrb.mxu1 %v10246_v51  ;;  %v2589_v20 = vand.u32 4294901760, %v2588_v30  ;;  %v13103_v51 = vld [vmem:[#allocation19_spill] sm:$0xff]  ;;  %v13125_v30 = vld [vmem:[#allocation45_spill] sm:$0xff] }
 0x3f6   :  { %2489 = vmatpush.msrb.mxu0 %v2309_v34  ;;  %2522 = vmatpush.msrb.mxu1 %v10264_v17  ;;  %v13106_v17 = vld [vmem:[#allocation26_spill] sm:$0xff] }
 0x3f7   :  { %2491 = vmatmul.f32.vlgmr.msrb.gmra.mxu0 %v10282_v43 }
 0x3f8   :  { %2524 = vmatpush.msrb.mxu1 %v10279_v60  ;;  %2572 = vmatpush.msra.mxu0 %v13092_v27  ;;  %v13109_v60 = vld [vmem:[#allocation31_spill] sm:$0xff] }
 0x3fa   :  { %2526 = vmatpush.msrb.mxu1 %v10294_v39  ;;  %2574 = vmatpush.msra.mxu0 %v13093_v13  ;;  %v13113_v39 = vld [vmem:[#allocation40_spill] sm:$0xff] }
 0x3fc   :  { %2528 = vmatpush.msrb.mxu1 %v10304_v15  ;;  %2576 = vmatpush.msra.mxu0 %v13094_v59  ;;  %v13116_v15 = vld [vmem:[#allocation20_spill] sm:$0xff] }
 0x3fe   :  { %2649 = vmatpush.msrb.mxu0 %v13095_v29  ;;  %2530 = vmatpush.msrb.mxu1 %v10319_v52  ;;  %v13120_v52 = vld [vmem:[#allocation28_spill] sm:$0xff] }
 0x3ff   :  { %2495 = vmatmul.f32.gmra.mxu0 %v10330_v14  ;;  %2532 = vmatmul.f32.vlgmr.msrb.gmra.mxu1 %v10282_v43  ;;  %v13110_v43 = vld [vmem:[#allocation33_spill] sm:$0xff] }
 0x400   :  { %2612 = vmatpush.msra.mxu1 %v13096_v44  ;;  %2652 = vmatpush.msrb.mxu0 %v13097_v47 }
 0x402   :  { %2618 = vmatpush.msra.mxu1 %v13098_v37  ;;  %2655 = vmatpush.msrb.mxu0 %v13099_v23 }
 0x404   :  { %2624 = vmatpush.msra.mxu1 %v13100_v36 }
 0x406   :  { %2681 = vmatpush.msrb.mxu1 %v13092_v27 }
 0x407   :  { %2536 = vmatmul.f32.gmra.mxu1 %v10330_v14  ;;  %2582 = vmatmul.f32.vlgmr.msra.gmra.mxu0 %v2581_v46  ;;  %v13124_v14 = vld [vmem:[#allocation43_spill] sm:$0xff] }
 0x408   :  { %2683 = vmatpush.msrb.mxu1 %v13093_v13  ;;  %2778 = vmatpush.msra.mxu0 %v13101_v58 }
 0x40a   :  { %2685 = vmatpush.msrb.mxu1 %v13094_v59  ;;  %2780 = vmatpush.msra.mxu0 %v13102_v49 }
 0x40c   :  { %2782 = vmatpush.msra.mxu0 %v13103_v51 }
 0x40e   :  { %2784 = vmatpush.msra.mxu0 %v13104_v45 }
 0x40f   :  { %2590 = vmatmul.f32.gmra.mxu0 %v2589_v20  ;;  %2626 = vmatmul.f32.vlgmr.msra.gmra.mxu1 %v13090_v24  ;;  %v2754_v24 = vpop.f32.mrf.mxu3  ;;  %v13127_v20 = vld [vmem:[#allocation49_spill] sm:$0xff] }
 0x410   :  { %2823 = vmatpush.msra.mxu1 %v13105_v22  ;;  %2786 = vmatpush.msra.mxu0 %v13106_v17 }
 0x412   :  { %2829 = vmatpush.msra.mxu1 %v13107_v26  ;;  %2788 = vmatpush.msra.mxu0 %v13108_v5  ;;  %v13129_v26 = vld [vmem:[#allocation52_spill] sm:$0xff] }
 0x414   :  { %2835 = vmatpush.msra.mxu1 %v13109_v60  ;;  %2790 = vmatpush.msra.mxu0 %v13110_v43 }
 0x416   :  { %2841 = vmatpush.msra.mxu1 %v13111_v16  ;;  %2792 = vmatpush.msra.mxu0 %v13112_v0  ;;  %v13131_v16 = vld [vmem:[#allocation56_spill] sm:$0xff] }
 0x417   :  { %2630 = vmatmul.f32.gmra.mxu1 %v10434_v63  ;;  %2658 = vmatmul.f32.vlgmr.msrb.gmra.mxu0 %v2578_v10 }
 0x418   :  { %2847 = vmatpush.msra.mxu1 %v13113_v39  ;;  %2966 = vmatpush.msrb.mxu0 %v13114_v35  ;;  %v13132_v39 = vld [vmem:[#allocation47_spill] sm:$0xff] }
 0x41a   :  { %2853 = vmatpush.msra.mxu1 %v13115_v4  ;;  %2970 = vmatpush.msrb.mxu0 %v13116_v15  ;;  %v13133_v4 = vld [vmem:[#allocation57_spill] sm:$0xff] }
 0x41b   :  { %v13134_v15 = vld [vmem:[#allocation61_spill] sm:$0xff] }
 0x41c   :  { %2859 = vmatpush.msra.mxu1 %v13117_v54  ;;  %2974 = vmatpush.msrb.mxu0 %v13118_v2  ;;  %v13135_v2 = vld [vmem:[#allocation51_spill] sm:$0xff] }
 0x41e   :  { %2865 = vmatpush.msra.mxu1 %v13119_v53  ;;  %2978 = vmatpush.msrb.mxu0 %v13120_v52  ;;  %v13136_v53 = vld [vmem:[#allocation60_spill] sm:$0xff]  ;;  %v13137_v52 = vld [vmem:[#allocation66_spill] sm:$0xff] }
 0x41f   :  { %2663 = vmatmul.f32.gmra.mxu0 %v2586_v25  ;;  %2689 = vmatmul.f32.vlgmr.msrb.gmra.mxu1 %v2579_v56 }
 0x420   :  { %3013 = vmatpush.msrb.mxu1 %v13101_v58  ;;  %2982 = vmatpush.msrb.mxu0 %v13121_v61 }
 0x422   :  { %3015 = vmatpush.msrb.mxu1 %v13102_v49  ;;  %2986 = vmatpush.msrb.mxu0 %v13122_v11  ;;  %v13126_v49 = vld [vmem:[#allocation46_spill] sm:$0xff] }
 0x423   :  { %v13138_v11 = vld [vmem:[#allocation54_spill] sm:$0xff] }
 0x424   :  { %3017 = vmatpush.msrb.mxu1 %v13103_v51  ;;  %2990 = vmatpush.msrb.mxu0 %v13123_v1  ;;  %v13139_v1 = vld [vmem:[#allocation64_spill] sm:$0xff] }
 0x426   :  { %3019 = vmatpush.msrb.mxu1 %v13104_v45  ;;  %2994 = vmatpush.msrb.mxu0 %v13124_v14  ;;  %v13140_v14 = vld [vmem:[#allocation67_spill] sm:$0xff] }
 0x427   :  { %2695 = vmatmul.f32.gmra.mxu1 %v2587_v40 }
 0x428   :  { %3021 = vmatpush.msrb.mxu1 %v13106_v17  ;;  %v13128_v17 = vld [vmem:[#allocation50_spill] sm:$0xff] }
 0x42a   :  { %3023 = vmatpush.msrb.mxu1 %v13108_v5 }
 0x42c   :  { %3025 = vmatpush.msrb.mxu1 %v13110_v43  ;;  %v13130_v43 = vld [vmem:[#allocation53_spill] sm:$0xff] }
 0x42e   :  { %3027 = vmatpush.msrb.mxu1 %v13112_v0 }
 0x434   :  { %v10524_v50 = vpop.f32.mrf.mxu0 }
 0x43c   :  { %v10526_v7 = vpop.f32.mrf.mxu1  ;;  %v10528_v9 = vpop.f32.mrf.mxu0 }
 0x444   :  { %v10530_v19 = vpop.f32.mrf.mxu1  ;;  %v2730_v48 = vpop.f32.mrf.mxu2 }
 0x445   :  { %v2758_v44 = vpop.f32.mrf.mxu3 }
 0x454   :  { %v10532_v55 = vpop.f32.mrf.mxu0 }
 0x45c   :  { %v10534_v18 = vpop.f32.mrf.mxu1  ;;  %v10536_v41 = vpop.f32.mrf.mxu0 }
 0x464   :  { %v10538_v34 = vpop.f32.mrf.mxu1 }
 0x474   :  { %v10540_v3 = vpop.f32.mrf.mxu0 }
 0x47c   :  { %v10542_v38 = vpop.f32.mrf.mxu0  ;;  %v10544_v28 = vpop.f32.mrf.mxu1 }
 0x484   :  { %v10546_v57 = vpop.f32.mrf.mxu1  ;;  %v2583_v31 = vpop.f32.mrf.mxu0 }
 0x48c   :  { %v2591_v21 = vpop.f32.mrf.mxu0  ;;  %v2627_v6 = vpop.f32.mrf.mxu1 }
 0x48d   :  { %v2628_v62 = vadd.f32 %v2627_v6, %v2583_v31  ;;  %v13141_v31 = vld [vmem:[#allocation58_spill] sm:$0xff]  ;;  %v13143_v6 = vld [vmem:[#allocation71_spill] sm:$0xff] }
 0x494   :  { %v2631_v8 = vpop.f32.mrf.mxu1  ;;  %v2659_v32 = vpop.f32.mrf.mxu0 }
 0x495   :  { %v2660_v42 = vadd.f32 %v2659_v32, %v2628_v62  ;;  %v2632_v13 = vadd.f32 %v2631_v8, %v2591_v21  ;;  %v13142_v21 = vld [vmem:[#allocation68_spill] sm:$0xff]  ;;  %v13144_v8 = vld [vmem:[#allocation62_spill] sm:$0xff]  ;;  %v13145_v32 = vld [vmem:[#allocation75_spill] sm:$0xff] }
 0x496   :  { %v13146_v62 = vld [vmem:[#allocation65_spill] sm:$0xff] }
 0x49c   :  { %v2690_v63 = vpop.f32.mrf.mxu1  ;;  %v2664_v27 = vpop.f32.mrf.mxu0 }
 0x49d   :  { %v2691_v12 = vadd.f32 %v2690_v63, %v2660_v42  ;;  %v2665_v59 = vadd.f32 %v2664_v27, %v2632_v13  ;;  %v13148_v42 = vld [vmem:[#allocation80_spill] sm:$0xff]  ;;  %v13149_v63 = vld [vmem:[#allocation69_spill] sm:$0xff]  ;;  %v13154_v13 = vld [vmem:[#allocation79_spill] sm:$0xff] }
 0x49e   :  { %v13153_v27 = vld [vmem:[#allocation81_spill] sm:$0xff] }
 0x49f   :  { %v2727_v10 = vadd.f32 %v2726_v33, %v2691_v12  ;;  %v13147_v33 = vld [vmem:[#allocation84_spill] sm:$0xff]  ;;  %v13151_v12 = vld [vmem:[#allocation78_spill] sm:$0xff] }
 0x4a1   :  { %v10548_v56 = vadd.f32 %v2754_v24, %v2727_v10  ;;  %v13150_v24 = vld [vmem:[#allocation85_spill] sm:$0xff]  ;;  %v13152_v10 = vld [vmem:[#allocation72_spill] sm:$0xff] }
 0x4a3   :  { %8393 = vtanh.f32 %v10548_v56 }
 0x4a4   :  { %v2696_v29 = vpop.f32.mrf.mxu1 }
 0x4a5   :  { %v2697_v25 = vadd.f32 %v2696_v29, %v2665_v59  ;;  %v8371_v59 = vld [vmem:[%s12366_s1 + $0x10] sm:$0xff] }
 0x4a6   :  { %v3319_v29 = vsel %vm862_vm2, %v8371_v59, 0  ;;  %v13195_v59 = vld [vmem:[#allocation104_spill] sm:$0xff] }
 0x4a7   :  { %v2731_v47 = vadd.f32 %v2730_v48, %v2697_v25  ;;  %v13155_v48 = vld [vmem:[#allocation86_spill] sm:$0xff]  ;;  %v10634_v25 = vand.u32 4294901760, %v3319_v29 }
 0x4a9   :  { %v8394_v37 = vpop.eup %8393  ;;  %v10551_v23 = vadd.f32 %v2758_v44, %v2731_v47  ;;  %13156 = vst [vmem:[#allocation234_spill] sm:$0xff] %v10634_v25  ;;  %v13157_v44 = vld [vmem:[#allocation132_spill] sm:$0xff]  ;;  %v13158_v47 = vld [vmem:[#allocation87_spill] sm:$0xff] }
 0x4aa   :  { %v2764_v46 = vsel %vm306_vm1, %v8394_v37, 0  ;;  %v8372_v37 = vld [vmem:[%s12366_s1 + $0x18] sm:$0xff] }
 0x4ab   :  { %v10554_v40 = vand.u32 4294901760, %v2764_v46  ;;  %8395 = vtanh.f32 %v10551_v23 }
 0x4ad   :  { %2867 = vmatmul.f32.vlgmr.msra.gmra.mxu1 %v10554_v40  ;;  %v10559_v36 = vsub.f32 %v2764_v46, %v10554_v40  ;;  %v13159_v46 = vld [vmem:[#allocation134_spill] sm:$0xff] }
 0x4ae   :  { %3204 = vmatpush.msra.mxu1 %v13125_v30 }
 0x4af   :  { %2909 = vmatmul.f32.vlgmr.msra.gmra.mxu2 %v10559_v36  ;;  %v10564_v58 = vand.u32 4294901760, %v10559_v36 }
 0x4b0   :  { %3206 = vmatpush.msra.mxu1 %v13126_v49  ;;  %3243 = vmatpush.msra.mxu2 %v13127_v20  ;;  %v13163_v20 = vld [vmem:[#allocation135_spill] sm:$0xff] }
 0x4b1   :  { %v8396_v51 = vpop.eup %8395  ;;  %2945 = vmatmul.f32.vlgmr.msra.gmra.mxu3 %v10564_v58  ;;  %v2796_v45 = vsub.f32 %v10559_v36, %v10564_v58 }
 0x4b2   :  { %v2767_v22 = vsel %vm306_vm1, %v8396_v51, 0  ;;  %3208 = vmatpush.msra.mxu1 %v13128_v17  ;;  %3247 = vmatpush.msra.mxu2 %v13129_v26  ;;  %v13164_v51 = vld [vmem:[#allocation83_spill] sm:$0xff] }
 0x4b3   :  { %v10574_v5 = vand.u32 4294901760, %v2767_v22  ;;  %v2797_v60 = vand.u32 4294901760, %v2796_v45  ;;  %3290 = vmatpush.msra.mxu3 %v13125_v30  ;;  %v13160_v30 = vld [vmem:[#allocation89_spill] sm:$0xff]  ;;  %v13169_v26 = vld [vmem:[#allocation139_spill] sm:$0xff] }
 0x4b4   :  { %3210 = vmatpush.msra.mxu1 %v13130_v43  ;;  %3251 = vmatpush.msra.mxu2 %v13131_v16  ;;  %v13165_v45 = vld [vmem:[#allocation137_spill] sm:$0xff] }
 0x4b5   :  { %2798 = vmatmul.f32.vlgmr.msra.gmra.mxu0 %v2797_v60  ;;  %2871 = vmatmul.f32.gmra.mxu1 %v10574_v5  ;;  %v10581_v0 = vsub.f32 %v2767_v22, %v10574_v5 }
 0x4b6   :  { %3292 = vmatpush.msra.mxu3 %v13126_v49  ;;  %3162 = vmatpush.msra.mxu0 %v13132_v39  ;;  %v3322_v49 = vsel %vm862_vm2, %v8372_v37, 0  ;;  %v13173_v39 = vld [vmem:[#allocation143_spill] sm:$0xff] }
 0x4b7   :  { %2914 = vmatmul.f32.gmra.mxu2 %v10581_v0  ;;  %v2803_v35 = vand.u32 4294901760, %v10581_v0  ;;  %3212 = vmatpush.msra.mxu1 %v13133_v4  ;;  %v10657_v22 = vand.u32 4294901760, %v3322_v49  ;;  %v13198_v37 = vld [vmem:[#allocation107_spill] sm:$0xff] }
 0x4b8   :  { %3255 = vmatpush.msra.mxu2 %v13134_v15  ;;  %3294 = vmatpush.msra.mxu3 %v13128_v17  ;;  %v13168_v17 = vld [vmem:[#allocation90_spill] sm:$0xff]  ;;  %v13177_v15 = vld [vmem:[#allocation93_spill] sm:$0xff] }
 0x4b9   :  { %2951 = vmatmul.f32.gmra.mxu3 %v2803_v35  ;;  %v2804_v54 = vsub.f32 %v10581_v0, %v2803_v35  ;;  %3165 = vmatpush.msra.mxu0 %v13135_v2  ;;  %13167 = vst [vmem:[#allocation21_spill] sm:$0xff] %v10657_v22  ;;  %v10668_v16 = vsub.f32 %v3322_v49, %v10657_v22  ;;  %v13179_v2 = vld [vmem:[#allocation96_spill] sm:$0xff]  ;;  %v13201_v49 = vld [vmem:[#allocation110_spill] sm:$0xff] }
 0x4ba   :  { %3214 = vmatpush.msra.mxu1 %v13136_v53  ;;  %3259 = vmatpush.msra.mxu2 %v13137_v52 }
 0x4bb   :  { %v2805_v61 = vand.u32 4294901760, %v2804_v54  ;;  %3296 = vmatpush.msra.mxu3 %v13130_v43  ;;  %3168 = vmatpush.msra.mxu0 %v13138_v11  ;;  %v13171_v43 = vld [vmem:[#allocation142_spill] sm:$0xff]  ;;  %13172 = vst [vmem:[#allocation59_spill] sm:$0xff] %v10668_v16  ;;  %v13178_v54 = vld [vmem:[#allocation147_spill] sm:$0xff] }
 0x4bc   :  { %3216 = vmatpush.msra.mxu1 %v13139_v1  ;;  %3263 = vmatpush.msra.mxu2 %v13140_v14  ;;  %v13182_v11 = vld [vmem:[#allocation151_spill] sm:$0xff] }
 0x4bd   :  { %2806 = vmatmul.f32.gmra.mxu0 %v2805_v61  ;;  %3029 = vmatmul.f32.vlgmr.msrb.gmra.mxu1 %v10554_v40 }
 0x4be   :  { %3298 = vmatpush.msra.mxu3 %v13133_v4  ;;  %3171 = vmatpush.msra.mxu0 %v13141_v31  ;;  %v10679_v4 = vand.u32 4294901760, %v10668_v16  ;;  %v13185_v31 = vld [vmem:[#allocation97_spill] sm:$0xff] }
 0x4bf   :  { %3075 = vmatmul.f32.vlgmr.msrb.gmra.mxu2 %v2797_v60  ;;  %3218 = vmatpush.msra.mxu1 %v13142_v21  ;;  %v13170_v60 = vld [vmem:[#allocation92_spill] sm:$0xff] }
 0x4c0   :  { %3267 = vmatpush.msra.mxu2 %v13143_v6  ;;  %3300 = vmatpush.msra.mxu3 %v13136_v53  ;;  %13176 = vst [vmem:[#allocation232_spill] sm:$0xff] %v10679_v4  ;;  %v13180_v53 = vld [vmem:[#allocation149_spill] sm:$0xff]  ;;  %v3353_v52 = vsub.f32 %v10668_v16, %v10679_v4  ;;  %v10704_v6 = vand.u32 4294901760, %v10551_v23 }
 0x4c1   :  { %3144 = vmatmul.f32.vlgmr.msrb.gmra.mxu3 %v10554_v40  ;;  %3174 = vmatpush.msra.mxu0 %v13144_v8  ;;  %v13187_v8 = vld [vmem:[#allocation153_spill] sm:$0xff] }
 0x4c2   :  { %3271 = vmatpush.msra.mxu2 %v13145_v32  ;;  %3302 = vmatpush.msra.mxu3 %v13139_v1  ;;  %v13183_v1 = vld [vmem:[#allocation105_spill] sm:$0xff]  ;;  %v10698_v14 = vand.u32 4294901760, %v3353_v52  ;;  %v13188_v32 = vld [vmem:[#allocation99_spill] sm:$0xff] }
 0x4c3   :  { %3177 = vmatpush.msra.mxu0 %v13146_v62  ;;  %3378 = vmatpush.msrb.mxu1 %v13147_v33  ;;  %v13189_v62 = vld [vmem:[#allocation108_spill] sm:$0xff]  ;;  %v10711_v33 = vand.u32 4294901760, %v10548_v56 }
 0x4c4   :  { %3304 = vmatpush.msra.mxu3 %v13142_v21  ;;  %3410 = vmatpush.msrb.mxu2 %v13148_v42  ;;  %13184 = vst [vmem:[#allocation236_spill] sm:$0xff] %v10698_v14  ;;  %v13186_v21 = vld [vmem:[#allocation106_spill] sm:$0xff]  ;;  %v13190_v42 = vld [vmem:[#allocation111_spill] sm:$0xff] }
 0x4c5   :  { %2996 = vmatmul.f32.vlgmr.msrb.gmra.mxu0 %v10554_v40  ;;  %3033 = vmatmul.f32.gmra.mxu1 %v10574_v5 }
 0x4c6   :  { %3180 = vmatpush.msra.mxu0 %v13149_v63  ;;  %3384 = vmatpush.msrb.mxu1 %v13150_v24  ;;  %v10719_v63 = vsub.f32 %v10551_v23, %v10704_v6  ;;  %v13191_v24 = vld [vmem:[#allocation155_spill] sm:$0xff] }
 0x4c7   :  { %3083 = vmatmul.f32.gmra.mxu2 %v2805_v61  ;;  %3440 = vmatpush.msrb.mxu3 %v13151_v12  ;;  %v13181_v61 = vld [vmem:[#allocation103_spill] sm:$0xff] }
 0x4c8   :  { %3183 = vmatpush.msra.mxu0 %v13152_v10  ;;  %3413 = vmatpush.msrb.mxu2 %v13153_v27  ;;  %v13193_v10 = vld [vmem:[#allocation112_spill] sm:$0xff]  ;;  %v10727_v27 = vsub.f32 %v10548_v56, %v10711_v33  ;;  %v4097_v23 = vand.u32 4294901760, %v10719_v63 }
 0x4c9   :  { %3148 = vmatmul.f32.gmra.mxu3 %v10574_v5 }
 0x4ca   :  { %3339 = vmatpush.msrb.mxu0 %v13151_v12  ;;  %3442 = vmatpush.msrb.mxu3 %v13154_v13  ;;  %v4103_v56 = vand.u32 4294901760, %v10727_v27 }
 0x4cc   :  { %3341 = vmatpush.msrb.mxu0 %v13154_v13 }
 0x4cd   :  { %3000 = vmatmul.f32.gmra.mxu0 %v10574_v5  ;;  %3222 = vmatmul.f32.vlgmr.msra.gmra.mxu1 %v10564_v58  ;;  %v10645_v58 = vsub.f32 %v3319_v29, %v10634_v25  ;;  %v13196_v29 = vld [vmem:[#allocation114_spill] sm:$0xff] }
 0x4ce   :  { %3502 = vmatpush.msra.mxu1 %v13151_v12  ;;  %v13192_v12 = vld [vmem:[#allocation100_spill] sm:$0xff] }
 0x4cf   :  { %3273 = vmatmul.f32.vlgmr.msra.gmra.mxu2 %v10554_v40  ;;  %13161 = vst [vmem:[#allocation237_spill] sm:$0xff] %v10645_v58 }
 0x4d0   :  { %3504 = vmatpush.msra.mxu1 %v13154_v13  ;;  %3533 = vmatpush.msra.mxu2 %v13155_v48  ;;  %v13194_v13 = vld [vmem:[#allocation156_spill] sm:$0xff] }
 0x4d1   :  { %3306 = vmatmul.f32.vlgmr.msra.gmra.mxu3 %v10554_v40  ;;  %v13162_v40 = vld [vmem:[#allocation82_spill] sm:$0xff] }
 0x4d2   :  { %3586 = vmatpush.msra.mxu3 %v13157_v44  ;;  %3535 = vmatpush.msra.mxu2 %v13158_v47  ;;  %v13197_v44 = vld [vmem:[#allocation157_spill] sm:$0xff] }
 0x4d4   :  { %3592 = vmatpush.msra.mxu3 %v13159_v46  ;;  %3537 = vmatpush.msra.mxu2 %v13160_v30  ;;  %v13199_v46 = vld [vmem:[#allocation116_spill] sm:$0xff] }
 0x4d5   :  { %3186 = vmatmul.f32.vlgmr.msra.gmra.mxu0 %v10559_v36  ;;  %3228 = vmatmul.f32.gmra.mxu1 %v2803_v35  ;;  %v10655_v36 = vand.u32 4294901760, %v10645_v58  ;;  %v13174_v35 = vld [vmem:[#allocation145_spill] sm:$0xff] }
 0x4d6   :  { %3473 = vmatpush.msra.mxu0 %v13162_v40  ;;  %3598 = vmatpush.msra.mxu3 %v13163_v20  ;;  %v13200_v40 = vld [vmem:[#allocation119_spill] sm:$0xff]  ;;  %v4098_v20 = vsub.f32 %v10719_v63, %v4097_v23 }
 0x4d7   :  { %3277 = vmatmul.f32.gmra.mxu2 %v10574_v5  ;;  %13166 = vst [vmem:[#allocation25_spill] sm:$0xff] %v10655_v36 }
 0x4d8   :  { %3477 = vmatpush.msra.mxu0 %v13164_v51  ;;  %3604 = vmatpush.msra.mxu3 %v13165_v45  ;;  %v13202_v51 = vld [vmem:[#allocation158_spill] sm:$0xff]  ;;  %v13203_v45 = vld [vmem:[#allocation120_spill] sm:$0xff] }
 0x4d9   :  { %3310 = vmatmul.f32.gmra.mxu3 %v10574_v5  ;;  %3539 = vmatpush.msra.mxu2 %v13168_v17  ;;  %v3345_v5 = vsub.f32 %v10645_v58, %v10655_v36 }
 0x4da   :  { %3610 = vmatpush.msra.mxu3 %v13169_v26  ;;  %v13204_v26 = vld [vmem:[#allocation113_spill] sm:$0xff] }
 0x4db   :  { %3541 = vmatpush.msra.mxu2 %v13170_v60 }
 0x4dc   :  { %3616 = vmatpush.msra.mxu3 %v13171_v43  ;;  %v4104_v43 = vsub.f32 %v10727_v27, %v4103_v56 }
 0x4dd   :  { %3191 = vmatmul.f32.gmra.mxu0 %v10581_v0  ;;  %3386 = vmatmul.f32.vlgmr.msrb.gmra.mxu1 %v10634_v25  ;;  %v10676_v0 = vand.u32 4294901760, %v3345_v5  ;;  %v13205_v5 = vld [vmem:[#allocation121_spill] sm:$0xff] }
 0x4de   :  { %3746 = vmatpush.msrb.mxu1 %v13155_v48  ;;  %3622 = vmatpush.msra.mxu3 %v13173_v39  ;;  %v13206_v39 = vld [vmem:[#allocation115_spill] sm:$0xff]  ;;  %v4105_v52 = vand.u32 4294901760, %v4104_v43 }
 0x4df   :  { %3416 = vmatmul.f32.vlgmr.msrb.gmra.mxu2 %v10645_v58  ;;  %13175 = vst [vmem:[#allocation225_spill] sm:$0xff] %v10676_v0 }
 0x4e0   :  { %3748 = vmatpush.msrb.mxu1 %v13158_v47  ;;  %3628 = vmatpush.msra.mxu3 %v13174_v35  ;;  %v4099_v35 = vand.u32 4294901760, %v4098_v20 }
 0x4e1   :  { %3446 = vmatmul.f32.vlgmr.msrb.gmra.mxu3 %v10655_v36  ;;  %3543 = vmatpush.msra.mxu2 %v13177_v15 }
 0x4e2   :  { %3750 = vmatpush.msrb.mxu1 %v13160_v30  ;;  %3634 = vmatpush.msra.mxu3 %v13178_v54  ;;  %v13207_v54 = vld [vmem:[#allocation122_spill] sm:$0xff] }
 0x4e3   :  { %3545 = vmatpush.msra.mxu2 %v13179_v2 }
 0x4e4   :  { %3752 = vmatpush.msrb.mxu1 %v13168_v17  ;;  %3640 = vmatpush.msra.mxu3 %v13180_v53  ;;  %v13208_v53 = vld [vmem:[#allocation118_spill] sm:$0xff] }
 0x4e5   :  { %3347 = vmatmul.f32.vlgmr.msrb.gmra.mxu0 %v10676_v0  ;;  %3390 = vmatmul.f32.gmra.mxu1 %v10657_v22  ;;  %v4961_v0 = vld [vmem:[%s12364_s2 + $0x248] sm:$0xff] }
 0x4e6   :  { %3688 = vmatpush.msrb.mxu0 %v13181_v61  ;;  %3754 = vmatpush.msrb.mxu1 %v13170_v60  ;;  %v13210_v61 = vld [vmem:[#allocation124_spill] sm:$0xff] }
 0x4e7   :  { %3421 = vmatmul.f32.gmra.mxu2 %v10668_v16  ;;  %3646 = vmatpush.msra.mxu3 %v13182_v11  ;;  %v13212_v11 = vld [vmem:[#allocation125_spill] sm:$0xff] }
 0x4e8   :  { %3691 = vmatpush.msrb.mxu0 %v13183_v1  ;;  %3756 = vmatpush.msrb.mxu1 %v13177_v15  ;;  %v13213_v1 = vld [vmem:[#allocation128_spill] sm:$0xff] }
 0x4e9   :  { %3452 = vmatmul.f32.gmra.mxu3 %v10679_v4  ;;  %3547 = vmatpush.msra.mxu2 %v13185_v31 }
 0x4ea   :  { %3694 = vmatpush.msrb.mxu0 %v13186_v21  ;;  %3758 = vmatpush.msrb.mxu1 %v13179_v2  ;;  %v13214_v21 = vld [vmem:[#allocation126_spill] sm:$0xff] }
 0x4eb   :  { %3652 = vmatpush.msra.mxu3 %v13187_v8  ;;  %3549 = vmatpush.msra.mxu2 %v13188_v32  ;;  %v13217_v8 = vld [vmem:[#allocation131_spill] sm:$0xff] }
 0x4ec   :  { %3697 = vmatpush.msrb.mxu0 %v13189_v62  ;;  %3760 = vmatpush.msrb.mxu1 %v13185_v31  ;;  %v13220_v62 = vld [vmem:[#allocation138_spill] sm:$0xff] }
 0x4ed   :  { %3355 = vmatmul.f32.gmra.mxu0 %v10698_v14  ;;  %3506 = vmatmul.f32.vlgmr.msra.gmra.mxu1 %v10634_v25  ;;  %v4962_v14 = vld [vmem:[%s12364_s2 + $0x250] sm:$0xff] }
 0x4ee   :  { %3700 = vmatpush.msrb.mxu0 %v13190_v42  ;;  %3762 = vmatpush.msrb.mxu1 %v13188_v32  ;;  %v13224_v42 = vld [vmem:[#allocation146_spill] sm:$0xff]  ;;  %v11002_v16 = vand.u32 4294901760, %v4962_v14 }
 0x4ef   :  { %3658 = vmatpush.msra.mxu3 %v13191_v24  ;;  %3551 = vmatpush.msra.mxu2 %v13192_v12  ;;  %v13225_v24 = vld [vmem:[#allocation148_spill] sm:$0xff] }
 0x4f0   :  { %3703 = vmatpush.msrb.mxu0 %v13193_v10  ;;  %3764 = vmatpush.msrb.mxu1 %v13192_v12  ;;  %v13227_v10 = vld [vmem:[#allocation152_spill] sm:$0xff]  ;;  %13304 = vst [vmem:[#allocation226_spill] sm:$0xff] %v11002_v16  ;;  %v11015_v36 = vsub.f32 %v4962_v14, %v11002_v16 }
 0x4f1   :  { %3664 = vmatpush.msra.mxu3 %v13194_v13  ;;  %3553 = vmatpush.msra.mxu2 %v13195_v59  ;;  %v13228_v13 = vld [vmem:[#allocation154_spill] sm:$0xff] }
 0x4f2   :  { %3706 = vmatpush.msrb.mxu0 %v13196_v29  ;;  %3766 = vmatpush.msrb.mxu1 %v13195_v59  ;;  %13306 = vst [vmem:[#allocation32_spill] sm:$0xff] %v11015_v36 }
 0x4f3   :  { %3670 = vmatpush.msra.mxu3 %v13197_v44  ;;  %3555 = vmatpush.msra.mxu2 %v13198_v37 }
 0x4f4   :  { %3709 = vmatpush.msrb.mxu0 %v13199_v46  ;;  %3768 = vmatpush.msrb.mxu1 %v13198_v37 }
 0x4f5   :  { %3479 = vmatmul.f32.vlgmr.msra.gmra.mxu0 %v10634_v25  ;;  %3510 = vmatmul.f32.gmra.mxu1 %v10657_v22 }
 0x4f6   :  { %3712 = vmatpush.msrb.mxu0 %v13200_v40  ;;  %3770 = vmatpush.msrb.mxu1 %v13201_v49 }
 0x4f7   :  { %3676 = vmatpush.msra.mxu3 %v13202_v51  ;;  %3557 = vmatpush.msra.mxu2 %v13201_v49 }
 0x4f8   :  { %3715 = vmatpush.msrb.mxu0 %v13203_v45  ;;  %3772 = vmatpush.msrb.mxu1 %v13204_v26 }
 0x4f9   :  { %3864 = vmatpush.msrb.mxu3 %v13155_v48  ;;  %3559 = vmatpush.msra.mxu2 %v13204_v26  ;;  %v13209_v48 = vld [vmem:[#allocation123_spill] sm:$0xff] }
 0x4fa   :  { %3718 = vmatpush.msrb.mxu0 %v13205_v5  ;;  %3774 = vmatpush.msrb.mxu1 %v13206_v39 }
 0x4fb   :  { %3866 = vmatpush.msrb.mxu3 %v13158_v47  ;;  %3561 = vmatpush.msra.mxu2 %v13206_v39  ;;  %v13211_v47 = vld [vmem:[#allocation127_spill] sm:$0xff] }
 0x4fc   :  { %3721 = vmatpush.msrb.mxu0 %v13207_v54  ;;  %3776 = vmatpush.msrb.mxu1 %v13208_v53 }
 0x4fd   :  { %3483 = vmatmul.f32.gmra.mxu0 %v10657_v22  ;;  %3868 = vmatpush.msrb.mxu3 %v13160_v30  ;;  %v13215_v30 = vld [vmem:[#allocation129_spill] sm:$0xff] }
 0x4fe   :  { %4100 = vmatpush.msra.mxu1 %v4099_v35  ;;  %3724 = vmatpush.msrb.mxu0 %v13209_v48 }
 0x4ff   :  { %3563 = vmatpush.msra.mxu2 %v13208_v53  ;;  %3870 = vmatpush.msrb.mxu3 %v13168_v17  ;;  %v13216_v17 = vld [vmem:[#allocation130_spill] sm:$0xff] }
 0x500   :  { %4106 = vmatpush.msra.mxu1 %v4105_v52  ;;  %3727 = vmatpush.msrb.mxu0 %v13210_v61 }
 0x501   :  { %3793 = vmatpush.msrb.mxu2 %v13211_v47  ;;  %3872 = vmatpush.msrb.mxu3 %v13170_v60  ;;  %v13218_v60 = vld [vmem:[#allocation133_spill] sm:$0xff] }
 0x502   :  { %3730 = vmatpush.msrb.mxu0 %v13212_v11 }
 0x503   :  { %3797 = vmatpush.msrb.mxu2 %v13213_v1  ;;  %3874 = vmatpush.msrb.mxu3 %v13177_v15  ;;  %v13219_v15 = vld [vmem:[#allocation136_spill] sm:$0xff] }
 0x504   :  { %3733 = vmatpush.msrb.mxu0 %v13214_v21 }
 0x505   :  { %3801 = vmatpush.msrb.mxu2 %v13215_v30  ;;  %3876 = vmatpush.msrb.mxu3 %v13179_v2  ;;  %v13221_v2 = vld [vmem:[#allocation140_spill] sm:$0xff] }
 0x506   :  { %3949 = vmatpush.msra.mxu0 %v10704_v6 }
 0x507   :  { %3805 = vmatpush.msrb.mxu2 %v13216_v17  ;;  %3878 = vmatpush.msrb.mxu3 %v13185_v31  ;;  %v13222_v31 = vld [vmem:[#allocation141_spill] sm:$0xff] }
 0x508   :  { %3951 = vmatpush.msra.mxu0 %v10711_v33 }
 0x509   :  { %3809 = vmatpush.msrb.mxu2 %v13217_v8  ;;  %3880 = vmatpush.msrb.mxu3 %v13188_v32  ;;  %v13223_v32 = vld [vmem:[#allocation144_spill] sm:$0xff]  ;;  %v8453_v8 = vld [vmem:[%s12364_s2 + $0xa0] sm:$0xff] }
 0x50b   :  { %3813 = vmatpush.msrb.mxu2 %v13218_v60  ;;  %3882 = vmatpush.msrb.mxu3 %v13192_v12  ;;  %v13226_v12 = vld [vmem:[#allocation150_spill] sm:$0xff] }
 0x50d   :  { %3817 = vmatpush.msrb.mxu2 %v13219_v15  ;;  %3884 = vmatpush.msrb.mxu3 %v13195_v59  ;;  %v8454_v15 = vld [vmem:[%s12364_s2 + $0xa8] sm:$0xff] }
 0x50f   :  { %3821 = vmatpush.msrb.mxu2 %v13220_v62  ;;  %3886 = vmatpush.msrb.mxu3 %v13198_v37 }
 0x511   :  { %3825 = vmatpush.msrb.mxu2 %v13221_v2  ;;  %3888 = vmatpush.msrb.mxu3 %v13201_v49 }
 0x513   :  { %3829 = vmatpush.msrb.mxu2 %v13222_v31  ;;  %3890 = vmatpush.msrb.mxu3 %v13204_v26 }
 0x515   :  { %3833 = vmatpush.msrb.mxu2 %v13223_v32  ;;  %3892 = vmatpush.msrb.mxu3 %v13206_v39 }
 0x517   :  { %3837 = vmatpush.msrb.mxu2 %v13224_v42  ;;  %3894 = vmatpush.msrb.mxu3 %v13208_v53 }
 0x519   :  { %3841 = vmatpush.msrb.mxu2 %v13225_v24 }
 0x51b   :  { %3845 = vmatpush.msrb.mxu2 %v13226_v12 }
 0x51d   :  { %3849 = vmatpush.msrb.mxu2 %v13227_v10 }
 0x51f   :  { %3853 = vmatpush.msrb.mxu2 %v13228_v13 }
 0x52a   :  { %v2868_v59 = vpop.f32.mrf.mxu1 }
 0x532   :  { %v2799_v29 = vpop.f32.mrf.mxu0  ;;  %v2872_v44 = vpop.f32.mrf.mxu1 }
 0x533   :  { %v2910_v37 = vpop.f32.mrf.mxu2  ;;  %v2869_v45 = vadd.f32 %v2868_v59, %v2799_v29 }
 0x534   :  { %v2946_v46 = vpop.f32.mrf.mxu3 }
 0x535   :  { %v2911_v26 = vadd.f32 %v2910_v37, %v2869_v45 }
 0x537   :  { %v2947_v54 = vadd.f32 %v2946_v46, %v2911_v26 }
 0x53a   :  { %v2807_v40 = vpop.f32.mrf.mxu0  ;;  %v3030_v49 = vpop.f32.mrf.mxu1 }
 0x53b   :  { %v2915_v20 = vpop.f32.mrf.mxu2  ;;  %v2873_v43 = vadd.f32 %v2872_v44, %v2807_v40 }
 0x53c   :  { %v2952_v51 = vpop.f32.mrf.mxu3 }
 0x53d   :  { %v2916_v53 = vadd.f32 %v2915_v20, %v2873_v43 }
 0x53f   :  { %v2953_v61 = vadd.f32 %v2952_v51, %v2916_v53 }
 0x542   :  { %v2997_v5 = vpop.f32.mrf.mxu0  ;;  %v3034_v39 = vpop.f32.mrf.mxu1 }
 0x543   :  { %v3076_v35 = vpop.f32.mrf.mxu2  ;;  %v2998_v48 = vadd.f32 %v2997_v5, %v2947_v54 }
 0x544   :  { %v3145_v52 = vpop.f32.mrf.mxu3 }
 0x545   :  { %v3031_v11 = vadd.f32 %v3030_v49, %v2998_v48 }
 0x547   :  { %v3037_v60 = vmul.f32 %v8453_v8, %v3031_v11 }
 0x54a   :  { %v3001_v47 = vpop.f32.mrf.mxu0  ;;  %v3223_v30 = vpop.f32.mrf.mxu1 }
 0x54b   :  { %v3002_v1 = vadd.f32 %v3001_v47, %v2953_v61  ;;  %v3084_v21 = vpop.f32.mrf.mxu2 }
 0x54c   :  { %v3149_v2 = vpop.f32.mrf.mxu3 }
 0x54d   :  { %v3035_v17 = vadd.f32 %v3034_v39, %v3002_v1 }
 0x54f   :  { %v3038_v62 = vmul.f32 %v8454_v15, %v3035_v17 }
 0x551   :  { %v3039_v31 = vadd.f32 %v3038_v62, %v3037_v60 }
 0x552   :  { %v3187_v32 = vpop.f32.mrf.mxu0  ;;  %v3229_v12 = vpop.f32.mrf.mxu1 }
 0x553   :  { %v3040_v42 = vrot.slane %v3039_v31, 4  ;;  %v3274_v10 = vpop.f32.mrf.mxu2 }
 0x554   :  { %v3307_v29 = vpop.f32.mrf.mxu3 }
 0x555   :  { %v3041_v24 = vadd.f32 %v3040_v42, %v3039_v31 }
 0x557   :  { %v3042_v13 = vrot.slane %v3041_v24, 2 }
 0x559   :  { %v3043_v59 = vadd.f32 %v3042_v13, %v3041_v24 }
 0x55a   :  { %v3192_v44 = vpop.f32.mrf.mxu0  ;;  %v3387_v40 = vpop.f32.mrf.mxu1 }
 0x55b   :  { %v3044_v37 = vrot.slane %v3043_v59, 1  ;;  %v3278_v20 = vpop.f32.mrf.mxu2 }
 0x55c   :  { %v3311_v5 = vpop.f32.mrf.mxu3 }
 0x55d   :  { %v3045_v46 = vadd.f32 %v3044_v37, %v3043_v59 }
 0x55f   :  { %v3077_v49 = vadd.f32 %v3076_v35, %v3045_v46  ;;  %v3085_v45 = vadd.f32 %v3084_v21, %v3045_v46 }
 0x561   :  { %v3146_v51 = vadd.f32 %v3145_v52, %v3077_v49  ;;  %v3150_v39 = vadd.f32 %v3149_v2, %v3085_v45 }
 0x562   :  { %v3348_v26 = vpop.f32.mrf.mxu0  ;;  %v3391_v48 = vpop.f32.mrf.mxu1 }
 0x563   :  { %v3188_v43 = vadd.f32 %v3187_v32, %v3146_v51  ;;  %v3417_v53 = vpop.f32.mrf.mxu2  ;;  %v3388_v61 = vadd.f32 %v3387_v40, %v3348_v26  ;;  %v3193_v11 = vadd.f32 %v3192_v44, %v3150_v39 }
 0x564   :  { %v3447_v17 = vpop.f32.mrf.mxu3 }
 0x565   :  { %v3224_v54 = vadd.f32 %v3223_v30, %v3188_v43  ;;  %v3418_v8 = vadd.f32 %v3417_v53, %v3388_v61  ;;  %v3230_v15 = vadd.f32 %v3229_v12, %v3193_v11 }
 0x567   :  { %v3275_v47 = vadd.f32 %v3274_v10, %v3224_v54  ;;  %v3448_v35 = vadd.f32 %v3447_v17, %v3418_v8  ;;  %v3279_v52 = vadd.f32 %v3278_v20, %v3230_v15 }
 0x569   :  { %v3308_v60 = vadd.f32 %v3307_v29, %v3275_v47  ;;  %v3312_v13 = vadd.f32 %v3311_v5, %v3279_v52 }
 0x56a   :  { %v3356_v1 = vpop.f32.mrf.mxu0  ;;  %v3507_v62 = vpop.f32.mrf.mxu1 }
 0x56b   :  { %v3392_v31 = vadd.f32 %v3391_v48, %v3356_v1  ;;  %v3422_v21 = vpop.f32.mrf.mxu2  ;;  %v3314_v32 = vmul.f32 0.2, %v3308_v60  ;;  %v3315_v46 = vmul.f32 0.2, %v3312_v13 }
 0x56c   :  { %v3453_v59 = vpop.f32.mrf.mxu3 }
 0x56d   :  { %v3423_v2 = vadd.f32 %v3422_v21, %v3392_v31  ;;  %v3316_v37 = vmax.f32 %v3308_v60, %v3314_v32  ;;  %v3317_v51 = vmax.f32 %v3312_v13, %v3315_v46  ;;  %v13231_v21 = vld [vmem:[#allocation159_spill] sm:$0xff]  ;;  %v13235_v32 = vld [vmem:[#allocation169_spill] sm:$0xff]  ;;  %v13240_v13 = vld [vmem:[#allocation168_spill] sm:$0xff] }
 0x56e   :  { %v13245_v46 = vld [vmem:[#allocation167_spill] sm:$0xff] }
 0x56f   :  { %v3454_v44 = vadd.f32 %v3453_v59, %v3423_v2  ;;  %v13238_v2 = vld [vmem:[#allocation165_spill] sm:$0xff]  ;;  %v13241_v59 = vld [vmem:[#allocation163_spill] sm:$0xff] }
 0x572   :  { %v3480_v42 = vpop.f32.mrf.mxu0  ;;  %v3511_v12 = vpop.f32.mrf.mxu1 }
 0x573   :  { %v3481_v24 = vadd.f32 %v3480_v42, %v3448_v35  ;;  %v13233_v42 = vld [vmem:[#allocation162_spill] sm:$0xff] }
 0x575   :  { %v3508_v30 = vadd.f32 %v3507_v62, %v3481_v24  ;;  %v13237_v24 = vld [vmem:[#allocation160_spill] sm:$0xff] }
 0x577   :  { %vm3514_vm13 = vcmp.gt.f32.partialorder %v3508_v30, 0.0 }
 0x578   :  { %v3516_v10 = vsel %vm3514_vm13, %v3316_v37, -1e+30 }
 0x579   :  { %3518 = vmax.xlane.f32.xlu1 %v3516_v10  ;;  %v13243_v10 = vld [vmem:[#allocation177_spill] sm:$0xff] }
 0x57a   :  { %v3484_v29 = vpop.f32.mrf.mxu0 }
 0x57b   :  { %v3485_v40 = vadd.f32 %v3484_v29, %v3454_v44  ;;  %v13244_v44 = vld [vmem:[#allocation171_spill] sm:$0xff]  ;;  %v13246_v29 = vld [vmem:[#allocation170_spill] sm:$0xff] }
 0x57d   :  { %v3512_v49 = vadd.f32 %v3511_v12, %v3485_v40  ;;  %v13247_v12 = vld [vmem:[#allocation181_spill] sm:$0xff]  ;;  %v13248_v40 = vld [vmem:[#allocation175_spill] sm:$0xff] }
 0x57f   :  { %vm3515_vm14 = vcmp.gt.f32.partialorder %v3512_v49, 0.0 }
 0x580   :  { %v3517_v20 = vsel %vm3515_vm14, %v3317_v51, -1e+30 }
 0x581   :  { %3520 = vmax.xlane.f32.xlu1 %v3517_v20  ;;  %v13251_v20 = vld [vmem:[#allocation185_spill] sm:$0xff] }
 0x5ec   :  { %v3519_v45 = vpop.xlane.xlu1 %3518 }
 0x5ed   :  { %v3522_v26 = vsub.f32 %v3316_v37, %v3519_v45  ;;  %v13242_v37 = vld [vmem:[#allocation9_spill] sm:$0xff]  ;;  %v13252_v45 = vld [vmem:[#allocation179_spill] sm:$0xff] }
 0x5ef   :  { %v3524_v43 = vmin.f32 %v3522_v26, 0.0  ;;  %v13253_v26 = vld [vmem:[#allocation172_spill] sm:$0xff] }
 0x5f1   :  { %v3526_v39 = vmul.f32 1.442695, %v3524_v43  ;;  %v13254_v43 = vld [vmem:[#allocation178_spill] sm:$0xff] }
 0x5f3   :  { %8397 = vpow2.f32 %v3526_v39  ;;  %v13255_v39 = vld [vmem:[#allocation189_spill] sm:$0xff] }
 0x5f4   :  { %v3521_v5 = vpop.xlane.xlu1 %3520 }
 0x5f5   :  { %v3523_v54 = vsub.f32 %v3317_v51, %v3521_v5  ;;  %v13250_v51 = vld [vmem:[#allocation174_spill] sm:$0xff]  ;;  %v13256_v5 = vld [vmem:[#allocation183_spill] sm:$0xff] }
 0x5f7   :  { %v3525_v53 = vmin.f32 %v3523_v54, 0.0  ;;  %v13257_v54 = vld [vmem:[#allocation176_spill] sm:$0xff] }
 0x5f9   :  { %v8398_v48 = vpop.eup %8397  ;;  %v3528_v61 = vmul.f32 1.442695, %v3525_v53  ;;  %v13258_v53 = vld [vmem:[#allocation182_spill] sm:$0xff] }
 0x5fa   :  { %v10805_v47 = vmul.f32 %v8398_v48, %v3508_v30  ;;  %v13239_v30 = vld [vmem:[#allocation173_spill] sm:$0xff] }
 0x5fb   :  { %8399 = vpow2.f32 %v3528_v61  ;;  %v13259_v48 = vld [vmem:[#allocation193_spill] sm:$0xff]  ;;  %v13260_v61 = vld [vmem:[#allocation187_spill] sm:$0xff] }
 0x5fc   :  { %v3564_v11 = vand.u32 4294901760, %v10805_v47 }
 0x5fe   :  { %3678 = vmatmul.f32.vlgmr.msra.gmra.mxu3 %v3564_v11  ;;  %v3565_v1 = vsub.f32 %v10805_v47, %v3564_v11 }
 0x5ff   :  { %4288 = vmatpush.msra.mxu3 %v10704_v6 }
 0x600   :  { %3736 = vmatmul.f32.vlgmr.msrb.gmra.mxu0 %v3565_v1  ;;  %v3566_v17 = vand.u32 4294901760, %v3565_v1 }
 0x601   :  { %v8400_v8 = vpop.eup %8399  ;;  %4290 = vmatpush.msra.mxu3 %v10711_v33  ;;  %4405 = vmatpush.msrb.mxu0 %v4097_v23 }
 0x602   :  { %v10813_v60 = vmul.f32 %v8400_v8, %v3512_v49  ;;  %3780 = vmatmul.f32.vlgmr.msrb.gmra.mxu1 %v3566_v17  ;;  %v3567_v15 = vsub.f32 %v3565_v1, %v3566_v17  ;;  %v13249_v49 = vld [vmem:[#allocation10_spill] sm:$0xff]  ;;  %v13263_v17 = vld [vmem:[#allocation197_spill] sm:$0xff]  ;;  %v13264_v8 = vld [vmem:[#allocation191_spill] sm:$0xff] }
 0x603   :  { %4409 = vmatpush.msrb.mxu0 %v4103_v56  ;;  %4490 = vmatpush.msrb.mxu1 %v10704_v6  ;;  %v13230_v6 = vld [vmem:[#allocation164_spill] sm:$0xff]  ;;  %v13262_v1 = vld [vmem:[#allocation186_spill] sm:$0xff] }
 0x604   :  { %13229 = vst [vmem:[#allocation18_spill] sm:$0xff] %v10813_v60  ;;  %v3568_v62 = vand.u32 4294901760, %v3567_v15  ;;  %v3572_v35 = vand.u32 4294901760, %v10813_v60  ;;  %v13265_v15 = vld [vmem:[#allocation184_spill] sm:$0xff] }
 0x605   :  { %4492 = vmatpush.msrb.mxu1 %v10711_v33  ;;  %v13232_v33 = vld [vmem:[#allocation8_spill] sm:$0xff] }
 0x606   :  { %3569 = vmatmul.f32.vlgmr.msra.gmra.mxu2 %v3568_v62  ;;  %3682 = vmatmul.f32.gmra.mxu3 %v3572_v35  ;;  %v3573_v31 = vsub.f32 %v10813_v60, %v3572_v35  ;;  %v13266_v62 = vld [vmem:[#allocation190_spill] sm:$0xff] }
 0x607   :  { %4188 = vmatpush.msra.mxu2 %v10719_v63  ;;  %v13234_v63 = vld [vmem:[#allocation117_spill] sm:$0xff] }
 0x608   :  { %3741 = vmatmul.f32.gmra.mxu0 %v3573_v31  ;;  %v3574_v23 = vand.u32 4294901760, %v3573_v31 }
 0x609   :  { %4191 = vmatpush.msra.mxu2 %v10727_v27  ;;  %v13236_v27 = vld [vmem:[#allocation166_spill] sm:$0xff] }
 0x60a   :  { %3786 = vmatmul.f32.gmra.mxu1 %v3574_v23  ;;  %v3575_v52 = vsub.f32 %v3573_v31, %v3574_v23  ;;  %v13268_v31 = vld [vmem:[#allocation195_spill] sm:$0xff]  ;;  %v13269_v23 = vld [vmem:[#allocation188_spill] sm:$0xff] }
 0x60c   :  { %v3576_v56 = vand.u32 4294901760, %v3575_v52  ;;  %v13270_v52 = vld [vmem:[#allocation194_spill] sm:$0xff] }
 0x60e   :  { %3577 = vmatmul.f32.gmra.mxu2 %v3576_v56  ;;  %3896 = vmatmul.f32.vlgmr.msrb.gmra.mxu3 %v3564_v11  ;;  %v13271_v56 = vld [vmem:[#allocation205_spill] sm:$0xff] }
 0x610   :  { %3957 = vmatmul.f32.vlgmr.msra.gmra.mxu0 %v13230_v6  ;;  %v13272_v6 = vld [vmem:[#allocation199_spill] sm:$0xff] }
 0x612   :  { %4108 = vmatmul.f32.vlgmr.msra.gmra.mxu1 %v13231_v21 }
 0x616   :  { %3855 = vmatmul.f32.vlgmr.msrb.gmra.mxu2 %v3564_v11  ;;  %3900 = vmatmul.f32.gmra.mxu3 %v3572_v35  ;;  %v13261_v11 = vld [vmem:[#allocation180_spill] sm:$0xff] }
 0x618   :  { %3965 = vmatmul.f32.gmra.mxu0 %v13232_v33  ;;  %v13273_v33 = vld [vmem:[#allocation192_spill] sm:$0xff] }
 0x61a   :  { %4112 = vmatmul.f32.gmra.mxu1 %v13233_v42 }
 0x61e   :  { %3859 = vmatmul.f32.gmra.mxu2 %v3572_v35  ;;  %4294 = vmatmul.f32.vlgmr.msra.gmra.mxu3 %v13234_v63  ;;  %v13267_v35 = vld [vmem:[#allocation201_spill] sm:$0xff]  ;;  %v13274_v63 = vld [vmem:[#allocation198_spill] sm:$0xff] }
 0x620   :  { %3973 = vmatmul.f32.gmra.mxu0 %v13235_v32  ;;  %v13275_v32 = vld [vmem:[#allocation209_spill] sm:$0xff] }
 0x622   :  { %4116 = vmatmul.f32.gmra.mxu1 %v13236_v27 }
 0x626   :  { %4194 = vmatmul.f32.vlgmr.msra.gmra.mxu2 %v13237_v24  ;;  %4300 = vmatmul.f32.gmra.mxu3 %v13238_v2  ;;  %v13276_v24 = vld [vmem:[#allocation203_spill] sm:$0xff]  ;;  %v13277_v2 = vld [vmem:[#allocation196_spill] sm:$0xff] }
 0x628   :  { %3981 = vmatmul.f32.gmra.mxu0 %v13239_v30  ;;  %v13278_v30 = vld [vmem:[#allocation202_spill] sm:$0xff] }
 0x62a   :  { %4120 = vmatmul.f32.gmra.mxu1 %v13240_v13 }
 0x62e   :  { %4199 = vmatmul.f32.gmra.mxu2 %v13241_v59  ;;  %4306 = vmatmul.f32.gmra.mxu3 %v13242_v37  ;;  %v13279_v59 = vld [vmem:[#allocation213_spill] sm:$0xff]  ;;  %v13280_v37 = vld [vmem:[#allocation207_spill] sm:$0xff] }
 0x630   :  { %3989 = vmatmul.f32.gmra.mxu0 %v13243_v10 }
 0x632   :  { %4124 = vmatmul.f32.gmra.mxu1 %v13244_v44 }
 0x636   :  { %4204 = vmatmul.f32.gmra.mxu2 %v13245_v46  ;;  %4312 = vmatmul.f32.gmra.mxu3 %v13246_v29  ;;  %v13281_v46 = vld [vmem:[#allocation200_spill] sm:$0xff]  ;;  %v13282_v29 = vld [vmem:[#allocation206_spill] sm:$0xff] }
 0x638   :  { %3997 = vmatmul.f32.gmra.mxu0 %v13247_v12 }
 0x63a   :  { %4128 = vmatmul.f32.gmra.mxu1 %v13248_v40 }
 0x63e   :  { %4209 = vmatmul.f32.gmra.mxu2 %v13249_v49  ;;  %4318 = vmatmul.f32.gmra.mxu3 %v13250_v51  ;;  %v13283_v49 = vld [vmem:[#allocation217_spill] sm:$0xff]  ;;  %v13284_v51 = vld [vmem:[#allocation211_spill] sm:$0xff] }
 0x640   :  { %4005 = vmatmul.f32.gmra.mxu0 %v13251_v20 }
 0x642   :  { %4132 = vmatmul.f32.gmra.mxu1 %v13252_v45 }
 0x646   :  { %4214 = vmatmul.f32.gmra.mxu2 %v13253_v26  ;;  %4324 = vmatmul.f32.gmra.mxu3 %v13254_v43  ;;  %v13285_v26 = vld [vmem:[#allocation204_spill] sm:$0xff]  ;;  %v13286_v43 = vld [vmem:[#allocation210_spill] sm:$0xff] }
 0x648   :  { %4013 = vmatmul.f32.gmra.mxu0 %v13255_v39 }
 0x64a   :  { %4136 = vmatmul.f32.gmra.mxu1 %v13256_v5 }
 0x64e   :  { %4219 = vmatmul.f32.gmra.mxu2 %v13257_v54  ;;  %4330 = vmatmul.f32.gmra.mxu3 %v13258_v53  ;;  %v13287_v53 = vld [vmem:[#allocation219_spill] sm:$0xff] }
 0x650   :  { %4021 = vmatmul.f32.gmra.mxu0 %v13259_v48 }
 0x652   :  { %4140 = vmatmul.f32.gmra.mxu1 %v13260_v61 }
 0x656   :  { %4224 = vmatmul.f32.gmra.mxu2 %v13261_v11  ;;  %4336 = vmatmul.f32.gmra.mxu3 %v13262_v1  ;;  %v13288_v1 = vld [vmem:[#allocation215_spill] sm:$0xff] }
 0x658   :  { %4029 = vmatmul.f32.gmra.mxu0 %v13263_v17 }
 0x65a   :  { %4144 = vmatmul.f32.gmra.mxu1 %v13264_v8 }
 0x65e   :  { %4229 = vmatmul.f32.gmra.mxu2 %v13265_v15  ;;  %4342 = vmatmul.f32.gmra.mxu3 %v13266_v62  ;;  %v13289_v62 = vld [vmem:[#allocation208_spill] sm:$0xff] }
 0x660   :  { %4037 = vmatmul.f32.gmra.mxu0 %v13267_v35  ;;  %v13290_v35 = vld [vmem:[#allocation214_spill] sm:$0xff] }
 0x662   :  { %4148 = vmatmul.f32.gmra.mxu1 %v13268_v31 }
 0x666   :  { %4234 = vmatmul.f32.gmra.mxu2 %v13269_v23  ;;  %4348 = vmatmul.f32.gmra.mxu3 %v13270_v52 }
 0x668   :  { %4045 = vmatmul.f32.gmra.mxu0 %v13271_v56 }
 0x66a   :  { %4152 = vmatmul.f32.gmra.mxu1 %v13272_v6 }
 0x66e   :  { %4239 = vmatmul.f32.gmra.mxu2 %v13273_v33  ;;  %4354 = vmatmul.f32.gmra.mxu3 %v13274_v63 }
 0x670   :  { %4053 = vmatmul.f32.gmra.mxu0 %v13275_v32 }
 0x672   :  { %4156 = vmatmul.f32.gmra.mxu1 %v13276_v24 }
 0x676   :  { %4244 = vmatmul.f32.gmra.mxu2 %v13277_v2  ;;  %4360 = vmatmul.f32.gmra.mxu3 %v13278_v30  ;;  %v13291_v30 = vld [vmem:[#allocation212_spill] sm:$0xff] }
 0x678   :  { %4061 = vmatmul.f32.gmra.mxu0 %v13279_v59  ;;  %v13292_v59 = vld [vmem:[#allocation218_spill] sm:$0xff] }
 0x67a   :  { %4160 = vmatmul.f32.gmra.mxu1 %v13280_v37 }
 0x67d   :  { %v3737_v10 = vpop.f32.mrf.mxu0 }
 0x67e   :  { %4249 = vmatmul.f32.gmra.mxu2 %v13281_v46  ;;  %4366 = vmatmul.f32.gmra.mxu3 %v13282_v29 }
 0x67f   :  { %v3781_v12 = vpop.f32.mrf.mxu1 }
 0x680   :  { %4069 = vmatmul.f32.gmra.mxu0 %v13283_v49 }
 0x681   :  { %v3679_v39 = vpop.f32.mrf.mxu3 }
 0x682   :  { %4164 = vmatmul.f32.gmra.mxu1 %v13284_v51 }
 0x685   :  { %v3742_v20 = vpop.f32.mrf.mxu0 }
 0x686   :  { %4254 = vmatmul.f32.gmra.mxu2 %v13285_v26  ;;  %4372 = vmatmul.f32.gmra.mxu3 %v13286_v43 }
 0x687   :  { %v3787_v54 = vpop.f32.mrf.mxu1 }
 0x688   :  { %4077 = vmatmul.f32.gmra.mxu0 %v13287_v53 }
 0x689   :  { %v3570_v48 = vpop.f32.mrf.mxu2  ;;  %v3683_v56 = vpop.f32.mrf.mxu3 }
 0x68a   :  { %v3680_v11 = vadd.f32 %v3679_v39, %v3570_v48  ;;  %4168 = vmatmul.f32.gmra.mxu1 %v13288_v1 }
 0x68c   :  { %v3738_v17 = vadd.f32 %v3737_v10, %v3680_v11 }
 0x68d   :  { %v10882_v15 = vpop.f32.mrf.mxu0 }
 0x68e   :  { %4259 = vmatmul.f32.gmra.mxu2 %v13289_v62  ;;  %4378 = vmatmul.f32.gmra.mxu3 %v13290_v35  ;;  %v10886_v23 = vadd.f32 %v3781_v12, %v3738_v17  ;;  %v13293_v12 = vld [vmem:[#allocation216_spill] sm:$0xff] }
 0x68f   :  { %v10888_v52 = vpop.f32.mrf.mxu1 }
 0x690   :  { %4411 = vmatmul.f32.vlgmr.msrb.gmra.mxu0 %v13231_v21 }
 0x691   :  { %v3578_v33 = vpop.f32.mrf.mxu2  ;;  %v10952_v17 = vpop.f32.mrf.mxu3 }
 0x692   :  { %v3684_v63 = vadd.f32 %v3683_v56, %v3578_v33  ;;  %4494 = vmatmul.f32.vlgmr.msrb.gmra.mxu1 %v13231_v21  ;;  %v4964_v56 = vld [vmem:[%s12364_s2 + $0x260] sm:$0xff] }
 0x694   :  { %v3743_v32 = vadd.f32 %v3742_v20, %v3684_v63  ;;  %v10970_v63 = vand.u32 4294901760, %v4964_v56 }
 0x695   :  { %v10892_v2 = vpop.f32.mrf.mxu0 }
 0x696   :  { %4264 = vmatmul.f32.gmra.mxu2 %v13291_v30  ;;  %4384 = vmatmul.f32.gmra.mxu3 %v13292_v59  ;;  %v10896_v10 = vadd.f32 %v3787_v54, %v3743_v32  ;;  %13298 = vst [vmem:[#allocation15_spill] sm:$0xff] %v10970_v63  ;;  %v4963_v32 = vld [vmem:[%s12364_s2 + $0x258] sm:$0xff]  ;;  %v10983_v59 = vsub.f32 %v4964_v56, %v10970_v63 }
 0x697   :  { %v10898_v46 = vpop.f32.mrf.mxu1 }
 0x698   :  { %4415 = vmatmul.f32.gmra.mxu0 %v13233_v42  ;;  %13300 = vst [vmem:[#allocation63_spill] sm:$0xff] %v10983_v59  ;;  %v10997_v4 = vand.u32 4294901760, %v10983_v59 }
 0x699   :  { %v11004_v22 = vpop.f32.mrf.mxu3 }
 0x69a   :  { %4498 = vmatmul.f32.gmra.mxu1 %v13233_v42  ;;  %13302 = vst [vmem:[#allocation233_spill] sm:$0xff] %v10997_v4 }
 0x69d   :  { %v10902_v29 = vpop.f32.mrf.mxu0 }
 0x69e   :  { %4269 = vmatmul.f32.gmra.mxu2 %v13293_v12  ;;  %v10985_v12 = vand.u32 4294901760, %v4963_v32 }
 0x69f   :  { %v10905_v21 = vpop.f32.mrf.mxu1 }
 0x6a0   :  { %4419 = vmatmul.f32.gmra.mxu0 %v13236_v27  ;;  %13301 = vst [vmem:[#allocation228_spill] sm:$0xff] %v10985_v12  ;;  %v11000_v56 = vsub.f32 %v4963_v32, %v10985_v12  ;;  %v11017_v32 = vand.u32 4294901760, %v4961_v0 }
 0x6a2   :  { %4502 = vmatmul.f32.gmra.mxu1 %v13236_v27  ;;  %13303 = vst [vmem:[#allocation221_spill] sm:$0xff] %v11000_v56  ;;  %v11031_v14 = vsub.f32 %v4961_v0, %v11017_v32 }
 0x6a3   :  { %13307 = vst [vmem:[#allocation223_spill] sm:$0xff] %v11017_v32 }
 0x6a4   :  { %13309 = vst [vmem:[#allocation76_spill] sm:$0xff] %v11031_v14 }
 0x6a5   :  { %v10909_v49 = vpop.f32.mrf.mxu0 }
 0x6a7   :  { %v10911_v20 = vpop.f32.mrf.mxu1 }
 0x6a8   :  { %4423 = vmatmul.f32.gmra.mxu0 %v13240_v13 }
 0x6aa   :  { %4506 = vmatmul.f32.gmra.mxu1 %v13240_v13 }
 0x6ad   :  { %v10915_v26 = vpop.f32.mrf.mxu0 }
 0x6af   :  { %v10917_v42 = vpop.f32.mrf.mxu1 }
 0x6b0   :  { %4427 = vmatmul.f32.gmra.mxu0 %v13244_v44 }
 0x6b2   :  { %4510 = vmatmul.f32.gmra.mxu1 %v13244_v44 }
 0x6b5   :  { %v10921_v43 = vpop.f32.mrf.mxu0 }
 0x6b6   :  { %13294 = vst [vmem:[#allocation41_spill] sm:$0xff] %v10921_v43 }
 0x6b7   :  { %v10923_v39 = vpop.f32.mrf.mxu1 }
 0x6b8   :  { %13295 = vst [vmem:[#allocation74_spill] sm:$0xff] %v10923_v39  ;;  %4431 = vmatmul.f32.gmra.mxu0 %v13248_v40 }
 0x6ba   :  { %4514 = vmatmul.f32.gmra.mxu1 %v13248_v40  ;;  %v10945_v40 = vpop.f32.mrf.mxu2 }
 0x6bd   :  { %v10927_v27 = vpop.f32.mrf.mxu0 }
 0x6bf   :  { %v10929_v54 = vpop.f32.mrf.mxu1 }
 0x6c0   :  { %4435 = vmatmul.f32.gmra.mxu0 %v13252_v45 }
 0x6c2   :  { %4518 = vmatmul.f32.gmra.mxu1 %v13252_v45  ;;  %v10960_v35 = vpop.f32.mrf.mxu2 }
 0x6c5   :  { %v10933_v13 = vpop.f32.mrf.mxu0 }
 0x6c7   :  { %v10935_v53 = vpop.f32.mrf.mxu1 }
 0x6c8   :  { %4439 = vmatmul.f32.gmra.mxu0 %v13256_v5 }
 0x6ca   :  { %4522 = vmatmul.f32.gmra.mxu1 %v13256_v5  ;;  %v4965_v5 = vld [vmem:[%s12364_s2 + $0x268] sm:$0xff] }
 0x6cb   :  { %v10958_v62 = vand.u32 4294901760, %v4965_v5 }
 0x6cd   :  { %v10939_v44 = vpop.f32.mrf.mxu0  ;;  %13296 = vst [vmem:[#allocation230_spill] sm:$0xff] %v10958_v62  ;;  %v10968_v33 = vsub.f32 %v4965_v5, %v10958_v62  ;;  %5228 = vmatpush.msra.mxu1 %v10958_v62  ;;  %v8379_v5 = vld [vmem:[%s12364_s2 + $0x98] ss:$0 sm:$0xff] }
 0x6ce   :  { %v2207_v58 = vadd.f32 %v8379_v5, %v10524_v50 }
 0x6cf   :  { %v10941_v48 = vpop.f32.mrf.mxu1  ;;  %13297 = vst [vmem:[#allocation235_spill] sm:$0xff] %v10968_v33  ;;  %v10980_v30 = vand.u32 4294901760, %v10968_v33  ;;  %5230 = vmatpush.msra.mxu1 %v10970_v63 }
 0x6d0   :  { %4443 = vmatmul.f32.gmra.mxu0 %v13260_v61  ;;  %v2316_v50 = vadd.f32 %v10526_v7, %v2207_v58  ;;  %v4958_v58 = vld [vmem:[%s12364_s2 + $0x230] sm:$0xff] }
 0x6d1   :  { %13299 = vst [vmem:[#allocation30_spill] sm:$0xff] %v10980_v30  ;;  %5181 = vmatpush.msra.mxu0 %v10980_v30  ;;  %5232 = vmatpush.msra.mxu1 %v10985_v12  ;;  %v4960_v12 = vld [vmem:[%s12364_s2 + $0x240] sm:$0xff] }
 0x6d2   :  { %4526 = vmatmul.f32.gmra.mxu1 %v13260_v61  ;;  %v11033_v59 = vand.u32 4294901760, %v4960_v12  ;;  %v2374_v7 = vadd.f32 %v10532_v55, %v2316_v50  ;;  %v11069_v50 = vpop.f32.mrf.mxu3 }
 0x6d3   :  { %5185 = vmatpush.msra.mxu0 %v10997_v4  ;;  %5234 = vmatpush.msra.mxu1 %v11002_v16  ;;  %v11036_v4 = vpop.f32.mrf.mxu2  ;;  %v4959_v16 = vld [vmem:[%s12364_s2 + $0x238] sm:$0xff] }
 0x6d4   :  { %13310 = vst [vmem:[#allocation227_spill] sm:$0xff] %v11033_v59  ;;  %v11049_v0 = vsub.f32 %v4960_v12, %v11033_v59  ;;  %v2418_v55 = vadd.f32 %v10534_v18, %v2374_v7 }
 0x6d5   :  { %v10947_v11 = vpop.f32.mrf.mxu0  ;;  %5236 = vmatpush.msra.mxu1 %v11017_v32  ;;  %v11066_v32 = vand.u32 4294901760, %v4958_v58 }
 0x6d6   :  { %13312 = vst [vmem:[#allocation224_spill] sm:$0xff] %v11049_v0 }
 0x6d7   :  { %v10949_v45 = vpop.f32.mrf.mxu1  ;;  %5238 = vmatpush.msra.mxu1 %v11033_v59  ;;  %13316 = vst [vmem:[#allocation222_spill] sm:$0xff] %v11066_v32 }
 0x6d8   :  { %4447 = vmatmul.f32.gmra.mxu0 %v13264_v8 }
 0x6da   :  { %4530 = vmatmul.f32.gmra.mxu1 %v13264_v8 }
 0x6dd   :  { %v10962_v61 = vpop.f32.mrf.mxu0 }
 0x6df   :  { %v10973_v8 = vpop.f32.mrf.mxu1 }
 0x6e0   :  { %4451 = vmatmul.f32.gmra.mxu0 %v13268_v31 }
 0x6e2   :  { %4534 = vmatmul.f32.gmra.mxu1 %v13268_v31  ;;  %v11012_v31 = vand.u32 4294901760, %v11000_v56  ;;  %v11028_v56 = vand.u32 4294901760, %v11015_v36  ;;  %v11046_v36 = vand.u32 4294901760, %v11031_v14  ;;  %v11061_v14 = vand.u32 4294901760, %v11049_v0 }
 0x6e3   :  { %v2215_v0 = vadd.f32 %v8379_v5, %v10528_v9 }
 0x6e4   :  { %13305 = vst [vmem:[#allocation231_spill] sm:$0xff] %v11012_v31  ;;  %5189 = vmatpush.msra.mxu0 %v11012_v31  ;;  %v11051_v31 = vand.u32 4294901760, %v4959_v16 }
 0x6e5   :  { %v11020_v25 = vpop.f32.mrf.mxu0  ;;  %13308 = vst [vmem:[#allocation229_spill] sm:$0xff] %v11028_v56  ;;  %v2320_v7 = vadd.f32 %v10530_v19, %v2215_v0 }
 0x6e6   :  { %13311 = vst [vmem:[#allocation70_spill] sm:$0xff] %v11046_v36  ;;  %5193 = vmatpush.msra.mxu0 %v11028_v56  ;;  %v11064_v12 = vsub.f32 %v4959_v16, %v11051_v31  ;;  %5240 = vmatpush.msra.mxu1 %v11051_v31  ;;  %v2493_v16 = vadd.f32 %v10540_v3, %v2418_v55  ;;  %v11095_v3 = vpop.f32.mrf.mxu2 }
 0x6e7   :  { %v11038_v63 = vpop.f32.mrf.mxu1  ;;  %13313 = vst [vmem:[#allocation55_spill] sm:$0xff] %v11051_v31  ;;  %v2379_v9 = vadd.f32 %v10536_v41, %v2320_v7 }
 0x6e8   :  { %4455 = vmatmul.f32.gmra.mxu0 %v13272_v6  ;;  %13314 = vst [vmem:[#allocation77_spill] sm:$0xff] %v11061_v14  ;;  %v11074_v59 = vand.u32 4294901760, %v11064_v12  ;;  %5242 = vmatpush.msra.mxu1 %v11066_v32 }
 0x6e9   :  { %13315 = vst [vmem:[#allocation73_spill] sm:$0xff] %v11064_v12  ;;  %5197 = vmatpush.msra.mxu0 %v11046_v36  ;;  %v2534_v12 = vadd.f32 %v10544_v28, %v2493_v16  ;;  %v2424_v5 = vadd.f32 %v10538_v34, %v2379_v9  ;;  %v11101_v28 = vpop.f32.mrf.mxu3 }
 0x6ea   :  { %4538 = vmatmul.f32.gmra.mxu1 %v13272_v6  ;;  %13317 = vst [vmem:[#allocation161_spill] sm:$0xff] %v11074_v59  ;;  %v11077_v6 = vsub.f32 %v4958_v58, %v11066_v32 }
 0x6eb   :  { %5201 = vmatpush.msra.mxu0 %v11061_v14  ;;  %13320 = vst [vmem:[#allocation2_spill] sm:$0xff] %v11095_v3  ;;  %v2542_v58 = vmin.f32 %v2534_v12, 0.0  ;;  %v2497_v19 = vadd.f32 %v10542_v38, %v2424_v5  ;;  %vm2540_vm15 = vcmp.gt.f32.partialorder %v2534_v12, 0.0 }
 0x6ec   :  { %13318 = vst [vmem:[#allocation220_spill] sm:$0xff] %v11077_v6  ;;  %v11086_v18 = vand.u32 4294901760, %v11077_v6 }
 0x6ed   :  { %v11081_v56 = vpop.f32.mrf.mxu0  ;;  %5205 = vmatpush.msra.mxu0 %v11074_v59  ;;  %13321 = vst [vmem:[#allocation3_spill] sm:$0xff] %v11101_v28  ;;  %v2544_v55 = vmul.f32 1.442695, %v2542_v58  ;;  %v2538_v16 = vadd.f32 %v10546_v57, %v2497_v19 }
 0x6ee   :  { %13319 = vst [vmem:[#allocation37_spill] sm:$0xff] %v11086_v18 }
 0x6ef   :  { %v11090_v31 = vpop.f32.mrf.mxu1  ;;  %5209 = vmatpush.msra.mxu0 %v11086_v18  ;;  %8401 = vpow2.f32 %v2544_v55  ;;  %v2543_v41 = vmin.f32 %v2538_v16, 0.0  ;;  %vm2541_vm0 = vcmp.gt.f32.partialorder %v2538_v16, 0.0 }
 0x6f0   :  { %4459 = vmatmul.f32.gmra.mxu0 %v13276_v24 }
 0x6f1   :  { %v2546_v38 = vmul.f32 1.442695, %v2543_v41  ;;  %v11114_v7 = vpop.f32.mrf.mxu3 }
 0x6f2   :  { %4542 = vmatmul.f32.gmra.mxu1 %v13276_v24  ;;  %v11110_v24 = vpop.f32.mrf.mxu2  ;;  %13323 = vst [vmem:[#allocation5_spill] sm:$0xff] %v11114_v7 }
 0x6f3   :  { %13322 = vst [vmem:[#allocation4_spill] sm:$0xff] %v11110_v24  ;;  %8403 = vpow2.f32 %v2546_v38 }
 0x6f5   :  { %v11103_v0 = vpop.f32.mrf.mxu0  ;;  %v8402_v57 = vpop.eup %8401 }
 0x6f6   :  { %v8373_v5 = vadd.f32 -1.0, %v8402_v57 }
 0x6f7   :  { %v11106_v6 = vpop.f32.mrf.mxu1 }
 0x6f8   :  { %4463 = vmatmul.f32.gmra.mxu0 %v13280_v37  ;;  %v2550_v55 = vsel %vm2540_vm15, %v2534_v12, %v8373_v5 }
 0x6f9   :  { %v8404_v41 = vpop.eup %8403  ;;  %v11127_v18 = vpop.f32.mrf.mxu3  ;;  %v11131_v32 = vsel %vm306_vm1, %v2550_v55, 0 }
 0x6fa   :  { %4546 = vmatmul.f32.gmra.mxu1 %v13280_v37  ;;  %v11120_v58 = vpop.f32.mrf.mxu2  ;;  %13325 = vst [vmem:[#allocation6_spill] sm:$0xff] %v11127_v18  ;;  %v11136_v57 = vand.u32 4294901760, %v11131_v32 }
 0x6fb   :  { %13324 = vst [vmem:[#allocation11_spill] sm:$0xff] %v11120_v58 }
 0x6fc   :  { %13326 = vst [vmem:[#allocation12_spill] sm:$0xff] %v11131_v32 }
 0x6fd   :  { %v11112_v34 = vpop.f32.mrf.mxu0  ;;  %13328 = vst [vmem:[#allocation13_spill] sm:$0xff] %v11136_v57 }
 0x6ff   :  { %v11116_v9 = vpop.f32.mrf.mxu1 }
 0x700   :  { %4467 = vmatmul.f32.gmra.mxu0 %v13284_v51 }
 0x701   :  { %v11147_v55 = vpop.f32.mrf.mxu3 }
 0x702   :  { %4550 = vmatmul.f32.gmra.mxu1 %v13284_v51  ;;  %v8374_v51 = vadd.f32 -1.0, %v8404_v41  ;;  %v11138_v59 = vpop.f32.mrf.mxu2  ;;  %13332 = vst [vmem:[#allocation22_spill] sm:$0xff] %v11147_v55 }
 0x703   :  { %13329 = vst [vmem:[#allocation14_spill] sm:$0xff] %v11138_v59 }
 0x704   :  { %v2551_v5 = vsel %vm2541_vm0, %v2538_v16, %v8374_v51 }
 0x705   :  { %v11122_v37 = vpop.f32.mrf.mxu0 }
 0x707   :  { %v11124_v19 = vpop.f32.mrf.mxu1 }
 0x708   :  { %4471 = vmatmul.f32.gmra.mxu0 %v13288_v1 }
 0x709   :  { %v11160_v16 = vpop.f32.mrf.mxu3 }
 0x70a   :  { %4554 = vmatmul.f32.gmra.mxu1 %v13288_v1  ;;  %v11145_v1 = vsel %vm306_vm1, %v2551_v5, 0  ;;  %v11157_v32 = vpop.f32.mrf.mxu2  ;;  %13337 = vst [vmem:[#allocation31_spill] sm:$0xff] %v11160_v16 }
 0x70b   :  { %13331 = vst [vmem:[#allocation19_spill] sm:$0xff] %v11145_v1  ;;  %v11152_v14 = vand.u32 4294901760, %v11145_v1 }
 0x70c   :  { %13336 = vst [vmem:[#allocation29_spill] sm:$0xff] %v11157_v32 }
 0x70d   :  { %v11133_v38 = vpop.f32.mrf.mxu0  ;;  %13334 = vst [vmem:[#allocation26_spill] sm:$0xff] %v11152_v14 }
 0x70e   :  { %13327 = vst [vmem:[#allocation7_spill] sm:$0xff] %v11133_v38 }
 0x70f   :  { %v11140_v12 = vpop.f32.mrf.mxu1 }
 0x710   :  { %13330 = vst [vmem:[#allocation16_spill] sm:$0xff] %v11140_v12  ;;  %5211 = vmatmul.f32.vlgmr.msra.gmra.mxu0 %v11136_v57 }
 0x711   :  { %v11170_v1 = vpop.f32.mrf.mxu3 }
 0x712   :  { %5244 = vmatmul.f32.vlgmr.msra.gmra.mxu1 %v11136_v57  ;;  %v11166_v57 = vpop.f32.mrf.mxu2  ;;  %13342 = vst [vmem:[#allocation17_spill] sm:$0xff] %v11170_v1 }
 0x713   :  { %13340 = vst [vmem:[#allocation38_spill] sm:$0xff] %v11166_v57 }
 0x715   :  { %v11149_v41 = vpop.f32.mrf.mxu0 }
 0x716   :  { %13333 = vst [vmem:[#allocation23_spill] sm:$0xff] %v11149_v41 }
 0x717   :  { %v11154_v36 = vpop.f32.mrf.mxu1 }
 0x718   :  { %13335 = vst [vmem:[#allocation27_spill] sm:$0xff] %v11154_v36  ;;  %5215 = vmatmul.f32.gmra.mxu0 %v11152_v14 }
 0x71a   :  { %5248 = vmatmul.f32.gmra.mxu1 %v11152_v14  ;;  %v11174_v62 = vpop.f32.mrf.mxu2  ;;  %v11180_v14 = vpop.f32.mrf.mxu3 }
 0x71b   :  { %13346 = vst [vmem:[#allocation24_spill] sm:$0xff] %v11180_v14 }
 0x71d   :  { %v11162_v51 = vpop.f32.mrf.mxu0 }
 0x71e   :  { %13338 = vst [vmem:[#allocation33_spill] sm:$0xff] %v11162_v51 }
 0x71f   :  { %v11164_v5 = vpop.f32.mrf.mxu1 }
 0x720   :  { %13339 = vst [vmem:[#allocation35_spill] sm:$0xff] %v11164_v5 }
 0x722   :  { %v11184_v38 = vpop.f32.mrf.mxu2  ;;  %v11188_v41 = vpop.f32.mrf.mxu3 }
 0x723   :  { %13349 = vst [vmem:[#allocation34_spill] sm:$0xff] %v11188_v41 }
 0x725   :  { %v11168_v33 = vpop.f32.mrf.mxu0 }
 0x726   :  { %13341 = vst [vmem:[#allocation40_spill] sm:$0xff] %v11168_v33 }
 0x727   :  { %v11172_v30 = vpop.f32.mrf.mxu1 }
 0x728   :  { %13343 = vst [vmem:[#allocation42_spill] sm:$0xff] %v11172_v30 }
 0x72a   :  { %v11194_v30 = vpop.f32.mrf.mxu2  ;;  %v11196_v7 = vpop.f32.mrf.mxu3 }
 0x72d   :  { %v11176_v60 = vpop.f32.mrf.mxu0 }
 0x72e   :  { %13344 = vst [vmem:[#allocation20_spill] sm:$0xff] %v11176_v60 }
 0x72f   :  { %v11178_v12 = vpop.f32.mrf.mxu1 }
 0x730   :  { %13345 = vst [vmem:[#allocation44_spill] sm:$0xff] %v11178_v12 }
 0x732   :  { %v4245_v18 = vpop.f32.mrf.mxu2  ;;  %v11204_v55 = vpop.f32.mrf.mxu3 }
 0x735   :  { %v11182_v36 = vpop.f32.mrf.mxu0 }
 0x736   :  { %13347 = vst [vmem:[#allocation48_spill] sm:$0xff] %v11182_v36 }
 0x737   :  { %v11186_v5 = vpop.f32.mrf.mxu1 }
 0x738   :  { %13348 = vst [vmem:[#allocation28_spill] sm:$0xff] %v11186_v5 }
 0x73a   :  { %v4250_v24 = vpop.f32.mrf.mxu2  ;;  %v11214_v58 = vpop.f32.mrf.mxu3 }
 0x73d   :  { %v11190_v51 = vpop.f32.mrf.mxu0 }
 0x73e   :  { %13350 = vst [vmem:[#allocation36_spill] sm:$0xff] %v11190_v51 }
 0x73f   :  { %v11192_v33 = vpop.f32.mrf.mxu1 }
 0x740   :  { %13351 = vst [vmem:[#allocation39_spill] sm:$0xff] %v11192_v33  ;;  %v3857_v33 = vadd.f32 %v10945_v40, %v10886_v23 }
 0x742   :  { %v4255_v1 = vpop.f32.mrf.mxu2  ;;  %v4367_v28 = vpop.f32.mrf.mxu3 }
 0x745   :  { %v11198_v60 = vpop.f32.mrf.mxu0 }
 0x746   :  { %13352 = vst [vmem:[#allocation43_spill] sm:$0xff] %v11198_v60  ;;  %v3898_v60 = vadd.f32 %v10952_v17, %v3857_v33 }
 0x747   :  { %v11200_v12 = vpop.f32.mrf.mxu1 }
 0x748   :  { %13353 = vst [vmem:[#allocation45_spill] sm:$0xff] %v11200_v12  ;;  %8405 = vrcp.f32 %v3898_v60  ;;  %v3913_v57 = vand.u32 2147483647, %v3898_v60  ;;  %v3915_v43 = vand.u32 2147483648, %v3898_v60  ;;  %vm3909_vm4 = vweird.f32 %v3898_v60 }
 0x74a   :  { %v4260_v40 = vpop.f32.mrf.mxu2  ;;  %v4373_v33 = vpop.f32.mrf.mxu3  ;;  %vm11245_vm5 = vcmp.eq.f32.partialorder %v3913_v57, 8.507059e+37 }
 0x74d   :  { %v11202_v36 = vpop.f32.mrf.mxu0 }
 0x74e   :  { %13354 = vst [vmem:[#allocation46_spill] sm:$0xff] %v11202_v36  ;;  %v8406_v36 = vpop.eup %8405 }
 0x74f   :  { %v11206_v5 = vpop.f32.mrf.mxu1  ;;  %v3905_v23 = vmul.f32 %v8406_v36, %v3898_v60  ;;  %vm3910_vm3 = vweird.f32 %v8406_v36 }
 0x750   :  { %13355 = vst [vmem:[#allocation49_spill] sm:$0xff] %v11206_v5  ;;  %vm11249_vm6 = vmor %vm3909_vm4, %vm3910_vm3 }
 0x751   :  { %v3906_v17 = vsub.f32 1.0, %v3905_v23 }
 0x752   :  { %v4265_v39 = vpop.f32.mrf.mxu2 }
 0x755   :  { %v11208_v16 = vpop.f32.mrf.mxu0 }
 0x756   :  { %13356 = vst [vmem:[#allocation50_spill] sm:$0xff] %v11208_v16 }
 0x757   :  { %v11210_v51 = vpop.f32.mrf.mxu1 }
 0x758   :  { %13357 = vst [vmem:[#allocation52_spill] sm:$0xff] %v11210_v51  ;;  %v3861_v51 = vadd.f32 %v10960_v35, %v10896_v10 }
 0x75a   :  { %v11228_v32 = vadd.f32 %v11004_v22, %v3861_v51  ;;  %v4158_v22 = vadd.f32 %v11090_v31, %v11081_v56  ;;  %v4166_v51 = vadd.f32 %v11116_v9, %v11112_v34  ;;  %v3916_v56 = vor.u32 1.1754944e-38, %v3915_v43 }
 0x75b   :  { %v4154_v31 = vadd.f32 %v11038_v63, %v11020_v25  ;;  %v11264_v34 = vadd.f32 %v10905_v21, %v10902_v29 }
 0x75c   :  { %8407 = vrcp.f32 %v11228_v32  ;;  %v3930_v43 = vand.u32 2147483648, %v11228_v32  ;;  %vm3924_vm8 = vweird.f32 %v11228_v32 }
 0x75d   :  { %v11217_v12 = vpop.f32.mrf.mxu0  ;;  %v4251_v25 = vadd.f32 %v4250_v24, %v4154_v31 }
 0x75e   :  { %13358 = vst [vmem:[#allocation53_spill] sm:$0xff] %v11217_v12  ;;  %v4270_v12 = vpop.f32.mrf.mxu2 }
 0x75f   :  { %v11219_v59 = vpop.f32.mrf.mxu1 }
 0x760   :  { %13359 = vst [vmem:[#allocation56_spill] sm:$0xff] %v11219_v59  ;;  %v3907_v59 = vmul.f32 %v8406_v36, %v3906_v17  ;;  %v4110_v17 = vadd.f32 %v10888_v52, %v10882_v15  ;;  %v4266_v15 = vadd.f32 %v4265_v39, %v4166_v51  ;;  %v11269_v39 = vadd.f32 %v10911_v20, %v10909_v49 }
 0x761   :  { %v4142_v49 = vadd.f32 %v10941_v48, %v10939_v44 }
 0x762   :  { %v3908_v10 = vadd.f32 %v8406_v36, %v3907_v59  ;;  %v11235_v3 = vpop.eup %8407 }
 0x763   :  { %v3920_v60 = vmul.f32 %v11235_v3, %v11228_v32  ;;  %vm3925_vm7 = vweird.f32 %v11235_v3 }
 0x764   :  { %v3912_v52 = vsel %vm11249_vm6, %v8406_v36, %v3908_v10  ;;  %v4146_v36 = vadd.f32 %v10949_v45, %v10947_v11  ;;  %v4362_v45 = vadd.f32 %v11214_v58, %v4251_v25  ;;  %vm11459_vm10 = vmor %vm3924_vm8, %vm3925_vm7 }
 0x765   :  { %v11221_v5 = vpop.f32.mrf.mxu0  ;;  %v3921_v57 = vsub.f32 1.0, %v3920_v60 }
 0x766   :  { %v4241_v20 = vadd.f32 %v11194_v30, %v4146_v36  ;;  %v4457_v30 = vadd.f32 %v11221_v5, %v4362_v45  ;;  %v8455_v5 = vld [vmem:[%s12364_s2 + $0x1a0] sm:$0xff] }
 0x767   :  { %v11223_v14 = vpop.f32.mrf.mxu1  ;;  %v13380_v45 = vld [vmem:[#allocation14_spill] sm:$0xff] }
 0x768   :  { %13360 = vst [vmem:[#allocation47_spill] sm:$0xff] %v11223_v14  ;;  %v4162_v14 = vadd.f32 %v11106_v6, %v11103_v0  ;;  %v4379_v6 = vpop.f32.mrf.mxu3 }
 0x769   :  { %v4380_v29 = vadd.f32 %v4379_v6, %v4266_v15 }
 0x76a   :  { %v4261_v23 = vadd.f32 %v4260_v40, %v4162_v14  ;;  %v4256_v14 = vadd.f32 %v4255_v1, %v4158_v22  ;;  %v4138_v40 = vadd.f32 %v10935_v53, %v10933_v13  ;;  %v4134_v13 = vadd.f32 %v10929_v54, %v10927_v27  ;;  %v13371_v27 = vld [vmem:[#allocation38_spill] sm:$0xff] }
 0x76c   :  { %v4374_v63 = vadd.f32 %v4373_v33, %v4261_v23  ;;  %v4231_v53 = vadd.f32 %v11174_v62, %v4138_v40  ;;  %v4226_v54 = vadd.f32 %v13371_v27, %v4134_v13  ;;  %v13372_v62 = vld [vmem:[#allocation34_spill] sm:$0xff]  ;;  %v13382_v40 = vld [vmem:[#allocation43_spill] sm:$0xff] }
 0x76d   :  { %v4460_v16 = vpop.f32.mrf.mxu0  ;;  %v13384_v13 = vld [vmem:[#allocation11_spill] sm:$0xff]  ;;  %v13389_v27 = vld [vmem:[#allocation22_spill] sm:$0xff] }
 0x76f   :  { %v11230_v41 = vpop.f32.mrf.mxu1 }
 0x770   :  { %13361 = vst [vmem:[#allocation57_spill] sm:$0xff] %v11230_v41  ;;  %v4114_v41 = vadd.f32 %v10898_v46, %v10892_v2  ;;  %v4196_v2 = vadd.f32 %v11036_v4, %v4110_v17  ;;  %v4150_v46 = vadd.f32 %v10973_v8, %v10962_v61  ;;  %v3928_v4 = vand.u32 2147483647, %v11228_v32  ;;  %v13368_v17 = vld [vmem:[#allocation2_spill] sm:$0xff] }
 0x771   :  { %v3917_v61 = vsel %vm11245_vm5, %v3916_v56, %v3912_v52  ;;  %v4368_v8 = vadd.f32 %v4367_v28, %v4256_v14  ;;  %v13374_v14 = vld [vmem:[#allocation47_spill] sm:$0xff]  ;;  %v8456_v52 = vld [vmem:[%s12364_s2 + $0x198] sm:$0xff] }
 0x772   :  { %v4246_v9 = vadd.f32 %v4245_v18, %v4150_v46  ;;  %v11277_v24 = vadd.f32 %v11069_v50, %v4196_v2  ;;  %v4170_v18 = vadd.f32 %v11124_v19, %v11122_v37  ;;  %v4236_v50 = vadd.f32 %v11184_v38, %v4142_v49  ;;  %v4385_v38 = vpop.f32.mrf.mxu3  ;;  %v13375_v2 = vld [vmem:[#allocation29_spill] sm:$0xff] }
 0x773   :  { %v4461_v1 = vadd.f32 %v4460_v16, %v4368_v8  ;;  %v11290_v44 = vmul.f32 %v3917_v61, %v10805_v47  ;;  %v3922_v37 = vmul.f32 %v11235_v3, %v3921_v57  ;;  %v4126_v19 = vadd.f32 %v10917_v42, %v10915_v26  ;;  %v13366_v47 = vld [vmem:[#allocation53_spill] sm:$0xff]  ;;  %v13370_v42 = vld [vmem:[#allocation74_spill] sm:$0xff]  ;;  %v13378_v8 = vld [vmem:[#allocation56_spill] sm:$0xff] }
 0x774   :  { %v4356_v33 = vadd.f32 %v11204_v55, %v4246_v9  ;;  %v4271_v48 = vadd.f32 %v4270_v12, %v4170_v18  ;;  %v4350_v55 = vadd.f32 %v11196_v7, %v4241_v20  ;;  %v4201_v59 = vadd.f32 %v13368_v17, %v4114_v41  ;;  %v13369_v26 = vld [vmem:[#allocation41_spill] sm:$0xff]  ;;  %v13373_v7 = vld [vmem:[#allocation50_spill] sm:$0xff]  ;;  %v13376_v41 = vld [vmem:[#allocation24_spill] sm:$0xff] }
 0x775   :  { %v4464_v35 = vpop.f32.mrf.mxu0  ;;  %v4130_v6 = vadd.f32 %v13370_v42, %v13369_v26  ;;  %v4540_v15 = vadd.f32 %v13374_v14, %v4457_v30  ;;  %v4338_v25 = vadd.f32 %v13376_v41, %v4231_v53  ;;  %v11319_v61 = vadd.f32 %v11235_v3, %v3922_v37  ;;  %v13379_v12 = vld [vmem:[#allocation3_spill] sm:$0xff]  ;;  %v13388_v42 = vld [vmem:[#allocation4_spill] sm:$0xff] }
 0x776   :  { %v4465_v21 = vadd.f32 %v4464_v35, %v4374_v63  ;;  %v4453_v16 = vadd.f32 %v13366_v47, %v4356_v33  ;;  %v4386_v56 = vadd.f32 %v4385_v38, %v4271_v48  ;;  %v4449_v31 = vadd.f32 %v13373_v7, %v4350_v55  ;;  %v13377_v63 = vld [vmem:[#allocation46_spill] sm:$0xff]  ;;  %v8458_v30 = vld [vmem:[%s12364_s2 + $0x188] sm:$0xff]  ;;  %v13386_v55 = vld [vmem:[#allocation36_spill] sm:$0xff] }
 0x777   :  { %v4547_v0 = vpop.f32.mrf.mxu1  ;;  %v13367_v22 = vld [vmem:[#allocation57_spill] sm:$0xff]  ;;  %v4221_v46 = vadd.f32 %v13375_v2, %v4130_v6  ;;  %v4216_v18 = vadd.f32 %v13380_v45, %v4126_v19  ;;  %v4211_v53 = vadd.f32 %v13384_v13, %v11269_v39  ;;  %v13385_v38 = vld [vmem:[#allocation31_spill] sm:$0xff]  ;;  %v4206_v6 = vadd.f32 %v13388_v42, %v11264_v34  ;;  %v13392_v34 = vld [vmem:[#allocation6_spill] sm:$0xff] }
 0x778   :  { %v4548_v58 = vadd.f32 %v4547_v0, %v4465_v21  ;;  %v4544_v51 = vadd.f32 %v13367_v22, %v4461_v1  ;;  %v4344_v0 = vadd.f32 %v13372_v62, %v4236_v50  ;;  %v8457_v21 = vld [vmem:[%s12364_s2 + $0x190] sm:$0xff]  ;;  %v13381_v1 = vld [vmem:[#allocation17_spill] sm:$0xff]  ;;  %v4441_v50 = vadd.f32 %v13382_v40, %v4338_v25  ;;  %v8460_v39 = vld [vmem:[%s12364_s2 + $0x1a8] sm:$0xff] }
 0x779   :  { %v4326_v19 = vadd.f32 %v13385_v38, %v4221_v46  ;;  %v13390_v62 = vld [vmem:[#allocation48_spill] sm:$0xff]  ;;  %v4314_v2 = vadd.f32 %v13392_v34, %v4211_v53  ;;  %v13394_v25 = vld [vmem:[#allocation39_spill] sm:$0xff]  ;;  %v8464_v38 = vld [vmem:[%s12364_s2 + $0x160] sm:$0xff]  ;;  %vm11420_vm9 = vcmp.eq.f32.partialorder %v3928_v4, 8.507059e+37 }
 0x77a   :  { %v4571_v60 = vmul.f32 %v8456_v52, %v4548_v58  ;;  %v4445_v36 = vadd.f32 %v13377_v63, %v4344_v0  ;;  %v4570_v57 = vmul.f32 %v8457_v21, %v4544_v51  ;;  %v4569_v58 = vmul.f32 %v8458_v30, %v4540_v15  ;;  %v8459_v51 = vld [vmem:[%s12364_s2 + $0x180] sm:$0xff]  ;;  %v13393_v46 = vld [vmem:[#allocation20_spill] sm:$0xff]  ;;  %v8463_v40 = vld [vmem:[%s12364_s2 + $0x168] sm:$0xff] }
 0x77b   :  { %v4433_v0 = vadd.f32 %v13390_v62, %v4326_v19  ;;  %v13396_v45 = vld [vmem:[#allocation40_spill] sm:$0xff]  ;;  %v13398_v30 = vld [vmem:[#allocation33_spill] sm:$0xff] }
 0x77c   :  { %v11345_v17 = vand.u32 4294901760, %v4570_v57  ;;  %v11362_v14 = vand.u32 4294901760, %v4569_v58  ;;  %v13399_v13 = vld [vmem:[#allocation44_spill] sm:$0xff] }
 0x77d   :  { %v4468_v11 = vpop.f32.mrf.mxu0 }
 0x77e   :  { %v4469_v28 = vadd.f32 %v4468_v11, %v4380_v29  ;;  %v4536_v29 = vadd.f32 %v13378_v8, %v4453_v16  ;;  %v4302_v11 = vadd.f32 %v13379_v12, %v4201_v59  ;;  %v13387_v16 = vld [vmem:[#allocation49_spill] sm:$0xff] }
 0x77f   :  { %v4551_v10 = vpop.f32.mrf.mxu1  ;;  %v4528_v22 = vadd.f32 %v13387_v16, %v4445_v36  ;;  %v8462_v36 = vld [vmem:[%s12364_s2 + $0x170] sm:$0xff] }
 0x780   :  { %v4552_v35 = vadd.f32 %v4551_v10, %v4469_v28  ;;  %v4332_v28 = vadd.f32 %v13381_v1, %v4226_v54  ;;  %v13383_v10 = vld [vmem:[#allocation52_spill] sm:$0xff]  ;;  %v4320_v54 = vadd.f32 %v13389_v27, %v4216_v18  ;;  %v4425_v18 = vadd.f32 %v13396_v45, %v4314_v2 }
 0x781   :  { %v4532_v48 = vadd.f32 %v13383_v10, %v4449_v31  ;;  %v13397_v1 = vld [vmem:[#allocation28_spill] sm:$0xff] }
 0x782   :  { %v4572_v23 = vmul.f32 %v8455_v5, %v4552_v35  ;;  %v11335_v35 = vand.u32 4294901760, %v4571_v60  ;;  %v4437_v47 = vadd.f32 %v13386_v55, %v4332_v28  ;;  %v4568_v5 = vmul.f32 %v8459_v51, %v4536_v29  ;;  %v8466_v2 = vld [vmem:[%s12364_s2 + $0x150] sm:$0xff] }
 0x783   :  { %v4429_v41 = vadd.f32 %v13393_v46, %v4320_v54  ;;  %v4516_v28 = vadd.f32 %v13397_v1, %v4433_v0  ;;  %v3927_v1 = vsel %vm11459_vm10, %v11235_v3, %v11319_v61 }
 0x784   :  { %v11325_v49 = vand.u32 4294901760, %v4572_v23  ;;  %v11365_v15 = vsub.f32 %v4571_v60, %v11335_v35  ;;  %v4520_v63 = vadd.f32 %v13394_v25, %v4437_v47  ;;  %v11376_v8 = vand.u32 4294901760, %v4568_v5 }
 0x785   :  { %v4472_v9 = vpop.f32.mrf.mxu0  ;;  %v11379_v60 = vsub.f32 %v4570_v57, %v11345_v17  ;;  %v4512_v53 = vadd.f32 %v13399_v13, %v4429_v41  ;;  %v13409_v13 = vld [vmem:[#allocation16_spill] sm:$0xff] }
 0x786   :  { %v4473_v20 = vadd.f32 %v4472_v9, %v4386_v56  ;;  %v11348_v59 = vsub.f32 %v4572_v23, %v11325_v49  ;;  %v13391_v56 = vld [vmem:[#allocation45_spill] sm:$0xff]  ;;  %v4566_v9 = vmul.f32 %v8462_v36, %v4528_v22  ;;  %v4564_v19 = vmul.f32 %v8464_v38, %v4520_v63  ;;  %v8468_v38 = vld [vmem:[%s12364_s2 + $0x140] sm:$0xff] }
 0x787   :  { %v4555_v33 = vpop.f32.mrf.mxu1  ;;  %v4524_v7 = vadd.f32 %v13391_v56, %v4441_v50  ;;  %v8461_v23 = vld [vmem:[%s12364_s2 + $0x178] sm:$0xff]  ;;  %v4643_v22 = vand.u32 4294901760, %v11379_v60  ;;  %v13404_v56 = vld [vmem:[#allocation7_spill] sm:$0xff] }
 0x788   :  { %v4556_v37 = vadd.f32 %v4555_v33, %v4473_v20  ;;  %v4567_v31 = vmul.f32 %v8461_v23, %v4532_v48  ;;  %v4631_v21 = vand.u32 4294901760, %v11348_v59  ;;  %v13395_v20 = vld [vmem:[#allocation5_spill] sm:$0xff]  ;;  %v11395_v33 = vsub.f32 %v4569_v58, %v11362_v14  ;;  %v13405_v23 = vld [vmem:[#allocation35_spill] sm:$0xff] }
 0x789   :  { %v4308_v12 = vadd.f32 %v13395_v20, %v4206_v6  ;;  %v4565_v50 = vmul.f32 %v8463_v40, %v4524_v7  ;;  %v4637_v48 = vand.u32 4294901760, %v11365_v15  ;;  %v11405_v55 = vand.u32 4294901760, %v4566_v9  ;;  %v8465_v6 = vld [vmem:[%s12364_s2 + $0x158] sm:$0xff] }
 0x78a   :  { %v4573_v26 = vmul.f32 %v8460_v39, %v4556_v37  ;;  %v11392_v57 = vand.u32 4294901760, %v4567_v31  ;;  %v11408_v58 = vsub.f32 %v4568_v5, %v11376_v8  ;;  %v4632_v16 = vsub.f32 %v11348_v59, %v4631_v21  ;;  %v13402_v5 = vld [vmem:[#allocation23_spill] sm:$0xff] }
 0x78b   :  { %v4421_v37 = vadd.f32 %v13398_v30, %v4308_v12  ;;  %v4417_v39 = vadd.f32 %v13402_v5, %v4302_v11  ;;  %v4563_v27 = vmul.f32 %v8465_v6, %v4516_v28  ;;  %v11429_v54 = vand.u32 4294901760, %v4565_v50  ;;  %v8467_v12 = vld [vmem:[%s12364_s2 + $0x148] sm:$0xff] }
 0x78c   :  { %v11367_v52 = vand.u32 4294901760, %v4573_v26  ;;  %v11432_v62 = vsub.f32 %v4567_v31, %v11392_v57  ;;  %v4638_v0 = vsub.f32 %v11365_v15, %v4637_v48  ;;  %v4649_v11 = vand.u32 4294901760, %v11395_v33 }
 0x78d   :  { %v4413_v7 = vadd.f32 %v13404_v56, %v11277_v24  ;;  %v4504_v34 = vadd.f32 %v13405_v23, %v4421_v37  ;;  %v4562_v31 = vmul.f32 %v8466_v2, %v4512_v53  ;;  %v11445_v46 = vand.u32 4294901760, %v4564_v19 }
 0x78e   :  { %v11382_v29 = vsub.f32 %v4573_v26, %v11367_v52  ;;  %4575 = vmatpush.msrb.mxu2 %v11367_v52  ;;  %v13403_v26 = vld [vmem:[#allocation42_spill] sm:$0xff]  ;;  %v11448_v41 = vsub.f32 %v4566_v9, %v11405_v55  ;;  %v4633_v25 = vand.u32 4294901760, %v4632_v16  ;;  %v4644_v24 = vsub.f32 %v11379_v60, %v4643_v22  ;;  %v13408_v9 = vld [vmem:[#allocation27_spill] sm:$0xff] }
 0x78f   :  { %v4508_v42 = vadd.f32 %v13403_v26, %v4425_v18  ;;  %v4655_v63 = vand.u32 4294901760, %v11408_v58  ;;  %v4500_v20 = vadd.f32 %v13408_v9, %v4417_v39  ;;  %v11467_v18 = vand.u32 4294901760, %v4563_v27  ;;  %v8469_v26 = vld [vmem:[%s12364_s2 + $0x138] sm:$0xff]  ;;  %v13410_v9 = vld [vmem:[#allocation18_spill] sm:$0xff] }
 0x790   :  { %4577 = vmatpush.msrb.mxu2 %v11325_v49  ;;  %v4625_v10 = vand.u32 4294901760, %v11382_v29  ;;  %v11474_v28 = vsub.f32 %v4565_v50, %v11429_v54  ;;  %v4639_v40 = vand.u32 4294901760, %v4638_v0  ;;  %v4650_v30 = vsub.f32 %v11395_v33, %v4649_v11 }
 0x791   :  { %v4561_v45 = vmul.f32 %v8467_v12, %v4508_v42  ;;  %v4661_v37 = vand.u32 4294901760, %v11432_v62  ;;  %v4496_v53 = vadd.f32 %v13409_v13, %v4413_v7  ;;  %v4560_v3 = vmul.f32 %v8468_v38, %v4504_v34  ;;  %v8470_v7 = vld [vmem:[%s12364_s2 + $0x130] sm:$0xff] }
 0x792   :  { %4579 = vmatpush.msrb.mxu2 %v11335_v35  ;;  %v4626_v47 = vsub.f32 %v11382_v29, %v4625_v10  ;;  %v11485_v61 = vand.u32 4294901760, %v4562_v31  ;;  %v3931_v50 = vor.u32 1.1754944e-38, %v3930_v43  ;;  %v4645_v16 = vand.u32 4294901760, %v4644_v24 }
 0x793   :  { %v4656_v5 = vsub.f32 %v11408_v58, %v4655_v63  ;;  %v4667_v39 = vand.u32 4294901760, %v11448_v41  ;;  %v4559_v42 = vmul.f32 %v8469_v26, %v4500_v20  ;;  %v11500_v32 = vand.u32 4294901760, %v4561_v45 }
 0x794   :  { %4581 = vmatpush.msrb.mxu2 %v11345_v17  ;;  %v4627_v4 = vand.u32 4294901760, %v4626_v47  ;;  %v11490_v47 = vsub.f32 %v4564_v19, %v11445_v46  ;;  %v11503_v43 = vand.u32 4294901760, %v11290_v44  ;;  %v3932_v19 = vsel %vm11420_vm9, %v3931_v50, %v3927_v1 }
 0x795   :  { %v11508_v6 = vsub.f32 %v4563_v27, %v11467_v18  ;;  %v4662_v0 = vsub.f32 %v11432_v62, %v4661_v37  ;;  %v4673_v56 = vand.u32 4294901760, %v11474_v28  ;;  %v4558_v23 = vmul.f32 %v8470_v7, %v4496_v53 }
 0x796   :  { %4583 = vmatpush.msrb.mxu2 %v11362_v14  ;;  %4628 = vmatpush.msrb.mxu3 %v4627_v4  ;;  %v4651_v4 = vand.u32 4294901760, %v4650_v30  ;;  %v11518_v51 = vand.u32 4294901760, %v4560_v3  ;;  %v11521_v27 = vsub.f32 %v4562_v31, %v11485_v61  ;;  %v4657_v34 = vand.u32 4294901760, %v4656_v5 }
 0x797   :  { %v4668_v2 = vsub.f32 %v11448_v41, %v4667_v39  ;;  %v11528_v24 = vand.u32 4294901760, %v4559_v42  ;;  %v11532_v36 = vsub.f32 %v11290_v44, %v11503_v43  ;;  %v3933_v20 = vmul.f32 %v3932_v19, %v13410_v9 }
 0x798   :  { %4585 = vmatpush.msrb.mxu2 %v11376_v8  ;;  %4634 = vmatpush.msrb.mxu3 %v4633_v25  ;;  %v4679_v25 = vand.u32 4294901760, %v11490_v47  ;;  %v11536_v31 = vsub.f32 %v4561_v45, %v11500_v32  ;;  %v4663_v12 = vand.u32 4294901760, %v4662_v0  ;;  %v4674_v1 = vsub.f32 %v11474_v28, %v4673_v56 }
 0x799   :  { %v11543_v30 = vand.u32 4294901760, %v4558_v23  ;;  %v11546_v44 = vsub.f32 %v4560_v3, %v11518_v51  ;;  %v4669_v45 = vand.u32 4294901760, %v4668_v2  ;;  %v4691_v53 = vand.u32 4294901760, %v11521_v27 }
 0x79a   :  { %4587 = vmatpush.msrb.mxu2 %v11392_v57  ;;  %4640 = vmatpush.msrb.mxu3 %v4639_v40  ;;  %v4685_v40 = vand.u32 4294901760, %v11508_v6  ;;  %v4680_v13 = vsub.f32 %v11490_v47, %v4679_v25  ;;  %v4608_v38 = vand.u32 4294901760, %v11532_v36  ;;  %v11554_v50 = vand.u32 4294901760, %v3933_v20 }
 0x79b   :  { %v4675_v3 = vand.u32 4294901760, %v4674_v1  ;;  %v4697_v26 = vand.u32 4294901760, %v11536_v31  ;;  %v11565_v19 = vsub.f32 %v4558_v23, %v11543_v30  ;;  %v4703_v0 = vand.u32 4294901760, %v11546_v44 }
 0x79c   :  { %4589 = vmatpush.msrb.mxu2 %v11405_v55  ;;  %4646 = vmatpush.msrb.mxu3 %v4645_v16  ;;  %v11557_v16 = vsub.f32 %v4559_v42, %v11528_v24  ;;  %v4686_v5 = vsub.f32 %v11508_v6, %v4685_v40  ;;  %v4692_v42 = vsub.f32 %v11521_v27, %v4691_v53 }
 0x79d   :  { %v4609_v7 = vsub.f32 %v11532_v36, %v4608_v38  ;;  %v4698_v2 = vsub.f32 %v11536_v31, %v4697_v26  ;;  %v4704_v1 = vsub.f32 %v11546_v44, %v4703_v0 }
 0x79e   :  { %4591 = vmatpush.msrb.mxu2 %v11429_v54  ;;  %4652 = vmatpush.msrb.mxu3 %v4651_v4  ;;  %v4681_v4 = vand.u32 4294901760, %v4680_v13  ;;  %v4687_v23 = vand.u32 4294901760, %v4686_v5  ;;  %v4709_v9 = vand.u32 4294901760, %v11557_v16 }
 0x7a0   :  { %4593 = vmatpush.msrb.mxu2 %v11445_v46  ;;  %4658 = vmatpush.msrb.mxu3 %v4657_v34  ;;  %v11576_v34 = vsub.f32 %v3933_v20, %v11554_v50  ;;  %v4715_v20 = vand.u32 4294901760, %v11565_v19  ;;  %v4710_v5 = vsub.f32 %v11557_v16, %v4709_v9 }
 0x7a2   :  { %4595 = vmatpush.msrb.mxu2 %v11467_v18  ;;  %4664 = vmatpush.msrb.mxu3 %v4663_v12  ;;  %v4693_v12 = vand.u32 4294901760, %v4692_v42  ;;  %v4616_v13 = vand.u32 4294901760, %v11576_v34  ;;  %v4716_v42 = vsub.f32 %v11565_v19, %v4715_v20 }
 0x7a4   :  { %4597 = vmatpush.msrb.mxu2 %v11485_v61  ;;  %4670 = vmatpush.msrb.mxu3 %v4669_v45  ;;  %v4610_v45 = vand.u32 4294901760, %v4609_v7  ;;  %v4617_v7 = vsub.f32 %v11576_v34, %v4616_v13 }
 0x7a6   :  { %4599 = vmatpush.msrb.mxu2 %v11500_v32  ;;  %4676 = vmatpush.msrb.mxu3 %v4675_v3  ;;  %v4699_v3 = vand.u32 4294901760, %v4698_v2  ;;  %v4717_v2 = vand.u32 4294901760, %v4716_v42 }
 0x7a8   :  { %4601 = vmatpush.msrb.mxu2 %v11518_v51  ;;  %4682 = vmatpush.msrb.mxu3 %v4681_v4  ;;  %v4705_v4 = vand.u32 4294901760, %v4704_v1 }
 0x7aa   :  { %4603 = vmatpush.msrb.mxu2 %v11528_v24  ;;  %4688 = vmatpush.msrb.mxu3 %v4687_v23  ;;  %v4711_v23 = vand.u32 4294901760, %v4710_v5 }
 0x7ac   :  { %4605 = vmatpush.msrb.mxu2 %v11543_v30  ;;  %4694 = vmatpush.msrb.mxu3 %v4693_v12  ;;  %v4618_v12 = vand.u32 4294901760, %v4617_v7 }
 0x7ad   :  { %4611 = vmatmul.f32.vlgmr.msrb.gmra.mxu2 %v4610_v45 }
 0x7ae   :  { %4730 = vmatpush.msra.mxu2 %v11382_v29  ;;  %4700 = vmatpush.msrb.mxu3 %v4699_v3  ;;  %v13418_v29 = vld [vmem:[#allocation63_spill] sm:$0xff] }
 0x7b0   :  { %4733 = vmatpush.msra.mxu2 %v11348_v59  ;;  %4706 = vmatpush.msrb.mxu3 %v4705_v4 }
 0x7b2   :  { %4736 = vmatpush.msra.mxu2 %v11365_v15  ;;  %4712 = vmatpush.msrb.mxu3 %v4711_v23  ;;  %v13415_v15 = vld [vmem:[#allocation12_spill] sm:$0xff] }
 0x7b4   :  { %4739 = vmatpush.msra.mxu2 %v11379_v60  ;;  %4718 = vmatpush.msrb.mxu3 %v4717_v2  ;;  %v13417_v60 = vld [vmem:[#allocation233_spill] sm:$0xff] }
 0x7b5   :  { %4619 = vmatmul.f32.gmra.mxu2 %v4618_v12  ;;  %4720 = vmatmul.f32.vlgmr.msrb.gmra.mxu3 %v11503_v43  ;;  %v4967_v12 = vld [vmem:[%s12364_s2 + $0x278] sm:$0x7f] }
 0x7b6   :  { %4742 = vmatpush.msra.mxu2 %v11395_v33  ;;  %4788 = vmatpush.msra.mxu3 %v11367_v52 }
 0x7b8   :  { %4745 = vmatpush.msra.mxu2 %v11408_v58  ;;  %4790 = vmatpush.msra.mxu3 %v11325_v49 }
 0x7ba   :  { %4748 = vmatpush.msra.mxu2 %v11432_v62  ;;  %4792 = vmatpush.msra.mxu3 %v11335_v35  ;;  %v13423_v62 = vld [vmem:[#allocation229_spill] sm:$0xff] }
 0x7bc   :  { %4751 = vmatpush.msra.mxu2 %v11448_v41  ;;  %4794 = vmatpush.msra.mxu3 %v11345_v17  ;;  %v13425_v41 = vld [vmem:[#allocation223_spill] sm:$0xff] }
 0x7bd   :  { %4724 = vmatmul.f32.gmra.mxu3 %v11554_v50 }
 0x7be   :  { %4754 = vmatpush.msra.mxu2 %v11474_v28  ;;  %4796 = vmatpush.msra.mxu3 %v11362_v14  ;;  %v13427_v28 = vld [vmem:[#allocation76_spill] sm:$0xff] }
 0x7c0   :  { %4757 = vmatpush.msra.mxu2 %v11490_v47  ;;  %4798 = vmatpush.msra.mxu3 %v11376_v8  ;;  %v13428_v47 = vld [vmem:[#allocation26_spill] sm:$0xff] }
 0x7c2   :  { %4760 = vmatpush.msra.mxu2 %v11508_v6  ;;  %4800 = vmatpush.msra.mxu3 %v11392_v57  ;;  %v13430_v6 = vld [vmem:[#allocation227_spill] sm:$0xff] }
 0x7c4   :  { %4763 = vmatpush.msra.mxu2 %v11521_v27  ;;  %4802 = vmatpush.msra.mxu3 %v11405_v55 }
 0x7c6   :  { %4766 = vmatpush.msra.mxu2 %v11536_v31  ;;  %4804 = vmatpush.msra.mxu3 %v11429_v54  ;;  %v13435_v31 = vld [vmem:[#allocation73_spill] sm:$0xff] }
 0x7c8   :  { %4769 = vmatpush.msra.mxu2 %v11546_v44  ;;  %4806 = vmatpush.msra.mxu3 %v11445_v46 }
 0x7ca   :  { %4772 = vmatpush.msra.mxu2 %v11557_v16  ;;  %4808 = vmatpush.msra.mxu3 %v11467_v18  ;;  %v13437_v16 = vld [vmem:[#allocation37_spill] sm:$0xff] }
 0x7cc   :  { %4775 = vmatpush.msra.mxu2 %v11565_v19  ;;  %4810 = vmatpush.msra.mxu3 %v11485_v61 }
 0x7cd   :  { %4778 = vmatmul.f32.vlgmr.msra.gmra.mxu2 %v11532_v36  ;;  %v13434_v36 = vld [vmem:[#allocation161_spill] sm:$0xff] }
 0x7ce   :  { %4835 = vmatpush.msrb.mxu2 %v4625_v10  ;;  %4812 = vmatpush.msra.mxu3 %v11500_v32  ;;  %v13420_v10 = vld [vmem:[#allocation231_spill] sm:$0xff] }
 0x7d0   :  { %4839 = vmatpush.msrb.mxu2 %v4631_v21  ;;  %4814 = vmatpush.msra.mxu3 %v11518_v51  ;;  %v5042_v21 = vsub.f32 %v13418_v29, %v13417_v60 }
 0x7d2   :  { %4843 = vmatpush.msrb.mxu2 %v4637_v48  ;;  %4816 = vmatpush.msra.mxu3 %v11528_v24  ;;  %v13421_v48 = vld [vmem:[#allocation221_spill] sm:$0xff] }
 0x7d4   :  { %4847 = vmatpush.msrb.mxu2 %v4643_v22  ;;  %4818 = vmatpush.msra.mxu3 %v11543_v30  ;;  %v13422_v22 = vld [vmem:[#allocation226_spill] sm:$0xff] }
 0x7d5   :  { %4783 = vmatmul.f32.gmra.mxu2 %v11576_v34  ;;  %4822 = vmatmul.f32.vlgmr.msra.gmra.mxu3 %v4608_v38 }
 0x7d6   :  { %4851 = vmatpush.msrb.mxu2 %v4649_v11  ;;  %4906 = vmatpush.msrb.mxu3 %v11367_v52  ;;  %v13424_v11 = vld [vmem:[#allocation32_spill] sm:$0xff] }
 0x7d8   :  { %4855 = vmatpush.msrb.mxu2 %v4655_v63  ;;  %4908 = vmatpush.msrb.mxu3 %v11325_v49  ;;  %v13411_v49 = vld [vmem:[#allocation230_spill] sm:$0xff] }
 0x7da   :  { %4859 = vmatpush.msrb.mxu2 %v4661_v37  ;;  %4910 = vmatpush.msrb.mxu3 %v11335_v35  ;;  %v13412_v35 = vld [vmem:[#allocation30_spill] sm:$0xff] }
 0x7dc   :  { %4863 = vmatpush.msrb.mxu2 %v4667_v39  ;;  %4912 = vmatpush.msrb.mxu3 %v11345_v17  ;;  %v13413_v17 = vld [vmem:[#allocation235_spill] sm:$0xff] }
 0x7dd   :  { %4828 = vmatmul.f32.gmra.mxu3 %v4616_v13  ;;  %v5036_v59 = vsub.f32 %v13413_v17, %v13412_v35  ;;  %v13429_v39 = vld [vmem:[#allocation19_spill] sm:$0xff] }
 0x7de   :  { %4867 = vmatpush.msrb.mxu2 %v4673_v56  ;;  %4914 = vmatpush.msrb.mxu3 %v11362_v14  ;;  %v13414_v14 = vld [vmem:[#allocation13_spill] sm:$0xff] }
 0x7df   :  { %v11690_v52 = vsub.f32 %v13415_v15, %v13414_v14  ;;  %v11698_v33 = vand.u32 4294901760, %v5036_v59  ;;  %v5263_v59 = vsel %vm5261_vm11, %v4967_v12, 0 }
 0x7e0   :  { %4871 = vmatpush.msrb.mxu2 %v4679_v25  ;;  %4916 = vmatpush.msrb.mxu3 %v11376_v8  ;;  %v13416_v8 = vld [vmem:[#allocation15_spill] sm:$0xff] }
 0x7e1   :  { %v5010_v58 = vand.u32 4294901760, %v11690_v52  ;;  %v13433_v25 = vld [vmem:[#allocation55_spill] sm:$0xff] }
 0x7e2   :  { %4875 = vmatpush.msrb.mxu2 %v4685_v40  ;;  %4918 = vmatpush.msrb.mxu3 %v11392_v57  ;;  %v13419_v57 = vld [vmem:[#allocation228_spill] sm:$0xff]  ;;  %v5072_v40 = vsub.f32 %v13435_v31, %v13434_v36 }
 0x7e4   :  { %4879 = vmatpush.msrb.mxu2 %v4691_v53  ;;  %4920 = vmatpush.msrb.mxu3 %v11405_v55  ;;  %v5048_v55 = vsub.f32 %v13421_v48, %v13420_v10  ;;  %v13436_v53 = vld [vmem:[#allocation222_spill] sm:$0xff] }
 0x7e6   :  { %4883 = vmatpush.msrb.mxu2 %v4697_v26  ;;  %4922 = vmatpush.msrb.mxu3 %v11429_v54  ;;  %v11705_v54 = vand.u32 4294901760, %v5042_v21  ;;  %v11713_v63 = vand.u32 4294901760, %v5048_v55  ;;  %v13438_v26 = vld [vmem:[#allocation220_spill] sm:$0xff] }
 0x7e7   :  { %v5078_v19 = vsub.f32 %v13438_v26, %v13437_v16 }
 0x7e8   :  { %4887 = vmatpush.msrb.mxu2 %v4703_v0  ;;  %4924 = vmatpush.msrb.mxu3 %v11445_v46  ;;  %v5054_v46 = vsub.f32 %v13424_v11, %v13423_v62  ;;  %v11741_v0 = vand.u32 4294901760, %v5072_v40 }
 0x7ea   :  { %4891 = vmatpush.msrb.mxu2 %v4709_v9  ;;  %4926 = vmatpush.msrb.mxu3 %v11467_v18  ;;  %v13426_v18 = vld [vmem:[#allocation70_spill] sm:$0xff]  ;;  %v11722_v56 = vand.u32 4294901760, %v5054_v46  ;;  %v11745_v9 = vand.u32 4294901760, %v5078_v19 }
 0x7eb   :  { %v5060_v37 = vsub.f32 %v13427_v28, %v13426_v18 }
 0x7ec   :  { %4895 = vmatpush.msrb.mxu2 %v4715_v20  ;;  %4928 = vmatpush.msrb.mxu3 %v11485_v61  ;;  %v5011_v61 = vsub.f32 %v11690_v52, %v5010_v58  ;;  %13439 = vst [vmem:[#allocation61_spill] sm:$0xff] %v11745_v9 }
 0x7ed   :  { %4897 = vmatmul.f32.vlgmr.msrb.gmra.mxu2 %v11503_v43 }
 0x7ee   :  { %4930 = vmatpush.msrb.mxu3 %v11500_v32  ;;  %4993 = vmatpush.msra.mxu2 %v13411_v49  ;;  %v5017_v32 = vsub.f32 %v13429_v39, %v13428_v47 }
 0x7f0   :  { %4932 = vmatpush.msrb.mxu3 %v11518_v51  ;;  %4995 = vmatpush.msra.mxu2 %v13416_v8  ;;  %v13432_v51 = vld [vmem:[#allocation224_spill] sm:$0xff]  ;;  %v5018_v44 = vand.u32 4294901760, %v5017_v32 }
 0x7f2   :  { %4934 = vmatpush.msrb.mxu3 %v11528_v24  ;;  %4997 = vmatpush.msra.mxu2 %v13419_v57  ;;  %v11728_v24 = vand.u32 4294901760, %v5060_v37  ;;  %v5019_v34 = vsub.f32 %v5017_v32, %v5018_v44 }
 0x7f4   :  { %4936 = vmatpush.msrb.mxu3 %v11543_v30  ;;  %4999 = vmatpush.msra.mxu2 %v13422_v22  ;;  %v5012_v30 = vand.u32 4294901760, %v5011_v61  ;;  %v5020_v1 = vand.u32 4294901760, %v5019_v34 }
 0x7f5   :  { %4901 = vmatmul.f32.gmra.mxu2 %v11554_v50  ;;  %4938 = vmatmul.f32.vlgmr.msrb.gmra.mxu3 %v11503_v43  ;;  %v13431_v43 = vld [vmem:[#allocation77_spill] sm:$0xff] }
 0x7f6   :  { %5001 = vmatpush.msra.mxu2 %v13425_v41  ;;  %5038 = vmatpush.msra.mxu3 %v11698_v33  ;;  %v5066_v27 = vsub.f32 %v13432_v51, %v13431_v43 }
 0x7f8   :  { %5003 = vmatpush.msra.mxu2 %v13430_v6  ;;  %5044 = vmatpush.msra.mxu3 %v11705_v54  ;;  %v11734_v38 = vand.u32 4294901760, %v5066_v27 }
 0x7fa   :  { %5005 = vmatpush.msra.mxu2 %v13433_v25  ;;  %5050 = vmatpush.msra.mxu3 %v11713_v63 }
 0x7fc   :  { %5007 = vmatpush.msra.mxu2 %v13436_v53  ;;  %5056 = vmatpush.msra.mxu3 %v11722_v56 }
 0x7fd   :  { %4942 = vmatmul.f32.gmra.mxu3 %v11554_v50  ;;  %5013 = vmatmul.f32.vlgmr.msra.gmra.mxu2 %v5012_v30 }
 0x7fe   :  { %5062 = vmatpush.msra.mxu3 %v11728_v24  ;;  %5100 = vmatpush.msrb.mxu2 %v13413_v17 }
 0x800   :  { %5068 = vmatpush.msra.mxu3 %v11734_v38  ;;  %5103 = vmatpush.msrb.mxu2 %v13418_v29 }
 0x802   :  { %5074 = vmatpush.msra.mxu3 %v11741_v0  ;;  %5106 = vmatpush.msrb.mxu2 %v13421_v48 }
 0x804   :  { %5080 = vmatpush.msra.mxu3 %v11745_v9  ;;  %5109 = vmatpush.msrb.mxu2 %v13424_v11 }
 0x805   :  { %5021 = vmatmul.f32.gmra.mxu2 %v5020_v1  ;;  %5082 = vmatmul.f32.vlgmr.msra.gmra.mxu3 %v13414_v14  ;;  %v11792_v14 = vand.u32 4294901760, %v5263_v59  ;;  %v5212_v1 = vpop.f32.mrf.mxu0 }
 0x806   :  { %5112 = vmatpush.msrb.mxu2 %v13427_v28  ;;  %5142 = vmatpush.msrb.mxu3 %v13411_v49 }
 0x807   :  { %13441 = vst [vmem:[#allocation60_spill] sm:$0xff] %v11792_v14  ;;  %v11797_v21 = vsub.f32 %v5263_v59, %v11792_v14  ;;  %5374 = vmatpush.msrb.mxu1 %v11792_v14 }
 0x808   :  { %5115 = vmatpush.msrb.mxu2 %v13432_v51  ;;  %5144 = vmatpush.msrb.mxu3 %v13416_v8 }
 0x809   :  { %13443 = vst [vmem:[#allocation54_spill] sm:$0xff] %v11797_v21  ;;  %v11802_v55 = vand.u32 4294901760, %v11797_v21  ;;  %5346 = vmatpush.msrb.mxu0 %v11797_v21 }
 0x80a   :  { %5118 = vmatpush.msrb.mxu2 %v13435_v31  ;;  %5146 = vmatpush.msrb.mxu3 %v13419_v57 }
 0x80b   :  { %13444 = vst [vmem:[#allocation64_spill] sm:$0xff] %v11802_v55 }
 0x80c   :  { %5121 = vmatpush.msrb.mxu2 %v13438_v26  ;;  %5148 = vmatpush.msrb.mxu3 %v13422_v22 }
 0x80d   :  { %5086 = vmatmul.f32.gmra.mxu3 %v13428_v47  ;;  %5124 = vmatmul.f32.vlgmr.msrb.gmra.mxu2 %v11690_v52  ;;  %v4966_v47 = vld [vmem:[%s12364_s2 + $0x270] sm:$0x7f] }
 0x80e   :  { %5150 = vmatpush.msrb.mxu3 %v13425_v41  ;;  %5281 = vmatpush.msra.mxu2 %v11792_v14 }
 0x810   :  { %5152 = vmatpush.msrb.mxu3 %v13430_v6  ;;  %5406 = vmatpush.msrb.mxu2 %v11802_v55 }
 0x812   :  { %5154 = vmatpush.msrb.mxu3 %v13433_v25 }
 0x814   :  { %5156 = vmatpush.msrb.mxu3 %v13436_v53 }
 0x815   :  { %5129 = vmatmul.f32.gmra.mxu2 %v5017_v32  ;;  %5160 = vmatmul.f32.vlgmr.msrb.gmra.mxu3 %v5010_v58  ;;  %v5317_v58 = vsub.f32 %v11797_v21, %v11802_v55  ;;  %v5454_v32 = vsel %vm5261_vm11, %v4966_v47, 0  ;;  %v5245_v47 = vpop.f32.mrf.mxu1 }
 0x816   :  { %v11816_v27 = vand.u32 4294901760, %v5454_v32 }
 0x817   :  { %v11808_v46 = vand.u32 4294901760, %v5317_v58 }
 0x818   :  { %13446 = vst [vmem:[#allocation58_spill] sm:$0xff] %v11816_v27  ;;  %5472 = vmatpush.msra.mxu0 %v11816_v27  ;;  %v11820_v30 = vsub.f32 %v5454_v32, %v11816_v27 }
 0x819   :  { %13445 = vst [vmem:[#allocation67_spill] sm:$0xff] %v11808_v46  ;;  %5319 = vmatpush.msra.mxu3 %v11808_v46 }
 0x81a   :  { %13447 = vst [vmem:[#allocation68_spill] sm:$0xff] %v11820_v30  ;;  %v11823_v19 = vand.u32 4294901760, %v11820_v30 }
 0x81b   :  { %5432 = vmatpush.msrb.mxu3 %v11792_v14 }
 0x81c   :  { %13448 = vst [vmem:[#allocation71_spill] sm:$0xff] %v11823_v19  ;;  %v5508_v59 = vsub.f32 %v11820_v30, %v11823_v19 }
 0x81d   :  { %5166 = vmatmul.f32.gmra.mxu3 %v5018_v44  ;;  %v5249_v46 = vpop.f32.mrf.mxu1 }
 0x81e   :  { %v11827_v55 = vand.u32 4294901760, %v5508_v59 }
 0x820   :  { %13449 = vst [vmem:[#allocation62_spill] sm:$0xff] %v11827_v55  ;;  %5510 = vmatpush.msra.mxu1 %v11827_v55 }
 0x830   :  { %v11766_v50 = vpop.f32.mrf.mxu2 }
 0x838   :  { %v11768_v20 = vpop.f32.mrf.mxu3  ;;  %v11770_v45 = vpop.f32.mrf.mxu2 }
 0x840   :  { %v11772_v13 = vpop.f32.mrf.mxu3 }
 0x850   :  { %v11774_v3 = vpop.f32.mrf.mxu2 }
 0x858   :  { %v11776_v5 = vpop.f32.mrf.mxu3  ;;  %v11778_v4 = vpop.f32.mrf.mxu2 }
 0x860   :  { %v11780_v42 = vpop.f32.mrf.mxu3 }
 0x870   :  { %v11782_v7 = vpop.f32.mrf.mxu2 }
 0x878   :  { %v11784_v23 = vpop.f32.mrf.mxu2  ;;  %v11786_v2 = vpop.f32.mrf.mxu3 }
 0x879   :  { %13440 = vst [vmem:[#allocation51_spill] sm:$0xff] %v11784_v23 }
 0x880   :  { %v11794_v15 = vpop.f32.mrf.mxu3  ;;  %v5014_v52 = vpop.f32.mrf.mxu2 }
 0x881   :  { %13442 = vst [vmem:[#allocation66_spill] sm:$0xff] %v11794_v15 }
 0x888   :  { %v5022_v37 = vpop.f32.mrf.mxu2  ;;  %v5083_v61 = vpop.f32.mrf.mxu3 }
 0x889   :  { %v5084_v44 = vadd.f32 %v5083_v61, %v5014_v52 }
 0x890   :  { %v5087_v39 = vpop.f32.mrf.mxu3  ;;  %v5125_v40 = vpop.f32.mrf.mxu2 }
 0x891   :  { %v5126_v34 = vadd.f32 %v5125_v40, %v5084_v44  ;;  %v5088_v32 = vadd.f32 %v5087_v39, %v5022_v37  ;;  %v5216_v44 = vpop.f32.mrf.mxu0  ;;  %v11841_v37 = vld [vmem:[%s12364_s2 + $0x290] sm:$0xff] }
 0x898   :  { %v5161_v12 = vpop.f32.mrf.mxu3  ;;  %v5130_v14 = vpop.f32.mrf.mxu2 }
 0x899   :  { %v5162_v58 = vadd.f32 %v5161_v12, %v5126_v34  ;;  %v5131_v52 = vadd.f32 %v5130_v14, %v5088_v32 }
 0x89b   :  { %v5213_v26 = vadd.f32 %v5212_v1, %v5162_v58  ;;  %v11850_v58 = vld [vmem:[%s12364_s2 + $0x288] sm:$0xff] }
 0x89d   :  { %v11830_v31 = vadd.f32 %v5245_v47, %v5213_v26 }
 0x89f   :  { %8409 = vtanh.f32 %v11830_v31 }
 0x8a0   :  { %v5167_v61 = vpop.f32.mrf.mxu3 }
 0x8a1   :  { %v5168_v40 = vadd.f32 %v5167_v61, %v5131_v52  ;;  %v11859_v52 = vand.u32 4294901760, %v11850_v58 }
 0x8a3   :  { %v5217_v21 = vadd.f32 %v5216_v44, %v5168_v40  ;;  %13452 = vst [vmem:[#allocation84_spill] sm:$0xff] %v11859_v52 }
 0x8a5   :  { %v8410_v34 = vpop.eup %8409  ;;  %v11833_v12 = vadd.f32 %v5249_v46, %v5217_v21  ;;  %v11845_v21 = vand.u32 4294901760, %v11841_v37 }
 0x8a6   :  { %v5256_v1 = vsel %vm5254_vm12, %v8410_v34, 0  ;;  %v11866_v34 = vsub.f32 %v11850_v58, %v11859_v52 }
 0x8a7   :  { %v5282_v59 = vand.u32 4294901760, %v5256_v1  ;;  %8411 = vtanh.f32 %v11833_v12  ;;  %13450 = vst [vmem:[#allocation75_spill] sm:$0xff] %v11845_v21  ;;  %v11856_v32 = vsub.f32 %v11841_v37, %v11845_v21 }
 0x8a8   :  { %13454 = vst [vmem:[#allocation69_spill] sm:$0xff] %v11866_v34 }
 0x8a9   :  { %5321 = vmatmul.f32.vlgmr.msra.gmra.mxu3 %v5282_v59  ;;  %v5283_v26 = vsub.f32 %v5256_v1, %v5282_v59  ;;  %13451 = vst [vmem:[#allocation65_spill] sm:$0xff] %v11856_v32  ;;  %v11862_v44 = vand.u32 4294901760, %v11856_v32 }
 0x8aa   :  { %5565 = vmatpush.msra.mxu3 %v11816_v27 }
 0x8ab   :  { %5349 = vmatmul.f32.vlgmr.msrb.gmra.mxu0 %v5283_v26  ;;  %v5284_v14 = vand.u32 4294901760, %v5283_v26  ;;  %13453 = vst [vmem:[#allocation80_spill] sm:$0xff] %v11862_v44 }
 0x8ac   :  { %5597 = vmatpush.msrb.mxu0 %v11823_v19  ;;  %v11872_v19 = vand.u32 4294901760, %v11866_v34 }
 0x8ad   :  { %v8412_v46 = vpop.eup %8411  ;;  %5378 = vmatmul.f32.vlgmr.msrb.gmra.mxu1 %v5284_v14  ;;  %v5285_v39 = vsub.f32 %v5283_v26, %v5284_v14 }
 0x8ae   :  { %v5259_v47 = vsel %vm5254_vm12, %v8412_v46, 0  ;;  %5623 = vmatpush.msrb.mxu1 %v11816_v27  ;;  %v5689_v46 = vsub.f32 %v11856_v32, %v11862_v44  ;;  %13455 = vst [vmem:[#allocation85_spill] sm:$0xff] %v11872_v19  ;;  %v5695_v55 = vsub.f32 %v11866_v34, %v11872_v19 }
 0x8af   :  { %v5290_v61 = vand.u32 4294901760, %v5259_v47  ;;  %v5286_v40 = vand.u32 4294901760, %v5285_v39 }
 0x8b0   :  { %v11876_v51 = vand.u32 4294901760, %v5689_v46  ;;  %v11878_v28 = vand.u32 4294901760, %v5695_v55  ;;  %v4976_v55 = vld [vmem:[%s12364_s2 + $0x2c0] sm:$0xff]  ;;  %v11909_v46 = vand.u32 4294901760, %v11830_v31 }
 0x8b1   :  { %5287 = vmatmul.f32.vlgmr.msra.gmra.mxu2 %v5286_v40  ;;  %5325 = vmatmul.f32.gmra.mxu3 %v5290_v61  ;;  %v5291_v1 = vsub.f32 %v5259_v47, %v5290_v61  ;;  %v11895_v47 = vand.u32 4294901760, %v4976_v55 }
 0x8b2   :  { %5537 = vmatpush.msra.mxu2 %v11820_v30  ;;  %13456 = vst [vmem:[#allocation78_spill] sm:$0xff] %v11876_v51 }
 0x8b3   :  { %5354 = vmatmul.f32.gmra.mxu0 %v5291_v1  ;;  %v5292_v39 = vand.u32 4294901760, %v5291_v1  ;;  %13457 = vst [vmem:[#allocation72_spill] sm:$0xff] %v11878_v28 }
 0x8b5   :  { %5384 = vmatmul.f32.gmra.mxu1 %v5292_v39  ;;  %v5293_v27 = vsub.f32 %v5291_v1, %v5292_v39 }
 0x8b7   :  { %v5294_v16 = vand.u32 4294901760, %v5293_v27  ;;  %v4975_v27 = vld [vmem:[%s12364_s2 + $0x2b8] sm:$0xff] }
 0x8b9   :  { %5295 = vmatmul.f32.gmra.mxu2 %v5294_v16  ;;  %5434 = vmatmul.f32.vlgmr.msrb.gmra.mxu3 %v5282_v59 }
 0x8ba   :  { %5691 = vmatpush.msrb.mxu3 %v11876_v51 }
 0x8bb   :  { %5478 = vmatmul.f32.vlgmr.msra.gmra.mxu0 %v5286_v40  ;;  %v13458_v40 = vld [vmem:[#allocation88_spill] sm:$0xff] }
 0x8bc   :  { %5697 = vmatpush.msrb.mxu3 %v11878_v28  ;;  %5723 = vmatpush.msra.mxu0 %v11856_v32 }
 0x8bd   :  { %5512 = vmatmul.f32.vlgmr.msra.gmra.mxu1 %v5282_v59 }
 0x8be   :  { %5726 = vmatpush.msra.mxu0 %v11866_v34  ;;  %5753 = vmatpush.msra.mxu1 %v11845_v21 }
 0x8c0   :  { %5755 = vmatpush.msra.mxu1 %v11859_v52 }
 0x8c1   :  { %5408 = vmatmul.f32.vlgmr.msrb.gmra.mxu2 %v5282_v59  ;;  %5438 = vmatmul.f32.gmra.mxu3 %v5290_v61 }
 0x8c2   :  { %5652 = vmatpush.msrb.mxu2 %v11845_v21 }
 0x8c3   :  { %5486 = vmatmul.f32.gmra.mxu0 %v5294_v16  ;;  %v11898_v16 = vand.u32 4294901760, %v4975_v27 }
 0x8c4   :  { %5654 = vmatpush.msrb.mxu2 %v11859_v52 }
 0x8c5   :  { %5516 = vmatmul.f32.gmra.mxu1 %v5290_v61 }
 0x8c9   :  { %5412 = vmatmul.f32.gmra.mxu2 %v5290_v61  ;;  %5569 = vmatmul.f32.vlgmr.msra.gmra.mxu3 %v5284_v14  ;;  %v11905_v14 = vand.u32 4294901760, %v11833_v12 }
 0x8ca   :  { %5815 = vmatpush.msra.mxu3 %v11845_v21  ;;  %v13465_v21 = vld [vmem:[#allocation109_spill] sm:$0xff] }
 0x8cb   :  { %5599 = vmatmul.f32.vlgmr.msrb.gmra.mxu0 %v5282_v59 }
 0x8cc   :  { %5817 = vmatpush.msra.mxu3 %v11859_v52  ;;  %5868 = vmatpush.msrb.mxu0 %v11895_v47 }
 0x8cd   :  { %5625 = vmatmul.f32.vlgmr.msrb.gmra.mxu1 %v5282_v59  ;;  %v13459_v59 = vld [vmem:[#allocation91_spill] sm:$0xff] }
 0x8ce   :  { %5870 = vmatpush.msrb.mxu0 %v11898_v16 }
 0x8d1   :  { %5540 = vmatmul.f32.vlgmr.msra.gmra.mxu2 %v5283_v26  ;;  %5575 = vmatmul.f32.gmra.mxu3 %v5292_v39  ;;  %v11915_v26 = vsub.f32 %v11833_v12, %v11905_v14  ;;  %v11924_v39 = vsub.f32 %v4976_v55, %v11895_v47  ;;  %v13462_v12 = vld [vmem:[#allocation95_spill] sm:$0xff]  ;;  %v13464_v55 = vld [vmem:[#allocation102_spill] sm:$0xff] }
 0x8d2   :  { %5786 = vmatpush.msra.mxu2 %v11862_v44  ;;  %v11928_v44 = vsub.f32 %v4975_v27, %v11898_v16 }
 0x8d3   :  { %5603 = vmatmul.f32.gmra.mxu0 %v5290_v61 }
 0x8d4   :  { %5790 = vmatpush.msra.mxu2 %v11872_v19  ;;  %v12737_v19 = vand.u32 4294901760, %v11915_v26 }
 0x8d5   :  { %5629 = vmatmul.f32.gmra.mxu1 %v5290_v61  ;;  %v13460_v61 = vld [vmem:[#allocation94_spill] sm:$0xff] }
 0x8d9   :  { %5545 = vmatmul.f32.gmra.mxu2 %v5291_v1  ;;  %5699 = vmatmul.f32.vlgmr.msrb.gmra.mxu3 %v13458_v40  ;;  %v11921_v1 = vsub.f32 %v11830_v31, %v11909_v46  ;;  %v6131_v31 = vsub.f32 %v11915_v26, %v12737_v19 }
 0x8da   :  { %5969 = vmatpush.msrb.mxu3 %v11895_v47 }
 0x8db   :  { %5729 = vmatmul.f32.vlgmr.msra.gmra.mxu0 %v13459_v59  ;;  %v13461_v59 = vld [vmem:[#allocation101_spill] sm:$0xff]  ;;  %v12736_v52 = vand.u32 4294901760, %v11921_v1 }
 0x8dc   :  { %5971 = vmatpush.msrb.mxu3 %v11898_v16 }
 0x8dd   :  { %5759 = vmatmul.f32.vlgmr.msra.gmra.mxu1 %v13460_v61  ;;  %v13463_v61 = vld [vmem:[#allocation98_spill] sm:$0xff]  ;;  %v6137_v27 = vsub.f32 %v11921_v1, %v12736_v52 }
 0x8df   :  { %v6138_v34 = vand.u32 4294901760, %v6137_v27 }
 0x8e1   :  { %5660 = vmatmul.f32.vlgmr.msrb.gmra.mxu2 %v13461_v59  ;;  %5703 = vmatmul.f32.gmra.mxu3 %v13462_v12  ;;  %v6132_v59 = vand.u32 4294901760, %v6131_v31 }
 0x8e2   :  { %5939 = vmatpush.msrb.mxu2 %v11924_v39 }
 0x8e3   :  { %5734 = vmatmul.f32.gmra.mxu0 %v13463_v61 }
 0x8e4   :  { %5942 = vmatpush.msrb.mxu2 %v11928_v44 }
 0x8e5   :  { %5765 = vmatmul.f32.gmra.mxu1 %v13464_v55 }
 0x8e9   :  { %5668 = vmatmul.f32.gmra.mxu2 %v13465_v21  ;;  %5819 = vmatmul.f32.vlgmr.msra.gmra.mxu3 %v13458_v40 }
 0x8ea   :  { %6133 = vmatpush.msra.mxu3 %v6132_v59 }
 0x8ec   :  { %6139 = vmatpush.msra.mxu3 %v6138_v34 }
 0x8f1   :  { %5792 = vmatmul.f32.vlgmr.msra.gmra.mxu2 %v13458_v40  ;;  %5823 = vmatmul.f32.gmra.mxu3 %v13462_v12 }
 0x8f2   :  { %6094 = vmatpush.msra.mxu2 %v11905_v14 }
 0x8f4   :  { %6096 = vmatpush.msra.mxu2 %v11909_v46 }
 0x8f9   :  { %5796 = vmatmul.f32.gmra.mxu2 %v13462_v12 }
 0x928   :  { %v5350_v55 = vpop.f32.mrf.mxu0 }
 0x92a   :  { %v5379_v31 = vpop.f32.mrf.mxu1 }
 0x92c   :  { %v5322_v61 = vpop.f32.mrf.mxu3 }
 0x930   :  { %v5355_v19 = vpop.f32.mrf.mxu0 }
 0x932   :  { %v5385_v34 = vpop.f32.mrf.mxu1 }
 0x934   :  { %v5288_v52 = vpop.f32.mrf.mxu2  ;;  %v5326_v21 = vpop.f32.mrf.mxu3 }
 0x935   :  { %v5323_v27 = vadd.f32 %v5322_v61, %v5288_v52 }
 0x937   :  { %v5351_v28 = vadd.f32 %v5350_v55, %v5323_v27 }
 0x938   :  { %v5479_v40 = vpop.f32.mrf.mxu0 }
 0x939   :  { %v5380_v11 = vadd.f32 %v5379_v31, %v5351_v28 }
 0x93a   :  { %v5513_v18 = vpop.f32.mrf.mxu1 }
 0x93c   :  { %v5296_v32 = vpop.f32.mrf.mxu2  ;;  %v5435_v59 = vpop.f32.mrf.mxu3 }
 0x93d   :  { %v5327_v51 = vadd.f32 %v5326_v21, %v5296_v32 }
 0x93f   :  { %v5356_v43 = vadd.f32 %v5355_v19, %v5327_v51 }
 0x940   :  { %v5487_v10 = vpop.f32.mrf.mxu0 }
 0x941   :  { %v5386_v29 = vadd.f32 %v5385_v34, %v5356_v43 }
 0x942   :  { %v5517_v61 = vpop.f32.mrf.mxu1 }
 0x944   :  { %v5409_v30 = vpop.f32.mrf.mxu2  ;;  %v5439_v36 = vpop.f32.mrf.mxu3 }
 0x945   :  { %v5410_v48 = vadd.f32 %v5409_v30, %v5380_v11 }
 0x947   :  { %v5436_v12 = vadd.f32 %v5435_v59, %v5410_v48 }
 0x948   :  { %v5600_v30 = vpop.f32.mrf.mxu0 }
 0x949   :  { %v5442_v35 = vmul.f32 %v5436_v12, %v11850_v58 }
 0x94b   :  { %v5444_v32 = vsel %vm862_vm2, %v5442_v35, 0.0 }
 0x94c   :  { %v5413_v62 = vpop.f32.mrf.mxu2  ;;  %v5570_v60 = vpop.f32.mrf.mxu3 }
 0x94d   :  { %v5414_v17 = vadd.f32 %v5413_v62, %v5386_v29  ;;  %v5626_v29 = vpop.f32.mrf.mxu1 }
 0x94f   :  { %v5440_v53 = vadd.f32 %v5439_v36, %v5414_v17 }
 0x950   :  { %v5604_v36 = vpop.f32.mrf.mxu0 }
 0x951   :  { %v5443_v52 = vmul.f32 %v5440_v53, %v11841_v37 }
 0x953   :  { %v5445_v55 = vsel %vm862_vm2, %v5443_v52, 0.0 }
 0x954   :  { %v5446_v28 = vadd.f32 %v5445_v55, %v5444_v32  ;;  %v5541_v51 = vpop.f32.mrf.mxu2  ;;  %v5576_v43 = vpop.f32.mrf.mxu3 }
 0x955   :  { %v5630_v27 = vpop.f32.mrf.mxu1 }
 0x956   :  { %v5447_v11 = vrot.slane %v5446_v28, 4 }
 0x958   :  { %v5448_v48 = vadd.f32 %v5447_v11, %v5446_v28  ;;  %v5730_v55 = vpop.f32.mrf.mxu0 }
 0x95a   :  { %v5449_v19 = vrot.slane %v5448_v48, 2 }
 0x95c   :  { %v5450_v62 = vadd.f32 %v5449_v19, %v5448_v48  ;;  %v5546_v31 = vpop.f32.mrf.mxu2  ;;  %v5700_v17 = vpop.f32.mrf.mxu3 }
 0x95d   :  { %v5760_v48 = vpop.f32.mrf.mxu1 }
 0x95e   :  { %v5451_v21 = vrot.slane %v5450_v62, 1 }
 0x960   :  { %v5452_v58 = vadd.f32 %v5451_v21, %v5450_v62 }
 0x962   :  { %v5480_v53 = vadd.f32 %v5479_v40, %v5452_v58  ;;  %v5488_v59 = vadd.f32 %v5487_v10, %v5452_v58  ;;  %v5735_v58 = vpop.f32.mrf.mxu0 }
 0x964   :  { %v5514_v37 = vadd.f32 %v5513_v18, %v5480_v53  ;;  %v5661_v35 = vpop.f32.mrf.mxu2  ;;  %v5518_v52 = vadd.f32 %v5517_v61, %v5488_v59  ;;  %v5704_v32 = vpop.f32.mrf.mxu3 }
 0x965   :  { %v5701_v28 = vadd.f32 %v5700_v17, %v5661_v35 }
 0x966   :  { %v5542_v34 = vadd.f32 %v5541_v51, %v5514_v37  ;;  %v5547_v15 = vadd.f32 %v5546_v31, %v5518_v52  ;;  %v5766_v37 = vpop.f32.mrf.mxu1  ;;  %v11962_v52 = vand.u32 4294901760, %v11928_v44 }
 0x967   :  { %v5731_v19 = vadd.f32 %v5730_v55, %v5701_v28 }
 0x968   :  { %v5571_v12 = vadd.f32 %v5570_v60, %v5542_v34  ;;  %v5577_v25 = vadd.f32 %v5576_v43, %v5547_v15  ;;  %v5911_v55 = vsub.f32 %v11928_v44, %v11962_v52 }
 0x969   :  { %v5761_v40 = vadd.f32 %v5760_v48, %v5731_v19 }
 0x96a   :  { %v5601_v11 = vadd.f32 %v5600_v30, %v5571_v12  ;;  %v5605_v18 = vadd.f32 %v5604_v36, %v5577_v25  ;;  %v11971_v28 = vand.u32 4294901760, %v5911_v55 }
 0x96c   :  { %v5669_v9 = vpop.f32.mrf.mxu2  ;;  %v5627_v62 = vadd.f32 %v5626_v29, %v5601_v11  ;;  %v5820_v21 = vpop.f32.mrf.mxu3  ;;  %v5631_v17 = vadd.f32 %v5630_v27, %v5605_v18 }
 0x96d   :  { %v5705_v23 = vadd.f32 %v5704_v32, %v5669_v9 }
 0x96e   :  { %v5633_v53 = vmul.f32 0.2, %v5627_v62  ;;  %v5634_v9 = vmul.f32 0.2, %v5631_v17 }
 0x96f   :  { %v5736_v61 = vadd.f32 %v5735_v58, %v5705_v23  ;;  %v11957_v23 = vand.u32 4294901760, %v11924_v39 }
 0x970   :  { %v5635_v59 = vmax.f32 %v5627_v62, %v5633_v53  ;;  %v5636_v36 = vmax.f32 %v5631_v17, %v5634_v9  ;;  %v13467_v9 = vand.u32 4294901760, %v11915_v26 }
 0x971   :  { %v5767_v31 = vadd.f32 %v5766_v37, %v5736_v61  ;;  %v5905_v27 = vsub.f32 %v11924_v39, %v11957_v23  ;;  %6002 = vmatpush.msra.mxu0 %v11957_v23 }
 0x973   :  { %v11965_v32 = vand.u32 4294901760, %v5905_v27  ;;  %6006 = vmatpush.msra.mxu0 %v11962_v52 }
 0x974   :  { %v5793_v10 = vpop.f32.mrf.mxu2  ;;  %v5824_v43 = vpop.f32.mrf.mxu3 }
 0x975   :  { %v5794_v51 = vadd.f32 %v5793_v10, %v5761_v40  ;;  %5907 = vmatpush.msrb.mxu1 %v11965_v32  ;;  %v4971_v10 = vld [vmem:[%s12364_s2 + $0x298] sm:$0xff] }
 0x976   :  { %v6074_v61 = vsel %vm862_vm2, %v4971_v10, 0 }
 0x977   :  { %v5821_v60 = vadd.f32 %v5820_v21, %v5794_v51  ;;  %5913 = vmatpush.msrb.mxu1 %v11971_v28  ;;  %v11984_v17 = vand.u32 4294901760, %v6074_v61 }
 0x979   :  { %vm5827_vm13 = vcmp.gt.f32.partialorder %v5821_v60, 0.0  ;;  %6031 = vmatpush.msra.mxu1 %v11895_v47 }
 0x97a   :  { %v5829_v30 = vsel %vm5827_vm13, %v5635_v59, -1e+30 }
 0x97b   :  { %v5831_v35 = vsel %vm862_vm2, %v5829_v30, -inf  ;;  %6033 = vmatpush.msra.mxu1 %v11898_v16 }
 0x97c   :  { %v5797_v15 = vpop.f32.mrf.mxu2  ;;  %5832 = vmax.xlane.f32.xlu2 %v5831_v35 }
 0x97d   :  { %v5798_v29 = vadd.f32 %v5797_v15, %v5767_v31  ;;  %v4972_v31 = vld [vmem:[%s12364_s2 + $0x2a0] sm:$0xff]  ;;  %v11991_v15 = vsub.f32 %v6074_v61, %v11984_v17 }
 0x97f   :  { %v5825_v25 = vadd.f32 %v5824_v43, %v5798_v29  ;;  %13466 = vst [vmem:[#allocation81_spill] sm:$0xff] %v11991_v15  ;;  %v6077_v29 = vsel %vm862_vm2, %v4972_v31, 0  ;;  %v12005_v55 = vand.u32 4294901760, %v11991_v15 }
 0x981   :  { %vm5828_vm14 = vcmp.gt.f32.partialorder %v5825_v25, 0.0 }
 0x982   :  { %v5830_v34 = vsel %vm5828_vm14, %v5636_v36, -1e+30 }
 0x983   :  { %v5834_v12 = vsel %vm862_vm2, %v5830_v34, -inf  ;;  %v13468_v34 = vand.u32 4294901760, %v11921_v1 }
 0x984   :  { %5835 = vmax.xlane.f32.xlu2 %v5834_v12 }
 0x9ef   :  { %v5833_v11 = vpop.xlane.xlu2 %5832 }
 0x9f0   :  { %v5837_v48 = vsub.f32 %v5635_v59, %v5833_v11  ;;  %v12007_v11 = vand.u32 4294901760, %v6077_v29 }
 0x9f2   :  { %v5839_v19 = vmin.f32 %v5837_v48, 0.0 }
 0x9f4   :  { %v5841_v62 = vmul.f32 1.442695, %v5839_v19 }
 0x9f6   :  { %8413 = vpow2.f32 %v5841_v62  ;;  %v12014_v62 = vsub.f32 %v6077_v29, %v12007_v11 }
 0x9f7   :  { %v5836_v21 = vpop.xlane.xlu2 %5835 }
 0x9f8   :  { %v5838_v40 = vsub.f32 %v5636_v36, %v5836_v21  ;;  %13469 = vst [vmem:[#allocation79_spill] sm:$0xff] %v12014_v62 }
 0x9fa   :  { %v5840_v18 = vmin.f32 %v5838_v40, 0.0 }
 0x9fc   :  { %v8414_v58 = vpop.eup %8413  ;;  %v5843_v53 = vmul.f32 1.442695, %v5840_v18 }
 0x9fd   :  { %v11979_v51 = vmul.f32 %v8414_v58, %v5821_v60 }
 0x9fe   :  { %8415 = vpow2.f32 %v5843_v53 }
 0x9ff   :  { %v5848_v37 = vsel %vm862_vm2, %v11979_v51, 0 }
 0xa00   :  { %v5871_v59 = vand.u32 4294901760, %v5848_v37 }
 0xa02   :  { %5915 = vmatmul.f32.vlgmr.msrb.gmra.mxu1 %v5871_v59  ;;  %v5872_v30 = vsub.f32 %v5848_v37, %v5871_v59 }
 0xa03   :  { %6195 = vmatpush.msrb.mxu1 %v11905_v14 }
 0xa04   :  { %v8416_v35 = vpop.eup %8415  ;;  %5945 = vmatmul.f32.vlgmr.msrb.gmra.mxu2 %v5872_v30  ;;  %v5873_v60 = vand.u32 4294901760, %v5872_v30 }
 0xa05   :  { %v11993_v43 = vmul.f32 %v8416_v35, %v5825_v25  ;;  %6197 = vmatpush.msrb.mxu1 %v11909_v46  ;;  %6228 = vmatpush.msrb.mxu2 %v13467_v9 }
 0xa06   :  { %5975 = vmatmul.f32.vlgmr.msrb.gmra.mxu3 %v5873_v60  ;;  %v5874_v36 = vsub.f32 %v5872_v30, %v5873_v60 }
 0xa07   :  { %6232 = vmatpush.msrb.mxu2 %v13468_v34  ;;  %6257 = vmatpush.msrb.mxu3 %v11905_v14  ;;  %v5851_v12 = vsel %vm862_vm2, %v11993_v43, 0  ;;  %v6100_v14 = vsub.f32 %v11991_v15, %v12005_v55 }
 0xa08   :  { %v5875_v27 = vand.u32 4294901760, %v5874_v36  ;;  %v5879_v25 = vand.u32 4294901760, %v5851_v12 }
 0xa09   :  { %6259 = vmatpush.msrb.mxu3 %v11909_v46  ;;  %v12017_v18 = vand.u32 4294901760, %v6100_v14  ;;  %v12020_v46 = vand.u32 4294901760, %v12014_v62 }
 0xa0a   :  { %5876 = vmatmul.f32.vlgmr.msrb.gmra.mxu0 %v5875_v27  ;;  %5919 = vmatmul.f32.gmra.mxu1 %v5879_v25  ;;  %v5880_v48 = vsub.f32 %v5851_v12, %v5879_v25 }
 0xa0b   :  { %6165 = vmatpush.msrb.mxu0 %v11915_v26  ;;  %13470 = vst [vmem:[#allocation86_spill] sm:$0xff] %v12020_v46  ;;  %v6108_v26 = vsub.f32 %v12014_v62, %v12020_v46 }
 0xa0c   :  { %5950 = vmatmul.f32.gmra.mxu2 %v5880_v48  ;;  %v5881_v19 = vand.u32 4294901760, %v5880_v48 }
 0xa0d   :  { %6168 = vmatpush.msrb.mxu0 %v11921_v1  ;;  %v12026_v10 = vand.u32 4294901760, %v6108_v26 }
 0xa0e   :  { %5981 = vmatmul.f32.gmra.mxu3 %v5881_v19  ;;  %v5882_v21 = vsub.f32 %v5880_v48, %v5881_v19 }
 0xa10   :  { %v5883_v40 = vand.u32 4294901760, %v5882_v21 }
 0xa12   :  { %5884 = vmatmul.f32.gmra.mxu0 %v5883_v40  ;;  %6035 = vmatmul.f32.vlgmr.msra.gmra.mxu1 %v5871_v59 }
 0xa14   :  { %6102 = vmatmul.f32.vlgmr.msra.gmra.mxu2 %v12017_v18 }
 0xa16   :  { %6141 = vmatmul.f32.vlgmr.msra.gmra.mxu3 %v11984_v17 }
 0xa1a   :  { %6008 = vmatmul.f32.vlgmr.msra.gmra.mxu0 %v5871_v59  ;;  %6039 = vmatmul.f32.gmra.mxu1 %v5879_v25 }
 0xa1c   :  { %6110 = vmatmul.f32.gmra.mxu2 %v12026_v10 }
 0xa1e   :  { %6145 = vmatmul.f32.gmra.mxu3 %v12007_v11 }
 0xa22   :  { %6012 = vmatmul.f32.gmra.mxu0 %v5879_v25  ;;  %6201 = vmatmul.f32.vlgmr.msrb.gmra.mxu1 %v12005_v55 }
 0xa24   :  { %6234 = vmatmul.f32.vlgmr.msrb.gmra.mxu2 %v11984_v17 }
 0xa26   :  { %6261 = vmatmul.f32.vlgmr.msrb.gmra.mxu3 %v11984_v17 }
 0xa2a   :  { %6171 = vmatmul.f32.vlgmr.msrb.gmra.mxu0 %v11991_v15  ;;  %6207 = vmatmul.f32.gmra.mxu1 %v12020_v46 }
 0xa2c   :  { %6238 = vmatmul.f32.gmra.mxu2 %v12007_v11 }
 0xa2e   :  { %6265 = vmatmul.f32.gmra.mxu3 %v12007_v11 }
 0xa32   :  { %6176 = vmatmul.f32.gmra.mxu0 %v12014_v62 }
 0xa7f   :  { %v5916_v1 = vpop.f32.mrf.mxu1 }
 0xa87   :  { %v5877_v58 = vpop.f32.mrf.mxu0  ;;  %v5946_v53 = vpop.f32.mrf.mxu2 }
 0xa88   :  { %v5920_v61 = vpop.f32.mrf.mxu1  ;;  %v5917_v59 = vadd.f32 %v5916_v1, %v5877_v58 }
 0xa89   :  { %v5976_v37 = vpop.f32.mrf.mxu3 }
 0xa8a   :  { %v5947_v60 = vadd.f32 %v5946_v53, %v5917_v59 }
 0xa8c   :  { %v5977_v29 = vadd.f32 %v5976_v37, %v5947_v60 }
 0xa8f   :  { %v5885_v30 = vpop.f32.mrf.mxu0  ;;  %v5951_v31 = vpop.f32.mrf.mxu2 }
 0xa90   :  { %v6036_v9 = vpop.f32.mrf.mxu1  ;;  %v5921_v36 = vadd.f32 %v5920_v61, %v5885_v30 }
 0xa91   :  { %v5982_v35 = vpop.f32.mrf.mxu3 }
 0xa92   :  { %v5952_v48 = vadd.f32 %v5951_v31, %v5921_v36 }
 0xa94   :  { %v5983_v21 = vadd.f32 %v5982_v35, %v5952_v48 }
 0xa97   :  { %v6009_v34 = vpop.f32.mrf.mxu0  ;;  %v6103_v27 = vpop.f32.mrf.mxu2 }
 0xa98   :  { %v6010_v12 = vadd.f32 %v6009_v34, %v5977_v29  ;;  %v6040_v14 = vpop.f32.mrf.mxu1 }
 0xa99   :  { %v6142_v25 = vpop.f32.mrf.mxu3 }
 0xa9a   :  { %v6037_v19 = vadd.f32 %v6036_v9, %v6010_v12  ;;  %v6143_v59 = vadd.f32 %v6142_v25, %v6103_v27  ;;  %v4973_v27 = vld [vmem:[%s12364_s2 + $0x2a8] sm:$0xff] }
 0xa9c   :  { %8417 = vrcp.f32 %v6037_v19  ;;  %v6054_v61 = vand.u32 2147483648, %v6037_v19  ;;  %v6052_v60 = vand.u32 2147483647, %v6037_v19  ;;  %vm6048_vm0 = vweird.f32 %v6037_v19 }
 0xa9e   :  { %v6055_v12 = vor.u32 1.1754944e-38, %v6054_v61  ;;  %vm6053_vm4 = vcmp.eq.f32.partialorder %v6052_v60, 8.507059e+37 }
 0xa9f   :  { %v6013_v40 = vpop.f32.mrf.mxu0  ;;  %v6111_v62 = vpop.f32.mrf.mxu2 }
 0xaa0   :  { %v6014_v26 = vadd.f32 %v6013_v40, %v5983_v21  ;;  %v6202_v37 = vpop.f32.mrf.mxu1 }
 0xaa1   :  { %v6146_v1 = vpop.f32.mrf.mxu3 }
 0xaa2   :  { %v8418_v58 = vpop.eup %8417  ;;  %v6041_v46 = vadd.f32 %v6040_v14, %v6014_v26 }
 0xaa3   :  { %v6044_v15 = vmul.f32 %v8418_v58, %v6037_v19  ;;  %vm6049_vm15 = vweird.f32 %v8418_v58 }
 0xaa4   :  { %8419 = vrcp.f32 %v6041_v46  ;;  %vm6050_vm3 = vmor %vm6048_vm0, %vm6049_vm15  ;;  %vm6063_vm6 = vweird.f32 %v6041_v46 }
 0xaa5   :  { %v6045_v53 = vsub.f32 1.0, %v6044_v15 }
 0xaa7   :  { %v6046_v30 = vmul.f32 %v8418_v58, %v6045_v53  ;;  %v6172_v31 = vpop.f32.mrf.mxu0  ;;  %v6235_v29 = vpop.f32.mrf.mxu2  ;;  %v6069_v53 = vand.u32 2147483648, %v6041_v46 }
 0xaa8   :  { %v6173_v9 = vadd.f32 %v6172_v31, %v6143_v59  ;;  %v6147_v59 = vadd.f32 %v6146_v1, %v6111_v62  ;;  %v6208_v61 = vpop.f32.mrf.mxu1 }
 0xaa9   :  { %v6047_v36 = vadd.f32 %v8418_v58, %v6046_v30  ;;  %v6262_v35 = vpop.f32.mrf.mxu3 }
 0xaaa   :  { %v8420_v34 = vpop.eup %8419  ;;  %v6203_v48 = vadd.f32 %v6202_v37, %v6173_v9  ;;  %v6067_v37 = vand.u32 2147483647, %v6041_v46 }
 0xaab   :  { %v6051_v14 = vsel %vm6050_vm3, %v8418_v58, %v6047_v36  ;;  %v6059_v21 = vmul.f32 %v8420_v34, %v6041_v46  ;;  %vm6064_vm5 = vweird.f32 %v8420_v34 }
 0xaac   :  { %v6056_v15 = vsel %vm6053_vm4, %v6055_v12, %v6051_v14  ;;  %v6236_v40 = vadd.f32 %v6235_v29, %v6203_v48  ;;  %vm6065_vm7 = vmor %vm6063_vm6, %vm6064_vm5  ;;  %v6070_v48 = vor.u32 1.1754944e-38, %v6069_v53  ;;  %vm6068_vm8 = vcmp.eq.f32.partialorder %v6067_v37, 8.507059e+37 }
 0xaad   :  { %v6060_v26 = vsub.f32 1.0, %v6059_v21  ;;  %v6057_v25 = vmul.f32 %v6056_v15, %v11979_v51 }
 0xaae   :  { %v6263_v19 = vadd.f32 %v6262_v35, %v6236_v40  ;;  %v4974_v40 = vld [vmem:[%s12364_s2 + $0x2b0] sm:$0xff] }
 0xaaf   :  { %v6061_v30 = vmul.f32 %v8420_v34, %v6060_v26  ;;  %v6177_v31 = vpop.f32.mrf.mxu0  ;;  %v6272_v58 = vsel %vm862_vm2, %v6057_v25, 0  ;;  %v6239_v36 = vpop.f32.mrf.mxu2 }
 0xab0   :  { %v6269_v60 = vmul.f32 %v6263_v19, %v4973_v27  ;;  %v6178_v9 = vadd.f32 %v6177_v31, %v6147_v59  ;;  %v6295_v29 = vand.u32 4294901760, %v6272_v58 }
 0xab1   :  { %v6062_v12 = vadd.f32 %v8420_v34, %v6061_v30  ;;  %v6266_v21 = vpop.f32.mrf.mxu3 }
 0xab2   :  { %v6209_v14 = vadd.f32 %v6208_v61, %v6178_v9  ;;  %v6296_v51 = vsub.f32 %v6272_v58, %v6295_v29  ;;  %v6293_v1 = vand.u32 4294901760, %v6269_v60 }
 0xab3   :  { %v6066_v62 = vsel %vm6065_vm7, %v8420_v34, %v6062_v12 }
 0xab4   :  { %v6240_v35 = vadd.f32 %v6239_v36, %v6209_v14  ;;  %v6071_v15 = vsel %vm6068_vm8, %v6070_v48, %v6066_v62  ;;  %v6297_v26 = vand.u32 4294901760, %v6296_v51  ;;  %v6333_v53 = vsub.f32 %v6269_v60, %v6293_v1 }
 0xab5   :  { %v6072_v27 = vmul.f32 %v6071_v15, %v11993_v43  ;;  %v8471_v15 = vld [vmem:[%s12364_s2 + $0x98] ss:$0 sm:$0xff] }
 0xab6   :  { %v6267_v46 = vadd.f32 %v6266_v21, %v6240_v35  ;;  %v6298_v30 = vsub.f32 %v6296_v51, %v6297_v26  ;;  %v6334_v58 = vand.u32 4294901760, %v6333_v53 }
 0xab7   :  { %v6275_v25 = vsel %vm862_vm2, %v6072_v27, 0 }
 0xab8   :  { %v6270_v59 = vmul.f32 %v6267_v46, %v4974_v40  ;;  %v6303_v19 = vand.u32 4294901760, %v6275_v25  ;;  %v6299_v37 = vand.u32 4294901760, %v6298_v30  ;;  %v6335_v12 = vsub.f32 %v6333_v53, %v6334_v58 }
 0xab9   :  { %v4613_v40 = vadd.f32 %v8471_v15, %v11766_v50  ;;  %v4621_v46 = vadd.f32 %v8471_v15, %v11770_v45 }
 0xaba   :  { %v6291_v31 = vand.u32 4294901760, %v6270_v59  ;;  %v6304_v34 = vsub.f32 %v6275_v25, %v6303_v19  ;;  %v6336_v14 = vand.u32 4294901760, %v6335_v12  ;;  %v13472_v25 = vld [vmem:[#allocation55_spill] sm:$0xff] }
 0xabc   :  { %v6327_v61 = vsub.f32 %v6270_v59, %v6291_v31  ;;  %6292 = vmatpush.msra.mxu0 %v6291_v31  ;;  %6393 = vmatpush.msra.mxu3 %v6291_v31  ;;  %v6305_v9 = vand.u32 4294901760, %v6304_v34 }
 0xabe   :  { %6294 = vmatpush.msra.mxu0 %v6293_v1  ;;  %6363 = vmatpush.msra.mxu2 %v6327_v61  ;;  %v6328_v36 = vand.u32 4294901760, %v6327_v61  ;;  %v6306_v60 = vsub.f32 %v6304_v34, %v6305_v9 }
 0xabf   :  { %6395 = vmatpush.msra.mxu3 %v6293_v1  ;;  %6300 = vmatmul.f32.vlgmr.msra.gmra.mxu0 %v6299_v37 }
 0xac0   :  { %6399 = vmatmul.f32.vlgmr.msra.gmra.mxu3 %v6297_v26  ;;  %6366 = vmatpush.msra.mxu2 %v6333_v53  ;;  %v6329_v43 = vsub.f32 %v6327_v61, %v6328_v36  ;;  %v6307_v21 = vand.u32 4294901760, %v6306_v60  ;;  %v13474_v53 = vld [vmem:[#allocation66_spill] sm:$0xff] }
 0xac1   :  { %6369 = vmatmul.f32.vlgmr.msra.gmra.mxu2 %v6296_v51  ;;  %6426 = vmatpush.msrb.mxu0 %v6328_v36  ;;  %v4977_v51 = vld [vmem:[%s12364_s2 + $0x2c8] sm:$0x7f] }
 0xac2   :  { %v6330_v48 = vand.u32 4294901760, %v6329_v43  ;;  %v6475_v62 = vsel %vm5261_vm11, %v4977_v51, 0 }
 0xac3   :  { %6430 = vmatpush.msrb.mxu0 %v6334_v58  ;;  %v12052_v35 = vand.u32 4294901760, %v6475_v62 }
 0xac4   :  { %6331 = vmatpush.msra.mxu1 %v6330_v48 }
 0xac5   :  { %6493 = vmatpush.msrb.mxu2 %v12052_v35 }
 0xac6   :  { %6337 = vmatpush.msra.mxu1 %v6336_v14 }
 0xac7   :  { %6308 = vmatmul.f32.gmra.mxu0 %v6307_v21  ;;  %6339 = vmatmul.f32.vlgmr.msra.gmra.mxu1 %v6295_v29 }
 0xac8   :  { %6405 = vmatmul.f32.gmra.mxu3 %v6305_v9  ;;  %6455 = vmatpush.msrb.mxu1 %v6291_v31 }
 0xac9   :  { %6374 = vmatmul.f32.gmra.mxu2 %v6304_v34 }
 0xaca   :  { %6457 = vmatpush.msrb.mxu1 %v6293_v1  ;;  %v12059_v1 = vsub.f32 %v6475_v62, %v12052_v35 }
 0xacc   :  { %6586 = vmatpush.msra.mxu1 %v12052_v35  ;;  %v12066_v26 = vand.u32 4294901760, %v12059_v1  ;;  %6558 = vmatpush.msra.mxu0 %v12059_v1 }
 0xace   :  { %v6529_v50 = vsub.f32 %v12059_v1, %v12066_v26  ;;  %6618 = vmatpush.msra.mxu2 %v12066_v26 }
 0xacf   :  { %6343 = vmatmul.f32.gmra.mxu1 %v6303_v19  ;;  %6432 = vmatmul.f32.vlgmr.msrb.gmra.mxu0 %v6295_v29 }
 0xad0   :  { %6695 = vmatpush.msrb.mxu0 %v13411_v49 }
 0xad2   :  { %6697 = vmatpush.msrb.mxu0 %v13416_v8 }
 0xad4   :  { %6699 = vmatpush.msrb.mxu0 %v13419_v57 }
 0xad6   :  { %6701 = vmatpush.msrb.mxu0 %v13422_v22 }
 0xad7   :  { %6436 = vmatmul.f32.gmra.mxu0 %v6303_v19  ;;  %6459 = vmatmul.f32.vlgmr.msrb.gmra.mxu1 %v6295_v29  ;;  %v4722_v29 = vadd.f32 %v11768_v20, %v4613_v40 }
 0xad8   :  { %6740 = vmatpush.msrb.mxu1 %v11698_v33  ;;  %v12078_v33 = vand.u32 4294901760, %v6529_v50  ;;  %6703 = vmatpush.msrb.mxu0 %v13425_v41 }
 0xad9   :  { %v4780_v27 = vadd.f32 %v11774_v3, %v4722_v29 }
 0xada   :  { %6746 = vmatpush.msrb.mxu1 %v11705_v54  ;;  %6531 = vmatpush.msrb.mxu3 %v12078_v33  ;;  %v4726_v54 = vadd.f32 %v11772_v13, %v4621_v46  ;;  %v13471_v13 = vld [vmem:[#allocation51_spill] sm:$0xff] }
 0xadb   :  { %v4824_v20 = vadd.f32 %v11776_v5, %v4780_v27  ;;  %6705 = vmatpush.msrb.mxu0 %v13430_v6 }
 0xadc   :  { %6752 = vmatpush.msrb.mxu1 %v11713_v63  ;;  %6644 = vmatpush.msra.mxu3 %v12052_v35  ;;  %v4785_v45 = vadd.f32 %v11778_v4, %v4726_v54 }
 0xadd   :  { %v4899_v3 = vadd.f32 %v11782_v7, %v4824_v20  ;;  %6707 = vmatpush.msrb.mxu0 %v13472_v25 }
 0xade   :  { %6758 = vmatpush.msrb.mxu1 %v11722_v56  ;;  %v4830_v56 = vadd.f32 %v11780_v42, %v4785_v45 }
 0xadf   :  { %6463 = vmatmul.f32.gmra.mxu1 %v6303_v19  ;;  %v4940_v5 = vadd.f32 %v11786_v2, %v4899_v3  ;;  %v13475_v19 = vld [vmem:[#allocation222_spill] sm:$0xff] }
 0xae0   :  { %6764 = vmatpush.msrb.mxu1 %v11728_v24  ;;  %v4903_v2 = vadd.f32 %v13471_v13, %v4830_v56  ;;  %v13473_v24 = vld [vmem:[#allocation61_spill] sm:$0xff]  ;;  %6709 = vmatpush.msrb.mxu0 %v13475_v19 }
 0xae1   :  { %v4948_v7 = vmin.f32 %v4940_v5, 0.0  ;;  %vm4946_vm9 = vcmp.gt.f32.partialorder %v4940_v5, 0.0 }
 0xae2   :  { %6770 = vmatpush.msrb.mxu1 %v11734_v38  ;;  %v4944_v4 = vadd.f32 %v13474_v53, %v4903_v2 }
 0xae3   :  { %v4950_v59 = vmul.f32 1.442695, %v4948_v7 }
 0xae4   :  { %6776 = vmatpush.msrb.mxu1 %v11741_v0  ;;  %v4949_v42 = vmin.f32 %v4944_v4, 0.0  ;;  %vm4947_vm10 = vcmp.gt.f32.partialorder %v4944_v4, 0.0 }
 0xae5   :  { %8421 = vpow2.f32 %v4950_v59 }
 0xae6   :  { %6782 = vmatpush.msrb.mxu1 %v13473_v24  ;;  %v4952_v61 = vmul.f32 1.442695, %v4949_v42  ;;  %v13476_v24 = vld [vmem:[#allocation30_spill] sm:$0xff] }
 0xae8   :  { %8423 = vpow2.f32 %v4952_v61 }
 0xaeb   :  { %v8422_v0 = vpop.eup %8421 }
 0xaec   :  { %v8375_v43 = vadd.f32 -1.0, %v8422_v0 }
 0xaee   :  { %v4956_v14 = vsel %vm4946_vm9, %v4940_v5, %v8375_v43  ;;  %v8424_v62 = vpop.eup %8423 }
 0xaef   :  { %v6681_v29 = vsel %vm306_vm1, %v4956_v14, 0  ;;  %v8376_v50 = vadd.f32 -1.0, %v8424_v62  ;;  %v13483_v14 = vld [vmem:[#allocation221_spill] sm:$0xff]  ;;  %v13485_v62 = vld [vmem:[#allocation32_spill] sm:$0xff] }
 0xaf1   :  { %v4957_v56 = vsel %vm4947_vm10, %v4944_v4, %v8376_v50  ;;  %v13477_v4 = vld [vmem:[#allocation233_spill] sm:$0xff]  ;;  %v13491_v50 = vld [vmem:[#allocation54_spill] sm:$0xff] }
 0xb3c   :  { %v6301_v63 = vpop.f32.mrf.mxu0 }
 0xb43   :  { %v6400_v9 = vpop.f32.mrf.mxu3 }
 0xb44   :  { %v6309_v30 = vpop.f32.mrf.mxu0  ;;  %v6340_v38 = vpop.f32.mrf.mxu1 }
 0xb45   :  { %v6341_v31 = vadd.f32 %v6340_v38, %v6301_v63  ;;  %v6370_v34 = vpop.f32.mrf.mxu2  ;;  %v12105_v63 = vand.u32 4294901760, %v6681_v29 }
 0xb47   :  { %v6371_v37 = vadd.f32 %v6370_v34, %v6341_v31  ;;  %v12113_v59 = vsub.f32 %v6681_v29, %v12105_v63  ;;  %v13478_v34 = vld [vmem:[#allocation231_spill] sm:$0xff]  ;;  %v13488_v29 = vld [vmem:[#allocation37_spill] sm:$0xff] }
 0xb49   :  { %v6401_v60 = vadd.f32 %v6400_v9, %v6371_v37  ;;  %v6712_v61 = vand.u32 4294901760, %v12113_v59  ;;  %v13479_v37 = vld [vmem:[#allocation235_spill] sm:$0xff] }
 0xb4b   :  { %v6406_v20 = vpop.f32.mrf.mxu3 }
 0xb4c   :  { %v6344_v58 = vpop.f32.mrf.mxu1  ;;  %v6433_v36 = vpop.f32.mrf.mxu0 }
 0xb4d   :  { %v6345_v12 = vadd.f32 %v6344_v58, %v6309_v30  ;;  %v6434_v48 = vadd.f32 %v6433_v36, %v6401_v60  ;;  %v6375_v21 = vpop.f32.mrf.mxu2  ;;  %v6684_v30 = vsel %vm306_vm1, %v4957_v56, 0  ;;  %v13480_v36 = vld [vmem:[#allocation229_spill] sm:$0xff]  ;;  %v13481_v60 = vld [vmem:[#allocation63_spill] sm:$0xff] }
 0xb4e   :  { %v6718_v58 = vand.u32 4294901760, %v6684_v30 }
 0xb4f   :  { %v6376_v15 = vadd.f32 %v6375_v21, %v6345_v12  ;;  %v6713_v12 = vsub.f32 %v12113_v59, %v6712_v61  ;;  %v13484_v21 = vld [vmem:[#allocation77_spill] sm:$0xff] }
 0xb51   :  { %v6407_v54 = vadd.f32 %v6406_v20, %v6376_v15  ;;  %v13486_v15 = vld [vmem:[#allocation161_spill] sm:$0xff] }
 0xb52   :  { %v13492_v20 = vld [vmem:[#allocation73_spill] sm:$0xff] }
 0xb54   :  { %v6460_v51 = vpop.f32.mrf.mxu1  ;;  %v6437_v46 = vpop.f32.mrf.mxu0 }
 0xb55   :  { %v6461_v40 = vadd.f32 %v6460_v51, %v6434_v48  ;;  %v6438_v5 = vadd.f32 %v6437_v46, %v6407_v54  ;;  %v13493_v46 = vld [vmem:[#allocation60_spill] sm:$0xff] }
 0xb56   :  { %v13494_v54 = vld [vmem:[#allocation220_spill] sm:$0xff] }
 0xb57   :  { %v6469_v27 = vsel %vm5254_vm12, %v6461_v40, 0  ;;  %v13487_v40 = vld [vmem:[#allocation76_spill] sm:$0xff] }
 0xb58   :  { %v12103_v3 = vand.u32 4294901760, %v6469_v27 }
 0xb5a   :  { %v6495_v45 = vsub.f32 %v6469_v27, %v12103_v3  ;;  %6533 = vmatmul.f32.vlgmr.msrb.gmra.mxu3 %v12103_v3  ;;  %v13489_v27 = vld [vmem:[#allocation224_spill] sm:$0xff] }
 0xb5b   :  { %6844 = vmatpush.msrb.mxu3 %v13411_v49 }
 0xb5c   :  { %v6496_v7 = vand.u32 4294901760, %v6495_v45  ;;  %v6464_v13 = vpop.f32.mrf.mxu1  ;;  %6561 = vmatmul.f32.vlgmr.msra.gmra.mxu0 %v6495_v45 }
 0xb5d   :  { %v6465_v2 = vadd.f32 %v6464_v13, %v6438_v5  ;;  %6846 = vmatpush.msrb.mxu3 %v13416_v8  ;;  %6883 = vmatpush.msra.mxu0 %v13476_v24 }
 0xb5e   :  { %v6497_v53 = vsub.f32 %v6495_v45, %v6496_v7  ;;  %6590 = vmatmul.f32.vlgmr.msra.gmra.mxu1 %v6496_v7  ;;  %v12165_v7 = vld [vmem:[%s12364_s2 + $0x280] ss:$0 sm:$0xff] }
 0xb5f   :  { %v6472_v38 = vsel %vm5254_vm12, %v6465_v2, 0  ;;  %6848 = vmatpush.msrb.mxu3 %v13419_v57  ;;  %6887 = vmatpush.msra.mxu0 %v13477_v4 }
 0xb60   :  { %v6498_v42 = vand.u32 4294901760, %v6497_v53  ;;  %v6502_v31 = vand.u32 4294901760, %v6472_v38  ;;  %6930 = vmatpush.msra.mxu1 %v13411_v49  ;;  %v6719_v49 = vsub.f32 %v6684_v30, %v6718_v58 }
 0xb61   :  { %6850 = vmatpush.msrb.mxu3 %v13422_v22  ;;  %6891 = vmatpush.msra.mxu0 %v13478_v34 }
 0xb62   :  { %6499 = vmatmul.f32.vlgmr.msrb.gmra.mxu2 %v6498_v42  ;;  %6537 = vmatmul.f32.gmra.mxu3 %v6502_v31  ;;  %v6503_v0 = vsub.f32 %v6472_v38, %v6502_v31  ;;  %v6720_v51 = vand.u32 4294901760, %v6719_v49 }
 0xb63   :  { %6932 = vmatpush.msra.mxu1 %v13416_v8  ;;  %6802 = vmatpush.msrb.mxu2 %v13479_v37  ;;  %v13482_v8 = vld [vmem:[#allocation70_spill] sm:$0xff] }
 0xb64   :  { %6566 = vmatmul.f32.gmra.mxu0 %v6503_v0  ;;  %v6504_v9 = vand.u32 4294901760, %v6503_v0  ;;  %6852 = vmatpush.msrb.mxu3 %v13425_v41 }
 0xb65   :  { %6895 = vmatpush.msra.mxu0 %v13480_v36  ;;  %6934 = vmatpush.msra.mxu1 %v13419_v57  ;;  %v6714_v57 = vand.u32 4294901760, %v6713_v12 }
 0xb66   :  { %6596 = vmatmul.f32.gmra.mxu1 %v6504_v9  ;;  %v6505_v43 = vsub.f32 %v6503_v0, %v6504_v9  ;;  %6805 = vmatpush.msrb.mxu2 %v13481_v60 }
 0xb67   :  { %6854 = vmatpush.msrb.mxu3 %v13430_v6  ;;  %6899 = vmatpush.msra.mxu0 %v13482_v8 }
 0xb68   :  { %v6506_v48 = vand.u32 4294901760, %v6505_v43  ;;  %6936 = vmatpush.msra.mxu1 %v13422_v22  ;;  %6808 = vmatpush.msrb.mxu2 %v13483_v14  ;;  %v6721_v22 = vsub.f32 %v6719_v49, %v6720_v51 }
 0xb69   :  { %6856 = vmatpush.msrb.mxu3 %v13472_v25  ;;  %6903 = vmatpush.msra.mxu0 %v13484_v21 }
 0xb6a   :  { %6507 = vmatmul.f32.gmra.mxu2 %v6506_v48  ;;  %6646 = vmatmul.f32.vlgmr.msra.gmra.mxu3 %v12103_v3 }
 0xb6b   :  { %6938 = vmatpush.msra.mxu1 %v13425_v41  ;;  %6811 = vmatpush.msrb.mxu2 %v13485_v62  ;;  %v13490_v41 = vld [vmem:[#allocation67_spill] sm:$0xff] }
 0xb6c   :  { %6715 = vmatmul.f32.vlgmr.msrb.gmra.mxu0 %v6714_v57  ;;  %6858 = vmatpush.msrb.mxu3 %v13475_v19 }
 0xb6d   :  { %6907 = vmatpush.msra.mxu0 %v13486_v15  ;;  %6940 = vmatpush.msra.mxu1 %v13430_v6  ;;  %v6722_v6 = vand.u32 4294901760, %v6721_v22 }
 0xb6e   :  { %6784 = vmatmul.f32.vlgmr.msrb.gmra.mxu1 %v12105_v63  ;;  %6814 = vmatpush.msrb.mxu2 %v13487_v40 }
 0xb6f   :  { %6911 = vmatpush.msra.mxu0 %v13488_v29  ;;  %6942 = vmatpush.msra.mxu1 %v13472_v25  ;;  %v13495_v25 = vld [vmem:[#allocation58_spill] sm:$0xff] }
 0xb70   :  { %6817 = vmatpush.msrb.mxu2 %v13489_v27  ;;  %7016 = vmatpush.msra.mxu3 %v13490_v41 }
 0xb71   :  { %6944 = vmatpush.msra.mxu1 %v13475_v19  ;;  %7043 = vmatpush.msrb.mxu0 %v13491_v50  ;;  %v13496_v19 = vld [vmem:[#allocation62_spill] sm:$0xff] }
 0xb72   :  { %6620 = vmatmul.f32.vlgmr.msra.gmra.mxu2 %v12103_v3  ;;  %6650 = vmatmul.f32.gmra.mxu3 %v6502_v31  ;;  %v13497_v3 = vld [vmem:[#allocation64_spill] sm:$0xff] }
 0xb73   :  { %6820 = vmatpush.msrb.mxu2 %v13492_v20  ;;  %7071 = vmatpush.msrb.mxu1 %v13493_v46 }
 0xb74   :  { %6723 = vmatmul.f32.gmra.mxu0 %v6722_v6 }
 0xb75   :  { %6823 = vmatpush.msrb.mxu2 %v13494_v54 }
 0xb76   :  { %6788 = vmatmul.f32.gmra.mxu1 %v6718_v58 }
 0xb77   :  { %6978 = vmatpush.msra.mxu2 %v13493_v46 }
 0xb7a   :  { %6624 = vmatmul.f32.gmra.mxu2 %v6502_v31  ;;  %6862 = vmatmul.f32.vlgmr.msrb.gmra.mxu3 %v6712_v61 }
 0xb7b   :  { %7129 = vmatpush.msrb.mxu3 %v13493_v46 }
 0xb7c   :  { %6913 = vmatmul.f32.vlgmr.msra.gmra.mxu0 %v12105_v63 }
 0xb7d   :  { %7166 = vmatpush.msra.mxu0 %v13495_v25 }
 0xb7e   :  { %6946 = vmatmul.f32.vlgmr.msra.gmra.mxu1 %v12105_v63 }
 0xb7f   :  { %7204 = vmatpush.msra.mxu1 %v13496_v19 }
 0xb82   :  { %6826 = vmatmul.f32.vlgmr.msrb.gmra.mxu2 %v12113_v59  ;;  %6868 = vmatmul.f32.gmra.mxu3 %v6720_v51 }
 0xb83   :  { %7103 = vmatpush.msrb.mxu2 %v13497_v3 }
 0xb84   :  { %6917 = vmatmul.f32.gmra.mxu0 %v6718_v58 }
 0xb86   :  { %6950 = vmatmul.f32.gmra.mxu1 %v6718_v58 }
 0xb8a   :  { %6831 = vmatmul.f32.gmra.mxu2 %v6719_v49 }
 0xbd9   :  { %v6562_v5 = vpop.f32.mrf.mxu0 }
 0xbdb   :  { %v6591_v56 = vpop.f32.mrf.mxu1 }
 0xbdd   :  { %v6534_v45 = vpop.f32.mrf.mxu3 }
 0xbe1   :  { %v12170_v24 = vpop.f32.mrf.mxu0 }
 0xbe3   :  { %v12172_v59 = vpop.f32.mrf.mxu1 }
 0xbe5   :  { %v6500_v13 = vpop.f32.mrf.mxu2  ;;  %v12167_v63 = vpop.f32.mrf.mxu3 }
 0xbe6   :  { %v6501_v2 = vadd.f32 %v12165_v7, %v6500_v13 }
 0xbe8   :  { %v6535_v53 = vadd.f32 %v6534_v45, %v6501_v2 }
 0xbe9   :  { %v6716_v42 = vpop.f32.mrf.mxu0 }
 0xbea   :  { %v6563_v38 = vadd.f32 %v6562_v5, %v6535_v53  ;;  %v13498_v5 = vld [vmem:[#allocation71_spill] sm:$0xff] }
 0xbeb   :  { %v6785_v34 = vpop.f32.mrf.mxu1 }
 0xbec   :  { %v6592_v31 = vadd.f32 %v6591_v56, %v6563_v38  ;;  %v6786_v12 = vadd.f32 %v6785_v34, %v6716_v42  ;;  %v13499_v42 = vld [vmem:[#allocation68_spill] sm:$0xff] }
 0xbed   :  { %v12174_v30 = vpop.f32.mrf.mxu2  ;;  %v6647_v4 = vpop.f32.mrf.mxu3 }
 0xbf1   :  { %v6724_v36 = vpop.f32.mrf.mxu0 }
 0xbf3   :  { %v6789_v43 = vpop.f32.mrf.mxu1 }
 0xbf4   :  { %v6790_v62 = vadd.f32 %v6789_v43, %v6724_v36  ;;  %v13503_v36 = vld [vmem:[#allocation69_spill] sm:$0xff]  ;;  %v13504_v43 = vld [vmem:[#allocation75_spill] sm:$0xff] }
 0xbf5   :  { %v6621_v61 = vpop.f32.mrf.mxu2  ;;  %v12180_v9 = vpop.f32.mrf.mxu3 }
 0xbf6   :  { %v6622_v58 = vadd.f32 %v6621_v61, %v6592_v31 }
 0xbf8   :  { %v12176_v0 = vadd.f32 %v6647_v4, %v6622_v58  ;;  %v13500_v58 = vld [vmem:[#allocation78_spill] sm:$0xff] }
 0xbf9   :  { %v6914_v14 = vpop.f32.mrf.mxu0 }
 0xbfa   :  { %v6654_v37 = vsel %vm5254_vm12, %v12176_v0, -inf }
 0xbfb   :  { %6655 = vmax.xlane.f32.xlu2 %v6654_v37  ;;  %v6947_v57 = vpop.f32.mrf.mxu1  ;;  %v13501_v37 = vld [vmem:[#allocation72_spill] sm:$0xff] }
 0xbfd   :  { %v12182_v49 = vpop.f32.mrf.mxu2  ;;  %v6863_v60 = vpop.f32.mrf.mxu3 }
 0xc01   :  { %v6918_v41 = vpop.f32.mrf.mxu0 }
 0xc03   :  { %v6951_v6 = vpop.f32.mrf.mxu1 }
 0xc05   :  { %v6827_v8 = vpop.f32.mrf.mxu2  ;;  %v6869_v29 = vpop.f32.mrf.mxu3 }
 0xc06   :  { %v6828_v48 = vadd.f32 %v6827_v8, %v6786_v12  ;;  %v13505_v12 = vld [vmem:[#allocation84_spill] sm:$0xff]  ;;  %v13507_v8 = vld [vmem:[#allocation85_spill] sm:$0xff] }
 0xc08   :  { %v6864_v21 = vadd.f32 %v6863_v60, %v6828_v48  ;;  %v13506_v60 = vld [vmem:[#allocation80_spill] sm:$0xff] }
 0xc0a   :  { %v6915_v51 = vadd.f32 %v6914_v14, %v6864_v21  ;;  %v13508_v14 = vld [vmem:[#allocation234_spill] sm:$0xff] }
 0xc0c   :  { %v12184_v15 = vadd.f32 %v6947_v57, %v6915_v51  ;;  %v13510_v57 = vld [vmem:[#allocation25_spill] sm:$0xff] }
 0xc0d   :  { %v6832_v22 = vpop.f32.mrf.mxu2 }
 0xc0e   :  { %8425 = vtanh.f32 %v12184_v15  ;;  %v6833_v40 = vadd.f32 %v6832_v22, %v6790_v62  ;;  %v13511_v22 = vld [vmem:[#allocation225_spill] sm:$0xff] }
 0xc10   :  { %v6870_v27 = vadd.f32 %v6869_v29, %v6833_v40  ;;  %v13512_v40 = vld [vmem:[#allocation21_spill] sm:$0xff]  ;;  %v13513_v29 = vld [vmem:[#allocation59_spill] sm:$0xff] }
 0xc12   :  { %v6919_v50 = vadd.f32 %v6918_v41, %v6870_v27  ;;  %v13515_v27 = vld [vmem:[#allocation236_spill] sm:$0xff] }
 0xc14   :  { %v8426_v20 = vpop.eup %8425  ;;  %v12187_v46 = vadd.f32 %v6951_v6, %v6919_v50 }
 0xc15   :  { %v6957_v54 = vsel %vm5254_vm12, %v8426_v20, 0 }
 0xc16   :  { %v6979_v19 = vand.u32 4294901760, %v6957_v54  ;;  %8427 = vtanh.f32 %v12187_v46  ;;  %v12213_v48 = vand.u32 4294901760, %v12187_v46 }
 0xc18   :  { %7018 = vmatmul.f32.vlgmr.msra.gmra.mxu3 %v6979_v19  ;;  %v6980_v3 = vsub.f32 %v6957_v54, %v6979_v19  ;;  %v12223_v21 = vsub.f32 %v12187_v46, %v12213_v48 }
 0xc19   :  { %7259 = vmatpush.msra.mxu3 %v13495_v25 }
 0xc1a   :  { %7046 = vmatmul.f32.vlgmr.msrb.gmra.mxu0 %v6980_v3  ;;  %v6981_v45 = vand.u32 4294901760, %v6980_v3  ;;  %v7818_v62 = vand.u32 4294901760, %v12223_v21 }
 0xc1b   :  { %7291 = vmatpush.msrb.mxu0 %v13498_v5 }
 0xc1c   :  { %v8428_v56 = vpop.eup %8427  ;;  %7075 = vmatmul.f32.vlgmr.msrb.gmra.mxu1 %v6981_v45  ;;  %v6982_v13 = vsub.f32 %v6980_v3, %v6981_v45 }
 0xc1d   :  { %v6960_v2 = vsel %vm5254_vm12, %v8428_v56, 0  ;;  %7317 = vmatpush.msrb.mxu1 %v13495_v25  ;;  %v13502_v25 = vld [vmem:[#allocation65_spill] sm:$0xff] }
 0xc1e   :  { %v6987_v53 = vand.u32 4294901760, %v6960_v2  ;;  %v6983_v38 = vand.u32 4294901760, %v6982_v13 }
 0xc20   :  { %6984 = vmatmul.f32.vlgmr.msra.gmra.mxu2 %v6983_v38  ;;  %7022 = vmatmul.f32.gmra.mxu3 %v6987_v53  ;;  %v6988_v4 = vsub.f32 %v6960_v2, %v6987_v53 }
 0xc21   :  { %7231 = vmatpush.msra.mxu2 %v13499_v42 }
 0xc22   :  { %7051 = vmatmul.f32.gmra.mxu0 %v6988_v4  ;;  %v6989_v31 = vand.u32 4294901760, %v6988_v4 }
 0xc24   :  { %7081 = vmatmul.f32.gmra.mxu1 %v6989_v31  ;;  %v6990_v34 = vsub.f32 %v6988_v4, %v6989_v31 }
 0xc26   :  { %v6991_v61 = vand.u32 4294901760, %v6990_v34 }
 0xc28   :  { %6992 = vmatmul.f32.gmra.mxu2 %v6991_v61  ;;  %7131 = vmatmul.f32.vlgmr.msrb.gmra.mxu3 %v6979_v19 }
 0xc29   :  { %7385 = vmatpush.msrb.mxu3 %v13500_v58 }
 0xc2a   :  { %7172 = vmatmul.f32.vlgmr.msra.gmra.mxu0 %v6983_v38 }
 0xc2b   :  { %7391 = vmatpush.msrb.mxu3 %v13501_v37  ;;  %7417 = vmatpush.msra.mxu0 %v13502_v25 }
 0xc2c   :  { %7206 = vmatmul.f32.vlgmr.msra.gmra.mxu1 %v6979_v19 }
 0xc2d   :  { %7420 = vmatpush.msra.mxu0 %v13503_v36  ;;  %7447 = vmatpush.msra.mxu1 %v13504_v43 }
 0xc2f   :  { %7449 = vmatpush.msra.mxu1 %v13505_v12 }
 0xc30   :  { %7105 = vmatmul.f32.vlgmr.msrb.gmra.mxu2 %v6979_v19  ;;  %7135 = vmatmul.f32.gmra.mxu3 %v6987_v53 }
 0xc31   :  { %7346 = vmatpush.msrb.mxu2 %v13504_v43 }
 0xc32   :  { %7180 = vmatmul.f32.gmra.mxu0 %v6991_v61 }
 0xc33   :  { %7348 = vmatpush.msrb.mxu2 %v13505_v12 }
 0xc34   :  { %7210 = vmatmul.f32.gmra.mxu1 %v6987_v53 }
 0xc38   :  { %7109 = vmatmul.f32.gmra.mxu2 %v6987_v53  ;;  %7263 = vmatmul.f32.vlgmr.msra.gmra.mxu3 %v6981_v45 }
 0xc39   :  { %7509 = vmatpush.msra.mxu3 %v13504_v43  ;;  %v8472_v43 = vld [vmem:[%s12364_s2 + $0x288] sm:$0xff] }
 0xc3a   :  { %7293 = vmatmul.f32.vlgmr.msrb.gmra.mxu0 %v6979_v19 }
 0xc3b   :  { %7511 = vmatpush.msra.mxu3 %v13505_v12  ;;  %7562 = vmatpush.msrb.mxu0 %v11895_v47 }
 0xc3c   :  { %7319 = vmatmul.f32.vlgmr.msrb.gmra.mxu1 %v6979_v19 }
 0xc3d   :  { %7601 = vmatpush.msrb.mxu1 %v11965_v32  ;;  %7564 = vmatpush.msrb.mxu0 %v11898_v16  ;;  %v12217_v32 = vand.u32 4294901760, %v12184_v15 }
 0xc3f   :  { %7607 = vmatpush.msrb.mxu1 %v11971_v28  ;;  %v13509_v28 = vld [vmem:[#allocation237_spill] sm:$0xff]  ;;  %v12230_v51 = vsub.f32 %v12184_v15, %v12217_v32 }
 0xc40   :  { %7234 = vmatmul.f32.vlgmr.msra.gmra.mxu2 %v6980_v3  ;;  %7269 = vmatmul.f32.gmra.mxu3 %v6989_v31 }
 0xc41   :  { %7480 = vmatpush.msra.mxu2 %v13506_v60 }
 0xc42   :  { %7297 = vmatmul.f32.gmra.mxu0 %v6987_v53 }
 0xc43   :  { %7484 = vmatpush.msra.mxu2 %v13507_v8  ;;  %v8473_v8 = vld [vmem:[%s12364_s2 + $0x290] sm:$0xff] }
 0xc44   :  { %7323 = vmatmul.f32.gmra.mxu1 %v6987_v53 }
 0xc48   :  { %7239 = vmatmul.f32.gmra.mxu2 %v6988_v4  ;;  %7393 = vmatmul.f32.vlgmr.msrb.gmra.mxu3 %v13508_v14 }
 0xc49   :  { %7663 = vmatpush.msrb.mxu3 %v11895_v47 }
 0xc4a   :  { %7423 = vmatmul.f32.vlgmr.msra.gmra.mxu0 %v13509_v28 }
 0xc4b   :  { %7665 = vmatpush.msrb.mxu3 %v11898_v16  ;;  %7696 = vmatpush.msra.mxu0 %v11957_v23  ;;  %v7824_v23 = vand.u32 4294901760, %v12230_v51 }
 0xc4c   :  { %7453 = vmatmul.f32.vlgmr.msra.gmra.mxu1 %v13510_v57 }
 0xc4d   :  { %7725 = vmatpush.msra.mxu1 %v11895_v47  ;;  %7700 = vmatpush.msra.mxu0 %v11962_v52  ;;  %v7819_v47 = vsub.f32 %v12223_v21, %v7818_v62  ;;  %v13514_v52 = vld [vmem:[#allocation232_spill] sm:$0xff] }
 0xc4f   :  { %7727 = vmatpush.msra.mxu1 %v11898_v16  ;;  %v7825_v16 = vsub.f32 %v12230_v51, %v7824_v23  ;;  %v7820_v15 = vand.u32 4294901760, %v7819_v47 }
 0xc50   :  { %7354 = vmatmul.f32.vlgmr.msrb.gmra.mxu2 %v13511_v22  ;;  %7397 = vmatmul.f32.gmra.mxu3 %v13512_v40 }
 0xc51   :  { %7633 = vmatpush.msrb.mxu2 %v11924_v39  ;;  %v7826_v39 = vand.u32 4294901760, %v7825_v16 }
 0xc52   :  { %7428 = vmatmul.f32.gmra.mxu0 %v13513_v29 }
 0xc53   :  { %7636 = vmatpush.msrb.mxu2 %v11928_v44 }
 0xc54   :  { %7459 = vmatmul.f32.gmra.mxu1 %v13514_v52 }
 0xc58   :  { %7362 = vmatmul.f32.gmra.mxu2 %v13515_v27  ;;  %7513 = vmatmul.f32.vlgmr.msra.gmra.mxu3 %v13508_v14 }
 0xc59   :  { %7821 = vmatpush.msra.mxu3 %v7820_v15 }
 0xc5b   :  { %7827 = vmatpush.msra.mxu3 %v7826_v39 }
 0xc60   :  { %7486 = vmatmul.f32.vlgmr.msra.gmra.mxu2 %v13508_v14  ;;  %7517 = vmatmul.f32.gmra.mxu3 %v13512_v40 }
 0xc61   :  { %7782 = vmatpush.msra.mxu2 %v12213_v48 }
 0xc63   :  { %7784 = vmatpush.msra.mxu2 %v12217_v32 }
 0xc68   :  { %7490 = vmatmul.f32.gmra.mxu2 %v13512_v40 }
 0xc97   :  { %v7047_v41 = vpop.f32.mrf.mxu0 }
 0xc99   :  { %v7076_v50 = vpop.f32.mrf.mxu1 }
 0xc9b   :  { %v7019_v44 = vpop.f32.mrf.mxu3 }
 0xc9f   :  { %v7052_v46 = vpop.f32.mrf.mxu0 }
 0xca1   :  { %v7082_v45 = vpop.f32.mrf.mxu1 }
 0xca3   :  { %v6985_v6 = vpop.f32.mrf.mxu2  ;;  %v7023_v20 = vpop.f32.mrf.mxu3 }
 0xca4   :  { %v7020_v3 = vadd.f32 %v7019_v44, %v6985_v6 }
 0xca6   :  { %v7048_v5 = vadd.f32 %v7047_v41, %v7020_v3 }
 0xca7   :  { %v7173_v56 = vpop.f32.mrf.mxu0 }
 0xca8   :  { %v7077_v38 = vadd.f32 %v7076_v50, %v7048_v5 }
 0xca9   :  { %v7207_v31 = vpop.f32.mrf.mxu1 }
 0xcab   :  { %v6993_v54 = vpop.f32.mrf.mxu2  ;;  %v7132_v19 = vpop.f32.mrf.mxu3 }
 0xcac   :  { %v7024_v13 = vadd.f32 %v7023_v20, %v6993_v54 }
 0xcae   :  { %v7053_v4 = vadd.f32 %v7052_v46, %v7024_v13 }
 0xcaf   :  { %v7181_v25 = vpop.f32.mrf.mxu0 }
 0xcb0   :  { %v7083_v61 = vadd.f32 %v7082_v45, %v7053_v4 }
 0xcb1   :  { %v7211_v28 = vpop.f32.mrf.mxu1 }
 0xcb3   :  { %v7106_v2 = vpop.f32.mrf.mxu2  ;;  %v7136_v53 = vpop.f32.mrf.mxu3 }
 0xcb4   :  { %v7107_v42 = vadd.f32 %v7106_v2, %v7077_v38 }
 0xcb6   :  { %v7133_v34 = vadd.f32 %v7132_v19, %v7107_v42 }
 0xcb7   :  { %v7294_v52 = vpop.f32.mrf.mxu0 }
 0xcb8   :  { %v7139_v12 = vmul.f32 %v8472_v43, %v7133_v34 }
 0xcb9   :  { %v7320_v39 = vpop.f32.mrf.mxu1 }
 0xcba   :  { %v7141_v57 = vsel %vm862_vm2, %v7139_v12, 0.0 }
 0xcbb   :  { %v7110_v58 = vpop.f32.mrf.mxu2  ;;  %v7264_v36 = vpop.f32.mrf.mxu3 }
 0xcbc   :  { %v7111_v37 = vadd.f32 %v7110_v58, %v7083_v61 }
 0xcbe   :  { %v7137_v60 = vadd.f32 %v7136_v53, %v7111_v37  ;;  %v6509_v37 = vadd.f32 %v12165_v7, %v12174_v30 }
 0xcbf   :  { %v7298_v46 = vpop.f32.mrf.mxu0 }
 0xcc0   :  { %v7140_v14 = vmul.f32 %v8473_v8, %v7137_v60 }
 0xcc1   :  { %v7324_v5 = vpop.f32.mrf.mxu1 }
 0xcc2   :  { %v7142_v22 = vsel %vm862_vm2, %v7140_v14, 0.0 }
 0xcc3   :  { %v7143_v40 = vadd.f32 %v7142_v22, %v7141_v57  ;;  %v7235_v29 = vpop.f32.mrf.mxu2  ;;  %v7270_v15 = vpop.f32.mrf.mxu3 }
 0xcc5   :  { %v7144_v47 = vrot.slane %v7143_v40, 4 }
 0xcc7   :  { %v7145_v16 = vadd.f32 %v7144_v47, %v7143_v40  ;;  %v7424_v4 = vpop.f32.mrf.mxu0  ;;  %v6656_v47 = vpop.xlane.xlu2 %6655 }
 0xcc9   :  { %v7146_v27 = vrot.slane %v7145_v16, 2  ;;  %v7454_v43 = vpop.f32.mrf.mxu1 }
 0xccb   :  { %v7147_v44 = vadd.f32 %v7146_v27, %v7145_v16  ;;  %v7240_v41 = vpop.f32.mrf.mxu2  ;;  %v7394_v20 = vpop.f32.mrf.mxu3 }
 0xccd   :  { %v7148_v50 = vrot.slane %v7147_v44, 1 }
 0xccf   :  { %v7149_v6 = vadd.f32 %v7148_v50, %v7147_v44  ;;  %v7429_v57 = vpop.f32.mrf.mxu0 }
 0xcd1   :  { %v7174_v54 = vadd.f32 %v7173_v56, %v7149_v6  ;;  %v7182_v3 = vadd.f32 %v7181_v25, %v7149_v6  ;;  %v7460_v30 = vpop.f32.mrf.mxu1 }
 0xcd3   :  { %v7208_v19 = vadd.f32 %v7207_v31, %v7174_v54  ;;  %v7355_v45 = vpop.f32.mrf.mxu2  ;;  %v7212_v53 = vadd.f32 %v7211_v28, %v7182_v3  ;;  %v7398_v38 = vpop.f32.mrf.mxu3  ;;  %v6539_v31 = vadd.f32 %v12167_v63, %v6509_v37  ;;  %v12270_v63 = vsub.f32 %v12176_v0, %v6656_v47 }
 0xcd4   :  { %v7395_v42 = vadd.f32 %v7394_v20, %v7355_v45 }
 0xcd5   :  { %v7236_v13 = vadd.f32 %v7235_v29, %v7208_v19  ;;  %v7241_v61 = vadd.f32 %v7240_v41, %v7212_v53  ;;  %v6568_v40 = vadd.f32 %v12170_v24, %v6539_v31  ;;  %v6662_v19 = vmul.f32 1.442695, %v12270_v63 }
 0xcd6   :  { %v7425_v12 = vadd.f32 %v7424_v4, %v7395_v42 }
 0xcd7   :  { %v7265_v2 = vadd.f32 %v7264_v36, %v7236_v13  ;;  %v7271_v60 = vadd.f32 %v7270_v15, %v7241_v61  ;;  %v6598_v15 = vadd.f32 %v12172_v59, %v6568_v40  ;;  %8429 = vpow2.f32 %v6662_v19 }
 0xcd8   :  { %v7455_v14 = vadd.f32 %v7454_v43, %v7425_v12 }
 0xcd9   :  { %v7295_v34 = vadd.f32 %v7294_v52, %v7265_v2  ;;  %v7299_v36 = vadd.f32 %v7298_v46, %v7271_v60  ;;  %v6626_v41 = vadd.f32 %v12182_v49, %v6598_v15 }
 0xcdb   :  { %v7363_v58 = vpop.f32.mrf.mxu2  ;;  %v7321_v56 = vadd.f32 %v7320_v39, %v7295_v34  ;;  %v7514_v25 = vpop.f32.mrf.mxu3  ;;  %v7325_v44 = vadd.f32 %v7324_v5, %v7299_v36  ;;  %v12276_v59 = vadd.f32 %v12180_v9, %v6626_v41 }
 0xcdc   :  { %v7399_v8 = vadd.f32 %v7398_v38, %v7363_v58 }
 0xcdd   :  { %v7327_v22 = vmul.f32 0.2, %v7321_v56  ;;  %v7328_v46 = vmul.f32 0.2, %v7325_v44  ;;  %v6657_v5 = vsel %vm5254_vm12, %v12276_v59, -inf  ;;  %v8430_v13 = vpop.eup %8429 }
 0xcde   :  { %v7430_v16 = vadd.f32 %v7429_v57, %v7399_v8  ;;  %v6666_v2 = vsel %vm5254_vm12, %v8430_v13, 0.0 }
 0xcdf   :  { %v7329_v27 = vmax.f32 %v7321_v56, %v7327_v22  ;;  %v7330_v45 = vmax.f32 %v7325_v44, %v7328_v46 }
 0xce0   :  { %v7461_v50 = vadd.f32 %v7460_v30, %v7430_v16 }
 0xce3   :  { %v7487_v28 = vpop.f32.mrf.mxu2  ;;  %v7518_v20 = vpop.f32.mrf.mxu3 }
 0xce4   :  { %v7488_v29 = vadd.f32 %v7487_v28, %v7455_v14 }
 0xce6   :  { %v7515_v52 = vadd.f32 %v7514_v25, %v7488_v29 }
 0xce8   :  { %vm7521_vm1 = vcmp.gt.f32.partialorder %v7515_v52, 0.0 }
 0xce9   :  { %v7523_v39 = vsel %vm7521_vm1, %v7329_v27, -1e+30 }
 0xcea   :  { %v7525_v6 = vsel %vm862_vm2, %v7523_v39, -inf }
 0xceb   :  { %v7491_v24 = vpop.f32.mrf.mxu2  ;;  %7526 = vmax.xlane.f32.xlu0 %v7525_v6 }
 0xcec   :  { %v7492_v54 = vadd.f32 %v7491_v24, %v7461_v50 }
 0xcee   :  { %v7519_v3 = vadd.f32 %v7518_v20, %v7492_v54 }
 0xcf0   :  { %vm7522_vm11 = vcmp.gt.f32.partialorder %v7519_v3, 0.0 }
 0xcf1   :  { %v7524_v0 = vsel %vm7522_vm11, %v7330_v45, -1e+30 }
 0xcf2   :  { %v7528_v49 = vsel %vm862_vm2, %v7524_v0, -inf }
 0xcf3   :  { %7529 = vmax.xlane.f32.xlu1 %v7528_v49  ;;  %6658 = vmax.xlane.f32.xlu0 %v6657_v5 }
 0xcfb   :  { %6667 = vadd.xlane.f32.xlu0 %v6666_v2 }
 0xd5e   :  { %v7527_v53 = vpop.xlane.xlu0 %7526 }
 0xd5f   :  { %v7531_v38 = vsub.f32 %v7329_v27, %v7527_v53 }
 0xd61   :  { %v7533_v4 = vmin.f32 %v7531_v38, 0.0 }
 0xd63   :  { %v7535_v9 = vmul.f32 1.442695, %v7533_v4 }
 0xd65   :  { %8431 = vpow2.f32 %v7535_v9 }
 0xd66   :  { %v7530_v42 = vpop.xlane.xlu1 %7529  ;;  %v12282_v34 = vpop.xlane.xlu0 %6658 }
 0xd67   :  { %v7532_v61 = vsub.f32 %v7330_v45, %v7530_v42 }
 0xd69   :  { %v7534_v58 = vmin.f32 %v7532_v61, 0.0 }
 0xd6b   :  { %v8432_v37 = vpop.eup %8431  ;;  %v7537_v43 = vmul.f32 1.442695, %v7534_v58 }
 0xd6c   :  { %v12284_v12 = vmul.f32 %v8432_v37, %v7515_v52 }
 0xd6d   :  { %8433 = vpow2.f32 %v7537_v43 }
 0xd6e   :  { %v7542_v60 = vsel %vm862_vm2, %v12284_v12, 0  ;;  %v6668_v56 = vpop.xlane.xlu0 %6667 }
 0xd6f   :  { %8435 = vlog2.f32 %v6668_v56  ;;  %v7565_v31 = vand.u32 4294901760, %v7542_v60 }
 0xd71   :  { %7609 = vmatmul.f32.vlgmr.msrb.gmra.mxu1 %v7565_v31  ;;  %v7566_v25 = vsub.f32 %v7542_v60, %v7565_v31 }
 0xd72   :  { %7883 = vmatpush.msrb.mxu1 %v12213_v48 }
 0xd73   :  { %v8434_v8 = vpop.eup %8433  ;;  %7639 = vmatmul.f32.vlgmr.msrb.gmra.mxu2 %v7566_v25  ;;  %v7567_v14 = vand.u32 4294901760, %v7566_v25 }
 0xd74   :  { %v12289_v36 = vmul.f32 %v8434_v8, %v7519_v3  ;;  %7885 = vmatpush.msrb.mxu1 %v12217_v32  ;;  %7916 = vmatpush.msrb.mxu2 %v7818_v62 }
 0xd75   :  { %v8436_v28 = vpop.eup %8435  ;;  %7669 = vmatmul.f32.vlgmr.msrb.gmra.mxu3 %v7567_v14  ;;  %v7568_v57 = vsub.f32 %v7566_v25, %v7567_v14 }
 0xd76   :  { %v6673_v22 = vmul.f32 0.6931472, %v8436_v28  ;;  %7920 = vmatpush.msrb.mxu2 %v7824_v23  ;;  %7945 = vmatpush.msrb.mxu3 %v12213_v48  ;;  %v7545_v40 = vsel %vm862_vm2, %v12289_v36, 0 }
 0xd77   :  { %v7569_v29 = vand.u32 4294901760, %v7568_v57  ;;  %v7573_v47 = vand.u32 4294901760, %v7545_v40 }
 0xd78   :  { %v6676_v52 = vsub.f32 %v12270_v63, %v6673_v22  ;;  %7947 = vmatpush.msrb.mxu3 %v12217_v32  ;;  %v13516_v32 = vld [vmem:[#allocation81_spill] sm:$0xff] }
 0xd79   :  { %7570 = vmatmul.f32.vlgmr.msrb.gmra.mxu0 %v7569_v29  ;;  %7613 = vmatmul.f32.gmra.mxu1 %v7573_v47  ;;  %v7574_v62 = vsub.f32 %v7545_v40, %v7573_v47 }
 0xd7a   :  { %6678 = vst.msk [vmem:[%s12367_s3] sm:$0xff] %vm5254_vm12, %v6676_v52  ;;  %7853 = vmatpush.msrb.mxu0 %v12223_v21  ;;  %v13517_v21 = vld [vmem:[#allocation86_spill] sm:$0xff] }
 0xd7b   :  { %7644 = vmatmul.f32.gmra.mxu2 %v7574_v62  ;;  %v7575_v48 = vand.u32 4294901760, %v7574_v62 }
 0xd7c   :  { %7856 = vmatpush.msrb.mxu0 %v12230_v51 }
 0xd7d   :  { %7675 = vmatmul.f32.gmra.mxu3 %v7575_v48  ;;  %v7576_v23 = vsub.f32 %v7574_v62, %v7575_v48 }
 0xd7f   :  { %v7577_v16 = vand.u32 4294901760, %v7576_v23 }
 0xd81   :  { %7578 = vmatmul.f32.gmra.mxu0 %v7577_v16  ;;  %7729 = vmatmul.f32.vlgmr.msra.gmra.mxu1 %v7565_v31 }
 0xd83   :  { %7790 = vmatmul.f32.vlgmr.msra.gmra.mxu2 %v12017_v18  ;;  %v13518_v18 = vld [vmem:[#allocation79_spill] sm:$0xff] }
 0xd85   :  { %7829 = vmatmul.f32.vlgmr.msra.gmra.mxu3 %v11984_v17 }
 0xd89   :  { %7702 = vmatmul.f32.vlgmr.msra.gmra.mxu0 %v7565_v31  ;;  %7733 = vmatmul.f32.gmra.mxu1 %v7573_v47 }
 0xd8b   :  { %7798 = vmatmul.f32.gmra.mxu2 %v12026_v10 }
 0xd8d   :  { %7833 = vmatmul.f32.gmra.mxu3 %v12007_v11 }
 0xd91   :  { %7706 = vmatmul.f32.gmra.mxu0 %v7573_v47  ;;  %7889 = vmatmul.f32.vlgmr.msrb.gmra.mxu1 %v12005_v55 }
 0xd93   :  { %7922 = vmatmul.f32.vlgmr.msrb.gmra.mxu2 %v11984_v17 }
 0xd95   :  { %7949 = vmatmul.f32.vlgmr.msrb.gmra.mxu3 %v11984_v17 }
 0xd99   :  { %7859 = vmatmul.f32.vlgmr.msrb.gmra.mxu0 %v13516_v32  ;;  %7895 = vmatmul.f32.gmra.mxu1 %v13517_v21 }
 0xd9b   :  { %7926 = vmatmul.f32.gmra.mxu2 %v12007_v11 }
 0xd9d   :  { %7953 = vmatmul.f32.gmra.mxu3 %v12007_v11 }
 0xda1   :  { %7864 = vmatmul.f32.gmra.mxu0 %v13518_v18 }
 0xdee   :  { %v7610_v10 = vpop.f32.mrf.mxu1 }
 0xdf6   :  { %v7571_v51 = vpop.f32.mrf.mxu0  ;;  %v7640_v30 = vpop.f32.mrf.mxu2 }
 0xdf7   :  { %v7614_v27 = vpop.f32.mrf.mxu1  ;;  %v7611_v55 = vadd.f32 %v7610_v10, %v7571_v51  ;;  %v8474_v51 = vld [vmem:[%s12364_s2 + $0x2a8] sm:$0xff] }
 0xdf8   :  { %v7670_v44 = vpop.f32.mrf.mxu3 }
 0xdf9   :  { %v7641_v17 = vadd.f32 %v7640_v30, %v7611_v55 }
 0xdfb   :  { %v7671_v50 = vadd.f32 %v7670_v44, %v7641_v17 }
 0xdfe   :  { %v7579_v15 = vpop.f32.mrf.mxu0  ;;  %v7645_v63 = vpop.f32.mrf.mxu2 }
 0xdff   :  { %v7730_v41 = vpop.f32.mrf.mxu1  ;;  %v7615_v6 = vadd.f32 %v7614_v27, %v7579_v15 }
 0xe00   :  { %v7676_v39 = vpop.f32.mrf.mxu3 }
 0xe01   :  { %v7646_v11 = vadd.f32 %v7645_v63, %v7615_v6 }
 0xe03   :  { %v7677_v45 = vadd.f32 %v7676_v39, %v7646_v11 }
 0xe06   :  { %v7703_v24 = vpop.f32.mrf.mxu0  ;;  %v7791_v46 = vpop.f32.mrf.mxu2 }
 0xe07   :  { %v7704_v20 = vadd.f32 %v7703_v24, %v7671_v50  ;;  %v7734_v3 = vpop.f32.mrf.mxu1 }
 0xe08   :  { %v7830_v54 = vpop.f32.mrf.mxu3 }
 0xe09   :  { %v7731_v19 = vadd.f32 %v7730_v41, %v7704_v20  ;;  %v7831_v61 = vadd.f32 %v7830_v54, %v7791_v46 }
 0xe0b   :  { %8437 = vrcp.f32 %v7731_v19  ;;  %v7748_v42 = vand.u32 2147483648, %v7731_v19  ;;  %v7746_v37 = vand.u32 2147483647, %v7731_v19  ;;  %vm7742_vm14 = vweird.f32 %v7731_v19 }
 0xe0d   :  { %v7749_v14 = vor.u32 1.1754944e-38, %v7748_v42  ;;  %vm7747_vm0 = vcmp.eq.f32.partialorder %v7746_v37, 8.507059e+37 }
 0xe0e   :  { %v7707_v0 = vpop.f32.mrf.mxu0  ;;  %v7799_v5 = vpop.f32.mrf.mxu2 }
 0xe0f   :  { %v7708_v49 = vadd.f32 %v7707_v0, %v7677_v45  ;;  %v7890_v9 = vpop.f32.mrf.mxu1 }
 0xe10   :  { %v7834_v13 = vpop.f32.mrf.mxu3 }
 0xe11   :  { %v8438_v2 = vpop.eup %8437  ;;  %v7735_v53 = vadd.f32 %v7734_v3, %v7708_v49  ;;  %v7835_v48 = vadd.f32 %v7834_v13, %v7799_v5 }
 0xe12   :  { %v7738_v38 = vmul.f32 %v8438_v2, %v7731_v19  ;;  %vm7743_vm13 = vweird.f32 %v8438_v2  ;;  %v8475_v19 = vld [vmem:[%s12364_s2 + $0x2b0] sm:$0xff] }
 0xe13   :  { %8439 = vrcp.f32 %v7735_v53  ;;  %vm7744_vm15 = vmor %vm7742_vm14, %vm7743_vm13  ;;  %v7763_v62 = vand.u32 2147483648, %v7735_v53  ;;  %v7761_v32 = vand.u32 2147483647, %v7735_v53  ;;  %vm7757_vm4 = vweird.f32 %v7735_v53 }
 0xe14   :  { %v7739_v4 = vsub.f32 1.0, %v7738_v38 }
 0xe15   :  { %v7764_v15 = vor.u32 1.1754944e-38, %v7763_v62  ;;  %vm7762_vm6 = vcmp.eq.f32.partialorder %v7761_v32, 8.507059e+37 }
 0xe16   :  { %v7740_v58 = vmul.f32 %v8438_v2, %v7739_v4  ;;  %v7860_v43 = vpop.f32.mrf.mxu0  ;;  %v7923_v56 = vpop.f32.mrf.mxu2 }
 0xe17   :  { %v7861_v60 = vadd.f32 %v7860_v43, %v7831_v61  ;;  %v7896_v18 = vpop.f32.mrf.mxu1 }
 0xe18   :  { %v7741_v31 = vadd.f32 %v8438_v2, %v7740_v58  ;;  %v7950_v25 = vpop.f32.mrf.mxu3 }
 0xe19   :  { %v8440_v8 = vpop.eup %8439  ;;  %v7891_v28 = vadd.f32 %v7890_v9, %v7861_v60 }
 0xe1a   :  { %v7745_v57 = vsel %vm7744_vm15, %v8438_v2, %v7741_v31  ;;  %v7753_v22 = vmul.f32 %v8440_v8, %v7735_v53  ;;  %vm7758_vm3 = vweird.f32 %v8440_v8 }
 0xe1b   :  { %v7750_v40 = vsel %vm7747_vm0, %v7749_v14, %v7745_v57  ;;  %v7924_v29 = vadd.f32 %v7923_v56, %v7891_v28  ;;  %vm7759_vm5 = vmor %vm7757_vm4, %vm7758_vm3 }
 0xe1c   :  { %v7751_v47 = vmul.f32 %v7750_v40, %v12284_v12  ;;  %v7754_v52 = vsub.f32 1.0, %v7753_v22 }
 0xe1d   :  { %v7951_v23 = vadd.f32 %v7950_v25, %v7924_v29 }
 0xe1e   :  { %v7755_v16 = vmul.f32 %v8440_v8, %v7754_v52  ;;  %v7865_v21 = vpop.f32.mrf.mxu0  ;;  %v7960_v10 = vsel %vm862_vm2, %v7751_v47, 0  ;;  %v7927_v55 = vpop.f32.mrf.mxu2 }
 0xe1f   :  { %v7957_v30 = vmul.f32 %v8474_v51, %v7951_v23  ;;  %v7866_v27 = vadd.f32 %v7865_v21, %v7835_v48  ;;  %v12324_v44 = vand.u32 4294901760, %v7960_v10 }
 0xe20   :  { %v7756_v12 = vadd.f32 %v8440_v8, %v7755_v16  ;;  %v7954_v17 = vpop.f32.mrf.mxu3 }
 0xe21   :  { %v7897_v63 = vadd.f32 %v7896_v18, %v7866_v27  ;;  %v7984_v39 = vsub.f32 %v7960_v10, %v12324_v44  ;;  %v7981_v50 = vand.u32 4294901760, %v7957_v30 }
 0xe22   :  { %v7760_v41 = vsel %vm7759_vm5, %v8440_v8, %v7756_v12 }
 0xe23   :  { %v7928_v6 = vadd.f32 %v7927_v55, %v7897_v63  ;;  %v7765_v24 = vsel %vm7762_vm6, %v7764_v15, %v7760_v41  ;;  %v7985_v20 = vand.u32 4294901760, %v7984_v39  ;;  %v8021_v45 = vsub.f32 %v7957_v30, %v7981_v50 }
 0xe24   :  { %v7766_v46 = vmul.f32 %v7765_v24, %v12289_v36 }
 0xe25   :  { %v7955_v54 = vadd.f32 %v7954_v17, %v7928_v6  ;;  %v7986_v49 = vsub.f32 %v7984_v39, %v7985_v20  ;;  %v8022_v53 = vand.u32 4294901760, %v8021_v45 }
 0xe26   :  { %v7963_v11 = vsel %vm862_vm2, %v7766_v46, 0 }
 0xe27   :  { %v7958_v3 = vmul.f32 %v8475_v19, %v7955_v54  ;;  %v7991_v0 = vand.u32 4294901760, %v7963_v11  ;;  %v7987_v38 = vand.u32 4294901760, %v7986_v49  ;;  %v8023_v42 = vsub.f32 %v8021_v45, %v8022_v53 }
 0xe28   :  { %v6661_v19 = vsub.f32 %v12276_v59, %v12282_v34 }
 0xe29   :  { %v7979_v5 = vand.u32 4294901760, %v7958_v3  ;;  %v7992_v13 = vsub.f32 %v7963_v11, %v7991_v0  ;;  %v8024_v37 = vand.u32 4294901760, %v8023_v42 }
 0xe2a   :  { %v6664_v49 = vmul.f32 1.442695, %v6661_v19 }
 0xe2b   :  { %v8015_v2 = vsub.f32 %v7958_v3, %v7979_v5  ;;  %7980 = vmatpush.msra.mxu0 %v7979_v5  ;;  %8081 = vmatpush.msra.mxu3 %v7979_v5  ;;  %v7993_v4 = vand.u32 4294901760, %v7992_v13 }
 0xe2c   :  { %8441 = vpow2.f32 %v6664_v49 }
 0xe2d   :  { %v8016_v36 = vand.u32 4294901760, %v8015_v2  ;;  %7982 = vmatpush.msra.mxu0 %v7981_v50  ;;  %8051 = vmatpush.msra.mxu2 %v8015_v2  ;;  %v7994_v61 = vsub.f32 %v7992_v13, %v7993_v4 }
 0xe2e   :  { %8083 = vmatpush.msra.mxu3 %v7981_v50  ;;  %7988 = vmatmul.f32.vlgmr.msra.gmra.mxu0 %v7987_v38 }
 0xe2f   :  { %8087 = vmatmul.f32.vlgmr.msra.gmra.mxu3 %v7985_v20  ;;  %8054 = vmatpush.msra.mxu2 %v8021_v45  ;;  %v8017_v9 = vsub.f32 %v8015_v2, %v8016_v36  ;;  %v7995_v43 = vand.u32 4294901760, %v7994_v61 }
 0xe30   :  { %8057 = vmatmul.f32.vlgmr.msra.gmra.mxu2 %v7984_v39  ;;  %8114 = vmatpush.msrb.mxu0 %v8016_v36 }
 0xe31   :  { %v8018_v58 = vand.u32 4294901760, %v8017_v9  ;;  %8215 = vmatpush.msrb.mxu3 %v12078_v33  ;;  %8177 = vmatpush.msrb.mxu2 %v12052_v35 }
 0xe32   :  { %8118 = vmatpush.msrb.mxu0 %v8022_v53 }
 0xe33   :  { %8328 = vmatpush.msra.mxu3 %v12052_v35  ;;  %8019 = vmatpush.msra.mxu1 %v8018_v58  ;;  %v8442_v58 = vpop.eup %8441 }
 0xe34   :  { %8242 = vmatpush.msra.mxu0 %v12059_v1  ;;  %8302 = vmatpush.msra.mxu2 %v12066_v26 }
 0xe35   :  { %8025 = vmatpush.msra.mxu1 %v8024_v37 }
 0xe36   :  { %7996 = vmatmul.f32.gmra.mxu0 %v7995_v43  ;;  %8027 = vmatmul.f32.vlgmr.msra.gmra.mxu1 %v12324_v44  ;;  %v6669_v43 = vsel %vm5254_vm12, %v8442_v58, 0.0 }
 0xe37   :  { %8093 = vmatmul.f32.gmra.mxu3 %v7993_v4  ;;  %8143 = vmatpush.msrb.mxu1 %v7979_v5 }
 0xe38   :  { %8062 = vmatmul.f32.gmra.mxu2 %v7992_v13 }
 0xe39   :  { %8145 = vmatpush.msrb.mxu1 %v7981_v50 }
 0xe3b   :  { %8270 = vmatpush.msra.mxu1 %v12052_v35 }
 0xe3e   :  { %8031 = vmatmul.f32.gmra.mxu1 %v7991_v0  ;;  %8120 = vmatmul.f32.vlgmr.msrb.gmra.mxu0 %v12324_v44 }
 0xe46   :  { %8124 = vmatmul.f32.gmra.mxu0 %v7991_v0  ;;  %8147 = vmatmul.f32.vlgmr.msrb.gmra.mxu1 %v12324_v44 }
 0xe4e   :  { %8151 = vmatmul.f32.gmra.mxu1 %v7991_v0 }
 0xeab   :  { %v7989_v1 = vpop.f32.mrf.mxu0 }
 0xeb2   :  { %v8088_v8 = vpop.f32.mrf.mxu3 }
 0xeb3   :  { %v7997_v33 = vpop.f32.mrf.mxu0  ;;  %v8028_v26 = vpop.f32.mrf.mxu1 }
 0xeb4   :  { %v8029_v60 = vadd.f32 %v8028_v26, %v7989_v1  ;;  %v8058_v56 = vpop.f32.mrf.mxu2 }
 0xeb6   :  { %v8059_v25 = vadd.f32 %v8058_v56, %v8029_v60 }
 0xeb8   :  { %v8089_v57 = vadd.f32 %v8088_v8, %v8059_v25 }
 0xeba   :  { %v8094_v62 = vpop.f32.mrf.mxu3 }
 0xebb   :  { %v8032_v31 = vpop.f32.mrf.mxu1  ;;  %v8121_v14 = vpop.f32.mrf.mxu0 }
 0xebc   :  { %v8033_v28 = vadd.f32 %v8032_v31, %v7997_v33  ;;  %v8122_v22 = vadd.f32 %v8121_v14, %v8089_v57  ;;  %v8063_v35 = vpop.f32.mrf.mxu2 }
 0xebe   :  { %v8064_v29 = vadd.f32 %v8063_v35, %v8033_v28 }
 0xec0   :  { %v8095_v16 = vadd.f32 %v8094_v62, %v8064_v29 }
 0xec3   :  { %v8148_v40 = vpop.f32.mrf.mxu1  ;;  %v8125_v48 = vpop.f32.mrf.mxu0 }
 0xec4   :  { %v8149_v47 = vadd.f32 %v8148_v40, %v8122_v22  ;;  %v8126_v21 = vadd.f32 %v8125_v48, %v8095_v16 }
 0xec6   :  { %v8156_v52 = vsel %vm5254_vm12, %v8149_v47, 0 }
 0xec7   :  { %v8178_v23 = vand.u32 4294901760, %v8156_v52 }
 0xec9   :  { %v8179_v32 = vsub.f32 %v8156_v52, %v8178_v23  ;;  %8217 = vmatmul.f32.vlgmr.msrb.gmra.mxu3 %v8178_v23 }
 0xecb   :  { %v8180_v18 = vand.u32 4294901760, %v8179_v32  ;;  %v8152_v10 = vpop.f32.mrf.mxu1  ;;  %8245 = vmatmul.f32.vlgmr.msra.gmra.mxu0 %v8179_v32 }
 0xecc   :  { %v8153_v51 = vadd.f32 %v8152_v10, %v8126_v21 }
 0xecd   :  { %v8181_v30 = vsub.f32 %v8179_v32, %v8180_v18  ;;  %8274 = vmatmul.f32.vlgmr.msra.gmra.mxu1 %v8180_v18 }
 0xece   :  { %v8159_v27 = vsel %vm5254_vm12, %v8153_v51, 0 }
 0xecf   :  { %v8182_v44 = vand.u32 4294901760, %v8181_v30  ;;  %v8186_v12 = vand.u32 4294901760, %v8159_v27 }
 0xed1   :  { %v8187_v55 = vsub.f32 %v8159_v27, %v8186_v12  ;;  %8183 = vmatmul.f32.vlgmr.msrb.gmra.mxu2 %v8182_v44  ;;  %8221 = vmatmul.f32.gmra.mxu3 %v8186_v12 }
 0xed3   :  { %8250 = vmatmul.f32.gmra.mxu0 %v8187_v55  ;;  %v8188_v15 = vand.u32 4294901760, %v8187_v55 }
 0xed5   :  { %8280 = vmatmul.f32.gmra.mxu1 %v8188_v15  ;;  %v8189_v63 = vsub.f32 %v8187_v55, %v8188_v15 }
 0xed7   :  { %v8190_v39 = vand.u32 4294901760, %v8189_v63 }
 0xed9   :  { %8191 = vmatmul.f32.gmra.mxu2 %v8190_v39  ;;  %8330 = vmatmul.f32.vlgmr.msra.gmra.mxu3 %v8178_v23 }
 0xee1   :  { %8304 = vmatmul.f32.vlgmr.msra.gmra.mxu2 %v8178_v23  ;;  %8334 = vmatmul.f32.gmra.mxu3 %v8186_v12 }
 0xee9   :  { %8308 = vmatmul.f32.gmra.mxu2 %v8186_v12 }
 0xf48   :  { %v8246_v20 = vpop.f32.mrf.mxu0 }
 0xf4a   :  { %v8275_v3 = vpop.f32.mrf.mxu1 }
 0xf4c   :  { %v8218_v17 = vpop.f32.mrf.mxu3 }
 0xf50   :  { %v8251_v53 = vpop.f32.mrf.mxu0 }
 0xf52   :  { %v8281_v9 = vpop.f32.mrf.mxu1 }
 0xf54   :  { %v8184_v41 = vpop.f32.mrf.mxu2  ;;  %v8222_v6 = vpop.f32.mrf.mxu3 }
 0xf55   :  { %v8185_v50 = vadd.f32 %v12165_v7, %v8184_v41 }
 0xf57   :  { %v8219_v24 = vadd.f32 %v8218_v17, %v8185_v50 }
 0xf59   :  { %v8247_v11 = vadd.f32 %v8246_v20, %v8219_v24 }
 0xf5b   :  { %v8276_v0 = vadd.f32 %v8275_v3, %v8247_v11 }
 0xf5c   :  { %v8192_v46 = vpop.f32.mrf.mxu2  ;;  %v8331_v5 = vpop.f32.mrf.mxu3 }
 0xf5d   :  { %v8193_v54 = vadd.f32 %v12165_v7, %v8192_v46 }
 0xf5f   :  { %v8223_v45 = vadd.f32 %v8222_v6, %v8193_v54 }
 0xf61   :  { %v8252_v4 = vadd.f32 %v8251_v53, %v8223_v45 }
 0xf63   :  { %v8282_v7 = vadd.f32 %v8281_v9, %v8252_v4 }
 0xf64   :  { %v8305_v13 = vpop.f32.mrf.mxu2  ;;  %v8335_v59 = vpop.f32.mrf.mxu3 }
 0xf65   :  { %v8306_v2 = vadd.f32 %v8305_v13, %v8276_v0 }
 0xf67   :  { %v8332_v38 = vadd.f32 %v8331_v5, %v8306_v2 }
 0xf69   :  { %v8338_v36 = vsel %vm5254_vm12, %v8332_v38, -inf }
 0xf6a   :  { %8339 = vmax.xlane.f32.xlu1 %v8338_v36 }
 0xf6c   :  { %v8309_v42 = vpop.f32.mrf.mxu2 }
 0xf6d   :  { %v8310_v61 = vadd.f32 %v8309_v42, %v8282_v7 }
 0xf6f   :  { %v8336_v34 = vadd.f32 %v8335_v59, %v8310_v61 }
 0xf71   :  { %v8341_v37 = vsel %vm5254_vm12, %v8336_v34, -inf }
 0xf72   :  { %8342 = vmax.xlane.f32.xlu2 %v8341_v37  ;;  %6670 = vadd.xlane.f32.xlu1 %v6669_v43 }
 0xfdd   :  { %v8340_v1 = vpop.xlane.xlu1 %8339 }
 0xfde   :  { %v8344_v33 = vsub.f32 %v8332_v38, %v8340_v1 }
 0xfe0   :  { %v8346_v26 = vmul.f32 1.442695, %v8344_v33 }
 0xfe2   :  { %8443 = vpow2.f32 %v8346_v26 }
 0xfe5   :  { %v8343_v60 = vpop.xlane.xlu2 %8342  ;;  %v6671_v56 = vpop.xlane.xlu1 %6670 }
 0xfe6   :  { %v8345_v31 = vsub.f32 %v8336_v34, %v8343_v60  ;;  %8445 = vlog2.f32 %v6671_v56 }
 0xfe8   :  { %v8444_v25 = vpop.eup %8443  ;;  %v8348_v8 = vmul.f32 1.442695, %v8345_v31 }
 0xfe9   :  { %v8350_v14 = vsel %vm5254_vm12, %v8444_v25, 0.0 }
 0xfea   :  { %8447 = vpow2.f32 %v8348_v8  ;;  %8351 = vadd.xlane.f32.xlu2 %v8350_v14 }
 0xfec   :  { %v8446_v28 = vpop.eup %8445 }
 0xfed   :  { %v6675_v57 = vmul.f32 0.6931472, %v8446_v28 }
 0xfef   :  { %v6677_v22 = vsub.f32 %v6661_v19, %v6675_v57 }
 0xff0   :  { %v8448_v35 = vpop.eup %8447 }
 0xff1   :  { %6679 = vst.msk [vmem:[%s12367_s3 + $0x8] sm:$0xff] %vm5254_vm12, %v6677_v22  ;;  %v8353_v40 = vsel %vm5254_vm12, %v8448_v35, 0.0 }
 0xff2   :  { %8354 = vadd.xlane.f32.xlu0 %v8353_v40 }
0x105d   :  { %v8352_v29 = vpop.xlane.xlu2 %8351 }
0x105e   :  { %8449 = vlog2.f32 %v8352_v29 }
0x1064   :  { %v8450_v47 = vpop.eup %8449 }
0x1065   :  { %v8357_v52 = vmul.f32 0.6931472, %v8450_v47  ;;  %v8355_v62 = vpop.xlane.xlu0 %8354 }
0x1066   :  { %8451 = vlog2.f32 %v8355_v62 }
0x1067   :  { %v8360_v48 = vsub.f32 %v8344_v33, %v8357_v52 }
0x1069   :  { %8377 = vst.msk [vmem:[%s12367_s3 + $0x10] sm:$0xff] %vm5254_vm12, %v8360_v48 }
0x106c   :  { %v8452_v23 = vpop.eup %8451 }
0x106d   :  { %v8359_v16 = vmul.f32 0.6931472, %v8452_v23 }
0x106f   :  { %v8361_v32 = vsub.f32 %v8345_v31, %v8359_v16 }
0x1071   :  { %8378 = vst.msk [vmem:[%s12367_s3 + $0x18] sm:$0xff] %vm5254_vm12, %v8361_v32 }

</bundles_post_ra>
